<compile_context>
chip_gen: v7x
topology: tpu7x:2x2x1
jax: 0.10.0
libtpu: 0.0.40
codegen_flags: <defaults>
</compile_context>

<pallas_src>
import numpy as np
import jax
import jax.numpy as jnp
from jax.experimental import pallas as pl
from jax.experimental.pallas import tpu as pltpu

PAD = 15        # max dilation (d=15): logical zero padding needed on H and W
ALLOC_PAD = 16  # allocated halo (>= PAD, multiple of 8 -> aligned interior store)


# ----------------------------------------------------------------------------
# Pallas kernel: full ASPP forward for one image (input NHWC, output (C, H*W)).
# ----------------------------------------------------------------------------
def aspp_kernel(x_ref,                          # (1, H, W, C) f32, unpadded
                wc_ref, bc_ref,                 # pooled-branch 1x1 conv (f32)
                w1_ref, b1_ref,                 # atrous_block1 (1x1, bf16 w)
                w3_ref, b3_ref,                 # atrous_block2 (3x3 d=3) as (9C, C) bf16
                w7_ref, b7_ref,                 # atrous_block4 (3x3 d=7) as (9C, C) bf16
                w15_ref, b15_ref,               # atrous_block8 (3x3 d=15) as (9C, C) bf16
                wop_ref, woc_ref, bo_ref,       # fusion conv split: (C,C) f32 / (4C,C) bf16
                out_ref,                        # (1, C, H*W) f32  (lane-dense store)
                xpad_ref):                      # VMEM scratch (H+2A, W+2A, C) f32
    _, H, W, C = x_ref.shape
    HW = H * W
    A = ALLOC_PAD

    x = x_ref[0]                                # (H, W, C) f32
    xc32 = x.reshape(HW, C)                     # center tap / 1x1 input, f32

    # ---- build zero-padded copy in VMEM (no halo bytes ever cross HBM) ----
    xpad_ref[...] = jnp.zeros_like(xpad_ref)
    xpad_ref[A:A + H, A:A + W, :] = x           # aligned interior store (offset 16)

    # ---- branch 0: AdaptiveAvgPool2d((1,1)) -> 1x1 conv ------------------
    # bilinear upsample of a 1x1 map == constant broadcast; no ReLU here.
    mean = jnp.mean(xc32, axis=0, keepdims=True)                        # (1, C)
    pooled = jnp.dot(mean, wc_ref[...],
                     preferred_element_type=jnp.float32) + bc_ref[...]  # (1, C)

    # ---- branch 1: 1x1 conv + ReLU (bf16 operands, f32 accumulate) --------
    xc_bf = xc32.astype(jnp.bfloat16)
    a1 = jnp.maximum(
        jnp.dot(xc_bf, w1_ref[...], preferred_element_type=jnp.float32)
        + b1_ref[...], 0.0)                                             # (HW, C)

    # ---- dilated 3x3 conv + ReLU: 9 shifted taps laid side-by-side along
    #      channels -> one deep-K (HW, 9C) @ (9C, C) MXU matmul per dilation.
    def atrous(w_ref, b_ref, d):
        taps = []
        for i in range(3):
            for j in range(3):
                oy = (i - 1) * d
                ox = (j - 1) * d
                if oy == 0 and ox == 0:
                    taps.append(x)              # reuse shared center tap
                else:
                    taps.append(xpad_ref[A + oy:A + oy + H,
                                         A + ox:A + ox + W, :])
        slab = jnp.concatenate(taps, axis=-1)                           # (H, W, 9C)
        slab = slab.reshape(HW, 9 * C).astype(jnp.bfloat16)             # (HW, 9C)
        acc = jnp.dot(slab, w_ref[...], preferred_element_type=jnp.float32)
        return jnp.maximum(acc + b_ref[...], 0.0)                       # (HW, C)

    a3 = atrous(w3_ref, b3_ref, 3)
    a7 = atrous(w7_ref, b7_ref, 7)
    a15 = atrous(w15_ref, b15_ref, 15)

    # ---- final 1x1 fusion conv over the implicit channel concat -----------
    # concat order [pooled, a1, a3, a7, a15] matches the (5C, C) weight split
    # done in the wrapper (rows 0:C -> pooled, rows C:5C -> [a1|a3|a7|a15]).
    cat = jnp.concatenate([a1, a3, a7, a15], axis=-1).astype(jnp.bfloat16)  # (HW, 4C)
    out = (jnp.dot(cat, woc_ref[...], preferred_element_type=jnp.float32)
           + jnp.dot(pooled, wop_ref[...], preferred_element_type=jnp.float32)
           + bo_ref[...])                                               # (HW, C) f32

    # lane-dense store: (C, HW) => last dim 256 (multiple of 128), unmasked vst.
    out_ref[0] = out.T


# ----------------------------------------------------------------------------
# Wrapper: NCHW in, NCHW out (like the PyTorch module).
# ----------------------------------------------------------------------------
def aspp_forward(x_nchw, params):
    N, C, H, W = x_nchw.shape
    x = jnp.transpose(x_nchw, (0, 2, 3, 1)).astype(jnp.float32)         # NHWC, unpadded
    A = ALLOC_PAD

    # Convert torch-layout weights (Cout, Cin, kH, kW) into kernel layouts.
    wc = params['conv_w'][:, :, 0, 0].T.astype(jnp.float32)             # (C, C)
    w1 = params['a1_w'][:, :, 0, 0].T.astype(jnp.bfloat16)              # (C, C)

    def slab_w(w):  # (Cout, Cin, 3, 3) -> (9*Cin, Cout), rows ordered (kh, kw, cin)
        return jnp.transpose(w, (2, 3, 1, 0)).reshape(9 * C, C).astype(jnp.bfloat16)

    w3, w7, w15 = slab_w(params['a3_w']), slab_w(params['a7_w']), slab_w(params['a15_w'])

    wo_full = params['out_w'][:, :, 0, 0].T                             # (5C, C)
    wo_pool = wo_full[:C].astype(jnp.float32)                           # (C, C)  pooled branch
    wo_cat = wo_full[C:].astype(jnp.bfloat16)                           # (4C, C) [a1|a3|a7|a15]

    def b2d(b):
        return b.reshape(1, C).astype(jnp.float32)

    weights = [wc, b2d(params['conv_b']),
               w1, b2d(params['a1_b']),
               w3, b2d(params['a3_b']),
               w7, b2d(params['a7_b']),
               w15, b2d(params['a15_b']),
               wo_pool, wo_cat, b2d(params['out_b'])]

    def const_spec(arr):
        nd = arr.ndim
        return pl.BlockSpec(arr.shape, lambda n, _nd=nd: (0,) * _nd)

    in_specs = ([pl.BlockSpec((1, H, W, C), lambda n: (n, 0, 0, 0))]
                + [const_spec(w) for w in weights])

    out_flat = pl.pallas_call(
        aspp_kernel,
        out_shape=jax.ShapeDtypeStruct((N, C, H * W), jnp.float32),
        grid_spec=pltpu.PrefetchScalarGridSpec(
            num_scalar_prefetch=0,
            grid=(N,),
            in_specs=in_specs,
            out_specs=pl.BlockSpec((1, C, H * W), lambda n: (n, 0, 0)),
            scratch_shapes=[pltpu.VMEM((H + 2 * A, W + 2 * A, C), jnp.float32)],
        ),
        compiler_params=pltpu.CompilerParams(
            dimension_semantics=("parallel",),
            vmem_limit_bytes=32 * 1024 * 1024),
    )(x, *weights)

    # (N, C, H*W) -> NCHW: a free reshape, no device transpose needed.
    return out_flat.reshape(N, C, H, W)


# ----------------------------------------------------------------------------
# Deterministic parameter init (PyTorch Conv2d default-style uniform bounds).
# ----------------------------------------------------------------------------
def init_params(key, C):
    ks = jax.random.split(key, 12)

    def u(k, shape, fan_in):
        bound = 1.0 / np.sqrt(fan_in)
        return jax.random.uniform(k, shape, jnp.float32, -bound, bound)

    return {
        'conv_w': u(ks[0], (C, C, 1, 1), C),      'conv_b': u(ks[1], (C,), C),
        'a1_w':   u(ks[2], (C, C, 1, 1), C),      'a1_b':   u(ks[3], (C,), C),
        'a3_w':   u(ks[4], (C, C, 3, 3), 9 * C),  'a3_b':   u(ks[5], (C,), 9 * C),
        'a7_w':   u(ks[6], (C, C, 3, 3), 9 * C),  'a7_b':   u(ks[7], (C,), 9 * C),
        'a15_w':  u(ks[8], (C, C, 3, 3), 9 * C),  'a15_b':  u(ks[9], (C,), 9 * C),
        'out_w':  u(ks[10], (C, 5 * C, 1, 1), 5 * C),
        'out_b':  u(ks[11], (C,), 5 * C),
    }


# ----------------------------------------------------------------------------
# Pure-JAX reference (NCHW, full f32) for correctness checking.
# ----------------------------------------------------------------------------
def ref_aspp(x, p):
    def conv2d(inp, w, b, dilation=1, padding=0):
        y = jax.lax.conv_general_dilated(
            inp, w, window_strides=(1, 1),
            padding=[(padding, padding), (padding, padding)],
            rhs_dilation=(dilation, dilation),
            dimension_numbers=('NCHW', 'OIHW', 'NCHW'))
        return y + b[None, :, None, None]

    N, C, H, W = x.shape
    mean = jnp.mean(x, axis=(2, 3), keepdims=True)
    imf = conv2d(mean, p['conv_w'], p['conv_b'])
    imf = jnp.broadcast_to(imf, (N, C, H, W))  # bilinear upsample of 1x1 == broadcast
    a1 = jax.nn.relu(conv2d(x, p['a1_w'], p['a1_b']))
    a3 = jax.nn.relu(conv2d(x, p['a3_w'], p['a3_b'], dilation=3, padding=3))
    a7 = jax.nn.relu(conv2d(x, p['a7_w'], p['a7_b'], dilation=7, padding=7))
    a15 = jax.nn.relu(conv2d(x, p['a15_w'], p['a15_b'], dilation=15, padding=15))
    cat = jnp.concatenate([imf, a1, a3, a7, a15], axis=1)
    return conv2d(cat, p['out_w'], p['out_b'])


if __name__ == "__main__":
    # Small shapes consistent with the module (ASPP is channel-preserving):
    # batch=2, channels=32, spatial=16x16, NCHW like the PyTorch forward.
    N, C, H, W = 2, 32, 16, 16
    key = jax.random.PRNGKey(0)
    kx, kp = jax.random.split(key)
    x = jax.random.normal(kx, (N, C, H, W), jnp.float32)
    params = init_params(kp, C)

    out = aspp_forward(x, params)
    out = jax.block_until_ready(out)

    ref = jax.block_until_ready(ref_aspp(x, params))
    # bf16 MXU operands (f32 accumulation) => tolerance is set for bf16
    # rounding of activations/weights; an algorithmic bug would be >> 0.05.
    np.testing.assert_allclose(np.asarray(out), np.asarray(ref),
                               rtol=5e-2, atol=5e-2)
    assert out.shape == (N, C, H, W)
    print("KERNEL_OK")
</pallas_src>

<mosaic_0001>
module attributes {stable_mosaic.version = 11 : i64} {
  func.func @aspp_kernel(%arg0: i32, %arg1: memref<1x16x16x32xf32, #tpu.memory_space<vmem>>, %arg2: memref<32x32xf32, #tpu.memory_space<vmem>>, %arg3: memref<1x32xf32, #tpu.memory_space<vmem>>, %arg4: memref<32x32xbf16, #tpu.memory_space<vmem>>, %arg5: memref<1x32xf32, #tpu.memory_space<vmem>>, %arg6: memref<288x32xbf16, #tpu.memory_space<vmem>>, %arg7: memref<1x32xf32, #tpu.memory_space<vmem>>, %arg8: memref<288x32xbf16, #tpu.memory_space<vmem>>, %arg9: memref<1x32xf32, #tpu.memory_space<vmem>>, %arg10: memref<288x32xbf16, #tpu.memory_space<vmem>>, %arg11: memref<1x32xf32, #tpu.memory_space<vmem>>, %arg12: memref<32x32xf32, #tpu.memory_space<vmem>>, %arg13: memref<128x32xbf16, #tpu.memory_space<vmem>>, %arg14: memref<1x32xf32, #tpu.memory_space<vmem>>, %arg15: memref<1x32x256xf32, #tpu.memory_space<vmem>>, %arg16: memref<48x48x32xf32, #tpu.memory_space<vmem>>) attributes {dimension_semantics = [#tpu.dimension_semantics<parallel>], iteration_bounds = array<i64: 2>, scalar_prefetch = 0 : i64, scratch_operands = 1 : i64, tpu.core_type = #tpu.core_type<tc>, window_params = [{transform_indices = @transform_0, window_bounds = array<i64: 1, 16, 16, 32>}, {pipeline_mode = #tpu.pipeline_mode<synchronous>, transform_indices = @transform_1, window_bounds = array<i64: 32, 32>}, {pipeline_mode = #tpu.pipeline_mode<synchronous>, transform_indices = @transform_2, window_bounds = array<i64: 1, 32>}, {pipeline_mode = #tpu.pipeline_mode<synchronous>, transform_indices = @transform_3, window_bounds = array<i64: 32, 32>}, {pipeline_mode = #tpu.pipeline_mode<synchronous>, transform_indices = @transform_4, window_bounds = array<i64: 1, 32>}, {pipeline_mode = #tpu.pipeline_mode<synchronous>, transform_indices = @transform_5, window_bounds = array<i64: 288, 32>}, {pipeline_mode = #tpu.pipeline_mode<synchronous>, transform_indices = @transform_6, window_bounds = array<i64: 1, 32>}, {pipeline_mode = #tpu.pipeline_mode<synchronous>, transform_indices = @transform_7, window_bounds = array<i64: 288, 32>}, {pipeline_mode = #tpu.pipeline_mode<synchronous>, transform_indices = @transform_8, window_bounds = array<i64: 1, 32>}, {pipeline_mode = #tpu.pipeline_mode<synchronous>, transform_indices = @transform_9, window_bounds = array<i64: 288, 32>}, {pipeline_mode = #tpu.pipeline_mode<synchronous>, transform_indices = @transform_10, window_bounds = array<i64: 1, 32>}, {pipeline_mode = #tpu.pipeline_mode<synchronous>, transform_indices = @transform_11, window_bounds = array<i64: 32, 32>}, {pipeline_mode = #tpu.pipeline_mode<synchronous>, transform_indices = @transform_12, window_bounds = array<i64: 128, 32>}, {pipeline_mode = #tpu.pipeline_mode<synchronous>, transform_indices = @transform_13, window_bounds = array<i64: 1, 32>}, {transform_indices = @transform_14, window_bounds = array<i64: 1, 32, 256>}]} {
    %c0 = arith.constant 0 : index
    %c0_0 = arith.constant 0 : index
    %c0_1 = arith.constant 0 : index
    %c0_2 = arith.constant 0 : index
    %0 = vector.load %arg1[%c0, %c0_0, %c0_1, %c0_2] : memref<1x16x16x32xf32, #tpu.memory_space<vmem>>, vector<1x16x16x32xf32>
    %1 = vector.shape_cast %0 : vector<1x16x16x32xf32> to vector<16x16x32xf32>
    %2 = vector.shape_cast %1 : vector<16x16x32xf32> to vector<256x32xf32>
    %cst = arith.constant 0.000000e+00 : f32
    %3 = vector.broadcast %cst : f32 to vector<48x48x32xf32>
    %c0_3 = arith.constant 0 : index
    %c0_4 = arith.constant 0 : index
    %c0_5 = arith.constant 0 : index
    %4 = vector.load %arg16[%c0_3, %c0_4, %c0_5] : memref<48x48x32xf32, #tpu.memory_space<vmem>>, vector<48x48x32xf32>
    tpu.vector_store %arg16[%c0_3, %c0_4, %c0_5], %3 {strides = array<i32>} : memref<48x48x32xf32, #tpu.memory_space<vmem>>, vector<48x48x32xf32>,
    %c16 = arith.constant 16 : index
    %c16_6 = arith.constant 16 : index
    %c0_7 = arith.constant 0 : index
    %5 = vector.load %arg16[%c16, %c16_6, %c0_7] : memref<48x48x32xf32, #tpu.memory_space<vmem>>, vector<16x16x32xf32>
    tpu.vector_store %arg16[%c16, %c16_6, %c0_7], %1 {strides = array<i32>} : memref<48x48x32xf32, #tpu.memory_space<vmem>>, vector<16x16x32xf32>,
    %cst_8 = arith.constant dense<0.000000e+00> : vector<32xf32>
    %6 = vector.multi_reduction <add>, %2, %cst_8 [0] : vector<256x32xf32> to vector<32xf32>
    %7 = vector.shape_cast %6 : vector<32xf32> to vector<1x32xf32>
    %cst_9 = arith.constant 2.560000e+02 : f32
    %8 = vector.broadcast %cst_9 : f32 to vector<1x32xf32>
    %9 = arith.divf %7, %8 : vector<1x32xf32>
    %c0_10 = arith.constant 0 : index
    %c0_11 = arith.constant 0 : index
    %10 = vector.load %arg2[%c0_10, %c0_11] : memref<32x32xf32, #tpu.memory_space<vmem>>, vector<32x32xf32>
    %cst_12 = arith.constant dense<0.000000e+00> : vector<1x32xf32>
    %11 = tpu.matmul %9, %10, %cst_12 {dimension_numbers = #tpu.dot_dimension_numbers<[1], [0], [0], [1], [0, 0, 1, 1], [], []>} : vector<1x32xf32>, vector<32x32xf32>, vector<1x32xf32> -> vector<1x32xf32>
    %c0_13 = arith.constant 0 : index
    %c0_14 = arith.constant 0 : index
    %12 = vector.load %arg3[%c0_13, %c0_14] : memref<1x32xf32, #tpu.memory_space<vmem>>, vector<1x32xf32>
    %13 = arith.addf %11, %12 : vector<1x32xf32>
    %14 = arith.truncf %2 : vector<256x32xf32> to vector<256x32xbf16>
    %c0_15 = arith.constant 0 : index
    %c0_16 = arith.constant 0 : index
    %15 = vector.load %arg4[%c0_15, %c0_16] : memref<32x32xbf16, #tpu.memory_space<vmem>>, vector<32x32xbf16>
    %cst_17 = arith.constant dense<0.000000e+00> : vector<256x32xf32>
    %16 = tpu.matmul %14, %15, %cst_17 {dimension_numbers = #tpu.dot_dimension_numbers<[1], [0], [0], [1], [0, 0, 1, 1], [], []>} : vector<256x32xbf16>, vector<32x32xbf16>, vector<256x32xf32> -> vector<256x32xf32>
    %c0_18 = arith.constant 0 : index
    %c0_19 = arith.constant 0 : index
    %17 = vector.load %arg5[%c0_18, %c0_19] : memref<1x32xf32, #tpu.memory_space<vmem>>, vector<1x32xf32>
    %18 = vector.broadcast %17 : vector<1x32xf32> to vector<256x32xf32>
    %19 = arith.addf %16, %18 : vector<256x32xf32>
    %cst_20 = arith.constant 0.000000e+00 : f32
    %20 = vector.broadcast %cst_20 : f32 to vector<256x32xf32>
    %21 = arith.maximumf %19, %20 : vector<256x32xf32>
    %c13 = arith.constant 13 : index
    %c13_21 = arith.constant 13 : index
    %c0_22 = arith.constant 0 : index
    %22 = vector.load %arg16[%c13, %c13_21, %c0_22] : memref<48x48x32xf32, #tpu.memory_space<vmem>>, vector<16x16x32xf32>
    %c13_23 = arith.constant 13 : index
    %c16_24 = arith.constant 16 : index
    %c0_25 = arith.constant 0 : index
    %23 = vector.load %arg16[%c13_23, %c16_24, %c0_25] : memref<48x48x32xf32, #tpu.memory_space<vmem>>, vector<16x16x32xf32>
    %c13_26 = arith.constant 13 : index
    %c19 = arith.constant 19 : index
    %c0_27 = arith.constant 0 : index
    %24 = vector.load %arg16[%c13_26, %c19, %c0_27] : memref<48x48x32xf32, #tpu.memory_space<vmem>>, vector<16x16x32xf32>
    %c16_28 = arith.constant 16 : index
    %c13_29 = arith.constant 13 : index
    %c0_30 = arith.constant 0 : index
    %25 = vector.load %arg16[%c16_28, %c13_29, %c0_30] : memref<48x48x32xf32, #tpu.memory_space<vmem>>, vector<16x16x32xf32>
    %c16_31 = arith.constant 16 : index
    %c19_32 = arith.constant 19 : index
    %c0_33 = arith.constant 0 : index
    %26 = vector.load %arg16[%c16_31, %c19_32, %c0_33] : memref<48x48x32xf32, #tpu.memory_space<vmem>>, vector<16x16x32xf32>
    %c19_34 = arith.constant 19 : index
    %c13_35 = arith.constant 13 : index
    %c0_36 = arith.constant 0 : index
    %27 = vector.load %arg16[%c19_34, %c13_35, %c0_36] : memref<48x48x32xf32, #tpu.memory_space<vmem>>, vector<16x16x32xf32>
    %c19_37 = arith.constant 19 : index
    %c16_38 = arith.constant 16 : index
    %c0_39 = arith.constant 0 : index
    %28 = vector.load %arg16[%c19_37, %c16_38, %c0_39] : memref<48x48x32xf32, #tpu.memory_space<vmem>>, vector<16x16x32xf32>
    %c19_40 = arith.constant 19 : index
    %c19_41 = arith.constant 19 : index
    %c0_42 = arith.constant 0 : index
    %29 = vector.load %arg16[%c19_40, %c19_41, %c0_42] : memref<48x48x32xf32, #tpu.memory_space<vmem>>, vector<16x16x32xf32>
    %30 = tpu.concatenate %22, %23, %24, %25, %1, %26, %27, %28, %29 in 2 : vector<16x16x32xf32>, vector<16x16x32xf32>, vector<16x16x32xf32>, vector<16x16x32xf32>, vector<16x16x32xf32>, vector<16x16x32xf32>, vector<16x16x32xf32>, vector<16x16x32xf32>, vector<16x16x32xf32> -> vector<16x16x288xf32>
    %31 = vector.shape_cast %30 : vector<16x16x288xf32> to vector<256x288xf32>
    %32 = arith.truncf %31 : vector<256x288xf32> to vector<256x288xbf16>
    %c0_43 = arith.constant 0 : index
    %c0_44 = arith.constant 0 : index
    %33 = vector.load %arg6[%c0_43, %c0_44] : memref<288x32xbf16, #tpu.memory_space<vmem>>, vector<288x32xbf16>
    %cst_45 = arith.constant dense<0.000000e+00> : vector<256x32xf32>
    %34 = tpu.matmul %32, %33, %cst_45 {dimension_numbers = #tpu.dot_dimension_numbers<[1], [0], [0], [1], [0, 0, 1, 1], [], []>} : vector<256x288xbf16>, vector<288x32xbf16>, vector<256x32xf32> -> vector<256x32xf32>
    %c0_46 = arith.constant 0 : index
    %c0_47 = arith.constant 0 : index
    %35 = vector.load %arg7[%c0_46, %c0_47] : memref<1x32xf32, #tpu.memory_space<vmem>>, vector<1x32xf32>
    %36 = vector.broadcast %35 : vector<1x32xf32> to vector<256x32xf32>
    %37 = arith.addf %34, %36 : vector<256x32xf32>
    %cst_48 = arith.constant 0.000000e+00 : f32
    %38 = vector.broadcast %cst_48 : f32 to vector<256x32xf32>
    %39 = arith.maximumf %37, %38 : vector<256x32xf32>
    %c9 = arith.constant 9 : index
    %c9_49 = arith.constant 9 : index
    %c0_50 = arith.constant 0 : index
    %40 = vector.load %arg16[%c9, %c9_49, %c0_50] : memref<48x48x32xf32, #tpu.memory_space<vmem>>, vector<16x16x32xf32>
    %c9_51 = arith.constant 9 : index
    %c16_52 = arith.constant 16 : index
    %c0_53 = arith.constant 0 : index
    %41 = vector.load %arg16[%c9_51, %c16_52, %c0_53] : memref<48x48x32xf32, #tpu.memory_space<vmem>>, vector<16x16x32xf32>
    %c9_54 = arith.constant 9 : index
    %c23 = arith.constant 23 : index
    %c0_55 = arith.constant 0 : index
    %42 = vector.load %arg16[%c9_54, %c23, %c0_55] : memref<48x48x32xf32, #tpu.memory_space<vmem>>, vector<16x16x32xf32>
    %c16_56 = arith.constant 16 : index
    %c9_57 = arith.constant 9 : index
    %c0_58 = arith.constant 0 : index
    %43 = vector.load %arg16[%c16_56, %c9_57, %c0_58] : memref<48x48x32xf32, #tpu.memory_space<vmem>>, vector<16x16x32xf32>
    %c16_59 = arith.constant 16 : index
    %c23_60 = arith.constant 23 : index
    %c0_61 = arith.constant 0 : index
    %44 = vector.load %arg16[%c16_59, %c23_60, %c0_61] : memref<48x48x32xf32, #tpu.memory_space<vmem>>, vector<16x16x32xf32>
    %c23_62 = arith.constant 23 : index
    %c9_63 = arith.constant 9 : index
    %c0_64 = arith.constant 0 : index
    %45 = vector.load %arg16[%c23_62, %c9_63, %c0_64] : memref<48x48x32xf32, #tpu.memory_space<vmem>>, vector<16x16x32xf32>
    %c23_65 = arith.constant 23 : index
    %c16_66 = arith.constant 16 : index
    %c0_67 = arith.constant 0 : index
    %46 = vector.load %arg16[%c23_65, %c16_66, %c0_67] : memref<48x48x32xf32, #tpu.memory_space<vmem>>, vector<16x16x32xf32>
    %c23_68 = arith.constant 23 : index
    %c23_69 = arith.constant 23 : index
    %c0_70 = arith.constant 0 : index
    %47 = vector.load %arg16[%c23_68, %c23_69, %c0_70] : memref<48x48x32xf32, #tpu.memory_space<vmem>>, vector<16x16x32xf32>
    %48 = tpu.concatenate %40, %41, %42, %43, %1, %44, %45, %46, %47 in 2 : vector<16x16x32xf32>, vector<16x16x32xf32>, vector<16x16x32xf32>, vector<16x16x32xf32>, vector<16x16x32xf32>, vector<16x16x32xf32>, vector<16x16x32xf32>, vector<16x16x32xf32>, vector<16x16x32xf32> -> vector<16x16x288xf32>
    %49 = vector.shape_cast %48 : vector<16x16x288xf32> to vector<256x288xf32>
    %50 = arith.truncf %49 : vector<256x288xf32> to vector<256x288xbf16>
    %c0_71 = arith.constant 0 : index
    %c0_72 = arith.constant 0 : index
    %51 = vector.load %arg8[%c0_71, %c0_72] : memref<288x32xbf16, #tpu.memory_space<vmem>>, vector<288x32xbf16>
    %cst_73 = arith.constant dense<0.000000e+00> : vector<256x32xf32>
    %52 = tpu.matmul %50, %51, %cst_73 {dimension_numbers = #tpu.dot_dimension_numbers<[1], [0], [0], [1], [0, 0, 1, 1], [], []>} : vector<256x288xbf16>, vector<288x32xbf16>, vector<256x32xf32> -> vector<256x32xf32>
    %c0_74 = arith.constant 0 : index
    %c0_75 = arith.constant 0 : index
    %53 = vector.load %arg9[%c0_74, %c0_75] : memref<1x32xf32, #tpu.memory_space<vmem>>, vector<1x32xf32>
    %54 = vector.broadcast %53 : vector<1x32xf32> to vector<256x32xf32>
    %55 = arith.addf %52, %54 : vector<256x32xf32>
    %cst_76 = arith.constant 0.000000e+00 : f32
    %56 = vector.broadcast %cst_76 : f32 to vector<256x32xf32>
    %57 = arith.maximumf %55, %56 : vector<256x32xf32>
    %c1 = arith.constant 1 : index
    %c1_77 = arith.constant 1 : index
    %c0_78 = arith.constant 0 : index
    %58 = vector.load %arg16[%c1, %c1_77, %c0_78] : memref<48x48x32xf32, #tpu.memory_space<vmem>>, vector<16x16x32xf32>
    %c1_79 = arith.constant 1 : index
    %c16_80 = arith.constant 16 : index
    %c0_81 = arith.constant 0 : index
    %59 = vector.load %arg16[%c1_79, %c16_80, %c0_81] : memref<48x48x32xf32, #tpu.memory_space<vmem>>, vector<16x16x32xf32>
    %c1_82 = arith.constant 1 : index
    %c31 = arith.constant 31 : index
    %c0_83 = arith.constant 0 : index
    %60 = vector.load %arg16[%c1_82, %c31, %c0_83] : memref<48x48x32xf32, #tpu.memory_space<vmem>>, vector<16x16x32xf32>
    %c16_84 = arith.constant 16 : index
    %c1_85 = arith.constant 1 : index
    %c0_86 = arith.constant 0 : index
    %61 = vector.load %arg16[%c16_84, %c1_85, %c0_86] : memref<48x48x32xf32, #tpu.memory_space<vmem>>, vector<16x16x32xf32>
    %c16_87 = arith.constant 16 : index
    %c31_88 = arith.constant 31 : index
    %c0_89 = arith.constant 0 : index
    %62 = vector.load %arg16[%c16_87, %c31_88, %c0_89] : memref<48x48x32xf32, #tpu.memory_space<vmem>>, vector<16x16x32xf32>
    %c31_90 = arith.constant 31 : index
    %c1_91 = arith.constant 1 : index
    %c0_92 = arith.constant 0 : index
    %63 = vector.load %arg16[%c31_90, %c1_91, %c0_92] : memref<48x48x32xf32, #tpu.memory_space<vmem>>, vector<16x16x32xf32>
    %c31_93 = arith.constant 31 : index
    %c16_94 = arith.constant 16 : index
    %c0_95 = arith.constant 0 : index
    %64 = vector.load %arg16[%c31_93, %c16_94, %c0_95] : memref<48x48x32xf32, #tpu.memory_space<vmem>>, vector<16x16x32xf32>
    %c31_96 = arith.constant 31 : index
    %c31_97 = arith.constant 31 : index
    %c0_98 = arith.constant 0 : index
    %65 = vector.load %arg16[%c31_96, %c31_97, %c0_98] : memref<48x48x32xf32, #tpu.memory_space<vmem>>, vector<16x16x32xf32>
    %66 = tpu.concatenate %58, %59, %60, %61, %1, %62, %63, %64, %65 in 2 : vector<16x16x32xf32>, vector<16x16x32xf32>, vector<16x16x32xf32>, vector<16x16x32xf32>, vector<16x16x32xf32>, vector<16x16x32xf32>, vector<16x16x32xf32>, vector<16x16x32xf32>, vector<16x16x32xf32> -> vector<16x16x288xf32>
    %67 = vector.shape_cast %66 : vector<16x16x288xf32> to vector<256x288xf32>
    %68 = arith.truncf %67 : vector<256x288xf32> to vector<256x288xbf16>
    %c0_99 = arith.constant 0 : index
    %c0_100 = arith.constant 0 : index
    %69 = vector.load %arg10[%c0_99, %c0_100] : memref<288x32xbf16, #tpu.memory_space<vmem>>, vector<288x32xbf16>
    %cst_101 = arith.constant dense<0.000000e+00> : vector<256x32xf32>
    %70 = tpu.matmul %68, %69, %cst_101 {dimension_numbers = #tpu.dot_dimension_numbers<[1], [0], [0], [1], [0, 0, 1, 1], [], []>} : vector<256x288xbf16>, vector<288x32xbf16>, vector<256x32xf32> -> vector<256x32xf32>
    %c0_102 = arith.constant 0 : index
    %c0_103 = arith.constant 0 : index
    %71 = vector.load %arg11[%c0_102, %c0_103] : memref<1x32xf32, #tpu.memory_space<vmem>>, vector<1x32xf32>
    %72 = vector.broadcast %71 : vector<1x32xf32> to vector<256x32xf32>
    %73 = arith.addf %70, %72 : vector<256x32xf32>
    %cst_104 = arith.constant 0.000000e+00 : f32
    %74 = vector.broadcast %cst_104 : f32 to vector<256x32xf32>
    %75 = arith.maximumf %73, %74 : vector<256x32xf32>
    %76 = tpu.concatenate %21, %39, %57, %75 in 1 : vector<256x32xf32>, vector<256x32xf32>, vector<256x32xf32>, vector<256x32xf32> -> vector<256x128xf32>
    %77 = arith.truncf %76 : vector<256x128xf32> to vector<256x128xbf16>
    %c0_105 = arith.constant 0 : index
    %c0_106 = arith.constant 0 : index
    %78 = vector.load %arg13[%c0_105, %c0_106] : memref<128x32xbf16, #tpu.memory_space<vmem>>, vector<128x32xbf16>
    %cst_107 = arith.constant dense<0.000000e+00> : vector<256x32xf32>
    %79 = tpu.matmul %77, %78, %cst_107 {dimension_numbers = #tpu.dot_dimension_numbers<[1], [0], [0], [1], [0, 0, 1, 1], [], []>} : vector<256x128xbf16>, vector<128x32xbf16>, vector<256x32xf32> -> vector<256x32xf32>
    %c0_108 = arith.constant 0 : index
    %c0_109 = arith.constant 0 : index
    %80 = vector.load %arg12[%c0_108, %c0_109] : memref<32x32xf32, #tpu.memory_space<vmem>>, vector<32x32xf32>
    %cst_110 = arith.constant dense<0.000000e+00> : vector<1x32xf32>
    %81 = tpu.matmul %13, %80, %cst_110 {dimension_numbers = #tpu.dot_dimension_numbers<[1], [0], [0], [1], [0, 0, 1, 1], [], []>} : vector<1x32xf32>, vector<32x32xf32>, vector<1x32xf32> -> vector<1x32xf32>
    %82 = vector.broadcast %81 : vector<1x32xf32> to vector<256x32xf32>
    %83 = arith.addf %79, %82 : vector<256x32xf32>
    %c0_111 = arith.constant 0 : index
    %c0_112 = arith.constant 0 : index
    %84 = vector.load %arg14[%c0_111, %c0_112] : memref<1x32xf32, #tpu.memory_space<vmem>>, vector<1x32xf32>
    %85 = vector.broadcast %84 : vector<1x32xf32> to vector<256x32xf32>
    %86 = arith.addf %83, %85 : vector<256x32xf32>
    %87 = tpu.transpose %86, [1, 0] : vector<256x32xf32> -> vector<32x256xf32>
    %c0_113 = arith.constant 0 : index
    %c0_114 = arith.constant 0 : index
    %c0_115 = arith.constant 0 : index
    %88 = vector.load %arg15[%c0_113, %c0_114, %c0_115] : memref<1x32x256xf32, #tpu.memory_space<vmem>>, vector<1x32x256xf32>
    %89 = vector.shape_cast %88 : vector<1x32x256xf32> to vector<32x256xf32>
    %90 = vector.shape_cast %87 : vector<32x256xf32> to vector<1x32x256xf32>
    tpu.vector_store %arg15[%c0_113, %c0_114, %c0_115], %90 {strides = array<i32>} : memref<1x32x256xf32, #tpu.memory_space<vmem>>, vector<1x32x256xf32>,
    return
  }
  func.func @transform_0(%arg0: i32) -> (i32, i32, i32, i32) {
    %c0_i32 = arith.constant 0 : i32
    %c0_i32_0 = arith.constant 0 : i32
    %c0_i32_1 = arith.constant 0 : i32
    %c0_i32_2 = arith.constant 0 : i32
    return %arg0, %c0_i32, %c0_i32_0, %c0_i32_1 : i32, i32, i32, i32
  }
  func.func @transform_1(%arg0: i32) -> (i32, i32) {
    %c0_i32 = arith.constant 0 : i32
    %c0_i32_0 = arith.constant 0 : i32
    %c0_i32_1 = arith.constant 0 : i32
    return %c0_i32, %c0_i32_0 : i32, i32
  }
  func.func @transform_2(%arg0: i32) -> (i32, i32) {
    %c0_i32 = arith.constant 0 : i32
    %c0_i32_0 = arith.constant 0 : i32
    %c0_i32_1 = arith.constant 0 : i32
    return %c0_i32, %c0_i32_0 : i32, i32
  }
  func.func @transform_3(%arg0: i32) -> (i32, i32) {
    %c0_i32 = arith.constant 0 : i32
    %c0_i32_0 = arith.constant 0 : i32
    %c0_i32_1 = arith.constant 0 : i32
    return %c0_i32, %c0_i32_0 : i32, i32
  }
  func.func @transform_4(%arg0: i32) -> (i32, i32) {
    %c0_i32 = arith.constant 0 : i32
    %c0_i32_0 = arith.constant 0 : i32
    %c0_i32_1 = arith.constant 0 : i32
    return %c0_i32, %c0_i32_0 : i32, i32
  }
  func.func @transform_5(%arg0: i32) -> (i32, i32) {
    %c0_i32 = arith.constant 0 : i32
    %c0_i32_0 = arith.constant 0 : i32
    %c0_i32_1 = arith.constant 0 : i32
    return %c0_i32, %c0_i32_0 : i32, i32
  }
  func.func @transform_6(%arg0: i32) -> (i32, i32) {
    %c0_i32 = arith.constant 0 : i32
    %c0_i32_0 = arith.constant 0 : i32
    %c0_i32_1 = arith.constant 0 : i32
    return %c0_i32, %c0_i32_0 : i32, i32
  }
  func.func @transform_7(%arg0: i32) -> (i32, i32) {
    %c0_i32 = arith.constant 0 : i32
    %c0_i32_0 = arith.constant 0 : i32
    %c0_i32_1 = arith.constant 0 : i32
    return %c0_i32, %c0_i32_0 : i32, i32
  }
  func.func @transform_8(%arg0: i32) -> (i32, i32) {
    %c0_i32 = arith.constant 0 : i32
    %c0_i32_0 = arith.constant 0 : i32
    %c0_i32_1 = arith.constant 0 : i32
    return %c0_i32, %c0_i32_0 : i32, i32
  }
  func.func @transform_9(%arg0: i32) -> (i32, i32) {
    %c0_i32 = arith.constant 0 : i32
    %c0_i32_0 = arith.constant 0 : i32
    %c0_i32_1 = arith.constant 0 : i32
    return %c0_i32, %c0_i32_0 : i32, i32
  }
  func.func @transform_10(%arg0: i32) -> (i32, i32) {
    %c0_i32 = arith.constant 0 : i32
    %c0_i32_0 = arith.constant 0 : i32
    %c0_i32_1 = arith.constant 0 : i32
    return %c0_i32, %c0_i32_0 : i32, i32
  }
  func.func @transform_11(%arg0: i32) -> (i32, i32) {
    %c0_i32 = arith.constant 0 : i32
    %c0_i32_0 = arith.constant 0 : i32
    %c0_i32_1 = arith.constant 0 : i32
    return %c0_i32, %c0_i32_0 : i32, i32
  }
  func.func @transform_12(%arg0: i32) -> (i32, i32) {
    %c0_i32 = arith.constant 0 : i32
    %c0_i32_0 = arith.constant 0 : i32
    %c0_i32_1 = arith.constant 0 : i32
    return %c0_i32, %c0_i32_0 : i32, i32
  }
  func.func @transform_13(%arg0: i32) -> (i32, i32) {
    %c0_i32 = arith.constant 0 : i32
    %c0_i32_0 = arith.constant 0 : i32
    %c0_i32_1 = arith.constant 0 : i32
    return %c0_i32, %c0_i32_0 : i32, i32
  }
  func.func @transform_14(%arg0: i32) -> (i32, i32, i32) {
    %c0_i32 = arith.constant 0 : i32
    %c0_i32_0 = arith.constant 0 : i32
    %c0_i32_1 = arith.constant 0 : i32
    return %arg0, %c0_i32, %c0_i32_0 : i32, i32, i32
  }
}

</mosaic_0001>

<bundles_post_ra>
// kernel: tpu_custom_call.1
= control target key start
LH: loop header
LB: loop body
LE: loop exit
PB: predicated region body
PF: predicated region fallthrough
CT: control target
= control target key end

     0   :  { %s16264_s0 = inlined_call_operand.vmem [shape: f32[2,16,16,32], index: 0, kind: input, shape index: {}]   ;;  %s16265_s1 = inlined_call_operand.hbm [shape: f32[32,32], index: 1, kind: input, shape index: {}]   ;;  %s16266_s2 = inlined_call_operand.vmem [shape: f32[1,32], index: 2, kind: input, shape index: {}]   ;;  %s16267_s3 = inlined_call_operand.hbm [shape: bf16[32,32], index: 3, kind: input, shape index: {}]   ;;  %s16268_s4 = inlined_call_operand.vmem [shape: f32[1,32], index: 4, kind: input, shape index: {}]   ;;  %s16269_s5 = inlined_call_operand.vmem [shape: bf16[288,32], index: 5, kind: input, shape index: {}]   ;;  %s16270_s6 = inlined_call_operand.vmem [shape: f32[1,32], index: 6, kind: input, shape index: {}]   ;;  %s16271_s7 = inlined_call_operand.vmem [shape: bf16[288,32], index: 7, kind: input, shape index: {}]   ;;  %s16272_s8 = inlined_call_operand.vmem [shape: f32[1,32], index: 8, kind: input, shape index: {}]   ;;  %s16273_s9 = inlined_call_operand.vmem [shape: bf16[288,32], index: 9, kind: input, shape index: {}]   ;;  %s16274_s10 = inlined_call_operand.vmem [shape: f32[1,32], index: 10, kind: input, shape index: {}]   ;;  %s16275_s11 = inlined_call_operand.vmem [shape: f32[32,32], index: 11, kind: input, shape index: {}]   ;;  %s16276_s12 = inlined_call_operand.vmem [shape: bf16[128,32], index: 12, kind: input, shape index: {}]   ;;  %s16277_s13 = inlined_call_operand.vmem [shape: f32[1,32], index: 13, kind: input, shape index: {}]   ;;  %s16278_s14 = inlined_call_operand.hbm [shape: f32[2,32,256], index: 14, kind: output, shape index: {}]  }
   0x1   :  { %16583 = sst [smem:[#allocation165_spill]] %s16278_s14 }
   0x2   :  { %19 = vsyncpa [#allocation4], 0 }
   0x3   :  { %20 = vsyncpa [#allocation7], 0 }
   0x4   :  { %21 = vsyncpa [#allocation5], 0 }
   0x5   :  { %23 = vsyncpa [#allocation5 + $0x1], 0  ;;  %s10668_s29 = smov 0   ;;  %s10670_s30 = smov 0  }
   0x6   :  { %s10672_s15 = smov 0   ;;  %s10674_s16 = smov 0  }
   0x7 LB: > { %16584 = sst [smem:[#allocation12_spill]] %s10564_s29  ;;  %s10689_s17 = sadd.s32 4294967295, %s10576_s16   ;;  %s10576_s16 = sphi %s10674_s16, %s17494_s16   ;;  %s10572_s15 = sphi %s10672_s15, %s17496_s15   ;;  %s10568_s30 = sphi %s10670_s30, %s17498_s30   ;;  %s10564_s29 = sphi %s10668_s29, %s17497_s29  }
   0x8   : > { %16585 = sst [smem:[#allocation13_spill]] %s10572_s15  ;;  %s7750_s18 = sadd.s32 4294967294, %s10576_s16  }
   0x9   : > { %16586 = sst [smem:[#allocation14_spill]] %s10576_s16  ;;  %s10693_s19 = sadd.s32 1, %s10576_s16  }
   0xa   : > { %16587 = sst [smem:[#allocation15_spill]] %s10693_s19  ;;  %s335_s20 = sadd.s32 1, %s10572_s15 }
   0xb   : > { %s332_s21 = ssub.s32 %s10576_s16, %s10693_s19  ;;  %p345_p0 = scmp.ne.s32.totalorder %s10572_s15, %s10568_s30 }
   0xc   : > { %p333_p1 = scmp.eq.s32.totalorder %s332_s21, 0  ;;  %p346_p2 = scmp.eq.s32.totalorder %s10689_s17, 1 }
   0xd   : > { %p351_p3 = scmp.ne.s32.totalorder %s10568_s30, %s10564_s29  ;;  %p352_p4 = scmp.eq.s32.totalorder %s7750_s18, 1 }
   0xe   : > { %s10704_s22 = scalar_select %p333_p1, %s10572_s15, %s335_s20  }
   0xf   : > { %p10706_p5 = por %p346_p2, %p345_p0  ;;  %p10710_p6 = por %p352_p4, %p351_p3 }
  0x10   : > { %16588 = sst [smem:[#allocation16_spill]] %s10704_s22  ;;  %p7751_p7 = scmp.ge.s32.totalorder %s10576_s16, 1 }
  0x11   : > { %s16589_s23 = scalar_select %p10706_p5, 1, 0 }
  0x12   : > { %s16591_s24 = scalar_select %p10710_p6, 1, 0 }
  0x13   : > { %16590 = sst [smem:[#allocation17_spill]] %s16589_s23  ;;  %p359_p8 = scmp.lt.s32.totalorder %s10576_s16, 3 }
  0x14   : > { %16592 = sst [smem:[#allocation18_spill]] %s16591_s24  ;;  %p16284_p9 = scmp.eq.s32.totalorder %s10689_s17, 0 }
  0x15   : > { %p10717_p10 = pnand %p7751_p7, %p359_p8  ;;  %s10578_s26 = smov [#allocation3]  }
  0x16   : > { %s371_s27 = sshll.u32 %s10578_s26, 4  ;;  %s10579_s18 = smov [#allocation6]   ;;  %s372_s27 = int_to_ptr.vmem [resolvable:$true] %s371_s27 }
  0x17   : > { %s16593_s25 = scalar_select %p10717_p10, 1, 0 }
  0x18   : > { %p8597_p11 = pneg %p10717_p10  ;;  %s387_s20 = sshll.u32 %s10579_s18, 4  ;;  %s10729_s20 = int_to_ptr.vmem [resolvable:$true] %s387_s20 }
  0x19   : > { %s10450_s15 = scalar_lea.hbm %s16265_s1, 512 }
  0x1a   : > { %p10725_p12 = pnand %p16284_p9, %p8597_p11  ;;  %p10451_p13 = scmp.ne.s32.totalorder %s16265_s1, %s10450_s15 }
  0x1b   : > { %p10457_p3 = scmp.lt.u32.totalorder %s10450_s15, %s16265_s1 }
  0x1c   : > { %p10452_p0 = pneg %p10725_p12 }
  0x1e   : > { %p10453_p1 = pnand %p10452_p0, %p10451_p13 }
  0x20   : > { %p10454_p2 = pneg %p10453_p1 }
  0x22   : > { %p10459_p4 = pnand %p10457_p3, %p10454_p2 }
  0x24   : > { %10462 = shalt.err (!%p10459_p4)
}
  0x25   : > { %s10463_s18 = scalar_lea.vmem %s372_s27, 512  ;;  %p10471_p9 = scmp.lt.s32.totalorder %s372_s27, %s372_s27 }
  0x26   : > { %p10464_p7 = scmp.ne.s32.totalorder %s372_s27, %s10463_s18  ;;  %p10472_p6 = scmp.lt.s32.totalorder %s10463_s18, %s10463_s18 }
  0x28   : > { %p10466_p8 = pnand %p10464_p7, %p10452_p0  ;;  %p10473_p5 = por %p10472_p6, %p10471_p9 }
  0x2a   : > { %p10467_p11 = pneg %p10466_p8 }
  0x2c   : > { %p10474_p10 = pnand %p10473_p5, %p10467_p11 }
  0x2e   : > { %10477 = shalt.err (!%p10474_p10)
}
  0x2f   : > { %s10580_s19 = smov 128   ;;  %s10581_s22 = smov 8  }
  0x30   : > { %8600 = dma.hbm_to_vmem [thread:$0]  (!%p10725_p12), %s16265_s1, 512, %s372_s27, [#allocation4], %s10580_s19, %s10580_s19, %s10581_s22  }
  0x31   : > { %s10478_s26 = scalar_lea.hbm %s16267_s3, 256 }
  0x32   : > { %p10479_p13 = scmp.ne.s32.totalorder %s16267_s3, %s10478_s26  ;;  %p10485_p9 = scmp.lt.u32.totalorder %s10478_s26, %s16267_s3 }
  0x34   : > { %p10481_p5 = pnand %p10479_p13, %p10452_p0 }
  0x36   : > { %p10482_p6 = pneg %p10481_p5 }
  0x38   : > { %p10487_p10 = pnand %p10485_p9, %p10482_p6 }
  0x3a   : > { %10490 = shalt.err (!%p10487_p10)
}
  0x3b   : > { %s10491_s27 = scalar_lea.vmem %s10729_s20, 256  ;;  %p10499_p4 = scmp.lt.s32.totalorder %s10729_s20, %s10729_s20 }
  0x3c   : > { %p10492_p1 = scmp.ne.s32.totalorder %s10729_s20, %s10491_s27  ;;  %p10500_p7 = scmp.lt.s32.totalorder %s10491_s27, %s10491_s27 }
  0x3e   : > { %p10494_p2 = pnand %p10492_p1, %p10452_p0  ;;  %p10501_p8 = por %p10500_p7, %p10499_p4 }
  0x40   : > { %p10495_p3 = pneg %p10494_p2 }
  0x42   : > { %p10502_p11 = pnand %p10501_p8, %p10495_p3 }
  0x44   : > { %10505 = shalt.err (!%p10502_p11)
}
  0x45   : > { %s10582_s14 = smov 64   ;;  %s10583_s16 = smov 4  }
  0x46   : > { %8603 = dma.hbm_to_vmem [thread:$0]  (!%p10725_p12), %s16267_s3, 256, %s10729_s20, [#allocation7], %s10582_s14, %s10582_s14, %s10583_s16  }
  0x47   : > { %p16595_p13 = scmp.ne.s32.totalorder %s16593_s25, 0 }
  0x49   : > { %441 = sbr.rel (%p16595_p13) target bundleno = 1633 (0x661), region = 76 }
  0x50   : > { %p16596_p0 = scmp.eq.s32.totalorder %s10689_s17, 0 }
  0x52   : > { %10551 = dma.done.wait (%p16596_p0), [#allocation4], 512   ;;  %p16597_p5 = pmov %p16596_p0 }
  0x53   : > { %p16598_p6 = pmov %p16596_p0 }
  0x54   : > { %10553 = vsyncadd (%p16597_p5), [#allocation4], 4294966784 }
  0x55   : > { %10555 = dma.done.wait (%p16598_p6), [#allocation7], 256   ;;  %p16599_p9 = pmov %p16596_p0 }
  0x56   : > { %vm529_vm0 = vcmask 261120   ;;  %p491_p10 = scmp.lt.s32.totalorder %s10689_s17, 1  ;;  %v16291_v0 = vmov 0.0   ;;  %s10585_s15 = smov 32   ;;  %vm10589_vm1 = vmmov 0   ;;  %vm2338_vm2 = vcmask 523264  }
  0x57   : > { %10557 = vsyncadd (%p16599_p9), [#allocation7], 4294967040  ;;  %536 = vst.msk [vmem:[#allocation2 + $0x30] sm:$0xff] %vm529_vm0, %v16291_v0  ;;  %s10586_s24 = smov 64   ;;  %s10587_s21 = smov 96   ;;  %vm2371_vm3 = vcmask 785408  }
  0x58   : > { %537 = vst.msk [vmem:[#allocation2 + $0x38] sm:$0xff] %vm529_vm0, %v16291_v0  ;;  %538 = vst.msk [vmem:[#allocation2 + $0x40] sm:$0xff] %vm529_vm0, %v16291_v0  ;;  %s492_s25 = scalar_select %p491_p10, %s10689_s17, 1 }
  0x59   : > { %539 = vst.msk [vmem:[#allocation2 + $0x48] sm:$0xff] %vm529_vm0, %v16291_v0  ;;  %540 = vst.msk [vmem:[#allocation2 + $0x50] sm:$0xff] %vm529_vm0, %v16291_v0  ;;  %s488_s18 = sand.u32 1, %s10568_s30   ;;  %s17487_s16 = sld [smem:[#allocation17_spill]] }
  0x5a   : > { %541 = vst.msk [vmem:[#allocation2 + $0x58] sm:$0xff] %vm529_vm0, %v16291_v0  ;;  %542 = vst.msk [vmem:[#allocation2 + $0x60] sm:$0xff] %vm529_vm0, %v16291_v0  ;;  %s7901_s28 = sshll.u32 %s492_s25, 8  ;;  %s7758_s27 = sshll.u32 %s488_s18, 6 }
  0x5b   : > { %543 = vst.msk [vmem:[#allocation2 + $0x68] sm:$0xff] %vm529_vm0, %v16291_v0  ;;  %544 = vst.msk [vmem:[#allocation2 + $0x70] sm:$0xff] %vm529_vm0, %v16291_v0  ;;  %s11347_s29 = scalar_lea.vmem %s16264_s0, %s7901_s28  ;;  %s490_s14 = scalar_lea.vmem [#allocation8], %s7758_s27 }
  0x5c   : > { %545 = vst.msk [vmem:[#allocation2 + $0x78] sm:$0xff] %vm529_vm0, %v16291_v0  ;;  %546 = vst.msk [vmem:[#allocation2 + $0x80] sm:$0xff] %vm529_vm0, %v16291_v0  ;;  %v11350_v1 = vld [vmem:[%s11347_s29] sm:$0xff]  ;;  %v11353_v2 = vld [vmem:[%s11347_s29 + $0x8] sm:$0xff]  ;;  %s7666_s23 = sshll.u32 %s490_s14, 4  ;;  %s7902_s19 = sshll.u32 %s10689_s17, 10  ;;  %s16216_s23 = int_to_ptr.vmem [resolvable:$true] %s7666_s23 }
  0x5d   : > { %547 = vst.msk [vmem:[#allocation2 + $0x88] sm:$0xff] %vm529_vm0, %v16291_v0  ;;  %548 = vst.msk [vmem:[#allocation2 + $0x90] sm:$0xff] %vm529_vm0, %v16291_v0  ;;  %v11356_v3 = vld [vmem:[%s11347_s29 + $0x10] sm:$0xff]  ;;  %v11365_v12 = vld [vmem:[%s11347_s29 + $0x18] sm:$0xff]  ;;  %v851_v47 = vsel %vm529_vm0, %v11350_v1, 0.0  ;;  %v852_v48 = vsel %vm529_vm0, %v11353_v2, 0.0 }
  0x5e   : > { %549 = vst.msk [vmem:[#allocation2 + $0x98] sm:$0xff] %vm529_vm0, %v16291_v0  ;;  %550 = vst.msk [vmem:[#allocation2 + $0xa0] sm:$0xff] %vm529_vm0, %v16291_v0  ;;  %v11368_v13 = vld [vmem:[%s11347_s29 + $0x20] sm:$0xff]  ;;  %v11371_v14 = vld [vmem:[%s11347_s29 + $0x28] sm:$0xff]  ;;  %v853_v57 = vadd.f32 %v852_v48, %v851_v47  ;;  %v854_v58 = vsel %vm529_vm0, %v11356_v3, 0.0  ;;  %s17488_s20 = sld [smem:[#allocation165_spill]] }
  0x5f   : > { %551 = vst.msk [vmem:[#allocation2 + $0xa8] sm:$0xff] %vm529_vm0, %v16291_v0  ;;  %552 = vst.msk [vmem:[#allocation2 + $0xb0] sm:$0xff] %vm529_vm0, %v16291_v0  ;;  %v11381_v16 = vld [vmem:[%s11347_s29 + $0x30] sm:$0xff]  ;;  %v11384_v17 = vld [vmem:[%s11347_s29 + $0x38] sm:$0xff]  ;;  %p17489_p1 = scmp.ne.s32.totalorder %s17487_s16, 0  ;;  %s10590_s17 = smov [#allocation8]  }
  0x60   : > { %553 = vst.msk [vmem:[#allocation2 + $0xb8] sm:$0xff] %vm529_vm0, %v16291_v0  ;;  %554 = vst.msk [vmem:[#allocation2 + $0xc0] sm:$0xff] %vm529_vm0, %v16291_v0  ;;  %v11387_v18 = vld [vmem:[%s11347_s29 + $0x40] sm:$0xff]  ;;  %v11395_v19 = vld [vmem:[%s11347_s29 + $0x48] sm:$0xff] }
  0x61   : > { %555 = vst.msk [vmem:[#allocation2 + $0xc8] sm:$0xff] %vm529_vm0, %v16291_v0  ;;  %556 = vst.msk [vmem:[#allocation2 + $0xd0] sm:$0xff] %vm529_vm0, %v16291_v0  ;;  %v11400_v20 = vld [vmem:[%s11347_s29 + $0x50] sm:$0xff]  ;;  %v11403_v21 = vld [vmem:[%s11347_s29 + $0x58] sm:$0xff] }
  0x62   : > { %557 = vst.msk [vmem:[#allocation2 + $0xd8] sm:$0xff] %vm529_vm0, %v16291_v0  ;;  %558 = vst.msk [vmem:[#allocation2 + $0xe0] sm:$0xff] %vm529_vm0, %v16291_v0  ;;  %v11412_v22 = vld [vmem:[%s11347_s29 + $0x60] sm:$0xff]  ;;  %v11415_v23 = vld [vmem:[%s11347_s29 + $0x68] sm:$0xff] }
  0x63   : > { %559 = vst.msk [vmem:[#allocation2 + $0xe8] sm:$0xff] %vm529_vm0, %v16291_v0  ;;  %560 = vst.msk [vmem:[#allocation2 + $0xf0] sm:$0xff] %vm529_vm0, %v16291_v0  ;;  %v11418_v24 = vld [vmem:[%s11347_s29 + $0x70] sm:$0xff]  ;;  %v11425_v25 = vld [vmem:[%s11347_s29 + $0x78] sm:$0xff] }
  0x64   : > { %561 = vst.msk [vmem:[#allocation2 + $0xf8] sm:$0xff] %vm529_vm0, %v16291_v0  ;;  %562 = vst.msk [vmem:[#allocation2 + $0x100] sm:$0xff] %vm529_vm0, %v16291_v0  ;;  %v11430_v26 = vld [vmem:[%s11347_s29 + $0x80] sm:$0xff]  ;;  %v11433_v27 = vld [vmem:[%s11347_s29 + $0x88] sm:$0xff]  ;;  %s16221_s22 = scalar_lea.hbm %s17488_s20, %s7902_s19 }
  0x65   : > { %563 = vst.msk [vmem:[#allocation2 + $0x108] sm:$0xff] %vm529_vm0, %v16291_v0  ;;  %564 = vst.msk [vmem:[#allocation2 + $0x110] sm:$0xff] %vm529_vm0, %v16291_v0  ;;  %v11443_v32 = vld [vmem:[%s11347_s29 + $0x90] sm:$0xff]  ;;  %v11446_v33 = vld [vmem:[%s11347_s29 + $0x98] sm:$0xff] }
  0x66   : > { %565 = vst.msk [vmem:[#allocation2 + $0x118] sm:$0xff] %vm529_vm0, %v16291_v0  ;;  %566 = vst.msk [vmem:[#allocation2 + $0x120] sm:$0xff] %vm529_vm0, %v16291_v0  ;;  %v11449_v34 = vld [vmem:[%s11347_s29 + $0xa0] sm:$0xff]  ;;  %v11456_v35 = vld [vmem:[%s11347_s29 + $0xa8] sm:$0xff] }
  0x67   : > { %567 = vst.msk [vmem:[#allocation2 + $0x128] sm:$0xff] %vm529_vm0, %v16291_v0  ;;  %568 = vst.msk [vmem:[#allocation2 + $0x130] sm:$0xff] %vm529_vm0, %v16291_v0  ;;  %v11461_v36 = vld [vmem:[%s11347_s29 + $0xb0] sm:$0xff]  ;;  %v11464_v37 = vld [vmem:[%s11347_s29 + $0xb8] sm:$0xff] }
  0x68   : > { %569 = vst.msk [vmem:[#allocation2 + $0x138] sm:$0xff] %vm529_vm0, %v16291_v0  ;;  %570 = vst.msk [vmem:[#allocation2 + $0x140] sm:$0xff] %vm529_vm0, %v16291_v0  ;;  %v11484_v55 = vld [vmem:[%s11347_s29 + $0xc0] sm:$0xff]  ;;  %v11487_v56 = vld [vmem:[%s11347_s29 + $0xc8] sm:$0xff] }
  0x69   : > { %571 = vst.msk [vmem:[#allocation2 + $0x148] sm:$0xff] %vm529_vm0, %v16291_v0  ;;  %572 = vst.msk [vmem:[#allocation2 + $0x150] sm:$0xff] %vm529_vm0, %v16291_v0 }
  0x6a   : > { %573 = vst.msk [vmem:[#allocation2 + $0x158] sm:$0xff] %vm529_vm0, %v16291_v0  ;;  %574 = vst.msk [vmem:[#allocation2 + $0x160] sm:$0xff] %vm529_vm0, %v16291_v0 }
  0x6b   : > { %575 = vst.msk [vmem:[#allocation2 + $0x168] sm:$0xff] %vm529_vm0, %v16291_v0  ;;  %576 = vst.msk [vmem:[#allocation2 + $0x170] sm:$0xff] %vm529_vm0, %v16291_v0 }
  0x6c   : > { %577 = vst.msk [vmem:[#allocation2 + $0x178] sm:$0xff] %vm529_vm0, %v16291_v0  ;;  %578 = vst.msk [vmem:[#allocation2 + $0x180] sm:$0xff] %vm529_vm0, %v16291_v0 }
  0x6d   : > { %579 = vst.msk [vmem:[#allocation2 + $0x188] sm:$0xff] %vm529_vm0, %v16291_v0  ;;  %580 = vst.msk [vmem:[#allocation2 + $0x190] sm:$0xff] %vm529_vm0, %v16291_v0 }
  0x6e   : > { %581 = vst.msk [vmem:[#allocation2 + $0x198] sm:$0xff] %vm529_vm0, %v16291_v0  ;;  %582 = vst.msk [vmem:[#allocation2 + $0x1a0] sm:$0xff] %vm529_vm0, %v16291_v0 }
  0x6f   : > { %583 = vst.msk [vmem:[#allocation2 + $0x1a8] sm:$0xff] %vm529_vm0, %v16291_v0  ;;  %584 = vst.msk [vmem:[#allocation2 + $0x1b0] sm:$0xff] %vm529_vm0, %v16291_v0 }
  0x70   : > { %585 = vst.msk [vmem:[#allocation2 + $0x1b8] sm:$0xff] %vm529_vm0, %v16291_v0  ;;  %586 = vst.msk [vmem:[#allocation2 + $0x1c0] sm:$0xff] %vm529_vm0, %v16291_v0 }
  0x71   : > { %587 = vst.msk [vmem:[#allocation2 + $0x1c8] sm:$0xff] %vm529_vm0, %v16291_v0  ;;  %588 = vst.msk [vmem:[#allocation2 + $0x1d0] sm:$0xff] %vm529_vm0, %v16291_v0 }
  0x72   : > { %589 = vst.msk [vmem:[#allocation2 + $0x1d8] sm:$0xff] %vm529_vm0, %v16291_v0  ;;  %590 = vst.msk [vmem:[#allocation2 + $0x1e0] sm:$0xff] %vm529_vm0, %v16291_v0 }
  0x73   : > { %591 = vst.msk [vmem:[#allocation2 + $0x1e8] sm:$0xff] %vm529_vm0, %v16291_v0  ;;  %592 = vst.msk [vmem:[#allocation2 + $0x1f0] sm:$0xff] %vm529_vm0, %v16291_v0 }
  0x74   : > { %593 = vst.msk [vmem:[#allocation2 + $0x1f8] sm:$0xff] %vm529_vm0, %v16291_v0  ;;  %594 = vst.msk [vmem:[#allocation2 + $0x200] sm:$0xff] %vm529_vm0, %v16291_v0 }
  0x75   : > { %595 = vst.msk [vmem:[#allocation2 + $0x208] sm:$0xff] %vm529_vm0, %v16291_v0  ;;  %596 = vst.msk [vmem:[#allocation2 + $0x210] sm:$0xff] %vm529_vm0, %v16291_v0 }
  0x76   : > { %597 = vst.msk [vmem:[#allocation2 + $0x218] sm:$0xff] %vm529_vm0, %v16291_v0  ;;  %598 = vst.msk [vmem:[#allocation2 + $0x220] sm:$0xff] %vm529_vm0, %v16291_v0 }
  0x77   : > { %599 = vst.msk [vmem:[#allocation2 + $0x228] sm:$0xff] %vm529_vm0, %v16291_v0  ;;  %600 = vst.msk [vmem:[#allocation2 + $0x230] sm:$0xff] %vm529_vm0, %v16291_v0 }
  0x78   : > { %601 = vst.msk [vmem:[#allocation2 + $0x238] sm:$0xff] %vm529_vm0, %v16291_v0  ;;  %602 = vst.msk [vmem:[#allocation2 + $0x240] sm:$0xff] %vm529_vm0, %v16291_v0 }
  0x79   : > { %603 = vst.msk [vmem:[#allocation2 + $0x248] sm:$0xff] %vm529_vm0, %v16291_v0  ;;  %604 = vst.msk [vmem:[#allocation2 + $0x250] sm:$0xff] %vm529_vm0, %v16291_v0 }
  0x7a   : > { %605 = vst.msk [vmem:[#allocation2 + $0x258] sm:$0xff] %vm529_vm0, %v16291_v0  ;;  %606 = vst.msk [vmem:[#allocation2 + $0x260] sm:$0xff] %vm529_vm0, %v16291_v0 }
  0x7b   : > { %607 = vst.msk [vmem:[#allocation2 + $0x268] sm:$0xff] %vm529_vm0, %v16291_v0  ;;  %608 = vst.msk [vmem:[#allocation2 + $0x270] sm:$0xff] %vm529_vm0, %v16291_v0 }
  0x7c   : > { %609 = vst.msk [vmem:[#allocation2 + $0x278] sm:$0xff] %vm529_vm0, %v16291_v0  ;;  %610 = vst.msk [vmem:[#allocation2 + $0x280] sm:$0xff] %vm529_vm0, %v16291_v0 }
  0x7d   : > { %611 = vst.msk [vmem:[#allocation2 + $0x288] sm:$0xff] %vm529_vm0, %v16291_v0  ;;  %612 = vst.msk [vmem:[#allocation2 + $0x290] sm:$0xff] %vm529_vm0, %v16291_v0 }
  0x7e   : > { %613 = vst.msk [vmem:[#allocation2 + $0x298] sm:$0xff] %vm529_vm0, %v16291_v0  ;;  %614 = vst.msk [vmem:[#allocation2 + $0x2a0] sm:$0xff] %vm529_vm0, %v16291_v0 }
  0x7f   : > { %615 = vst.msk [vmem:[#allocation2 + $0x2a8] sm:$0xff] %vm529_vm0, %v16291_v0  ;;  %616 = vst.msk [vmem:[#allocation2 + $0x2b0] sm:$0xff] %vm529_vm0, %v16291_v0 }
  0x80   : > { %617 = vst.msk [vmem:[#allocation2 + $0x2b8] sm:$0xff] %vm529_vm0, %v16291_v0  ;;  %618 = vst.msk [vmem:[#allocation2 + $0x2c0] sm:$0xff] %vm529_vm0, %v16291_v0 }
  0x81   : > { %619 = vst.msk [vmem:[#allocation2 + $0x2c8] sm:$0xff] %vm529_vm0, %v16291_v0  ;;  %620 = vst.msk [vmem:[#allocation2 + $0x2d0] sm:$0xff] %vm529_vm0, %v16291_v0 }
  0x82   : > { %621 = vst.msk [vmem:[#allocation2 + $0x2d8] sm:$0xff] %vm529_vm0, %v16291_v0  ;;  %622 = vst.msk [vmem:[#allocation2 + $0x2e0] sm:$0xff] %vm529_vm0, %v16291_v0 }
  0x83   : > { %623 = vst.msk [vmem:[#allocation2 + $0x2e8] sm:$0xff] %vm529_vm0, %v16291_v0  ;;  %624 = vst.msk [vmem:[#allocation2 + $0x2f0] sm:$0xff] %vm529_vm0, %v16291_v0  ;;  %v1313_v4 = vld [vmem:[#allocation2 + $0x280] sm:$0xff] }
  0x84   : > { %625 = vst.msk [vmem:[#allocation2 + $0x2f8] sm:$0xff] %vm529_vm0, %v16291_v0  ;;  %626 = vst.msk [vmem:[#allocation2 + $0x300] sm:$0xff] %vm529_vm0, %v16291_v0  ;;  %v1314_v5 = vld [vmem:[#allocation2 + $0x288] sm:$0xff] }
  0x85   : > { %627 = vst.msk [vmem:[#allocation2 + $0x308] sm:$0xff] %vm529_vm0, %v16291_v0  ;;  %628 = vst.msk [vmem:[#allocation2 + $0x310] sm:$0xff] %vm529_vm0, %v16291_v0  ;;  %v8659_v7 = vpack.i.bf16 %v1314_v5, %v1313_v4  ;;  %v855_v5 = vadd.f32 %v854_v58, %v853_v57  ;;  %v1346_v47 = vld [vmem:[#allocation2 + $0x28b] sm:$0xff] }
  0x86   : > { %629 = vst.msk [vmem:[#allocation2 + $0x318] sm:$0xff] %vm529_vm0, %v16291_v0  ;;  %630 = vst.msk [vmem:[#allocation2 + $0x320] sm:$0xff] %vm529_vm0, %v16291_v0  ;;  %v1315_v9 = vld [vmem:[#allocation2 + $0x2b0] sm:$0xff] }
  0x87   : > { %631 = vst.msk [vmem:[#allocation2 + $0x328] sm:$0xff] %vm529_vm0, %v16291_v0  ;;  %632 = vst.msk [vmem:[#allocation2 + $0x330] sm:$0xff] %vm529_vm0, %v16291_v0  ;;  %v1316_v10 = vld [vmem:[#allocation2 + $0x2b8] sm:$0xff]  ;;  %8660 = vrot.lane.b32.xlu0 %v8659_v7, %s10585_s15 }
  0x88   : > { %633 = vst.msk [vmem:[#allocation2 + $0x338] sm:$0xff] %vm529_vm0, %v16291_v0  ;;  %634 = vst.msk [vmem:[#allocation2 + $0x340] sm:$0xff] %vm529_vm0, %v16291_v0  ;;  %v8664_v15 = vpack.i.bf16 %v1316_v10, %v1315_v9  ;;  %v1347_v48 = vld [vmem:[#allocation2 + $0x2b3] sm:$0xff] }
  0x89   : > { %635 = vst.msk [vmem:[#allocation2 + $0x348] sm:$0xff] %vm529_vm0, %v16291_v0  ;;  %636 = vst.msk [vmem:[#allocation2 + $0x350] sm:$0xff] %vm529_vm0, %v16291_v0  ;;  %v1317_v6 = vld [vmem:[#allocation2 + $0x2e0] sm:$0xff] }
  0x8a   : > { %637 = vst.msk [vmem:[#allocation2 + $0x358] sm:$0xff] %vm529_vm0, %v16291_v0  ;;  %638 = vst.msk [vmem:[#allocation2 + $0x360] sm:$0xff] %vm529_vm0, %v16291_v0  ;;  %v1318_v8 = vld [vmem:[#allocation2 + $0x2e8] sm:$0xff] }
  0x8b   : > { %639 = vst.msk [vmem:[#allocation2 + $0x368] sm:$0xff] %vm529_vm0, %v16291_v0  ;;  %640 = vst.msk [vmem:[#allocation2 + $0x370] sm:$0xff] %vm529_vm0, %v16291_v0  ;;  %v8669_v11 = vpack.i.bf16 %v1318_v8, %v1317_v6  ;;  %8665 = vrot.lane.b32.xlu0 %v8664_v15, %s10585_s15  ;;  %v856_v6 = vsel %vm529_vm0, %v11365_v12, 0.0  ;;  %v1349_v58 = vld [vmem:[#allocation2 + $0x2e3] sm:$0xff] }
  0x8c   : > { %641 = vst.msk [vmem:[#allocation2 + $0x378] sm:$0xff] %vm529_vm0, %v16291_v0  ;;  %642 = vst.msk [vmem:[#allocation2 + $0x380] sm:$0xff] %vm529_vm0, %v16291_v0 }
  0x8d   : > { %643 = vst.msk [vmem:[#allocation2 + $0x388] sm:$0xff] %vm529_vm0, %v16291_v0  ;;  %644 = vst.msk [vmem:[#allocation2 + $0x390] sm:$0xff] %vm529_vm0, %v16291_v0  ;;  %8670 = vrot.lane.b32.xlu1 %v8669_v11, %s10585_s15 }
  0x8e   : > { %645 = vst.msk [vmem:[#allocation2 + $0x398] sm:$0xff] %vm529_vm0, %v16291_v0  ;;  %646 = vst.msk [vmem:[#allocation2 + $0x3a0] sm:$0xff] %vm529_vm0, %v16291_v0 }
  0x8f   : > { %647 = vst.msk [vmem:[#allocation2 + $0x3a8] sm:$0xff] %vm529_vm0, %v16291_v0  ;;  %648 = vst.msk [vmem:[#allocation2 + $0x3b0] sm:$0xff] %vm529_vm0, %v16291_v0 }
  0x90   : > { %649 = vst.msk [vmem:[#allocation2 + $0x3b8] sm:$0xff] %vm529_vm0, %v16291_v0  ;;  %650 = vst.msk [vmem:[#allocation2 + $0x3c0] sm:$0xff] %vm529_vm0, %v16291_v0 }
  0x91   : > { %651 = vst.msk [vmem:[#allocation2 + $0x3c8] sm:$0xff] %vm529_vm0, %v16291_v0  ;;  %652 = vst.msk [vmem:[#allocation2 + $0x3d0] sm:$0xff] %vm529_vm0, %v16291_v0 }
  0x92   : > { %653 = vst.msk [vmem:[#allocation2 + $0x3d8] sm:$0xff] %vm529_vm0, %v16291_v0  ;;  %654 = vst.msk [vmem:[#allocation2 + $0x3e0] sm:$0xff] %vm529_vm0, %v16291_v0 }
  0x93   : > { %655 = vst.msk [vmem:[#allocation2 + $0x3e8] sm:$0xff] %vm529_vm0, %v16291_v0  ;;  %656 = vst.msk [vmem:[#allocation2 + $0x3f0] sm:$0xff] %vm529_vm0, %v16291_v0 }
  0x94   : > { %657 = vst.msk [vmem:[#allocation2 + $0x3f8] sm:$0xff] %vm529_vm0, %v16291_v0  ;;  %658 = vst.msk [vmem:[#allocation2 + $0x400] sm:$0xff] %vm529_vm0, %v16291_v0 }
  0x95   : > { %659 = vst.msk [vmem:[#allocation2 + $0x408] sm:$0xff] %vm529_vm0, %v16291_v0  ;;  %660 = vst.msk [vmem:[#allocation2 + $0x410] sm:$0xff] %vm529_vm0, %v16291_v0 }
  0x96   : > { %661 = vst.msk [vmem:[#allocation2 + $0x418] sm:$0xff] %vm529_vm0, %v16291_v0  ;;  %662 = vst.msk [vmem:[#allocation2 + $0x420] sm:$0xff] %vm529_vm0, %v16291_v0 }
  0x97   : > { %663 = vst.msk [vmem:[#allocation2 + $0x428] sm:$0xff] %vm529_vm0, %v16291_v0  ;;  %664 = vst.msk [vmem:[#allocation2 + $0x430] sm:$0xff] %vm529_vm0, %v16291_v0 }
  0x98   : > { %665 = vst.msk [vmem:[#allocation2 + $0x438] sm:$0xff] %vm529_vm0, %v16291_v0  ;;  %666 = vst.msk [vmem:[#allocation2 + $0x440] sm:$0xff] %vm529_vm0, %v16291_v0 }
  0x99   : > { %667 = vst.msk [vmem:[#allocation2 + $0x448] sm:$0xff] %vm529_vm0, %v16291_v0  ;;  %668 = vst.msk [vmem:[#allocation2 + $0x450] sm:$0xff] %vm529_vm0, %v16291_v0 }
  0x9a   : > { %669 = vst.msk [vmem:[#allocation2 + $0x458] sm:$0xff] %vm529_vm0, %v16291_v0  ;;  %670 = vst.msk [vmem:[#allocation2 + $0x460] sm:$0xff] %vm529_vm0, %v16291_v0 }
  0x9b   : > { %671 = vst.msk [vmem:[#allocation2 + $0x468] sm:$0xff] %vm529_vm0, %v16291_v0  ;;  %672 = vst.msk [vmem:[#allocation2 + $0x470] sm:$0xff] %vm529_vm0, %v16291_v0 }
  0x9c   : > { %673 = vst.msk [vmem:[#allocation2 + $0x478] sm:$0xff] %vm529_vm0, %v16291_v0  ;;  %674 = vst.msk [vmem:[#allocation2 + $0x480] sm:$0xff] %vm529_vm0, %v16291_v0 }
  0x9d   : > { %675 = vst.msk [vmem:[#allocation2 + $0x488] sm:$0xff] %vm529_vm0, %v16291_v0  ;;  %676 = vst.msk [vmem:[#allocation2 + $0x490] sm:$0xff] %vm529_vm0, %v16291_v0 }
  0x9e   : > { %677 = vst.msk [vmem:[#allocation2 + $0x498] sm:$0xff] %vm529_vm0, %v16291_v0  ;;  %678 = vst.msk [vmem:[#allocation2 + $0x4a0] sm:$0xff] %vm529_vm0, %v16291_v0 }
  0x9f   : > { %679 = vst.msk [vmem:[#allocation2 + $0x4a8] sm:$0xff] %vm529_vm0, %v16291_v0  ;;  %680 = vst.msk [vmem:[#allocation2 + $0x4b0] sm:$0xff] %vm529_vm0, %v16291_v0 }
  0xa0   : > { %681 = vst.msk [vmem:[#allocation2 + $0x4b8] sm:$0xff] %vm529_vm0, %v16291_v0  ;;  %682 = vst.msk [vmem:[#allocation2 + $0x4c0] sm:$0xff] %vm529_vm0, %v16291_v0 }
  0xa1   : > { %683 = vst.msk [vmem:[#allocation2 + $0x4c8] sm:$0xff] %vm529_vm0, %v16291_v0  ;;  %684 = vst.msk [vmem:[#allocation2 + $0x4d0] sm:$0xff] %vm529_vm0, %v16291_v0 }
  0xa2   : > { %685 = vst.msk [vmem:[#allocation2 + $0x4d8] sm:$0xff] %vm529_vm0, %v16291_v0  ;;  %686 = vst.msk [vmem:[#allocation2 + $0x4e0] sm:$0xff] %vm529_vm0, %v16291_v0 }
  0xa3   : > { %687 = vst.msk [vmem:[#allocation2 + $0x4e8] sm:$0xff] %vm529_vm0, %v16291_v0  ;;  %688 = vst.msk [vmem:[#allocation2 + $0x4f0] sm:$0xff] %vm529_vm0, %v16291_v0 }
  0xa4   : > { %689 = vst.msk [vmem:[#allocation2 + $0x4f8] sm:$0xff] %vm529_vm0, %v16291_v0  ;;  %690 = vst.msk [vmem:[#allocation2 + $0x500] sm:$0xff] %vm529_vm0, %v16291_v0 }
  0xa5   : > { %691 = vst.msk [vmem:[#allocation2 + $0x508] sm:$0xff] %vm529_vm0, %v16291_v0  ;;  %692 = vst.msk [vmem:[#allocation2 + $0x510] sm:$0xff] %vm529_vm0, %v16291_v0 }
  0xa6   : > { %693 = vst.msk [vmem:[#allocation2 + $0x518] sm:$0xff] %vm529_vm0, %v16291_v0  ;;  %694 = vst.msk [vmem:[#allocation2 + $0x520] sm:$0xff] %vm529_vm0, %v16291_v0 }
  0xa7   : > { %695 = vst.msk [vmem:[#allocation2 + $0x528] sm:$0xff] %vm529_vm0, %v16291_v0  ;;  %696 = vst.msk [vmem:[#allocation2 + $0x530] sm:$0xff] %vm529_vm0, %v16291_v0 }
  0xa8   : > { %697 = vst.msk [vmem:[#allocation2 + $0x538] sm:$0xff] %vm529_vm0, %v16291_v0  ;;  %698 = vst.msk [vmem:[#allocation2 + $0x540] sm:$0xff] %vm529_vm0, %v16291_v0 }
  0xa9   : > { %699 = vst.msk [vmem:[#allocation2 + $0x548] sm:$0xff] %vm529_vm0, %v16291_v0  ;;  %700 = vst.msk [vmem:[#allocation2 + $0x550] sm:$0xff] %vm529_vm0, %v16291_v0 }
  0xaa   : > { %701 = vst.msk [vmem:[#allocation2 + $0x558] sm:$0xff] %vm529_vm0, %v16291_v0  ;;  %702 = vst.msk [vmem:[#allocation2 + $0x560] sm:$0xff] %vm529_vm0, %v16291_v0 }
  0xab   : > { %703 = vst.msk [vmem:[#allocation2 + $0x568] sm:$0xff] %vm529_vm0, %v16291_v0  ;;  %704 = vst.msk [vmem:[#allocation2 + $0x570] sm:$0xff] %vm529_vm0, %v16291_v0 }
  0xac   : > { %705 = vst.msk [vmem:[#allocation2 + $0x578] sm:$0xff] %vm529_vm0, %v16291_v0  ;;  %706 = vst.msk [vmem:[#allocation2 + $0x580] sm:$0xff] %vm529_vm0, %v16291_v0 }
  0xad   : > { %707 = vst.msk [vmem:[#allocation2 + $0x588] sm:$0xff] %vm529_vm0, %v16291_v0  ;;  %708 = vst.msk [vmem:[#allocation2 + $0x590] sm:$0xff] %vm529_vm0, %v16291_v0 }
  0xae   : > { %709 = vst.msk [vmem:[#allocation2 + $0x598] sm:$0xff] %vm529_vm0, %v16291_v0  ;;  %710 = vst.msk [vmem:[#allocation2 + $0x5a0] sm:$0xff] %vm529_vm0, %v16291_v0 }
  0xaf   : > { %711 = vst.msk [vmem:[#allocation2 + $0x5a8] sm:$0xff] %vm529_vm0, %v16291_v0  ;;  %712 = vst.msk [vmem:[#allocation2 + $0x5b0] sm:$0xff] %vm529_vm0, %v16291_v0 }
  0xb0   : > { %713 = vst.msk [vmem:[#allocation2 + $0x5b8] sm:$0xff] %vm529_vm0, %v16291_v0  ;;  %714 = vst.msk [vmem:[#allocation2 + $0x5c0] sm:$0xff] %vm529_vm0, %v16291_v0 }
  0xb1   : > { %715 = vst.msk [vmem:[#allocation2 + $0x5c8] sm:$0xff] %vm529_vm0, %v16291_v0  ;;  %716 = vst.msk [vmem:[#allocation2 + $0x5d0] sm:$0xff] %vm529_vm0, %v16291_v0 }
  0xb2   : > { %717 = vst.msk [vmem:[#allocation2 + $0x5d8] sm:$0xff] %vm529_vm0, %v16291_v0  ;;  %718 = vst.msk [vmem:[#allocation2 + $0x5e0] sm:$0xff] %vm529_vm0, %v16291_v0 }
  0xb3   : > { %719 = vst.msk [vmem:[#allocation2 + $0x5e8] sm:$0xff] %vm529_vm0, %v16291_v0  ;;  %720 = vst.msk [vmem:[#allocation2 + $0x5f0] sm:$0xff] %vm529_vm0, %v16291_v0 }
  0xb4   : > { %721 = vst.msk [vmem:[#allocation2 + $0x5f8] sm:$0xff] %vm529_vm0, %v16291_v0  ;;  %722 = vst.msk [vmem:[#allocation2 + $0x600] sm:$0xff] %vm529_vm0, %v16291_v0 }
  0xb5   : > { %723 = vst.msk [vmem:[#allocation2 + $0x608] sm:$0xff] %vm529_vm0, %v16291_v0  ;;  %724 = vst.msk [vmem:[#allocation2 + $0x610] sm:$0xff] %vm529_vm0, %v16291_v0 }
  0xb6   : > { %725 = vst.msk [vmem:[#allocation2 + $0x618] sm:$0xff] %vm529_vm0, %v16291_v0  ;;  %726 = vst.msk [vmem:[#allocation2 + $0x620] sm:$0xff] %vm529_vm0, %v16291_v0 }
  0xb7   : > { %727 = vst.msk [vmem:[#allocation2 + $0x628] sm:$0xff] %vm529_vm0, %v16291_v0  ;;  %728 = vst.msk [vmem:[#allocation2 + $0x630] sm:$0xff] %vm529_vm0, %v16291_v0 }
  0xb8   : > { %729 = vst.msk [vmem:[#allocation2 + $0x638] sm:$0xff] %vm529_vm0, %v16291_v0  ;;  %730 = vst.msk [vmem:[#allocation2 + $0x640] sm:$0xff] %vm529_vm0, %v16291_v0 }
  0xb9   : > { %731 = vst.msk [vmem:[#allocation2 + $0x648] sm:$0xff] %vm529_vm0, %v16291_v0  ;;  %732 = vst.msk [vmem:[#allocation2 + $0x650] sm:$0xff] %vm529_vm0, %v16291_v0 }
  0xba   : > { %733 = vst.msk [vmem:[#allocation2 + $0x658] sm:$0xff] %vm529_vm0, %v16291_v0  ;;  %734 = vst.msk [vmem:[#allocation2 + $0x660] sm:$0xff] %vm529_vm0, %v16291_v0 }
  0xbb   : > { %735 = vst.msk [vmem:[#allocation2 + $0x668] sm:$0xff] %vm529_vm0, %v16291_v0  ;;  %736 = vst.msk [vmem:[#allocation2 + $0x670] sm:$0xff] %vm529_vm0, %v16291_v0 }
  0xbc   : > { %737 = vst.msk [vmem:[#allocation2 + $0x678] sm:$0xff] %vm529_vm0, %v16291_v0  ;;  %738 = vst.msk [vmem:[#allocation2 + $0x680] sm:$0xff] %vm529_vm0, %v16291_v0 }
  0xbd   : > { %739 = vst.msk [vmem:[#allocation2 + $0x688] sm:$0xff] %vm529_vm0, %v16291_v0  ;;  %740 = vst.msk [vmem:[#allocation2 + $0x690] sm:$0xff] %vm529_vm0, %v16291_v0 }
  0xbe   : > { %741 = vst.msk [vmem:[#allocation2 + $0x698] sm:$0xff] %vm529_vm0, %v16291_v0  ;;  %742 = vst.msk [vmem:[#allocation2 + $0x6a0] sm:$0xff] %vm529_vm0, %v16291_v0 }
  0xbf   : > { %743 = vst.msk [vmem:[#allocation2 + $0x6a8] sm:$0xff] %vm529_vm0, %v16291_v0  ;;  %744 = vst.msk [vmem:[#allocation2 + $0x6b0] sm:$0xff] %vm529_vm0, %v16291_v0 }
  0xc0   : > { %745 = vst.msk [vmem:[#allocation2 + $0x6b8] sm:$0xff] %vm529_vm0, %v16291_v0  ;;  %746 = vst.msk [vmem:[#allocation2 + $0x6c0] sm:$0xff] %vm529_vm0, %v16291_v0 }
  0xc1   : > { %747 = vst.msk [vmem:[#allocation2 + $0x6c8] sm:$0xff] %vm529_vm0, %v16291_v0  ;;  %748 = vst.msk [vmem:[#allocation2 + $0x6d0] sm:$0xff] %vm529_vm0, %v16291_v0 }
  0xc2   : > { %749 = vst.msk [vmem:[#allocation2 + $0x6d8] sm:$0xff] %vm529_vm0, %v16291_v0  ;;  %750 = vst.msk [vmem:[#allocation2 + $0x6e0] sm:$0xff] %vm529_vm0, %v16291_v0 }
  0xc3   : > { %751 = vst.msk [vmem:[#allocation2 + $0x6e8] sm:$0xff] %vm529_vm0, %v16291_v0  ;;  %752 = vst.msk [vmem:[#allocation2 + $0x6f0] sm:$0xff] %vm529_vm0, %v16291_v0 }
  0xc4   : > { %753 = vst.msk [vmem:[#allocation2 + $0x6f8] sm:$0xff] %vm529_vm0, %v16291_v0  ;;  %754 = vst.msk [vmem:[#allocation2 + $0x700] sm:$0xff] %vm529_vm0, %v16291_v0 }
  0xc5   : > { %755 = vst.msk [vmem:[#allocation2 + $0x708] sm:$0xff] %vm529_vm0, %v16291_v0  ;;  %756 = vst.msk [vmem:[#allocation2 + $0x710] sm:$0xff] %vm529_vm0, %v16291_v0 }
  0xc6   : > { %757 = vst.msk [vmem:[#allocation2 + $0x718] sm:$0xff] %vm529_vm0, %v16291_v0  ;;  %758 = vst.msk [vmem:[#allocation2 + $0x720] sm:$0xff] %vm529_vm0, %v16291_v0 }
  0xc7   : > { %759 = vst.msk [vmem:[#allocation2 + $0x728] sm:$0xff] %vm529_vm0, %v16291_v0  ;;  %760 = vst.msk [vmem:[#allocation2 + $0x730] sm:$0xff] %vm529_vm0, %v16291_v0 }
  0xc8   : > { %761 = vst.msk [vmem:[#allocation2 + $0x738] sm:$0xff] %vm529_vm0, %v16291_v0  ;;  %762 = vst.msk [vmem:[#allocation2 + $0x740] sm:$0xff] %vm529_vm0, %v16291_v0 }
  0xc9   : > { %763 = vst.msk [vmem:[#allocation2 + $0x748] sm:$0xff] %vm529_vm0, %v16291_v0  ;;  %764 = vst.msk [vmem:[#allocation2 + $0x750] sm:$0xff] %vm529_vm0, %v16291_v0 }
  0xca   : > { %765 = vst.msk [vmem:[#allocation2 + $0x758] sm:$0xff] %vm529_vm0, %v16291_v0  ;;  %766 = vst.msk [vmem:[#allocation2 + $0x760] sm:$0xff] %vm529_vm0, %v16291_v0 }
  0xcb   : > { %767 = vst.msk [vmem:[#allocation2 + $0x768] sm:$0xff] %vm529_vm0, %v16291_v0  ;;  %768 = vst.msk [vmem:[#allocation2 + $0x770] sm:$0xff] %vm529_vm0, %v16291_v0 }
  0xcc   : > { %769 = vst.msk [vmem:[#allocation2 + $0x778] sm:$0xff] %vm529_vm0, %v16291_v0  ;;  %770 = vst.msk [vmem:[#allocation2 + $0x780] sm:$0xff] %vm529_vm0, %v16291_v0 }
  0xcd   : > { %771 = vst.msk [vmem:[#allocation2 + $0x788] sm:$0xff] %vm529_vm0, %v16291_v0  ;;  %772 = vst.msk [vmem:[#allocation2 + $0x790] sm:$0xff] %vm529_vm0, %v16291_v0 }
  0xce   : > { %773 = vst.msk [vmem:[#allocation2 + $0x798] sm:$0xff] %vm529_vm0, %v16291_v0  ;;  %774 = vst.msk [vmem:[#allocation2 + $0x7a0] sm:$0xff] %vm529_vm0, %v16291_v0 }
  0xcf   : > { %775 = vst.msk [vmem:[#allocation2 + $0x7a8] sm:$0xff] %vm529_vm0, %v16291_v0  ;;  %776 = vst.msk [vmem:[#allocation2 + $0x7b0] sm:$0xff] %vm529_vm0, %v16291_v0 }
  0xd0   : > { %777 = vst.msk [vmem:[#allocation2 + $0x7b8] sm:$0xff] %vm529_vm0, %v16291_v0  ;;  %778 = vst.msk [vmem:[#allocation2 + $0x7c0] sm:$0xff] %vm529_vm0, %v16291_v0 }
  0xd1   : > { %779 = vst.msk [vmem:[#allocation2 + $0x7c8] sm:$0xff] %vm529_vm0, %v16291_v0  ;;  %780 = vst.msk [vmem:[#allocation2 + $0x7d0] sm:$0xff] %vm529_vm0, %v16291_v0 }
  0xd2   : > { %781 = vst.msk [vmem:[#allocation2 + $0x7d8] sm:$0xff] %vm529_vm0, %v16291_v0  ;;  %782 = vst.msk [vmem:[#allocation2 + $0x7e0] sm:$0xff] %vm529_vm0, %v16291_v0 }
  0xd3   : > { %783 = vst.msk [vmem:[#allocation2 + $0x7e8] sm:$0xff] %vm529_vm0, %v16291_v0  ;;  %784 = vst.msk [vmem:[#allocation2 + $0x7f0] sm:$0xff] %vm529_vm0, %v16291_v0 }
  0xd4   : > { %785 = vst.msk [vmem:[#allocation2 + $0x7f8] sm:$0xff] %vm529_vm0, %v16291_v0  ;;  %786 = vst.msk [vmem:[#allocation2 + $0x800] sm:$0xff] %vm529_vm0, %v16291_v0 }
  0xd5   : > { %787 = vst.msk [vmem:[#allocation2 + $0x808] sm:$0xff] %vm529_vm0, %v16291_v0  ;;  %788 = vst.msk [vmem:[#allocation2 + $0x810] sm:$0xff] %vm529_vm0, %v16291_v0 }
  0xd6   : > { %789 = vst.msk [vmem:[#allocation2 + $0x818] sm:$0xff] %vm529_vm0, %v16291_v0  ;;  %790 = vst.msk [vmem:[#allocation2 + $0x820] sm:$0xff] %vm529_vm0, %v16291_v0 }
  0xd7   : > { %791 = vst.msk [vmem:[#allocation2 + $0x828] sm:$0xff] %vm529_vm0, %v16291_v0  ;;  %792 = vst.msk [vmem:[#allocation2 + $0x830] sm:$0xff] %vm529_vm0, %v16291_v0 }
  0xd8   : > { %793 = vst.msk [vmem:[#allocation2 + $0x838] sm:$0xff] %vm529_vm0, %v16291_v0  ;;  %794 = vst.msk [vmem:[#allocation2 + $0x840] sm:$0xff] %vm529_vm0, %v16291_v0 }
  0xd9   : > { %795 = vst.msk [vmem:[#allocation2 + $0x848] sm:$0xff] %vm529_vm0, %v16291_v0  ;;  %796 = vst.msk [vmem:[#allocation2 + $0x850] sm:$0xff] %vm529_vm0, %v16291_v0 }
  0xda   : > { %797 = vst.msk [vmem:[#allocation2 + $0x858] sm:$0xff] %vm529_vm0, %v16291_v0  ;;  %798 = vst.msk [vmem:[#allocation2 + $0x860] sm:$0xff] %vm529_vm0, %v16291_v0 }
  0xdb   : > { %799 = vst.msk [vmem:[#allocation2 + $0x868] sm:$0xff] %vm529_vm0, %v16291_v0  ;;  %800 = vst.msk [vmem:[#allocation2 + $0x870] sm:$0xff] %vm529_vm0, %v16291_v0 }
  0xdc   : > { %801 = vst.msk [vmem:[#allocation2 + $0x878] sm:$0xff] %vm529_vm0, %v16291_v0  ;;  %802 = vst.msk [vmem:[#allocation2 + $0x880] sm:$0xff] %vm529_vm0, %v16291_v0 }
  0xdd   : > { %803 = vst.msk [vmem:[#allocation2 + $0x888] sm:$0xff] %vm529_vm0, %v16291_v0  ;;  %804 = vst.msk [vmem:[#allocation2 + $0x890] sm:$0xff] %vm529_vm0, %v16291_v0 }
  0xde   : > { %805 = vst.msk [vmem:[#allocation2 + $0x898] sm:$0xff] %vm529_vm0, %v16291_v0  ;;  %806 = vst.msk [vmem:[#allocation2 + $0x8a0] sm:$0xff] %vm529_vm0, %v16291_v0 }
  0xdf   : > { %807 = vst.msk [vmem:[#allocation2 + $0x8a8] sm:$0xff] %vm529_vm0, %v16291_v0  ;;  %808 = vst.msk [vmem:[#allocation2 + $0x8b0] sm:$0xff] %vm529_vm0, %v16291_v0 }
  0xe0   : > { %809 = vst.msk [vmem:[#allocation2 + $0x8b8] sm:$0xff] %vm529_vm0, %v16291_v0  ;;  %810 = vst.msk [vmem:[#allocation2 + $0x8c0] sm:$0xff] %vm529_vm0, %v16291_v0 }
  0xe1   : > { %811 = vst.msk [vmem:[#allocation2 + $0x8c8] sm:$0xff] %vm529_vm0, %v16291_v0  ;;  %16600 = vst [vmem:[#allocation19_spill] sm:$0xff] %v11350_v1 }
  0xe2   : > { %16601 = vst [vmem:[#allocation20_spill] sm:$0xff] %v11353_v2  ;;  %16602 = vst [vmem:[#allocation21_spill] sm:$0xff] %v11356_v3 }
  0xe3   : > { %819 = vst.msk [vmem:[#allocation2 + $0x310] sm:$0xff] %vm529_vm0, %v11350_v1  ;;  %820 = vst.msk [vmem:[#allocation2 + $0x318] sm:$0xff] %vm529_vm0, %v11353_v2 }
  0xe4   : > { %821 = vst.msk [vmem:[#allocation2 + $0x340] sm:$0xff] %vm529_vm0, %v11356_v3  ;;  %16603 = vst [vmem:[#allocation22_spill] sm:$0xff] %v11365_v12 }
  0xe5   : > { %16604 = vst [vmem:[#allocation23_spill] sm:$0xff] %v11368_v13  ;;  %16605 = vst [vmem:[#allocation24_spill] sm:$0xff] %v11371_v14 }
  0xe6   : > { %822 = vst.msk [vmem:[#allocation2 + $0x348] sm:$0xff] %vm529_vm0, %v11365_v12  ;;  %823 = vst.msk [vmem:[#allocation2 + $0x370] sm:$0xff] %vm529_vm0, %v11368_v13 }
  0xe7   : > { %824 = vst.msk [vmem:[#allocation2 + $0x378] sm:$0xff] %vm529_vm0, %v11371_v14  ;;  %16606 = vst [vmem:[#allocation25_spill] sm:$0xff] %v11381_v16 }
  0xe8   : > { %16607 = vst [vmem:[#allocation26_spill] sm:$0xff] %v11384_v17  ;;  %16608 = vst [vmem:[#allocation27_spill] sm:$0xff] %v11387_v18 }
  0xe9   : > { %825 = vst.msk [vmem:[#allocation2 + $0x3a0] sm:$0xff] %vm529_vm0, %v11381_v16  ;;  %826 = vst.msk [vmem:[#allocation2 + $0x3a8] sm:$0xff] %vm529_vm0, %v11384_v17 }
  0xea   : > { %16609 = vst [vmem:[#allocation28_spill] sm:$0xff] %v11395_v19  ;;  %827 = vst.msk [vmem:[#allocation2 + $0x3d0] sm:$0xff] %vm529_vm0, %v11387_v18  ;;  %v1319_v28 = vld [vmem:[#allocation2 + $0x310] sm:$0xff]  ;;  %v1320_v29 = vld [vmem:[#allocation2 + $0x318] sm:$0xff] }
  0xeb   : > { %16610 = vst [vmem:[#allocation29_spill] sm:$0xff] %v11400_v20  ;;  %16611 = vst [vmem:[#allocation30_spill] sm:$0xff] %v11403_v21  ;;  %v1321_v30 = vld [vmem:[#allocation2 + $0x340] sm:$0xff]  ;;  %v8674_v31 = vpack.i.bf16 %v1320_v29, %v1319_v28  ;;  %v857_v28 = vadd.f32 %v856_v6, %v855_v5  ;;  %v858_v29 = vsel %vm529_vm0, %v11368_v13, 0.0  ;;  %v864_v6 = vsel %vm529_vm0, %v11384_v17, 0.0 }
  0xec   : > { %828 = vst.msk [vmem:[#allocation2 + $0x3d8] sm:$0xff] %vm529_vm0, %v11395_v19  ;;  %829 = vst.msk [vmem:[#allocation2 + $0x400] sm:$0xff] %vm529_vm0, %v11400_v20 }
  0xed   : > { %830 = vst.msk [vmem:[#allocation2 + $0x408] sm:$0xff] %vm529_vm0, %v11403_v21  ;;  %16612 = vst [vmem:[#allocation31_spill] sm:$0xff] %v11412_v22  ;;  %8675 = vrot.lane.b32.xlu1 %v8674_v31, %s10585_s15  ;;  %v1322_v38 = vld [vmem:[#allocation2 + $0x348] sm:$0xff]  ;;  %v1323_v39 = vld [vmem:[#allocation2 + $0x370] sm:$0xff] }
  0xee   : > { %16613 = vst [vmem:[#allocation32_spill] sm:$0xff] %v11415_v23  ;;  %16614 = vst [vmem:[#allocation33_spill] sm:$0xff] %v11418_v24  ;;  %v1324_v40 = vld [vmem:[#allocation2 + $0x378] sm:$0xff]  ;;  %v8679_v41 = vpack.i.bf16 %v1322_v38, %v1321_v30  ;;  %v1353_v5 = vld [vmem:[#allocation2 + $0x343] sm:$0xff] }
  0xef   : > { %831 = vst.msk [vmem:[#allocation2 + $0x430] sm:$0xff] %vm529_vm0, %v11412_v22  ;;  %832 = vst.msk [vmem:[#allocation2 + $0x438] sm:$0xff] %vm529_vm0, %v11415_v23  ;;  %v8684_v42 = vpack.i.bf16 %v1324_v40, %v1323_v39 }
  0xf0   : > { %16615 = vst [vmem:[#allocation34_spill] sm:$0xff] %v11425_v25  ;;  %833 = vst.msk [vmem:[#allocation2 + $0x460] sm:$0xff] %vm529_vm0, %v11418_v24  ;;  %v1325_v43 = vld [vmem:[#allocation2 + $0x3a0] sm:$0xff]  ;;  %v1326_v44 = vld [vmem:[#allocation2 + $0x3a8] sm:$0xff]  ;;  %8680 = vrot.lane.b32.xlu0 %v8679_v41, %s10585_s15 }
  0xf1   : > { %16616 = vst [vmem:[#allocation35_spill] sm:$0xff] %v11430_v26  ;;  %16617 = vst [vmem:[#allocation36_spill] sm:$0xff] %v11433_v27  ;;  %v1327_v45 = vld [vmem:[#allocation2 + $0x3d0] sm:$0xff]  ;;  %v11478_v49 = vpack.i.bf16 %v1326_v44, %v1325_v43  ;;  %8685 = vrot.lane.b32.xlu1 %v8684_v42, %s10585_s15  ;;  %v859_v42 = vadd.f32 %v858_v29, %v857_v28  ;;  %v860_v43 = vsel %vm529_vm0, %v11371_v14, 0.0  ;;  %v11549_v29 = vld [vmem:[%s11347_s29 + $0xd8] sm:$0xff] }
  0xf2   : > { %834 = vst.msk [vmem:[#allocation2 + $0x468] sm:$0xff] %vm529_vm0, %v11425_v25  ;;  %835 = vst.msk [vmem:[#allocation2 + $0x490] sm:$0xff] %vm529_vm0, %v11430_v26 }
  0xf3   : > { %836 = vst.msk [vmem:[#allocation2 + $0x498] sm:$0xff] %vm529_vm0, %v11433_v27  ;;  %16618 = vst [vmem:[#allocation37_spill] sm:$0xff] %v11443_v32  ;;  %v1328_v46 = vld [vmem:[#allocation2 + $0x3d8] sm:$0xff]  ;;  %v1329_v51 = vld [vmem:[#allocation2 + $0x400] sm:$0xff] }
  0xf4   : > { %16619 = vst [vmem:[#allocation38_spill] sm:$0xff] %v11446_v33  ;;  %16620 = vst [vmem:[#allocation39_spill] sm:$0xff] %v11449_v34  ;;  %v11481_v50 = vpack.i.bf16 %v1328_v46, %v1327_v45  ;;  %v1330_v52 = vld [vmem:[#allocation2 + $0x408] sm:$0xff]  ;;  %8690 = vrot.lane.b32.xlu0 %v11478_v49, %s10585_s15 }
  0xf5   : > { %837 = vst.msk [vmem:[#allocation2 + $0x4c0] sm:$0xff] %vm529_vm0, %v11443_v32  ;;  %838 = vst.msk [vmem:[#allocation2 + $0x4c8] sm:$0xff] %vm529_vm0, %v11446_v33  ;;  %v11497_v59 = vpack.i.bf16 %v1330_v52, %v1329_v51  ;;  %v1345_v46 = vld [vmem:[#allocation2 + $0x283] sm:$0xff]  ;;  %v1348_v51 = vld [vmem:[#allocation2 + $0x2bb] sm:$0xff]  ;;  %v861_v52 = vadd.f32 %v860_v43, %v859_v42 }
  0xf6   : > { %16621 = vst [vmem:[#allocation40_spill] sm:$0xff] %v11456_v35  ;;  %839 = vst.msk [vmem:[#allocation2 + $0x4f0] sm:$0xff] %vm529_vm0, %v11449_v34  ;;  %v1331_v53 = vld [vmem:[#allocation2 + $0x430] sm:$0xff]  ;;  %v1332_v54 = vld [vmem:[#allocation2 + $0x438] sm:$0xff]  ;;  %8695 = vrot.lane.b32.xlu1 %v11481_v50, %s10585_s15  ;;  %v8744_v57 = vpack.i.bf16 %v1348_v51, %v1347_v48 }
  0xf7   : > { %16622 = vst [vmem:[#allocation41_spill] sm:$0xff] %v11461_v36  ;;  %16623 = vst [vmem:[#allocation42_spill] sm:$0xff] %v11464_v37  ;;  %v11501_v60 = vpack.i.bf16 %v1332_v54, %v1331_v53  ;;  %v1333_v61 = vld [vmem:[#allocation2 + $0x460] sm:$0xff]  ;;  %v862_v53 = vsel %vm529_vm0, %v11381_v16, 0.0  ;;  %v8739_v54 = vpack.i.bf16 %v1346_v47, %v1345_v46  ;;  %v11569_v42 = vld [vmem:[%s11347_s29 + $0xf8] sm:$0xff]  ;;  %v866_v46 = vsel %vm529_vm0, %v11387_v18, 0.0 }
  0xf8   : > { %840 = vst.msk [vmem:[#allocation2 + $0x4f8] sm:$0xff] %vm529_vm0, %v11456_v35  ;;  %841 = vst.msk [vmem:[#allocation2 + $0x520] sm:$0xff] %vm529_vm0, %v11461_v36  ;;  %8700 = vrot.lane.b32.xlu0 %v11497_v59, %s10585_s15  ;;  %v1357_v51 = vld [vmem:[#allocation2 + $0x3a3] sm:$0xff] }
  0xf9   : > { %842 = vst.msk [vmem:[#allocation2 + $0x528] sm:$0xff] %vm529_vm0, %v11464_v37  ;;  %16624 = vst [vmem:[#allocation43_spill] sm:$0xff] %v11478_v49  ;;  %v1334_v62 = vld [vmem:[#allocation2 + $0x468] sm:$0xff]  ;;  %v1335_v63 = vld [vmem:[#allocation2 + $0x490] sm:$0xff]  ;;  %v900_v49 = vsel %vm529_vm0, %v11487_v56, 0.0 }
  0xfa   : > { %16625 = vst [vmem:[#allocation44_spill] sm:$0xff] %v11481_v50  ;;  %16626 = vst [vmem:[#allocation45_spill] sm:$0xff] %v11484_v55  ;;  %v1336_v4 = vld [vmem:[#allocation2 + $0x498] sm:$0xff]  ;;  %v11507_v7 = vpack.i.bf16 %v1334_v62, %v1333_v61  ;;  %8705 = vrot.lane.b32.xlu1 %v11501_v60, %s10585_s15  ;;  %v1350_v61 = vld [vmem:[#allocation2 + $0x2eb] sm:$0xff]  ;;  %v890_v50 = vsel %vm529_vm0, %v11449_v34, 0.0 }
  0xfb   : > { %16627 = vst [vmem:[#allocation46_spill] sm:$0xff] %v11487_v56  ;;  %843 = vst.msk [vmem:[#allocation2 + $0x550] sm:$0xff] %vm529_vm0, %v11484_v55  ;;  %v11511_v8 = vpack.i.bf16 %v1336_v4, %v1335_v63  ;;  %v1351_v62 = vld [vmem:[#allocation2 + $0x313] sm:$0xff]  ;;  %v1352_v63 = vld [vmem:[#allocation2 + $0x31b] sm:$0xff]  ;;  %v863_v4 = vadd.f32 %v862_v53, %v861_v52 }
  0xfc   : > { %844 = vst.msk [vmem:[#allocation2 + $0x558] sm:$0xff] %vm529_vm0, %v11487_v56  ;;  %16628 = vst [vmem:[#allocation47_spill] sm:$0xff] %v11497_v59  ;;  %v1337_v9 = vld [vmem:[#allocation2 + $0x4c0] sm:$0xff]  ;;  %v1338_v10 = vld [vmem:[#allocation2 + $0x4c8] sm:$0xff]  ;;  %8710 = vrot.lane.b32.xlu0 %v11507_v7, %s10585_s15  ;;  %v11546_v28 = vpack.i.bf16 %v1352_v63, %v1351_v62  ;;  %v904_v56 = vsel %vm529_vm0, %v11549_v29, 0.0 }
  0xfd   : > { %16629 = vst [vmem:[#allocation48_spill] sm:$0xff] %v11501_v60  ;;  %16630 = vst [vmem:[#allocation49_spill] sm:$0xff] %v11507_v7  ;;  %v1339_v11 = vld [vmem:[#allocation2 + $0x4f0] sm:$0xff]  ;;  %v11517_v30 = vpack.i.bf16 %v1338_v10, %v1337_v9  ;;  %v8749_v9 = vpack.i.bf16 %v1350_v61, %v1349_v58  ;;  %v865_v43 = vadd.f32 %v864_v6, %v863_v4  ;;  %v868_v58 = vsel %vm529_vm0, %v11395_v19, 0.0  ;;  %v1361_v63 = vld [vmem:[#allocation2 + $0x403] sm:$0xff] }
  0xfe   : > { %16631 = vst [vmem:[#allocation50_spill] sm:$0xff] %v11511_v8  ;;  %8715 = vrot.lane.b32.xlu1 %v11511_v8, %s10585_s15  ;;  %v1354_v10 = vld [vmem:[#allocation2 + $0x34b] sm:$0xff]  ;;  %16637 = vst [vmem:[#allocation56_spill] sm:$0xff] %v11549_v29  ;;  %v1359_v53 = vld [vmem:[#allocation2 + $0x3d3] sm:$0xff]  ;;  %v884_v8 = vsel %vm529_vm0, %v11433_v27, 0.0  ;;  %v886_v60 = vsel %vm529_vm0, %v11443_v32, 0.0 }
  0xff   : > { %v1340_v15 = vld [vmem:[#allocation2 + $0x4f8] sm:$0xff]  ;;  %16632 = vst [vmem:[#allocation51_spill] sm:$0xff] %v11517_v30  ;;  %v1341_v38 = vld [vmem:[#allocation2 + $0x520] sm:$0xff]  ;;  %846 = vst.msk [vmem:[#allocation2 + $0x588] sm:$0xff] %vm529_vm0, %v11549_v29  ;;  %v11578_v47 = vpack.i.bf16 %v1354_v10, %v1353_v5 }
 0x100   : > { %v11521_v31 = vpack.i.bf16 %v1340_v15, %v1339_v11  ;;  %v1342_v39 = vld [vmem:[#allocation2 + $0x528] sm:$0xff]  ;;  %8720 = vrot.lane.b32.xlu0 %v11517_v30, %s10585_s15  ;;  %v1355_v11 = vld [vmem:[#allocation2 + $0x373] sm:$0xff]  ;;  %16641 = vst [vmem:[#allocation60_spill] sm:$0xff] %v11569_v42  ;;  %850 = vst.msk [vmem:[#allocation2 + $0x5e8] sm:$0xff] %vm529_vm0, %v11569_v42 }
 0x101   : > { %v11527_v44 = vpack.i.bf16 %v1342_v39, %v1341_v38  ;;  %v11543_v15 = vld [vmem:[%s11347_s29 + $0xd0] sm:$0xff]  ;;  %v11554_v38 = vld [vmem:[%s11347_s29 + $0xe0] sm:$0xff]  ;;  %v11557_v39 = vld [vmem:[%s11347_s29 + $0xe8] sm:$0xff] }
 0x102   : > { %16633 = vst [vmem:[#allocation52_spill] sm:$0xff] %v11521_v31  ;;  %v1343_v40 = vld [vmem:[#allocation2 + $0x550] sm:$0xff]  ;;  %8725 = vrot.lane.b32.xlu1 %v11521_v31, %s10585_s15  ;;  %16636 = vst [vmem:[#allocation55_spill] sm:$0xff] %v11543_v15  ;;  %v1364_v6 = vld [vmem:[#allocation2 + $0x43b] sm:$0xff]  ;;  %v880_v31 = vsel %vm529_vm0, %v11425_v25, 0.0  ;;  %v908_v29 = vsel %vm529_vm0, %v11557_v39, 0.0 }
 0x103   : > { %v1344_v41 = vld [vmem:[#allocation2 + $0x558] sm:$0xff]  ;;  %16634 = vst [vmem:[#allocation53_spill] sm:$0xff] %v11527_v44  ;;  %845 = vst.msk [vmem:[#allocation2 + $0x580] sm:$0xff] %vm529_vm0, %v11543_v15  ;;  %v1358_v52 = vld [vmem:[#allocation2 + $0x3ab] sm:$0xff] }
 0x104   : > { %v11531_v45 = vpack.i.bf16 %v1344_v41, %v1343_v40  ;;  %8730 = vrot.lane.b32.xlu0 %v11527_v44, %s10585_s15  ;;  %16638 = vst [vmem:[#allocation57_spill] sm:$0xff] %v11554_v38  ;;  %16639 = vst [vmem:[#allocation58_spill] sm:$0xff] %v11557_v39  ;;  %v1356_v40 = vld [vmem:[#allocation2 + $0x37b] sm:$0xff]  ;;  %v11566_v41 = vld [vmem:[%s11347_s29 + $0xf0] sm:$0xff]  ;;  %v11588_v61 = vpack.i.bf16 %v1358_v52, %v1357_v51  ;;  %s16223_s29 = scalar_lea.sflag [#allocation5], %s488_s18 }
 0x105   : > { %847 = vst.msk [vmem:[#allocation2 + $0x5b0] sm:$0xff] %vm529_vm0, %v11554_v38  ;;  %848 = vst.msk [vmem:[#allocation2 + $0x5b8] sm:$0xff] %vm529_vm0, %v11557_v39  ;;  %v11582_v48 = vpack.i.bf16 %v1356_v40, %v1355_v11  ;;  %v1362_v4 = vld [vmem:[#allocation2 + $0x40b] sm:$0xff]  ;;  %v1363_v5 = vld [vmem:[#allocation2 + $0x433] sm:$0xff]  ;;  %v870_v40 = vsel %vm529_vm0, %v11400_v20, 0.0 }
 0x106   : > { %16635 = vst [vmem:[#allocation54_spill] sm:$0xff] %v11531_v45  ;;  %8735 = vrot.lane.b32.xlu1 %v11531_v45, %s10585_s15  ;;  %16640 = vst [vmem:[#allocation59_spill] sm:$0xff] %v11566_v41  ;;  %v1365_v10 = vld [vmem:[#allocation2 + $0x463] sm:$0xff]  ;;  %v1366_v11 = vld [vmem:[#allocation2 + $0x46b] sm:$0xff]  ;;  %v11602_v52 = vpack.i.bf16 %v1364_v6, %v1363_v5  ;;  %v874_v6 = vsel %vm529_vm0, %v11412_v22, 0.0 }
 0x107   : > { %849 = vst.msk [vmem:[#allocation2 + $0x5e0] sm:$0xff] %vm529_vm0, %v11566_v41  ;;  %v1368_v51 = vld [vmem:[#allocation2 + $0x49b] sm:$0xff]  ;;  %v1371_v0 = vld [vmem:[#allocation2 + $0x4f3] sm:$0xff]  ;;  %v1380_v30 = vld [vmem:[#allocation2 + $0x345] sm:$0xff] }
 0x108   : > { %8740 = vrot.lane.b32.xlu0 %v8739_v54, %s10586_s24  ;;  %v1360_v54 = vld [vmem:[#allocation2 + $0x3db] sm:$0xff] }
 0x109   : > { %v11592_v62 = vpack.i.bf16 %v1360_v54, %v1359_v53  ;;  %v11606_v54 = vpack.i.bf16 %v1366_v11, %v1365_v10  ;;  %v1372_v5 = vld [vmem:[#allocation2 + $0x4fb] sm:$0xff]  ;;  %v1373_v11 = vld [vmem:[#allocation2 + $0x523] sm:$0xff] }
 0x10a   : > { %8745 = vrot.lane.b32.xlu1 %v8744_v57, %s10586_s24  ;;  %v867_v57 = vadd.f32 %v866_v46, %v865_v43  ;;  %v11598_v43 = vpack.i.bf16 %v1362_v4, %v1361_v63  ;;  %v1367_v46 = vld [vmem:[#allocation2 + $0x493] sm:$0xff]  ;;  %v1370_v4 = vld [vmem:[#allocation2 + $0x4cb] sm:$0xff]  ;;  %v1376_v44 = vld [vmem:[#allocation2 + $0x55b] sm:$0xff] }
 0x10b   : > { %v11612_v63 = vpack.i.bf16 %v1368_v51, %v1367_v46  ;;  %v11624_v46 = vpack.i.bf16 %v1372_v5, %v1371_v0  ;;  %v1374_v51 = vld [vmem:[#allocation2 + $0x52b] sm:$0xff]  ;;  %v1378_v5 = vld [vmem:[#allocation2 + $0x315] sm:$0xff]  ;;  %v1383_v7 = vld [vmem:[#allocation2 + $0x39d] sm:$0xff] }
 0x10c   : > { %8750 = vrot.lane.b32.xlu0 %v8749_v9, %s10586_s24  ;;  %v869_v9 = vadd.f32 %v868_v58, %v867_v57  ;;  %v1369_v57 = vld [vmem:[#allocation2 + $0x4c3] sm:$0xff]  ;;  %v872_v58 = vsel %vm529_vm0, %v11403_v21, 0.0 }
 0x10d   : > { %v11618_v10 = vpack.i.bf16 %v1370_v4, %v1369_v57  ;;  %v11630_v57 = vpack.i.bf16 %v1374_v51, %v1373_v11  ;;  %v1377_v4 = vld [vmem:[#allocation2 + $0x30d] sm:$0xff] }
 0x10e   : > { %8755 = vrot.lane.b32.xlu1 %v11546_v28, %s10586_s24  ;;  %v871_v53 = vadd.f32 %v870_v40, %v869_v9  ;;  %v876_v40 = vsel %vm529_vm0, %v11415_v23, 0.0  ;;  %v8819_v11 = vpack.i.bf16 %v1378_v5, %v1377_v4  ;;  %v1381_v51 = vld [vmem:[#allocation2 + $0x36d] sm:$0xff] }
 0x10f   : > { %v1385_v5 = vld [vmem:[#allocation2 + $0x3cd] sm:$0xff] }
 0x110   : > { %8760 = vrot.lane.b32.xlu0 %v11578_v47, %s10586_s24  ;;  %v873_v45 = vadd.f32 %v872_v58, %v871_v53  ;;  %v1375_v53 = vld [vmem:[#allocation2 + $0x553] sm:$0xff] }
 0x111   : > { %v11636_v0 = vpack.i.bf16 %v1376_v44, %v1375_v53  ;;  %v1382_v53 = vld [vmem:[#allocation2 + $0x375] sm:$0xff] }
 0x112   : > { %8765 = vrot.lane.b32.xlu1 %v11582_v48, %s10586_s24  ;;  %v875_v9 = vadd.f32 %v874_v6, %v873_v45  ;;  %v878_v45 = vsel %vm529_vm0, %v11418_v24, 0.0  ;;  %v8829_v4 = vpack.i.bf16 %v1382_v53, %v1381_v51  ;;  %v1389_v51 = vld [vmem:[#allocation2 + $0x42d] sm:$0xff]  ;;  %v892_v53 = vsel %vm529_vm0, %v11456_v35, 0.0 }
 0x114   : > { %8770 = vrot.lane.b32.xlu0 %v11588_v61, %s10586_s24  ;;  %v877_v58 = vadd.f32 %v876_v40, %v875_v9  ;;  %v1379_v9 = vld [vmem:[#allocation2 + $0x33d] sm:$0xff] }
 0x115   : > { %v8824_v44 = vpack.i.bf16 %v1380_v30, %v1379_v9  ;;  %v1386_v30 = vld [vmem:[#allocation2 + $0x3d5] sm:$0xff]  ;;  %v1387_v9 = vld [vmem:[#allocation2 + $0x3fd] sm:$0xff] }
 0x116   : > { %8775 = vrot.lane.b32.xlu1 %v11592_v62, %s10586_s24  ;;  %v879_v6 = vadd.f32 %v878_v45, %v877_v58  ;;  %v882_v58 = vsel %vm529_vm0, %v11430_v26, 0.0 }
 0x118   : > { %8780 = vrot.lane.b32.xlu0 %v11598_v43, %s10586_s24  ;;  %v881_v40 = vadd.f32 %v880_v31, %v879_v6  ;;  %v1384_v6 = vld [vmem:[#allocation2 + $0x3a5] sm:$0xff] }
 0x119   : > { %v11652_v59 = vpack.i.bf16 %v1384_v6, %v1383_v7 }
 0x11a   : > { %8785 = vrot.lane.b32.xlu1 %v11602_v52, %s10586_s24  ;;  %v883_v45 = vadd.f32 %v882_v58, %v881_v40  ;;  %v888_v58 = vsel %vm529_vm0, %v11446_v33, 0.0 }
 0x11c   : > { %8790 = vrot.lane.b32.xlu0 %v11606_v54, %s10586_s24  ;;  %v885_v31 = vadd.f32 %v884_v8, %v883_v45  ;;  %v1388_v45 = vld [vmem:[#allocation2 + $0x405] sm:$0xff] }
 0x11d   : > { %v11663_v7 = vpack.i.bf16 %v1388_v45, %v1387_v9  ;;  %v1395_v45 = vld [vmem:[#allocation2 + $0x4bd] sm:$0xff] }
 0x11e   : > { %8795 = vrot.lane.b32.xlu1 %v11612_v63, %s10586_s24  ;;  %v887_v40 = vadd.f32 %v886_v60, %v885_v31  ;;  %v1391_v31 = vld [vmem:[#allocation2 + $0x45d] sm:$0xff] }
 0x120   : > { %8800 = vrot.lane.b32.xlu0 %v11618_v10, %s10586_s24  ;;  %v889_v8 = vadd.f32 %v888_v58, %v887_v40  ;;  %v1392_v40 = vld [vmem:[#allocation2 + $0x465] sm:$0xff] }
 0x121   : > { %v11675_v9 = vpack.i.bf16 %v1392_v40, %v1391_v31  ;;  %v1398_v40 = vld [vmem:[#allocation2 + $0x4f5] sm:$0xff] }
 0x122   : > { %8805 = vrot.lane.b32.xlu1 %v11624_v46, %s10586_s24  ;;  %v891_v60 = vadd.f32 %v890_v50, %v889_v8  ;;  %v894_v50 = vsel %vm529_vm0, %v11461_v36, 0.0  ;;  %v1394_v8 = vld [vmem:[#allocation2 + $0x495] sm:$0xff] }
 0x124   : > { %8810 = vrot.lane.b32.xlu0 %v11630_v57, %s10586_s24  ;;  %v893_v6 = vadd.f32 %v892_v53, %v891_v60  ;;  %v1396_v53 = vld [vmem:[#allocation2 + $0x4c5] sm:$0xff] }
 0x125   : > { %v11687_v31 = vpack.i.bf16 %v1396_v53, %v1395_v45  ;;  %v1403_v53 = vld [vmem:[#allocation2 + $0x57d] sm:$0xff] }
 0x126   : > { %8815 = vrot.lane.b32.xlu1 %v11636_v0, %s10586_s24  ;;  %v895_v58 = vadd.f32 %v894_v50, %v893_v6  ;;  %v898_v6 = vsel %vm529_vm0, %v11484_v55, 0.0  ;;  %v1404_v55 = vld [vmem:[#allocation2 + $0x585] sm:$0xff] }
 0x128   : > { %8820 = vrot.lane.b32.xlu0 %v8819_v11, %s10587_s21  ;;  %v11657_v11 = vpack.i.bf16 %v1386_v30, %v1385_v5  ;;  %v1393_v5 = vld [vmem:[#allocation2 + $0x48d] sm:$0xff]  ;;  %v896_v30 = vsel %vm529_vm0, %v11464_v37, 0.0  ;;  %v1400_v37 = vld [vmem:[#allocation2 + $0x525] sm:$0xff] }
 0x129   : > { %v897_v60 = vadd.f32 %v896_v30, %v895_v58  ;;  %v1399_v58 = vld [vmem:[#allocation2 + $0x51d] sm:$0xff] }
 0x12a   : > { %8825 = vrot.lane.b32.xlu1 %v8824_v44, %s10587_s21  ;;  %v1390_v44 = vld [vmem:[#allocation2 + $0x435] sm:$0xff]  ;;  %v11699_v45 = vpack.i.bf16 %v1400_v37, %v1399_v58  ;;  %v11711_v37 = vpack.i.bf16 %v1404_v55, %v1403_v53  ;;  %v1407_v58 = vld [vmem:[#allocation2 + $0x5dd] sm:$0xff] }
 0x12b   : > { %v899_v50 = vadd.f32 %v898_v6, %v897_v60  ;;  %v902_v60 = vsel %vm529_vm0, %v11543_v15, 0.0  ;;  %v1408_v15 = vld [vmem:[#allocation2 + $0x5e5] sm:$0xff] }
 0x12c   : > { %8830 = vrot.lane.b32.xlu0 %v8829_v4, %s10587_s21  ;;  %v11669_v4 = vpack.i.bf16 %v1390_v44, %v1389_v51  ;;  %v11681_v51 = vpack.i.bf16 %v1394_v8, %v1393_v5  ;;  %v1397_v44 = vld [vmem:[#allocation2 + $0x4ed] sm:$0xff]  ;;  %v11723_v55 = vpack.i.bf16 %v1408_v15, %v1407_v58 }
 0x12d   : > { %v901_v30 = vadd.f32 %v900_v49, %v899_v50  ;;  %v11693_v5 = vpack.i.bf16 %v1398_v40, %v1397_v44  ;;  %v1401_v8 = vld [vmem:[#allocation2 + $0x54d] sm:$0xff]  ;;  %v1402_v49 = vld [vmem:[#allocation2 + $0x555] sm:$0xff] }
 0x12e   : > { %8835 = vrot.lane.b32.xlu1 %v11652_v59, %s10587_s21  ;;  %v11705_v44 = vpack.i.bf16 %v1402_v49, %v1401_v8  ;;  %v1405_v40 = vld [vmem:[#allocation2 + $0x5ad] sm:$0xff]  ;;  %v912_v49 = vsel %vm529_vm0, %v11569_v42, 0.0  ;;  %v16315_v42 = vmov 0.0|0.0  }
 0x12f   : > { %v903_v6 = vadd.f32 %v902_v60, %v901_v30  ;;  %v906_v30 = vsel %vm529_vm0, %v11554_v38, 0.0  ;;  %8559 = vmatprep.subr.bf16.mxu1 %v16315_v42  ;;  %v924_v58 = vld [vmem:[#allocation3 + $0x10] sm:$0xff] }
 0x130   : > { %8840 = vrot.lane.b32.xlu0 %v11657_v11, %s10587_s21 }
 0x131   : > { %v905_v50 = vadd.f32 %v904_v56, %v903_v6  ;;  %v1406_v56 = vld [vmem:[#allocation2 + $0x5b5] sm:$0xff] }
 0x132   : > { %8845 = vrot.lane.b32.xlu1 %v11663_v7, %s10587_s21  ;;  %v11717_v8 = vpack.i.bf16 %v1406_v56, %v1405_v40  ;;  %v923_v40 = vld [vmem:[#allocation3 + $0x8] sm:$0xff] }
 0x133   : > { %v907_v60 = vadd.f32 %v906_v30, %v905_v50  ;;  %v910_v50 = vsel %vm529_vm0, %v11566_v41, 0.0 }
 0x134   : > { %8850 = vrot.lane.b32.xlu0 %v11669_v4, %s10587_s21 }
 0x135   : > { %v909_v6 = vadd.f32 %v908_v29, %v907_v60 }
 0x136   : > { %8855 = vrot.lane.b32.xlu1 %v11675_v9, %s10587_s21 }
 0x137   : > { %v911_v30 = vadd.f32 %v910_v50, %v909_v6  ;;  %v922_v6 = vld [vmem:[#allocation3] sm:$0xff] }
 0x138   : > { %8860 = vrot.lane.b32.xlu0 %v11681_v51, %s10587_s21  ;;  %v8560_v56 = vpack.c.bf16 %v923_v40, %v922_v6 }
 0x139   : > { %v913_v53 = vadd.f32 %v912_v49, %v911_v30  ;;  %v925_v30 = vld [vmem:[#allocation3 + $0x18] sm:$0xff] }
 0x13a   : > { %8865 = vrot.lane.b32.xlu1 %v11687_v31, %s10587_s21  ;;  %8561 = vmatpush3.bf16.msra.mxu1 %v8560_v56  ;;  %v8563_v49 = vpack.c.bf16 %v925_v30, %v924_v58  ;;  %v1437_v56 = vld [vmem:[#allocation2 + $0x5b3] sm:$0xff]  ;;  %v1440_v58 = vld [vmem:[#allocation2 + $0x5eb] sm:$0xff]  ;;  %v1003_v30 = vpack.c.bf16 %v11384_v17, %v11381_v16 }
 0x13b   : > { %v914_v29 = vrot.slane %v913_v53, 4  ;;  %8562 = vmatprep.subr.bf16.mxu1 %v16315_v42  ;;  %v16657_v42 = vld [vmem:[#allocation48_spill] sm:$0xff]  ;;  %v3174_v16 = vld [vmem:[#allocation2 + $0x287] sm:$0xff] }
 0x13c   : > { %8870 = vrot.lane.b32.xlu0 %v11693_v5, %s10587_s21  ;;  %v3186_v17 = vld [vmem:[#allocation2 + $0x3a7] sm:$0xff] }
 0x13d   : > { %v915_v60 = vadd.f32 %v914_v29, %v913_v53  ;;  %v10339_v29 = vld [vmem:[#allocation6] sm:$0xff]  }
 0x13e   : > { %8875 = vrot.lane.b32.xlu1 %v11699_v45, %s10587_s21  ;;  %8564 = vmatpush3.bf16.msra.mxu1 %v8563_v49 }
 0x13f   : > { %v916_v50 = vrot.slane %v915_v60, 2  ;;  %8356 = vmatprep.subr.bf16.mxu1 %v10339_v29 }
 0x140   : > { %8880 = vrot.lane.b32.xlu0 %v11705_v44, %s10587_s21 }
 0x141   : > { %v917_v15 = vadd.f32 %v916_v50, %v915_v60  ;;  %v1436_v60 = vld [vmem:[#allocation2 + $0x58b] sm:$0xff]  ;;  %v1438_v50 = vld [vmem:[#allocation2 + $0x5bb] sm:$0xff] }
 0x142   : > { %8885 = vrot.lane.b32.xlu1 %v11711_v37, %s10587_s21 }
 0x143   : > { %v918_v53 = vrot.slane %v917_v15, 1 }
 0x144   : > { %8890 = vrot.lane.b32.xlu0 %v11717_v8, %s10587_s21 }
 0x146   : > { %8895 = vrot.lane.b32.xlu1 %v11723_v55, %s10587_s21 }
 0x148   : > { %8900 = vrot.lane.b32.xlu0 %v11546_v28, %s10585_s15  ;;  %v919_v28 = vadd.f32 %v918_v53, %v917_v15  ;;  %v1439_v15 = vld [vmem:[#allocation2 + $0x5e3] sm:$0xff] }
 0x149   : > { %v10342_v53 = vld [vmem:[%s16269_s5] sm:$0xff]  }
 0x14a   : > { %8905 = vrot.lane.b32.xlu1 %v11578_v47, %s10585_s15  ;;  %v921_v6 = vmul.f32 0.00390625, %v919_v28  ;;  %v16642_v47 = vmov 0.0   ;;  %v8974_v28 = vpack.i.bf16 %v1440_v58, %v1439_v15  ;;  %v1006_v15 = vpack.c.bf16 %v11415_v23, %v11412_v22 }
 0x14b   : > { %8353 = vmatprep.mubr.msk.f32.mxu1 %vm10589_vm1, %v16642_v47 }
 0x14c   : > { %8910 = vrot.lane.b32.xlu0 %v11582_v48, %s10585_s15  ;;  %8354 = vmatmul.mubr.msk.f32.vlgmr.msra.gmra.mrb[0].mxu1 %vm529_vm0, %v921_v6  ;;  %v10340_v48 = vld [vmem:[#allocation6 + $0x8] sm:$0xff]  }
 0x14d   : > { %8357 = vmatpush3.bf16.msra.mxu1 %v10339_v29 }
 0x14e   : > { %8915 = vrot.lane.b32.xlu1 %v11588_v61, %s10585_s15  ;;  %8358 = vmatprep.subr.bf16.mxu1 %v10340_v48  ;;  %v1000_v61 = vpack.c.bf16 %v11353_v2, %v11350_v1  ;;  %v10411_v1 = vld [vmem:[#allocation2 + $0x3d5] sm:$0xff] }
 0x150   : > { %8920 = vrot.lane.b32.xlu0 %v11592_v62, %s10585_s15  ;;  %v1001_v62 = vpack.c.bf16 %v11365_v12, %v11356_v3  ;;  %8360 = vmatprep.mubr.msk.bf16.mxu1 %vm529_vm0, %v1000_v61  ;;  %v1004_v61 = vpack.c.bf16 %v11395_v19, %v11387_v18  ;;  %v3170_v19 = vld [vmem:[#allocation2 + $0x227] sm:$0xff]  ;;  %v12195_v12 = vld [vmem:[#allocation2 + $0x3f9] sm:$0xff] }
 0x151   : > { %8359 = vmatpush3.bf16.msra.mxu1 %v10340_v48  ;;  %v10344_v48 = vld [vmem:[%s16269_s5 + $0x8] sm:$0xff]   ;;  %16716 = vst [vmem:[#allocation108_spill] sm:$0xff] %v12195_v12  ;;  %v10417_v12 = vld [vmem:[#allocation2 + $0x4f5] sm:$0xff] }
 0x152   : > { %8925 = vrot.lane.b32.xlu1 %v11598_v43, %s10585_s15  ;;  %v11757_v43 = vpop.permute.xlu0 %8660  ;;  %v10406_v3 = vld [vmem:[#allocation2 + $0x345] sm:$0xff] }
 0x154   : > { %8930 = vrot.lane.b32.xlu0 %v11602_v52, %s10585_s15  ;;  %v11761_v52 = vpop.permute.xlu1 %8670  ;;  %8361 = vmatmul.mubr.msk.bf16.vlgmr.msra.gmra.mrb[4].mxu1 %vm529_vm0, %v1001_v62 }
 0x156   : > { %8935 = vrot.lane.b32.xlu1 %v11606_v54, %s10585_s15  ;;  %v1435_v54 = vld [vmem:[#allocation2 + $0x583] sm:$0xff]  ;;  %v11766_v40 = vpop.permute.xlu0 %8665 }
 0x158   : > { %8940 = vrot.lane.b32.xlu0 %v11612_v63, %s10585_s15  ;;  %v8964_v63 = vpack.i.bf16 %v1436_v60, %v1435_v54  ;;  %v1005_v54 = vpack.c.bf16 %v11403_v21, %v11400_v20  ;;  %v3138_v20 = vld [vmem:[#allocation2 + $0x220] sm:$0xff] }
 0x15a   : > { %8945 = vrot.lane.b32.xlu1 %v11618_v10, %s10585_s15  ;;  %v1002_v10 = vpack.c.bf16 %v11371_v14, %v11368_v13  ;;  %v3191_v13 = vld [vmem:[#allocation2 + $0x40f] sm:$0xff] }
 0x15c   : > { %8950 = vrot.lane.b32.xlu0 %v11624_v46, %s10585_s15  ;;  %8364 = vmatprep.mubr.msk.bf16.mxu1 %vm529_vm0, %v1002_v10  ;;  %v10341_v46 = vld [vmem:[%s16269_s5 + $0x40] sm:$0xff]  }
 0x15d   : > { %7926 = vmatprep.subr.bf16.mxu0 %v10341_v46  ;;  %8365 = vmatmul.mubr.msk.bf16.gmra.mrb[8].mxu1 %vm529_vm0, %v1003_v30  ;;  %v1007_v30 = vpack.c.bf16 %v11425_v25, %v11418_v24  ;;  %v1501_v24 = vld [vmem:[#allocation2 + $0x618] sm:$0xff] }
 0x15e   : > { %8955 = vrot.lane.b32.xlu1 %v11630_v57, %s10585_s15  ;;  %v8969_v57 = vpack.i.bf16 %v1438_v50, %v1437_v56  ;;  %7927 = vmatpush3.bf16.msra.mxu0 %v10342_v53  ;;  %v10346_v56 = vld [vmem:[%s16269_s5 + $0x10] sm:$0xff]  }
 0x15f   : > { %v11774_v49 = vpop.permute.xlu1 %8675  ;;  %8571 = vmatprep.subr.bf16.mxu1 %v10341_v46  ;;  %8368 = vmatprep.mubr.msk.bf16.mxu1 %vm529_vm0, %v1004_v61 }
 0x160   : > { %8960 = vrot.lane.b32.xlu0 %v11636_v0, %s10585_s15  ;;  %v10343_v0 = vld [vmem:[%s16269_s5 + $0x48] sm:$0xff]   ;;  %8579 = vmatpush3.bf16.msra.mxu1 %v10342_v53 }
 0x161   : > { %7928 = vmatprep.subr.bf16.mxu0 %v10343_v0  ;;  %8572 = vmatprep.subr.bf16.mxu1 %v10343_v0 }
 0x162   : > { %8965 = vrot.lane.b32.xlu1 %v8964_v63, %s10585_s15  ;;  %v11786_v29 = vpop.permute.xlu0 %8680  ;;  %7929 = vmatpush3.bf16.msra.mxu0 %v10344_v48  ;;  %v10345_v63 = vld [vmem:[%s16269_s5 + $0x50] sm:$0xff]  }
 0x163   : > { %v11789_v6 = vpop.permute.xlu1 %8685  ;;  %7930 = vmatprep.subr.bf16.mxu0 %v10345_v63 }
 0x164   : > { %8970 = vrot.lane.b32.xlu0 %v8969_v57, %s10585_s15  ;;  %8580 = vmatpush3.bf16.msra.mxu1 %v10344_v48  ;;  %v1009_v48 = vpack.c.bf16 %v11446_v33, %v11443_v32  ;;  %v1495_v32 = vld [vmem:[#allocation2 + $0x588] sm:$0xff]  ;;  %v1497_v33 = vld [vmem:[#allocation2 + $0x5b8] sm:$0xff] }
 0x165   : > { %8369 = vmatmul.mubr.msk.bf16.gmra.mrb[12].mxu1 %vm529_vm0, %v1005_v54  ;;  %8573 = vmatprep.subr.bf16.mxu1 %v10345_v63  ;;  %v1468_v63 = vld [vmem:[#allocation2 + $0x60d] sm:$0xff] }
 0x166   : > { %8975 = vrot.lane.b32.xlu1 %v8974_v28, %s10585_s15  ;;  %v11801_v62 = vpop.permute.xlu0 %8690  ;;  %7931 = vmatpush3.bf16.msra.mxu0 %v10346_v56  ;;  %v1008_v28 = vpack.c.bf16 %v11433_v27, %v11430_v26  ;;  %v1499_v27 = vld [vmem:[#allocation2 + $0x5e8] sm:$0xff] }
 0x167   : > { %8372 = vmatprep.mubr.msk.bf16.mxu1 %vm529_vm0, %v1006_v15  ;;  %v1470_v15 = vld [vmem:[#allocation2 + $0x63d] sm:$0xff]  ;;  %v8692_v14 = vunpack.i.l.bf16 %v11801_v62 }
 0x168   : > { %v11805_v60 = vpop.permute.xlu1 %8695  ;;  %8980 = vrot.lane.b32.xlu0 %v11652_v59, %s10586_s24  ;;  %v10347_v59 = vld [vmem:[%s16269_s5 + $0x58] sm:$0xff]   ;;  %8581 = vmatpush3.bf16.msra.mxu1 %v10346_v56 }
 0x169   : > { %7932 = vmatprep.subr.bf16.mxu0 %v10347_v59  ;;  %8574 = vmatprep.subr.bf16.mxu1 %v10347_v59  ;;  %v1469_v56 = vld [vmem:[#allocation2 + $0x615] sm:$0xff] }
 0x16a   : > { %8985 = vrot.lane.b32.xlu1 %v11657_v11, %s10586_s24  ;;  %v11818_v50 = vpop.permute.xlu0 %8700  ;;  %v10348_v11 = vld [vmem:[%s16269_s5 + $0x18] sm:$0xff]  }
 0x16b   : > { %16643 = vst [vmem:[#allocation61_spill] sm:$0xff] %v11818_v50  ;;  %7933 = vmatpush3.bf16.msra.mxu0 %v10348_v11 }
 0x16c   : > { %v11821_v10 = vpop.permute.xlu1 %8705  ;;  %8990 = vrot.lane.b32.xlu0 %v11663_v7, %s10586_s24  ;;  %v10349_v7 = vld [vmem:[%s16269_s5 + $0x60] sm:$0xff]   ;;  %8582 = vmatpush3.bf16.msra.mxu1 %v10348_v11  ;;  %v9044_v11 = vpack.i.bf16 %v1469_v56, %v1468_v63 }
 0x16d   : > { %16644 = vst [vmem:[#allocation62_spill] sm:$0xff] %v11821_v10  ;;  %7934 = vmatprep.subr.bf16.mxu0 %v10349_v7  ;;  %8373 = vmatmul.mubr.msk.bf16.gmra.mrb[16].mxu1 %vm529_vm0, %v1007_v30  ;;  %v1471_v30 = vld [vmem:[#allocation2 + $0x645] sm:$0xff] }
 0x16e   : > { %8995 = vrot.lane.b32.xlu1 %v11669_v4, %s10586_s24  ;;  %v11835_v58 = vpop.permute.xlu0 %8710  ;;  %v10350_v4 = vld [vmem:[%s16269_s5 + $0x20] sm:$0xff]   ;;  %8575 = vmatprep.subr.bf16.mxu1 %v10349_v7  ;;  %v1010_v7 = vpack.c.bf16 %v11456_v35, %v11449_v34  ;;  %v16663_v35 = vld [vmem:[#allocation52_spill] sm:$0xff]  ;;  %v16666_v10 = vld [vmem:[#allocation54_spill] sm:$0xff] }
 0x16f   : > { %16645 = vst [vmem:[#allocation63_spill] sm:$0xff] %v11835_v58  ;;  %7935 = vmatpush3.bf16.msra.mxu0 %v10350_v4  ;;  %8376 = vmatprep.mubr.msk.bf16.mxu1 %vm529_vm0, %v1008_v28 }
 0x170   : > { %v11839_v46 = vpop.permute.xlu1 %8715  ;;  %9000 = vrot.lane.b32.xlu0 %v11675_v9, %s10586_s24  ;;  %v10351_v9 = vld [vmem:[%s16269_s5 + $0x68] sm:$0xff]   ;;  %8583 = vmatpush3.bf16.msra.mxu1 %v10350_v4 }
 0x171   : > { %7936 = vmatprep.subr.bf16.mxu0 %v10351_v9  ;;  %8576 = vmatprep.subr.bf16.mxu1 %v10351_v9  ;;  %v1472_v9 = vld [vmem:[#allocation2 + $0x66d] sm:$0xff] }
 0x172   : > { %9005 = vrot.lane.b32.xlu1 %v11681_v51, %s10586_s24  ;;  %v11852_v57 = vpop.permute.xlu0 %8720  ;;  %v10352_v51 = vld [vmem:[%s16269_s5 + $0x28] sm:$0xff]  }
 0x173   : > { %7937 = vmatpush3.bf16.msra.mxu0 %v10352_v51 }
 0x174   : > { %v11855_v53 = vpop.permute.xlu1 %8725  ;;  %9010 = vrot.lane.b32.xlu0 %v11687_v31, %s10586_s24  ;;  %v10353_v31 = vld [vmem:[%s16269_s5 + $0x70] sm:$0xff]   ;;  %8584 = vmatpush3.bf16.msra.mxu1 %v10352_v51 }
 0x175   : > { %7938 = vmatprep.subr.bf16.mxu0 %v10353_v31  ;;  %8377 = vmatmul.mubr.msk.bf16.gmra.mrb[20].mxu1 %vm529_vm0, %v1009_v48  ;;  %v1473_v51 = vld [vmem:[#allocation2 + $0x675] sm:$0xff] }
 0x176   : > { %9015 = vrot.lane.b32.xlu1 %v11693_v5, %s10586_s24  ;;  %v11869_v0 = vpop.permute.xlu0 %8730  ;;  %v10354_v5 = vld [vmem:[%s16269_s5 + $0x30] sm:$0xff]   ;;  %8577 = vmatprep.subr.bf16.mxu1 %v10353_v31  ;;  %v9054_v31 = vpack.i.bf16 %v1473_v51, %v1472_v9  ;;  %v16653_v51 = vld [vmem:[#allocation44_spill] sm:$0xff] }
 0x177   : > { %7939 = vmatpush3.bf16.msra.mxu0 %v10354_v5  ;;  %8380 = vmatprep.mubr.msk.bf16.mxu1 %vm529_vm0, %v1010_v7  ;;  %v16648_v7 = vld [vmem:[#allocation46_spill] sm:$0xff]  ;;  %v16652_v9 = vld [vmem:[#allocation43_spill] sm:$0xff] }
 0x178   : > { %v11873_v61 = vpop.permute.xlu1 %8735  ;;  %9020 = vrot.lane.b32.xlu0 %v11699_v45, %s10586_s24  ;;  %v10355_v45 = vld [vmem:[%s16269_s5 + $0x78] sm:$0xff]   ;;  %8585 = vmatpush3.bf16.msra.mxu1 %v10354_v5 }
 0x179   : > { %7940 = vmatprep.subr.bf16.mxu0 %v10355_v45  ;;  %8578 = vmatprep.subr.bf16.mxu1 %v10355_v45  ;;  %v16647_v45 = vld [vmem:[#allocation45_spill] sm:$0xff] }
 0x17a   : > { %9025 = vrot.lane.b32.xlu1 %v11705_v44, %s10586_s24  ;;  %v11886_v54 = vpop.permute.xlu0 %8740  ;;  %v10356_v44 = vld [vmem:[%s16269_s5 + $0x38] sm:$0xff]  }
 0x17b   : > { %7941 = vmatpush3.bf16.msra.mxu0 %v10356_v44 }
 0x17c   : > { %v11889_v59 = vpop.permute.xlu1 %8745  ;;  %9030 = vrot.lane.b32.xlu0 %v11711_v37, %s10586_s24  ;;  %v16646_v37 = vld [vmem:[#allocation42_spill] sm:$0xff]  ;;  %8586 = vmatpush3.bf16.msra.mxu1 %v10356_v44  ;;  %v16650_v44 = vld [vmem:[#allocation55_spill] sm:$0xff] }
 0x17d   : > { %v1011_v28 = vpack.c.bf16 %v16646_v37, %v11461_v36  ;;  %v3166_v37 = vld [vmem:[#allocation2 + $0x1c7] sm:$0xff] }
 0x17e   : > { %9035 = vrot.lane.b32.xlu1 %v11717_v8, %s10586_s24  ;;  %v11903_v4 = vpop.permute.xlu0 %8750  ;;  %v9049_v8 = vpack.i.bf16 %v1471_v30, %v1470_v15 }
 0x17f   : > { %8381 = vmatmul.mubr.msk.bf16.gmra.mrb[24].mxu1 %vm529_vm0, %v1011_v28 }
 0x180   : > { %v11907_v48 = vpop.permute.xlu1 %8755  ;;  %9040 = vrot.lane.b32.xlu0 %v11723_v55, %s10586_s24  ;;  %v1012_v55 = vpack.c.bf16 %v16648_v7, %v16647_v45  ;;  %v3154_v45 = vld [vmem:[#allocation2 + $0x3a0] sm:$0xff] }
 0x182   : > { %9045 = vrot.lane.b32.xlu1 %v9044_v11, %s10586_s24  ;;  %v11913_v5 = vpop.permute.xlu0 %8760  ;;  %v16651_v11 = vld [vmem:[#allocation56_spill] sm:$0xff]  ;;  %8384 = vmatprep.mubr.msk.bf16.mxu1 %vm529_vm0, %v1012_v55  ;;  %v1014_v55 = vpack.c.bf16 %v11557_v39, %v11554_v38  ;;  %v3134_v38 = vld [vmem:[#allocation2 + $0x1c0] sm:$0xff] }
 0x183   : > { %v1013_v30 = vpack.c.bf16 %v16651_v11, %v16650_v44  ;;  %v3142_v44 = vld [vmem:[#allocation2 + $0x280] sm:$0xff] }
 0x184   : > { %v11916_v63 = vpop.permute.xlu1 %8765  ;;  %9050 = vrot.lane.b32.xlu0 %v9049_v8, %s10586_s24  ;;  %v3146_v11 = vld [vmem:[#allocation2 + $0x2e0] sm:$0xff] }
 0x186   : > { %9055 = vrot.lane.b32.xlu1 %v9054_v31, %s10586_s24  ;;  %v11920_v56 = vpop.permute.xlu0 %8770  ;;  %v16656_v31 = vld [vmem:[#allocation47_spill] sm:$0xff] }
 0x187   : > { %8385 = vmatmul.mubr.msk.bf16.gmra.mrb[28].mxu1 %vm529_vm0, %v1013_v30  ;;  %v16660_v30 = vld [vmem:[#allocation49_spill] sm:$0xff] }
 0x188   : > { %v11924_v15 = vpop.permute.xlu1 %8775  ;;  %9060 = vrot.lane.b32.xlu0 %v16652_v9, %s10587_s21  ;;  %8388 = vmatprep.mubr.msk.bf16.mxu1 %vm529_vm0, %v1014_v55  ;;  %v1496_v55 = vld [vmem:[#allocation2 + $0x5b0] sm:$0xff] }
 0x189   : > { %16649 = vst [vmem:[#allocation64_spill] sm:$0xff] %v11924_v15  ;;  %v9114_v26 = vpack.i.bf16 %v1497_v33, %v1496_v55  ;;  %v1505_v33 = vld [vmem:[#allocation2 + $0x678] sm:$0xff] }
 0x18a   : > { %9065 = vrot.lane.b32.xlu1 %v16653_v51, %s10587_s21  ;;  %v11933_v28 = vpop.permute.xlu0 %8780  ;;  %v16659_v51 = vld [vmem:[#allocation60_spill] sm:$0xff] }
 0x18b   : > { %16654 = vst [vmem:[#allocation43_spill] sm:$0xff] %v11933_v28  ;;  %v1015_v58 = vpack.c.bf16 %v16659_v51, %v11566_v41 }
 0x18c   : > { %v11936_v8 = vpop.permute.xlu1 %8785  ;;  %9070 = vrot.lane.b32.xlu0 %v16656_v31, %s10587_s21  ;;  %v16661_v31 = vld [vmem:[#allocation50_spill] sm:$0xff] }
 0x18d   : > { %16655 = vst [vmem:[#allocation44_spill] sm:$0xff] %v11936_v8  ;;  %v1494_v8 = vld [vmem:[#allocation2 + $0x580] sm:$0xff] }
 0x18e   : > { %9075 = vrot.lane.b32.xlu1 %v16657_v42, %s10587_s21  ;;  %v11942_v47 = vpop.permute.xlu0 %8790 }
 0x18f   : > { %16658 = vst [vmem:[#allocation47_spill] sm:$0xff] %v11942_v47  ;;  %8389 = vmatmul.mubr.msk.bf16.gmra.mrb[32].mxu1 %vm529_vm0, %v1015_v58  ;;  %v16662_v47 = vld [vmem:[#allocation51_spill] sm:$0xff]  ;;  %v9109_v58 = vpack.i.bf16 %v1495_v32, %v1494_v8  ;;  %v1503_v32 = vld [vmem:[#allocation2 + $0x648] sm:$0xff] }
 0x190   : > { %v11946_v9 = vpop.permute.xlu1 %8795  ;;  %9080 = vrot.lane.b32.xlu0 %v16660_v30, %s10587_s21 }
 0x192   : > { %9085 = vrot.lane.b32.xlu1 %v16661_v31, %s10587_s21  ;;  %v11955_v34 = vpop.permute.xlu0 %8800  ;;  %v16665_v31 = vld [vmem:[#allocation53_spill] sm:$0xff] }
 0x194   : > { %v11958_v42 = vpop.permute.xlu1 %8805  ;;  %9090 = vrot.lane.b32.xlu0 %v16662_v47, %s10587_s21  ;;  %v1498_v47 = vld [vmem:[#allocation2 + $0x5e0] sm:$0xff] }
 0x195   : > { %v9119_v41 = vpack.i.bf16 %v1499_v27, %v1498_v47 }
 0x196   : > { %9095 = vrot.lane.b32.xlu1 %v16663_v35, %s10587_s21  ;;  %v11964_v30 = vpop.permute.xlu0 %8810  ;;  %v1500_v35 = vld [vmem:[#allocation2 + $0x610] sm:$0xff] }
 0x197   : > { %v9124_v51 = vpack.i.bf16 %v1501_v24, %v1500_v35  ;;  %v3137_v24 = vld [vmem:[#allocation2 + $0x1f8] sm:$0xff] }
 0x198   : > { %v11966_v28 = vpop.permute.xlu1 %8815  ;;  %9100 = vrot.lane.b32.xlu0 %v16665_v31, %s10587_s21  ;;  %v1502_v31 = vld [vmem:[#allocation2 + $0x640] sm:$0xff] }
 0x199   : > { %16664 = vst [vmem:[#allocation48_spill] sm:$0xff] %v11966_v28  ;;  %v9129_v22 = vpack.i.bf16 %v1503_v32, %v1502_v31  ;;  %v3141_v32 = vld [vmem:[#allocation2 + $0x258] sm:$0xff] }
 0x19a   : > { %9105 = vrot.lane.b32.xlu1 %v16666_v10, %s10587_s21  ;;  %v11972_v50 = vpop.permute.xlu0 %8820  ;;  %v1504_v10 = vld [vmem:[#allocation2 + $0x670] sm:$0xff] }
 0x19b   : > { %16667 = vst [vmem:[#allocation49_spill] sm:$0xff] %v11972_v50  ;;  %v9134_v23 = vpack.i.bf16 %v1505_v33, %v1504_v10  ;;  %v10415_v50 = vld [vmem:[#allocation2 + $0x4c5] sm:$0xff] }
 0x19c   : > { %v11974_v25 = vpop.permute.xlu1 %8825  ;;  %9110 = vrot.lane.b32.xlu0 %v9109_v58, %s10587_s21  ;;  %v3135_v58 = vld [vmem:[#allocation2 + $0x1c8] sm:$0xff] }
 0x19d   : > { %16668 = vst [vmem:[#allocation50_spill] sm:$0xff] %v11974_v25  ;;  %v9139_v35 = vpack.i.bf16 %v3135_v58, %v3134_v38  ;;  %v3145_v58 = vld [vmem:[#allocation2 + $0x2b8] sm:$0xff] }
 0x19e   : > { %9115 = vrot.lane.b32.xlu1 %v9114_v26, %s10587_s21  ;;  %v11978_v8 = vpop.permute.xlu0 %8830  ;;  %v3136_v26 = vld [vmem:[#allocation2 + $0x1f0] sm:$0xff] }
 0x19f   : > { %16669 = vst [vmem:[#allocation51_spill] sm:$0xff] %v11978_v8  ;;  %v9144_v39 = vpack.i.bf16 %v3137_v24, %v3136_v26  ;;  %v8738_v8 = vunpack.i.h.bf16 %v11873_v61 }
 0x1a0   : > { %v11980_v55 = vpop.permute.xlu1 %8835  ;;  %9120 = vrot.lane.b32.xlu0 %v9119_v41, %s10587_s21  ;;  %v3139_v41 = vld [vmem:[#allocation2 + $0x228] sm:$0xff] }
 0x1a1   : > { %16670 = vst [vmem:[#allocation52_spill] sm:$0xff] %v11980_v55  ;;  %v9149_v33 = vpack.i.bf16 %v3139_v41, %v3138_v20  ;;  %v3149_v41 = vld [vmem:[#allocation2 + $0x318] sm:$0xff]  ;;  %v12197_v55 = vld [vmem:[#allocation2 + $0x401] sm:$0xff] }
 0x1a2   : > { %9125 = vrot.lane.b32.xlu1 %v9124_v51, %s10587_s21  ;;  %v11984_v27 = vpop.permute.xlu0 %8840  ;;  %v3140_v51 = vld [vmem:[#allocation2 + $0x250] sm:$0xff]  ;;  %16717 = vst [vmem:[#allocation109_spill] sm:$0xff] %v12197_v55 }
 0x1a3   : > { %16671 = vst [vmem:[#allocation53_spill] sm:$0xff] %v11984_v27  ;;  %v9154_v21 = vpack.i.bf16 %v3141_v32, %v3140_v51  ;;  %v12133_v27 = vld [vmem:[#allocation2 + $0x311] sm:$0xff] }
 0x1a4   : > { %v11986_v47 = vpop.permute.xlu1 %8845  ;;  %9130 = vrot.lane.b32.xlu0 %v9129_v22, %s10587_s21  ;;  %v3143_v22 = vld [vmem:[#allocation2 + $0x288] sm:$0xff] }
 0x1a5   : > { %16672 = vst [vmem:[#allocation54_spill] sm:$0xff] %v11986_v47  ;;  %v9159_v24 = vpack.i.bf16 %v3143_v22, %v3142_v44  ;;  %v3153_v22 = vld [vmem:[#allocation2 + $0x378] sm:$0xff] }
 0x1a6   : > { %9135 = vrot.lane.b32.xlu1 %v9134_v23, %s10587_s21  ;;  %v11990_v31 = vpop.permute.xlu0 %8850  ;;  %v3144_v23 = vld [vmem:[#allocation2 + $0x2b0] sm:$0xff] }
 0x1a7   : > { %16673 = vst [vmem:[#allocation65_spill] sm:$0xff] %v11990_v31  ;;  %v3189_v31 = vld [vmem:[#allocation2 + $0x3df] sm:$0xff]  ;;  %v3196_v47 = vld [vmem:[#allocation2 + $0x497] sm:$0xff] }
 0x1a8   : > { %v11992_v10 = vpop.permute.xlu1 %8855  ;;  %9140 = vrot.lane.b32.xlu0 %v9139_v35, %s10585_s15  ;;  %v3147_v35 = vld [vmem:[#allocation2 + $0x2e8] sm:$0xff] }
 0x1a9   : > { %16674 = vst [vmem:[#allocation66_spill] sm:$0xff] %v11992_v10  ;;  %v9164_v10 = vpack.i.bf16 %v3145_v58, %v3144_v23  ;;  %v9169_v32 = vpack.i.bf16 %v3147_v35, %v3146_v11  ;;  %v3157_v35 = vld [vmem:[#allocation2 + $0x3d8] sm:$0xff] }
 0x1aa   : > { %9145 = vrot.lane.b32.xlu1 %v9144_v39, %s10585_s15  ;;  %v11996_v38 = vpop.permute.xlu0 %8860  ;;  %v3148_v39 = vld [vmem:[#allocation2 + $0x310] sm:$0xff] }
 0x1ab   : > { %16675 = vst [vmem:[#allocation67_spill] sm:$0xff] %v11996_v38  ;;  %v3150_v38 = vld [vmem:[#allocation2 + $0x340] sm:$0xff] }
 0x1ac   : > { %v11998_v26 = vpop.permute.xlu1 %8865  ;;  %9150 = vrot.lane.b32.xlu0 %v9149_v33, %s10585_s15  ;;  %v3151_v33 = vld [vmem:[#allocation2 + $0x348] sm:$0xff] }
 0x1ad   : > { %16676 = vst [vmem:[#allocation68_spill] sm:$0xff] %v11998_v26  ;;  %v9174_v26 = vpack.i.bf16 %v3149_v41, %v3148_v39  ;;  %v9179_v58 = vpack.i.bf16 %v3151_v33, %v3150_v38  ;;  %v12021_v41 = vld [vmem:[%s16269_s5 + $0x80] sm:$0xff]   ;;  %v3159_v33 = vld [vmem:[#allocation2 + $0x408] sm:$0xff] }
 0x1ae   : > { %9155 = vrot.lane.b32.xlu1 %v9154_v21, %s10585_s15  ;;  %v12002_v20 = vpop.permute.xlu0 %8870  ;;  %v3152_v21 = vld [vmem:[#allocation2 + $0x370] sm:$0xff]  ;;  %16683 = vst [vmem:[#allocation75_spill] sm:$0xff] %v12021_v41  ;;  %8392 = vmatprep.subr.bf16.mxu1 %v12021_v41 }
 0x1af   : > { %16677 = vst [vmem:[#allocation69_spill] sm:$0xff] %v12002_v20  ;;  %v9184_v20 = vpack.i.bf16 %v3153_v22, %v3152_v21  ;;  %v3160_v22 = vld [vmem:[#allocation2 + $0x430] sm:$0xff] }
 0x1b0   : > { %v12004_v51 = vpop.permute.xlu1 %8875  ;;  %9160 = vrot.lane.b32.xlu0 %v9159_v24, %s10585_s15  ;;  %v3155_v24 = vld [vmem:[#allocation2 + $0x3a8] sm:$0xff] }
 0x1b1   : > { %16678 = vst [vmem:[#allocation70_spill] sm:$0xff] %v12004_v51 }
 0x1b2   : > { %9165 = vrot.lane.b32.xlu1 %v9164_v10, %s10585_s15  ;;  %v12008_v44 = vpop.permute.xlu0 %8880  ;;  %v3156_v10 = vld [vmem:[#allocation2 + $0x3d0] sm:$0xff] }
 0x1b3   : > { %16679 = vst [vmem:[#allocation71_spill] sm:$0xff] %v12008_v44  ;;  %v9194_v38 = vpack.i.bf16 %v3157_v35, %v3156_v10  ;;  %v3164_v10 = vld [vmem:[#allocation2 + $0x490] sm:$0xff]  ;;  %v3165_v35 = vld [vmem:[#allocation2 + $0x498] sm:$0xff] }
 0x1b4   : > { %v12010_v23 = vpop.permute.xlu1 %8885  ;;  %9170 = vrot.lane.b32.xlu0 %v9169_v32, %s10585_s15  ;;  %v9189_v32 = vpack.i.bf16 %v3155_v24, %v3154_v45  ;;  %v3162_v45 = vld [vmem:[#allocation2 + $0x460] sm:$0xff]  ;;  %v3163_v24 = vld [vmem:[#allocation2 + $0x468] sm:$0xff]  ;;  %v9214_v36 = vpack.i.bf16 %v3165_v35, %v3164_v10 }
 0x1b5   : > { %16680 = vst [vmem:[#allocation72_spill] sm:$0xff] %v12010_v23  ;;  %v9209_v41 = vpack.i.bf16 %v3163_v24, %v3162_v45  ;;  %v3173_v24 = vld [vmem:[#allocation2 + $0x25f] sm:$0xff]  ;;  %v3187_v44 = vld [vmem:[#allocation2 + $0x3af] sm:$0xff] }
 0x1b6   : > { %9175 = vrot.lane.b32.xlu1 %v9174_v26, %s10585_s15  ;;  %v12014_v11 = vpop.permute.xlu0 %8890  ;;  %v3158_v26 = vld [vmem:[#allocation2 + $0x400] sm:$0xff] }
 0x1b7   : > { %16681 = vst [vmem:[#allocation73_spill] sm:$0xff] %v12014_v11  ;;  %v3161_v11 = vld [vmem:[#allocation2 + $0x438] sm:$0xff]  ;;  %v9199_v23 = vpack.i.bf16 %v3159_v33, %v3158_v26 }
 0x1b8   : > { %v12016_v39 = vpop.permute.xlu1 %8895  ;;  %9180 = vrot.lane.b32.xlu0 %v9179_v58, %s10585_s15  ;;  %v9204_v58 = vpack.i.bf16 %v3161_v11, %v3160_v22  ;;  %v3169_v11 = vld [vmem:[#allocation2 + $0x1ff] sm:$0xff] }
 0x1b9   : > { %16682 = vst [vmem:[#allocation74_spill] sm:$0xff] %v12016_v39 }
 0x1ba   : > { %9185 = vrot.lane.b32.xlu1 %v9184_v20, %s10585_s15  ;;  %v12026_v21 = vpop.permute.xlu0 %8900 }
 0x1bb   : > { %16684 = vst [vmem:[#allocation76_spill] sm:$0xff] %v12026_v21 }
 0x1bc   : > { %v12028_v39 = vpop.permute.xlu1 %8905  ;;  %9190 = vrot.lane.b32.xlu0 %v9189_v32, %s10585_s15  ;;  %v3167_v32 = vld [vmem:[#allocation2 + $0x1cf] sm:$0xff] }
 0x1bd   : > { %16685 = vst [vmem:[#allocation77_spill] sm:$0xff] %v12028_v39  ;;  %v9219_v22 = vpack.i.bf16 %v3167_v32, %v3166_v37  ;;  %v3177_v32 = vld [vmem:[#allocation2 + $0x2bf] sm:$0xff]  ;;  %v8732_v39 = vunpack.i.l.bf16 %v11869_v0 }
 0x1be   : > { %9195 = vrot.lane.b32.xlu1 %v9194_v38, %s10585_s15  ;;  %v12032_v20 = vpop.permute.xlu0 %8910  ;;  %v3168_v38 = vld [vmem:[#allocation2 + $0x1f7] sm:$0xff] }
 0x1bf   : > { %16686 = vst [vmem:[#allocation78_spill] sm:$0xff] %v12032_v20  ;;  %v9224_v18 = vpack.i.bf16 %v3169_v11, %v3168_v38 }
 0x1c0   : > { %v12034_v7 = vpop.permute.xlu1 %8915  ;;  %9200 = vrot.lane.b32.xlu0 %v9199_v23, %s10585_s15  ;;  %v3171_v23 = vld [vmem:[#allocation2 + $0x22f] sm:$0xff] }
 0x1c1   : > { %16687 = vst [vmem:[#allocation79_spill] sm:$0xff] %v12034_v7  ;;  %v9229_v35 = vpack.i.bf16 %v3171_v23, %v3170_v19  ;;  %v3181_v23 = vld [vmem:[#allocation2 + $0x31f] sm:$0xff]  ;;  %v3188_v7 = vld [vmem:[#allocation2 + $0x3d7] sm:$0xff] }
 0x1c2   : > { %9205 = vrot.lane.b32.xlu1 %v9204_v58, %s10585_s15  ;;  %v12038_v26 = vpop.permute.xlu0 %8920  ;;  %v3172_v58 = vld [vmem:[#allocation2 + $0x257] sm:$0xff] }
 0x1c3   : > { %16688 = vst [vmem:[#allocation80_spill] sm:$0xff] %v12038_v26  ;;  %v12082_v26 = vpack.i.bf16 %v3187_v44, %v3186_v17 }
 0x1c4   : > { %v12040_v33 = vpop.permute.xlu1 %8925  ;;  %9210 = vrot.lane.b32.xlu0 %v9209_v41, %s10585_s15  ;;  %v3175_v41 = vld [vmem:[#allocation2 + $0x28f] sm:$0xff] }
 0x1c5   : > { %16689 = vst [vmem:[#allocation81_spill] sm:$0xff] %v12040_v33  ;;  %v9234_v33 = vpack.i.bf16 %v3173_v24, %v3172_v58  ;;  %v9239_v11 = vpack.i.bf16 %v3175_v41, %v3174_v16  ;;  %v3183_v16 = vld [vmem:[#allocation2 + $0x34f] sm:$0xff]  ;;  %16702 = vst [vmem:[#allocation94_spill] sm:$0xff] %v12082_v26 }
 0x1c6   : > { %9215 = vrot.lane.b32.xlu1 %v9214_v36, %s10585_s15  ;;  %v12044_v45 = vpop.permute.xlu0 %8930  ;;  %v3176_v36 = vld [vmem:[#allocation2 + $0x2b7] sm:$0xff] }
 0x1c7   : > { %16690 = vst [vmem:[#allocation82_spill] sm:$0xff] %v12044_v45  ;;  %v3178_v45 = vld [vmem:[#allocation2 + $0x2e7] sm:$0xff] }
 0x1c8   : > { %v12046_v10 = vpop.permute.xlu1 %8935  ;;  %9220 = vrot.lane.b32.xlu0 %v9219_v22, %s10586_s24  ;;  %v3179_v22 = vld [vmem:[#allocation2 + $0x2ef] sm:$0xff] }
 0x1c9   : > { %16691 = vst [vmem:[#allocation83_spill] sm:$0xff] %v12046_v10  ;;  %v9244_v10 = vpack.i.bf16 %v3177_v32, %v3176_v36  ;;  %v9249_v24 = vpack.i.bf16 %v3179_v22, %v3178_v45  ;;  %v3185_v36 = vld [vmem:[#allocation2 + $0x37f] sm:$0xff]  ;;  %v8663_v32 = vunpack.i.h.bf16 %v11757_v43  ;;  %v8672_v22 = vunpack.i.l.bf16 %v11761_v52 }
 0x1ca   : > { %9225 = vrot.lane.b32.xlu1 %v9224_v18, %s10586_s24  ;;  %v12050_v37 = vpop.permute.xlu0 %8940  ;;  %v3180_v18 = vld [vmem:[#allocation2 + $0x317] sm:$0xff]  ;;  %v1282_v45 = vld [vmem:[#allocation2 + $0x285] sm:$0xff] }
 0x1cb   : > { %16692 = vst [vmem:[#allocation84_spill] sm:$0xff] %v12050_v37 }
 0x1cc   : > { %v12052_v38 = vpop.permute.xlu1 %8945  ;;  %9230 = vrot.lane.b32.xlu0 %v9229_v35, %s10586_s24  ;;  %v3182_v35 = vld [vmem:[#allocation2 + $0x347] sm:$0xff] }
 0x1cd   : > { %16693 = vst [vmem:[#allocation85_spill] sm:$0xff] %v12052_v38  ;;  %v12062_v38 = vpack.i.bf16 %v3181_v23, %v3180_v18  ;;  %v12073_v18 = vpack.i.bf16 %v3183_v16, %v3182_v35  ;;  %v1285_v23 = vld [vmem:[#allocation2 + $0x2dd] sm:$0xff]  ;;  %v1284_v35 = vld [vmem:[#allocation2 + $0x2b5] sm:$0xff]  ;;  %v8667_v16 = vunpack.i.l.bf16 %v11766_v40 }
 0x1ce   : > { %9235 = vrot.lane.b32.xlu1 %v9234_v33, %s10586_s24  ;;  %v12056_v19 = vpop.permute.xlu0 %8950  ;;  %v3184_v33 = vld [vmem:[#allocation2 + $0x377] sm:$0xff]  ;;  %v12095_v17 = vsel %vm529_vm0, %v1285_v23, %v8672_v22  ;;  %v8687_v22 = vunpack.i.l.bf16 %v11789_v6 }
 0x1cf   : > { %16694 = vst [vmem:[#allocation86_spill] sm:$0xff] %v12056_v19  ;;  %16696 = vst [vmem:[#allocation88_spill] sm:$0xff] %v12062_v38  ;;  %v8662_v19 = vunpack.i.l.bf16 %v11757_v43  ;;  %v12077_v43 = vpack.i.bf16 %v3185_v36, %v3184_v33  ;;  %v8677_v33 = vunpack.i.l.bf16 %v11774_v49 }
 0x1d0   : > { %v12058_v58 = vpop.permute.xlu1 %8955  ;;  %9240 = vrot.lane.b32.xlu0 %v9239_v11, %s10586_s24  ;;  %v1281_v11 = vld [vmem:[#allocation2 + $0x27d] sm:$0xff]  ;;  %16699 = vst [vmem:[#allocation91_spill] sm:$0xff] %v12073_v18 }
 0x1d1   : > { %16695 = vst [vmem:[#allocation87_spill] sm:$0xff] %v12058_v58  ;;  %16700 = vst [vmem:[#allocation92_spill] sm:$0xff] %v12077_v43 }
 0x1d2   : > { %9245 = vrot.lane.b32.xlu1 %v9244_v10, %s10586_s24  ;;  %v12064_v41 = vpop.permute.xlu0 %8960  ;;  %v8673_v10 = vunpack.i.h.bf16 %v11761_v52  ;;  %v12085_v52 = vsel %vm529_vm0, %v1281_v11, %v8662_v19  ;;  %v1283_v19 = vld [vmem:[#allocation2 + $0x2ad] sm:$0xff]  ;;  %v8678_v11 = vunpack.i.h.bf16 %v11774_v49 }
 0x1d3   : > { %16697 = vst [vmem:[#allocation89_spill] sm:$0xff] %v12064_v41  ;;  %v1286_v41 = vld [vmem:[#allocation2 + $0x2e5] sm:$0xff]  ;;  %v3195_v49 = vld [vmem:[#allocation2 + $0x46f] sm:$0xff]  ;;  %v12121_v20 = vsel %vm529_vm0, %v1283_v19, %v8667_v16  ;;  %v10405_v16 = vld [vmem:[#allocation2 + $0x33d] sm:$0xff] }
 0x1d4   : > { %v12068_v37 = vpop.permute.xlu1 %8965  ;;  %9250 = vrot.lane.b32.xlu0 %v9249_v24, %s10586_s24  ;;  %v12088_v24 = vsel %vm529_vm0, %v1282_v45, %v8663_v32  ;;  %v12098_v44 = vsel %vm529_vm0, %v1286_v41, %v8673_v10  ;;  %v8682_v32 = vunpack.i.l.bf16 %v11786_v29  ;;  %v3193_v45 = vld [vmem:[#allocation2 + $0x43f] sm:$0xff]  ;;  %v12109_v41 = vpack.i.bf16 %v3189_v31, %v3188_v7  ;;  %v3194_v10 = vld [vmem:[#allocation2 + $0x467] sm:$0xff] }
 0x1d5   : > { %16698 = vst [vmem:[#allocation90_spill] sm:$0xff] %v12068_v37  ;;  %v8668_v37 = vunpack.i.h.bf16 %v11766_v40  ;;  %v3192_v40 = vld [vmem:[#allocation2 + $0x437] sm:$0xff]  ;;  %v10403_v7 = vld [vmem:[#allocation2 + $0x30d] sm:$0xff] }
 0x1d6   : > { %9255 = vrot.lane.b32.xlu1 %v12062_v38, %s10586_s24  ;;  %v12080_v58 = vpop.permute.xlu0 %8970  ;;  %v3190_v38 = vld [vmem:[#allocation2 + $0x407] sm:$0xff]  ;;  %16704 = vst [vmem:[#allocation96_spill] sm:$0xff] %v12109_v41  ;;  %v12124_v31 = vsel %vm529_vm0, %v10403_v7, %v8677_v33  ;;  %v12139_v19 = vsel %vm529_vm0, %v10405_v16, %v8682_v32  ;;  %v8697_v33 = vunpack.i.l.bf16 %v11805_v60  ;;  %v12144_v7 = vpack.i.bf16 %v3195_v49, %v3194_v10  ;;  %v12165_v16 = vld [vmem:[#allocation2 + $0x371] sm:$0xff] }
 0x1d7   : > { %16701 = vst [vmem:[#allocation93_spill] sm:$0xff] %v12080_v58  ;;  %v8688_v58 = vunpack.i.h.bf16 %v11789_v6  ;;  %v12112_v23 = vsel %vm529_vm0, %v1284_v35, %v8668_v37  ;;  %v3197_v6 = vld [vmem:[#allocation2 + $0x49f] sm:$0xff]  ;;  %v8698_v37 = vunpack.i.h.bf16 %v11805_v60  ;;  %v10408_v32 = vld [vmem:[#allocation2 + $0x36d] sm:$0xff] }
 0x1d8   : > { %v12092_v36 = vpop.permute.xlu1 %8975  ;;  %9260 = vrot.lane.b32.xlu0 %v12073_v18, %s10586_s24  ;;  %v8693_v18 = vunpack.i.h.bf16 %v11801_v62  ;;  %v12131_v62 = vld [vmem:[#allocation2 + $0x309] sm:$0xff]  ;;  %16709 = vst [vmem:[#allocation101_spill] sm:$0xff] %v12144_v7  ;;  %v12157_v60 = vsel %vm529_vm0, %v10408_v32, %v8687_v22  ;;  %v12161_v10 = vpack.i.bf16 %v3197_v6, %v3196_v47  ;;  %v8718_v22 = vunpack.i.h.bf16 %v11839_v46  ;;  %v12178_v6 = vld [vmem:[#allocation2 + $0x399] sm:$0xff]  ;;  %v12180_v32 = vld [vmem:[#allocation2 + $0x3a1] sm:$0xff] }
 0x1d9   : > { %16703 = vst [vmem:[#allocation95_spill] sm:$0xff] %v12092_v36  ;;  %v8683_v36 = vunpack.i.h.bf16 %v11786_v29  ;;  %v12118_v29 = vpack.i.bf16 %v3191_v13, %v3190_v38  ;;  %v10404_v13 = vld [vmem:[#allocation2 + $0x315] sm:$0xff]  ;;  %v12163_v49 = vld [vmem:[#allocation2 + $0x369] sm:$0xff] }
 0x1da   : > { %9265 = vrot.lane.b32.xlu1 %v12077_v43, %s10586_s24  ;;  %v12116_v51 = vpop.permute.xlu0 %8980  ;;  %v12129_v43 = vpack.i.bf16 %v3193_v45, %v3192_v40  ;;  %v12136_v38 = vsel %vm529_vm0, %v10404_v13, %v8678_v11  ;;  %v12146_v40 = vld [vmem:[#allocation2 + $0x339] sm:$0xff]  ;;  %v12148_v45 = vld [vmem:[#allocation2 + $0x341] sm:$0xff]  ;;  %16710 = vst [vmem:[#allocation102_spill] sm:$0xff] %v12161_v10  ;;  %v12207_v47 = vld [vmem:[#allocation2 + $0x429] sm:$0xff] }
 0x1db   : > { %16705 = vst [vmem:[#allocation97_spill] sm:$0xff] %v12116_v51  ;;  %16706 = vst [vmem:[#allocation98_spill] sm:$0xff] %v12118_v29  ;;  %v12151_v2 = vsel %vm529_vm0, %v10406_v3, %v8683_v36  ;;  %v10407_v11 = vld [vmem:[#allocation2 + $0x375] sm:$0xff]  ;;  %v10410_v36 = vld [vmem:[#allocation2 + $0x39d] sm:$0xff]  ;;  %v8733_v51 = vunpack.i.h.bf16 %v11869_v0 }
 0x1dc   : > { %v12127_v35 = vpop.permute.xlu1 %8985  ;;  %16708 = vst [vmem:[#allocation100_spill] sm:$0xff] %v12129_v43  ;;  %9270 = vrot.lane.b32.xlu0 %v12082_v26, %s10586_s24  ;;  %v12154_v13 = vsel %vm529_vm0, %v10407_v11, %v8688_v58  ;;  %v10409_v26 = vld [vmem:[#allocation2 + $0x3a5] sm:$0xff]  ;;  %v12171_v58 = vsel %vm529_vm0, %v10410_v36, %v8692_v14  ;;  %v8717_v14 = vunpack.i.l.bf16 %v11839_v46  ;;  %v8722_v46 = vunpack.i.l.bf16 %v11852_v57  ;;  %v10420_v0 = vld [vmem:[#allocation2 + $0x51d] sm:$0xff] }
 0x1dd   : > { %16707 = vst [vmem:[#allocation99_spill] sm:$0xff] %v12127_v35  ;;  %v12168_v3 = vsel %vm529_vm0, %v10409_v26, %v8693_v18  ;;  %16712 = vst [vmem:[#allocation104_spill] sm:$0xff] %v12171_v58  ;;  %v12185_v26 = vsel %vm529_vm0, %v10411_v1, %v8698_v37  ;;  %v8723_v18 = vunpack.i.h.bf16 %v11852_v57  ;;  %v10412_v35 = vld [vmem:[#allocation2 + $0x3cd] sm:$0xff]  ;;  %v8728_v37 = vunpack.i.h.bf16 %v11855_v53 }
 0x1de   : > { %9275 = vrot.lane.b32.xlu1 %v12109_v41, %s10586_s24  ;;  %16711 = vst [vmem:[#allocation103_spill] sm:$0xff] %v12168_v3  ;;  %v12174_v11 = vpop.permute.xlu0 %8990  ;;  %v12182_v41 = vld [vmem:[#allocation2 + $0x3c9] sm:$0xff]  ;;  %16714 = vst [vmem:[#allocation106_spill] sm:$0xff] %v12185_v26  ;;  %v12200_v1 = vsel %vm529_vm0, %v10412_v35, %v8697_v33  ;;  %v8727_v26 = vunpack.i.l.bf16 %v11855_v53  ;;  %v3212_v35 = vld [vmem:[#allocation2 + $0x459] sm:$0xff] }
 0x1df   : > { %16713 = vst [vmem:[#allocation105_spill] sm:$0xff] %v12174_v11  ;;  %v12193_v11 = vld [vmem:[#allocation2 + $0x3d1] sm:$0xff]  ;;  %16718 = vst [vmem:[#allocation110_spill] sm:$0xff] %v12200_v1  ;;  %v3213_v33 = vld [vmem:[#allocation2 + $0x461] sm:$0xff]  ;;  %v12244_v55 = vsel %vm529_vm0, %v10417_v12, %v8728_v37 }
 0x1e0   : > { %v12189_v36 = vpop.permute.xlu1 %8995  ;;  %9280 = vrot.lane.b32.xlu0 %v12118_v29, %s10586_s24  ;;  %v3214_v1 = vld [vmem:[#allocation2 + $0x489] sm:$0xff]  ;;  %v10413_v29 = vld [vmem:[#allocation2 + $0x495] sm:$0xff]  ;;  %v3217_v53 = vld [vmem:[#allocation2 + $0x4c1] sm:$0xff] }
 0x1e1   : > { %16715 = vst [vmem:[#allocation107_spill] sm:$0xff] %v12189_v36  ;;  %v12209_v36 = vld [vmem:[#allocation2 + $0x431] sm:$0xff]  ;;  %v12220_v21 = vsel %vm529_vm0, %v10413_v29, %v8718_v22  ;;  %v3216_v3 = vld [vmem:[#allocation2 + $0x4b9] sm:$0xff]  ;;  %v12233_v29 = vsel %vm529_vm0, %v10415_v50, %v8723_v18  ;;  %v8737_v22 = vunpack.i.l.bf16 %v11873_v61  ;;  %v12251_v50 = vpack.i.bf16 %v3213_v33, %v3212_v35  ;;  %v10419_v61 = vld [vmem:[#allocation2 + $0x525] sm:$0xff] }
 0x1e2   : > { %9285 = vrot.lane.b32.xlu1 %v12129_v43, %s10586_s24  ;;  %16719 = vst [vmem:[#allocation111_spill] sm:$0xff] %v12220_v21  ;;  %v12223_v28 = vpop.permute.xlu0 %9000  ;;  %v3215_v43 = vld [vmem:[#allocation2 + $0x491] sm:$0xff]  ;;  %v10416_v21 = vld [vmem:[#allocation2 + $0x4bd] sm:$0xff]  ;;  %v12254_v18 = vsel %vm529_vm0, %v10419_v61, %v8733_v51  ;;  %v8743_v51 = vunpack.i.h.bf16 %v11886_v54  ;;  %v8742_v33 = vunpack.i.l.bf16 %v11886_v54 }
 0x1e3   : > { %16720 = vst [vmem:[#allocation112_spill] sm:$0xff] %v12223_v28  ;;  %v10414_v58 = vld [vmem:[#allocation2 + $0x48d] sm:$0xff]  ;;  %v12241_v57 = vsel %vm529_vm0, %v10416_v21, %v8722_v46  ;;  %v12257_v21 = vsel %vm529_vm0, %v10420_v0, %v8732_v39  ;;  %v12261_v12 = vpack.i.bf16 %v3215_v43, %v3214_v1  ;;  %v8747_v39 = vunpack.i.l.bf16 %v11889_v59  ;;  %v3220_v61 = vld [vmem:[#allocation2 + $0x519] sm:$0xff] }
 0x1e4   : > { %v12230_v25 = vsel %vm529_vm0, %v10414_v58, %v8717_v14  ;;  %v12236_v28 = vpop.permute.xlu1 %9005  ;;  %v10418_v58 = vld [vmem:[#allocation2 + $0x4ed] sm:$0xff]  ;;  %9290 = vrot.lane.b32.xlu0 %v12144_v7, %s10586_s24  ;;  %v8748_v1 = vunpack.i.h.bf16 %v11889_v59  ;;  %v8762_v7 = vunpack.i.l.bf16 %v11913_v5 }
 0x1e5   : > { %16721 = vst [vmem:[#allocation113_spill] sm:$0xff] %v12236_v28  ;;  %v12247_v14 = vsel %vm529_vm0, %v10418_v58, %v8727_v26  ;;  %16722 = vst [vmem:[#allocation114_spill] sm:$0xff] %v12261_v12  ;;  %v12263_v26 = vpack.i.bf16 %v3217_v53, %v3216_v3  ;;  %v3218_v46 = vld [vmem:[#allocation2 + $0x4e9] sm:$0xff]  ;;  %v3219_v37 = vld [vmem:[#allocation2 + $0x4f1] sm:$0xff]  ;;  %v8753_v53 = vunpack.i.h.bf16 %v11903_v4  ;;  %v8758_v28 = vunpack.i.h.bf16 %v11907_v48 }
 0x1e6   : > { %9295 = vrot.lane.b32.xlu1 %v12161_v10, %s10586_s24  ;;  %v10421_v58 = vld [vmem:[#allocation2 + $0x555] sm:$0xff]  ;;  %v12271_v0 = vpop.permute.xlu0 %9010  ;;  %v3221_v10 = vld [vmem:[#allocation2 + $0x521] sm:$0xff]  ;;  %v10422_v43 = vld [vmem:[#allocation2 + $0x54d] sm:$0xff]  ;;  %v12288_v59 = vpack.i.bf16 %v3219_v37, %v3218_v46 }
 0x1e7   : > { %16723 = vst [vmem:[#allocation115_spill] sm:$0xff] %v12263_v26  ;;  %v12266_v35 = vsel %vm529_vm0, %v10421_v58, %v8738_v8  ;;  %16725 = vst [vmem:[#allocation117_spill] sm:$0xff] %v12271_v0  ;;  %v12274_v3 = vsel %vm529_vm0, %v10422_v43, %v8737_v22  ;;  %v8752_v8 = vunpack.i.l.bf16 %v11903_v4  ;;  %v3223_v54 = vld [vmem:[#allocation2 + $0x551] sm:$0xff]  ;;  %v8757_v0 = vunpack.i.l.bf16 %v11907_v48  ;;  %v3224_v43 = vld [vmem:[#allocation2 + $0x579] sm:$0xff] }
 0x1e8   : > { %16724 = vst [vmem:[#allocation116_spill] sm:$0xff] %v12266_v35  ;;  %16726 = vst [vmem:[#allocation118_spill] sm:$0xff] %v12274_v3  ;;  %v12279_v58 = vpop.permute.xlu1 %9015  ;;  %v3222_v35 = vld [vmem:[#allocation2 + $0x549] sm:$0xff]  ;;  %v16728_v22 = vpack.i.bf16 %v12133_v27, %v12131_v62  ;;  %v3225_v3 = vld [vmem:[#allocation2 + $0x581] sm:$0xff]  ;;  %v8763_v4 = vunpack.i.h.bf16 %v11913_v5  ;;  %v8767_v26 = vunpack.i.l.bf16 %v11916_v63  ;;  %v16730_v48 = vpack.i.bf16 %v12148_v45, %v12146_v40 }
 0x1e9   : > { %16727 = vst [vmem:[#allocation119_spill] sm:$0xff] %v12279_v58  ;;  %16729 = vst [vmem:[#allocation120_spill] sm:$0xff] %v12288_v59  ;;  %v8768_v58 = vunpack.i.h.bf16 %v11916_v63  ;;  %v12297_v12 = vpack.i.bf16 %v3221_v10, %v3220_v61  ;;  %v3226_v27 = vld [vmem:[#allocation2 + $0x5a9] sm:$0xff]  ;;  %v3227_v62 = vld [vmem:[#allocation2 + $0x5b1] sm:$0xff]  ;;  %v12301_v37 = vpack.i.bf16 %v3223_v54, %v3222_v35  ;;  %v2339_v5 = vsel %vm2338_vm2, %v12085_v52, %v8742_v33 }
 0x1ea   : > { %9300 = vrot.lane.b32.xlu0 %v16728_v22, %s10587_s21  ;;  %9305 = vrot.lane.b32.xlu1 %v16730_v48, %s10587_s21  ;;  %v12299_v46 = vpop.permute.xlu0 %9020  ;;  %v2340_v63 = vsel %vm2338_vm2, %v12088_v24, %v8743_v51  ;;  %v12307_v22 = vld [vmem:[#allocation2 + $0x5d9] sm:$0xff]  ;;  %v12309_v59 = vld [vmem:[#allocation2 + $0x5e1] sm:$0xff]  ;;  %v2341_v40 = vsel %vm2338_vm2, %v12121_v20, %v8747_v39  ;;  %v12315_v10 = vpack.i.bf16 %v3225_v3, %v3224_v43  ;;  %v8802_v39 = vunpack.i.l.bf16 %v11955_v34 }
 0x1eb   : > { %16731 = vst [vmem:[#allocation121_spill] sm:$0xff] %v12297_v12  ;;  %16732 = vst [vmem:[#allocation122_spill] sm:$0xff] %v12299_v46  ;;  %v2342_v35 = vsel %vm2338_vm2, %v12112_v23, %v8748_v1  ;;  %v12321_v52 = vsel %vm2338_vm2, %v12095_v17, %v8752_v8  ;;  %v12325_v24 = vsel %vm2338_vm2, %v12098_v44, %v8753_v53  ;;  %v16740_v61 = vld [vmem:[#allocation49_spill] sm:$0xff]  ;;  %v8813_v53 = vunpack.i.h.bf16 %v11964_v30  ;;  %v16744_v43 = vld [vmem:[#allocation108_spill] sm:$0xff] }
 0x1ec   : > { %16733 = vst [vmem:[#allocation123_spill] sm:$0xff] %v12301_v37  ;;  %v12313_v45 = vpop.permute.xlu1 %9025  ;;  %16735 = vst [vmem:[#allocation125_spill] sm:$0xff] %v12315_v10  ;;  %v16736_v51 = vpack.i.bf16 %v12165_v16, %v12163_v49  ;;  %v12331_v20 = vpack.i.bf16 %v3227_v62, %v3226_v27  ;;  %v12335_v33 = vsel %vm2338_vm2, %v12124_v31, %v8757_v0  ;;  %v8798_v16 = vunpack.i.h.bf16 %v11946_v9  ;;  %v16743_v54 = vld [vmem:[#allocation109_spill] sm:$0xff]  ;;  %v16746_v27 = vld [vmem:[#allocation111_spill] sm:$0xff] }
 0x1ed   : > { %16734 = vst [vmem:[#allocation124_spill] sm:$0xff] %v12313_v45  ;;  %v12339_v23 = vsel %vm2338_vm2, %v12136_v38, %v8758_v28  ;;  %v12343_v17 = vsel %vm2338_vm2, %v12139_v19, %v8762_v7  ;;  %v16738_v44 = vpack.i.bf16 %v12180_v32, %v12178_v6  ;;  %v12353_v31 = vsel %vm2338_vm2, %v12151_v2, %v8763_v4  ;;  %v12403_v62 = vld [vmem:[#allocation2 + $0x4cf] sm:$0xff] }
 0x1ee   : > { %9310 = vrot.lane.b32.xlu0 %v16736_v51, %s10587_s21  ;;  %16737 = vst [vmem:[#allocation126_spill] sm:$0xff] %v12331_v20  ;;  %v12357_v28 = vsel %vm2338_vm2, %v12157_v60, %v8767_v26  ;;  %v12361_v38 = vsel %vm2338_vm2, %v12154_v13, %v8768_v58  ;;  %v8773_v19 = vunpack.i.h.bf16 %v11920_v56  ;;  %v8772_v7 = vunpack.i.l.bf16 %v11920_v56  ;;  %v12367_v32 = vpop.permute.xlu0 %9030  ;;  %v16747_v51 = vld [vmem:[#allocation104_spill] sm:$0xff]  ;;  %v16762_v45 = vld [vmem:[#allocation19_spill] sm:$0xff] }
 0x1ef   : > { %9315 = vrot.lane.b32.xlu1 %v16738_v44, %s10587_s21  ;;  %v8797_v6 = vunpack.i.l.bf16 %v11946_v9  ;;  %16739 = vst [vmem:[#allocation127_spill] sm:$0xff] %v12367_v32  ;;  %v8803_v2 = vunpack.i.h.bf16 %v11955_v34  ;;  %v8808_v60 = vunpack.i.h.bf16 %v11958_v42  ;;  %v8807_v26 = vunpack.i.l.bf16 %v11958_v42  ;;  %v16742_v42 = vld [vmem:[#allocation50_spill] sm:$0xff] }
 0x1f0   : > { %v12373_v13 = vpop.permute.xlu1 %9035  ;;  %v8812_v56 = vunpack.i.l.bf16 %v11964_v30  ;;  %v8823_v3 = vunpack.i.h.bf16 %v16740_v61  ;;  %v8822_v9 = vunpack.i.l.bf16 %v16740_v61  ;;  %v16741_v1 = vpack.i.bf16 %v12193_v11, %v12182_v41  ;;  %v12401_v30 = vld [vmem:[#allocation2 + $0x4c7] sm:$0xff]  ;;  %v16749_v61 = vld [vmem:[#allocation103_spill] sm:$0xff] }
 0x1f1   : > { %v8828_v8 = vunpack.i.h.bf16 %v16742_v42  ;;  %v8827_v58 = vunpack.i.l.bf16 %v16742_v42  ;;  %v16745_v4 = vpack.i.bf16 %v16743_v54, %v16744_v43  ;;  %v12393_v48 = vsel %vm2338_vm2, %v12230_v25, %v8797_v6  ;;  %v16758_v34 = vld [vmem:[#allocation114_spill] sm:$0xff]  ;;  %v16759_v54 = vld [vmem:[#allocation52_spill] sm:$0xff] }
 0x1f2   : > { %9320 = vrot.lane.b32.xlu0 %v16741_v1, %s10587_s21  ;;  %v12397_v41 = vsel %vm2338_vm2, %v16746_v27, %v8798_v16  ;;  %v12399_v11 = vpop.permute.xlu0 %9040  ;;  %v12407_v44 = vsel %vm2338_vm2, %v16747_v51, %v8772_v7  ;;  %v12411_v1 = vsel %vm2338_vm2, %v16749_v61, %v8773_v19  ;;  %v12417_v16 = vsel %vm2338_vm2, %v12241_v57, %v8802_v39  ;;  %v16753_v39 = vld [vmem:[#allocation51_spill] sm:$0xff] }
 0x1f3   : > { %9325 = vrot.lane.b32.xlu1 %v16745_v4, %s10587_s21  ;;  %16748 = vst [vmem:[#allocation49_spill] sm:$0xff] %v12407_v44  ;;  %16750 = vst [vmem:[#allocation50_spill] sm:$0xff] %v12411_v1  ;;  %v12421_v6 = vsel %vm2338_vm2, %v12233_v29, %v8803_v2  ;;  %v12425_v42 = vsel %vm2338_vm2, %v12247_v14, %v8807_v26  ;;  %v12429_v7 = vsel %vm2338_vm2, %v12244_v55, %v8808_v60  ;;  %v12442_v2 = vld [vmem:[#allocation2 + $0x4f7] sm:$0xff]  ;;  %v12444_v14 = vld [vmem:[#allocation2 + $0x4ff] sm:$0xff] }
 0x1f4   : > { %v12413_v25 = vpop.permute.xlu1 %9045  ;;  %v16752_v43 = vpack.i.bf16 %v12209_v36, %v12207_v47  ;;  %v12437_v57 = vsel %vm2371_vm3, %v2339_v5, %v8822_v9  ;;  %v12440_v29 = vsel %vm2371_vm3, %v2340_v63, %v8823_v3  ;;  %v12448_v55 = vsel %vm2338_vm2, %v12257_v21, %v8812_v56  ;;  %v16754_v21 = vld [vmem:[#allocation76_spill] sm:$0xff]  ;;  %v16755_v3 = vld [vmem:[#allocation77_spill] sm:$0xff] }
 0x1f5   : > { %v12453_v47 = vsel %vm2371_vm3, %v2341_v40, %v8827_v58  ;;  %v12456_v36 = vsel %vm2371_vm3, %v2342_v35, %v8828_v8  ;;  %v12462_v63 = vsel %vm2338_vm2, %v12254_v18, %v8813_v53  ;;  %v8832_v60 = vunpack.i.l.bf16 %v16753_v39  ;;  %v12470_v58 = vld [vmem:[#allocation2 + $0x527] sm:$0xff]  ;;  %v12472_v35 = vld [vmem:[#allocation2 + $0x52f] sm:$0xff] }
 0x1f6   : > { %9330 = vrot.lane.b32.xlu0 %v16752_v43, %s10587_s21  ;;  %v8903_v26 = vunpack.i.h.bf16 %v16754_v21  ;;  %v8902_v56 = vunpack.i.l.bf16 %v16754_v21  ;;  %v8908_v9 = vunpack.i.h.bf16 %v16755_v3  ;;  %v12468_v40 = vpop.permute.xlu0 %9050  ;;  %v8907_v8 = vunpack.i.l.bf16 %v16755_v3  ;;  %v16756_v4 = vld [vmem:[#allocation97_spill] sm:$0xff]  ;;  %v16757_v21 = vld [vmem:[#allocation99_spill] sm:$0xff]  ;;  %v16763_v3 = vld [vmem:[#allocation20_spill] sm:$0xff] }
 0x1f7   : > { %9335 = vrot.lane.b32.xlu1 %v12251_v50, %s10587_s21  ;;  %v8982_v27 = vunpack.i.l.bf16 %v16756_v4  ;;  %v2500_v53 = vpack.c.bf16 %v12440_v29, %v12437_v57  ;;  %v8833_v61 = vunpack.i.h.bf16 %v16753_v39  ;;  %v8983_v43 = vunpack.i.h.bf16 %v16756_v4  ;;  %v16760_v29 = vld [vmem:[#allocation115_spill] sm:$0xff]  ;;  %v16761_v4 = vld [vmem:[#allocation22_spill] sm:$0xff] }
 0x1f8   : > { %v12476_v18 = vpop.permute.xlu1 %9055  ;;  %v8987_v0 = vunpack.i.l.bf16 %v16757_v21  ;;  %v8838_v5 = vunpack.i.h.bf16 %v16759_v54  ;;  %v8837_v49 = vunpack.i.l.bf16 %v16759_v54  ;;  %v8988_v57 = vunpack.i.h.bf16 %v16757_v21  ;;  %v16764_v21 = vld [vmem:[#allocation21_spill] sm:$0xff] }
 0x1f9   : > { %v2407_v51 = vsel %vm529_vm0, %v16761_v4, %v8908_v9  ;;  %v2404_v46 = vsel %vm529_vm0, %v16762_v45, %v8902_v56  ;;  %v2405_v15 = vsel %vm529_vm0, %v16763_v3, %v8903_v26  ;;  %v12504_v54 = vsel %vm2371_vm3, %v12321_v52, %v8832_v60  ;;  %v10359_v9 = vld [vmem:[%s16271_s7 + $0x80] sm:$0xff]   ;;  %v16765_v56 = vld [vmem:[#allocation120_spill] sm:$0xff] }
 0x1fa   : > { %9340 = vrot.lane.b32.xlu0 %v16758_v34, %s10587_s21  ;;  %v9061_v32 = vpop.permute.xlu0 %9060  ;;  %v2406_v1 = vsel %vm529_vm0, %v16764_v21, %v8907_v8  ;;  %v2437_v52 = vsel %vm2338_vm2, %v2405_v15, %v8983_v43  ;;  %v16766_v45 = vld [vmem:[#allocation53_spill] sm:$0xff]  ;;  %8428 = vmatprep.subr.bf16.mxu0 %v10359_v9 }
 0x1fb   : > { %9345 = vrot.lane.b32.xlu1 %v16760_v29, %s10587_s21  ;;  %v9063_v44 = vunpack.i.h.bf16 %v9061_v32  ;;  %v9062_v19 = vunpack.i.l.bf16 %v9061_v32  ;;  %v2436_v29 = vsel %vm2338_vm2, %v2404_v46, %v8982_v27  ;;  %v2438_v60 = vsel %vm2338_vm2, %v2406_v1, %v8987_v0  ;;  %v16767_v1 = vld [vmem:[#allocation78_spill] sm:$0xff] }
 0x1fc   : > { %v9066_v39 = vpop.permute.xlu1 %9065  ;;  %v8843_v8 = vunpack.i.h.bf16 %v16766_v45  ;;  %v2439_v27 = vsel %vm2338_vm2, %v2407_v51, %v8988_v57  ;;  %v8842_v21 = vunpack.i.l.bf16 %v16766_v45  ;;  %v8913_v43 = vunpack.i.h.bf16 %v16767_v1  ;;  %v10362_v45 = vld [vmem:[%s16271_s7 + $0x88] sm:$0xff]   ;;  %v16768_v51 = vld [vmem:[#allocation105_spill] sm:$0xff] }
 0x1fd   : > { %v9068_v26 = vunpack.i.h.bf16 %v9066_v39  ;;  %v9067_v4 = vunpack.i.l.bf16 %v9066_v39  ;;  %v2468_v46 = vsel %vm2371_vm3, %v2436_v29, %v9062_v19  ;;  %v2469_v32 = vsel %vm2371_vm3, %v2437_v52, %v9063_v44  ;;  %v16769_v52 = vld [vmem:[#allocation54_spill] sm:$0xff] }
 0x1fe   : > { %9350 = vrot.lane.b32.xlu0 %v16765_v56, %s10587_s21  ;;  %v9071_v3 = vpop.permute.xlu0 %9070  ;;  %v2501_v39 = vpack.c.bf16 %v2469_v32, %v2468_v46  ;;  %v8912_v56 = vunpack.i.l.bf16 %v16767_v1  ;;  %v12531_v44 = vsel %vm2371_vm3, %v12325_v24, %v8833_v61  ;;  %v8993_v57 = vunpack.i.h.bf16 %v16768_v51  ;;  %v12548_v61 = vld [vmem:[#allocation2 + $0x557] sm:$0xff] }
 0x1ff   : > { %9355 = vrot.lane.b32.xlu1 %v12297_v12, %s10587_s21  ;;  %v2470_v15 = vsel %vm2371_vm3, %v2438_v60, %v9067_v4  ;;  %v2471_v0 = vsel %vm2371_vm3, %v2439_v27, %v9068_v26  ;;  %v8992_v29 = vunpack.i.l.bf16 %v16768_v51  ;;  %v12542_v4 = vsel %vm2371_vm3, %v12335_v33, %v8837_v49  ;;  %v12550_v26 = vld [vmem:[#allocation2 + $0x55f] sm:$0xff]  ;;  %v12558_v49 = vld [vmem:[#allocation2 + $0x468] sm:$0xff]  ;;  %v16772_v51 = vld [vmem:[#allocation23_spill] sm:$0xff] }
 0x200   : > { %v12527_v12 = vpop.permute.xlu1 %9075  ;;  %v2504_v19 = vpack.c.bf16 %v2471_v0, %v2470_v15  ;;  %2779 = vmatprep.mubr.bf16.mxu0 %v2501_v39  ;;  %v12546_v24 = vsel %vm2371_vm3, %v12339_v23, %v8838_v5  ;;  %v8848_v60 = vunpack.i.h.bf16 %v16769_v52  ;;  %v8847_v46 = vunpack.i.l.bf16 %v16769_v52  ;;  %v12556_v33 = vld [vmem:[#allocation2 + $0x460] sm:$0xff]  ;;  %v16770_v23 = vld [vmem:[#allocation70_spill] sm:$0xff] }
 0x201   : > { %v9073_v32 = vunpack.i.h.bf16 %v9071_v3  ;;  %v9072_v27 = vunpack.i.l.bf16 %v9071_v3  ;;  %2780 = vmatmul.mubr.bf16.vlgmr.msra.gmra.mrb[0].mxu0 %v2500_v53  ;;  %v8878_v5 = vunpack.i.h.bf16 %v16770_v23  ;;  %v8877_v39 = vunpack.i.l.bf16 %v16770_v23  ;;  %v16771_v3 = vld [vmem:[#allocation24_spill] sm:$0xff] }
 0x202   : > { %9360 = vrot.lane.b32.xlu0 %v12301_v37, %s10587_s21  ;;  %v12562_v15 = vpop.permute.xlu0 %9080  ;;  %2787 = vmatprep.mubr.bf16.mxu0 %v2504_v19  ;;  %v12566_v0 = vsel %vm2371_vm3, %v12343_v17, %v8842_v21  ;;  %v12570_v53 = vsel %vm2371_vm3, %v12353_v31, %v8843_v8  ;;  %v2409_v1 = vsel %vm529_vm0, %v16771_v3, %v8913_v43  ;;  %v9077_v17 = vunpack.i.l.bf16 %v12527_v12  ;;  %v16788_v3 = vld [vmem:[#allocation27_spill] sm:$0xff] }
 0x203   : > { %9365 = vrot.lane.b32.xlu1 %v12315_v10, %s10587_s21  ;;  %8429 = vmatpush3.bf16.msra.mxu0 %v10359_v9  ;;  %v2408_v52 = vsel %vm529_vm0, %v16772_v51, %v8912_v56  ;;  %v2441_v21 = vsel %vm2338_vm2, %v2409_v1, %v8993_v57  ;;  %v16773_v8 = vpack.i.bf16 %v12309_v59, %v12307_v22  ;;  %v16782_v9 = vld [vmem:[#allocation91_spill] sm:$0xff]  ;;  %v16787_v51 = vld [vmem:[#allocation28_spill] sm:$0xff] }
 0x204   : > { %v12576_v10 = vpop.permute.xlu1 %9085  ;;  %8430 = vmatprep.subr.bf16.mxu0 %v10362_v45  ;;  %v2440_v31 = vsel %vm2338_vm2, %v2408_v52, %v8992_v29  ;;  %v2473_v23 = vsel %vm2371_vm3, %v2441_v21, %v9073_v32  ;;  %v12600_v57 = vsel %vm2371_vm3, %v12357_v28, %v8847_v46  ;;  %v12605_v56 = vsel %vm2371_vm3, %v12393_v48, %v8877_v39 }
 0x205   : > { %v2472_v43 = vsel %vm2371_vm3, %v2440_v31, %v9072_v27  ;;  %16774 = vst [vmem:[#allocation109_spill] sm:$0xff] %v12600_v57  ;;  %v12609_v59 = vsel %vm2371_vm3, %v12397_v41, %v8878_v5  ;;  %v12615_v32 = vsel %vm2371_vm3, %v12361_v38, %v8848_v60  ;;  %v16776_v27 = vld [vmem:[#allocation79_spill] sm:$0xff]  ;;  %v16777_v31 = vld [vmem:[#allocation80_spill] sm:$0xff]  ;;  %v16790_v60 = vld [vmem:[#allocation42_spill] sm:$0xff] }
 0x206   : > { %9370 = vrot.lane.b32.xlu0 %v12331_v20, %s10587_s21  ;;  %v12611_v22 = vpop.permute.xlu0 %9090  ;;  %v8918_v28 = vunpack.i.h.bf16 %v16776_v27  ;;  %v8917_v46 = vunpack.i.l.bf16 %v16776_v27  ;;  %v8923_v21 = vunpack.i.h.bf16 %v16777_v31  ;;  %v8922_v48 = vunpack.i.l.bf16 %v16777_v31  ;;  %v16779_v5 = vld [vmem:[#allocation107_spill] sm:$0xff]  ;;  %v16780_v38 = vld [vmem:[#allocation88_spill] sm:$0xff]  ;;  %v16791_v20 = vld [vmem:[#allocation89_spill] sm:$0xff] }
 0x207   : > { %9375 = vrot.lane.b32.xlu1 %v16773_v8, %s10587_s21  ;;  %8431 = vmatpush3.bf16.msra.mxu0 %v10362_v45  ;;  %v16778_v8 = vld [vmem:[#allocation87_spill] sm:$0xff]  ;;  %v8998_v52 = vunpack.i.h.bf16 %v16779_v5  ;;  %v8997_v29 = vunpack.i.l.bf16 %v16779_v5  ;;  %v2507_v45 = vpack.c.bf16 %v2473_v23, %v2472_v43  ;;  %v9078_v27 = vunpack.i.h.bf16 %v12527_v12 }
 0x208   : > { %v12621_v39 = vpop.permute.xlu1 %9095  ;;  %v8958_v41 = vunpack.i.h.bf16 %v16778_v8  ;;  %v16781_v31 = vpack.c.bf16 %v12456_v36, %v12453_v47  ;;  %v16783_v43 = vld [vmem:[#allocation71_spill] sm:$0xff]  ;;  %v8957_v19 = vunpack.i.l.bf16 %v16778_v8  ;;  %v16785_v47 = vld [vmem:[#allocation26_spill] sm:$0xff]  ;;  %v2413_v5 = vsel %vm529_vm0, %v16787_v51, %v8923_v21 }
 0x209   : > { %v2411_v36 = vsel %vm529_vm0, %v16785_v47, %v8918_v28  ;;  %v8963_v37 = vunpack.i.h.bf16 %v16791_v20  ;;  %v9037_v21 = vunpack.i.l.bf16 %v12373_v13  ;;  %v16795_v47 = vld [vmem:[#allocation90_spill] sm:$0xff] }
 0x20a   : > { %9380 = vrot.lane.b32.xlu0 %v16780_v38, %s10585_s15  ;;  %2788 = vmatmul.mubr.bf16.gmra.mrb[4].mxu0 %v16781_v31  ;;  %v12643_v12 = vpop.permute.xlu0 %9100  ;;  %v16786_v31 = vld [vmem:[#allocation25_spill] sm:$0xff]  ;;  %v2412_v38 = vsel %vm529_vm0, %v16788_v3, %v8922_v48  ;;  %v2427_v8 = vsel %vm529_vm0, %v16790_v60, %v8958_v41  ;;  %v16793_v48 = vld [vmem:[#allocation94_spill] sm:$0xff] }
 0x20b   : > { %9385 = vrot.lane.b32.xlu1 %v16782_v9, %s10585_s15  ;;  %16784 = vst [vmem:[#allocation108_spill] sm:$0xff] %v12643_v12  ;;  %2795 = vmatprep.mubr.bf16.mxu0 %v2507_v45  ;;  %v2410_v9 = vsel %vm529_vm0, %v16786_v31, %v8917_v46  ;;  %v16792_v45 = vld [vmem:[#allocation92_spill] sm:$0xff]  ;;  %v2443_v46 = vsel %vm2338_vm2, %v2411_v36, %v8998_v52  ;;  %v9038_v31 = vunpack.i.h.bf16 %v12373_v13  ;;  %v16794_v60 = vld [vmem:[#allocation41_spill] sm:$0xff]  ;;  %v8967_v13 = vunpack.i.l.bf16 %v16795_v47  ;;  %v16799_v12 = vld [vmem:[#allocation46_spill] sm:$0xff] }
 0x20c   : > { %v12653_v23 = vpop.permute.xlu1 %9105  ;;  %v2442_v28 = vsel %vm2338_vm2, %v2410_v9, %v8997_v29  ;;  %v2475_v41 = vsel %vm2371_vm3, %v2443_v46, %v9078_v27  ;;  %v2426_v51 = vsel %vm529_vm0, %v16794_v60, %v8957_v19  ;;  %v8968_v29 = vunpack.i.h.bf16 %v16795_v47  ;;  %v16796_v9 = vld [vmem:[#allocation112_spill] sm:$0xff] }
 0x20d   : > { %16789 = vst [vmem:[#allocation111_spill] sm:$0xff] %v12653_v23  ;;  %v2474_v3 = vsel %vm2371_vm3, %v2442_v28, %v9077_v17  ;;  %v9002_v52 = vunpack.i.l.bf16 %v16796_v9  ;;  %v9003_v23 = vunpack.i.h.bf16 %v16796_v9  ;;  %v9042_v17 = vunpack.i.l.bf16 %v12399_v11  ;;  %v16798_v19 = vld [vmem:[#allocation96_spill] sm:$0xff] }
 0x20e   : > { %9390 = vrot.lane.b32.xlu0 %v16792_v45, %s10585_s15  ;;  %v8962_v45 = vunpack.i.l.bf16 %v16791_v20  ;;  %v12673_v36 = vpop.permute.xlu0 %9110  ;;  %v9082_v28 = vunpack.i.l.bf16 %v12562_v15  ;;  %v2510_v60 = vpack.c.bf16 %v2475_v41, %v2474_v3  ;;  %v9083_v47 = vunpack.i.h.bf16 %v12562_v15 }
 0x20f   : > { %9395 = vrot.lane.b32.xlu1 %v16793_v48, %s10585_s15  ;;  %16797 = vst [vmem:[#allocation104_spill] sm:$0xff] %v12673_v36  ;;  %v9043_v48 = vunpack.i.h.bf16 %v12399_v11  ;;  %v2429_v36 = vsel %vm529_vm0, %v16799_v12, %v8963_v37  ;;  %v16800_v9 = vpack.c.bf16 %v12531_v44, %v12504_v54  ;;  %v16801_v11 = vld [vmem:[#allocation98_spill] sm:$0xff]  ;;  %v2458_v1 = vsel %vm2338_vm2, %v2426_v51, %v9037_v21 }
 0x210   : > { %v9116_v27 = vpop.permute.xlu1 %9115  ;;  %v2459_v57 = vsel %vm2338_vm2, %v2427_v8, %v9038_v31  ;;  %v2444_v41 = vsel %vm2338_vm2, %v2412_v38, %v9002_v52  ;;  %v9048_v51 = vunpack.i.h.bf16 %v12413_v25  ;;  %v16803_v31 = vld [vmem:[#allocation100_spill] sm:$0xff]  ;;  %v16804_v38 = vld [vmem:[#allocation101_spill] sm:$0xff] }
 0x211   : > { %v9118_v20 = vunpack.i.h.bf16 %v9116_v27  ;;  %v9117_v46 = vunpack.i.l.bf16 %v9116_v27 }
 0x212   : > { %9400 = vrot.lane.b32.xlu0 %v16798_v19, %s10585_s15  ;;  %2796 = vmatmul.mubr.bf16.gmra.mrb[8].mxu0 %v16800_v9  ;;  %v16802_v19 = vld [vmem:[#allocation45_spill] sm:$0xff]  ;;  %v9121_v3 = vpop.permute.xlu0 %9120 }
 0x213   : > { %9405 = vrot.lane.b32.xlu1 %v16801_v11, %s10585_s15  ;;  %v2428_v27 = vsel %vm529_vm0, %v16802_v19, %v8962_v45  ;;  %2803 = vmatprep.mubr.bf16.mxu0 %v2510_v60  ;;  %v2490_v37 = vsel %vm2371_vm3, %v2458_v1, %v9117_v46  ;;  %v2491_v15 = vsel %vm2371_vm3, %v2459_v57, %v9118_v20  ;;  %v9123_v54 = vunpack.i.h.bf16 %v9121_v3 }
 0x214   : > { %v9122_v44 = vunpack.i.l.bf16 %v9121_v3  ;;  %v9126_v9 = vpop.permute.xlu1 %9125  ;;  %v2534_v12 = vpack.c.bf16 %v2491_v15, %v2490_v37  ;;  %v2445_v11 = vsel %vm2338_vm2, %v2413_v5, %v9003_v23  ;;  %v2460_v8 = vsel %vm2338_vm2, %v2428_v27, %v9042_v17  ;;  %v10358_v17 = vld [vmem:[%s16269_s5 + $0x88] sm:$0xff]   ;;  %v16808_v27 = vld [vmem:[#allocation56_spill] sm:$0xff]  ;;  %v16810_v15 = vld [vmem:[#allocation75_spill] sm:$0xff] }
 0x215   : > { %v2461_v60 = vsel %vm2338_vm2, %v2429_v36, %v9043_v48  ;;  %v2476_v1 = vsel %vm2371_vm3, %v2444_v41, %v9082_v28  ;;  %v9047_v57 = vunpack.i.l.bf16 %v12413_v25  ;;  %v2477_v23 = vsel %vm2371_vm3, %v2445_v11, %v9083_v47  ;;  %v16807_v28 = vld [vmem:[#allocation81_spill] sm:$0xff]  ;;  %v16813_v11 = vld [vmem:[#allocation102_spill] sm:$0xff] }
 0x216   : > { %9410 = vrot.lane.b32.xlu0 %v16803_v31, %s10585_s15  ;;  %2867 = vmatprep.mubr.bf16.mxu1 %v2534_v12  ;;  %v2492_v21 = vsel %vm2371_vm3, %v2460_v8, %v9122_v44  ;;  %v2493_v5 = vsel %vm2371_vm3, %v2461_v60, %v9123_v54  ;;  %v9128_v45 = vunpack.i.h.bf16 %v9126_v9  ;;  %v9127_v52 = vunpack.i.l.bf16 %v9126_v9  ;;  %v12710_v20 = vpop.permute.xlu0 %9130  ;;  %v16812_v54 = vld [vmem:[#allocation113_spill] sm:$0xff] }
 0x217   : > { %9415 = vrot.lane.b32.xlu1 %v16804_v38, %s10585_s15  ;;  %v16805_v36 = vpack.c.bf16 %v12609_v59, %v12605_v56  ;;  %v2537_v48 = vpack.c.bf16 %v2493_v5, %v2492_v21  ;;  %v16806_v25 = vunpack.i.l.bf16 %v16783_v43  ;;  %v8928_v46 = vunpack.i.h.bf16 %v16807_v28  ;;  %v16816_v38 = vld [vmem:[#allocation72_spill] sm:$0xff] }
 0x218   : > { %v8927_v47 = vunpack.i.l.bf16 %v16807_v28  ;;  %v2431_v3 = vsel %vm529_vm0, %v16808_v27, %v8968_v29  ;;  %v12726_v37 = vpop.permute.xlu1 %9135  ;;  %v16809_v56 = vunpack.i.h.bf16 %v16783_v43  ;;  %v9008_v44 = vunpack.i.h.bf16 %v16812_v54  ;;  %v10360_v43 = vld [vmem:[%s16271_s7 + $0x40] sm:$0xff]   ;;  %v12766_v28 = vld [vmem:[#allocation2 + $0x490] sm:$0xff] }
 0x219   : > { %2868 = vmatmul.mubr.bf16.vlgmr.msra.gmra.mrb[36].mxu1 %v16805_v36  ;;  %v2396_v12 = vsel %vm2371_vm3, %v12417_v16, %v16806_v25  ;;  %v16811_v16 = vld [vmem:[#allocation55_spill] sm:$0xff]  ;;  %v9007_v9 = vunpack.i.l.bf16 %v16812_v54  ;;  %v2513_v29 = vpack.c.bf16 %v2477_v23, %v2476_v1  ;;  %v9087_v31 = vunpack.i.l.bf16 %v12576_v10  ;;  %v16819_v36 = vld [vmem:[#allocation93_spill] sm:$0xff] }
 0x21a   : > { %v2397_v59 = vsel %vm2371_vm3, %v12421_v6, %v16809_v56  ;;  %8393 = vmatpush3.bf16.msra.mxu1 %v16810_v15  ;;  %v2430_v41 = vsel %vm529_vm0, %v16811_v16, %v8967_v13  ;;  %9420 = vrot.lane.b32.xlu0 %v16813_v11, %s10585_s15  ;;  %v9088_v6 = vunpack.i.h.bf16 %v12576_v10  ;;  %v16814_v13 = vpack.c.bf16 %v12546_v24, %v12542_v4  ;;  %v12755_v23 = vpop.permute.xlu0 %9140  ;;  %v16817_v24 = vld [vmem:[#allocation30_spill] sm:$0xff]  ;;  %v16897_v16 = vld [vmem:[#allocation104_spill] sm:$0xff] }
 0x21b   : > { %2875 = vmatprep.mubr.bf16.mxu1 %v2537_v48  ;;  %v16815_v8 = vpack.i.bf16 %v12403_v62, %v12401_v30  ;;  %v2462_v60 = vsel %vm2338_vm2, %v2430_v41, %v9047_v57  ;;  %v2463_v1 = vsel %vm2338_vm2, %v2431_v3, %v9048_v51  ;;  %v8888_v21 = vunpack.i.h.bf16 %v16816_v38  ;;  %8394 = vmatprep.subr.bf16.mxu1 %v10358_v17  ;;  %v16818_v62 = vld [vmem:[#allocation29_spill] sm:$0xff]  ;;  %v12768_v3 = vld [vmem:[#allocation2 + $0x498] sm:$0xff]  ;;  %v16823_v11 = vld [vmem:[#allocation58_spill] sm:$0xff] }
 0x21c   : > { %2804 = vmatmul.mubr.bf16.gmra.mrb[12].mxu0 %v16814_v13  ;;  %v8887_v5 = vunpack.i.l.bf16 %v16816_v38  ;;  %v2494_v10 = vsel %vm2371_vm3, %v2462_v60, %v9127_v52  ;;  %v2495_v4 = vsel %vm2371_vm3, %v2463_v1, %v9128_v45  ;;  %v2415_v30 = vsel %vm529_vm0, %v16817_v24, %v8928_v46  ;;  %v12764_v48 = vpop.permute.xlu1 %9145  ;;  %v16825_v13 = vld [vmem:[#allocation117_spill] sm:$0xff] }
 0x21d   : > { %9425 = vrot.lane.b32.xlu1 %v16815_v8, %s10585_s15  ;;  %2811 = vmatprep.mubr.bf16.mxu0 %v2513_v29  ;;  %v2414_v57 = vsel %vm529_vm0, %v16818_v62, %v8927_v47  ;;  %v8973_v51 = vunpack.i.h.bf16 %v16819_v36  ;;  %v2536_v25 = vpack.c.bf16 %v2397_v59, %v2396_v12  ;;  %v8972_v52 = vunpack.i.l.bf16 %v16819_v36  ;;  %v16830_v36 = vld [vmem:[#allocation31_spill] sm:$0xff] }
 0x21e   : > { %8395 = vmatpush3.bf16.msra.mxu1 %v10358_v17  ;;  %v9053_v45 = vunpack.i.h.bf16 %v12468_v40  ;;  %v16820_v46 = vpack.i.bf16 %v12444_v14, %v12442_v2  ;;  %v2446_v47 = vsel %vm2338_vm2, %v2414_v57, %v9007_v9  ;;  %v2447_v56 = vsel %vm2338_vm2, %v2415_v30, %v9008_v44  ;;  %v12787_v54 = vpop.permute.xlu0 %9150  ;;  %v13267_v62 = vld [vmem:[#allocation2 + $0x3b7] sm:$0xff] }
 0x21f   : > { %8056 = vmatprep.subr.bf16.mxu1 %v10360_v43  ;;  %v9052_v12 = vunpack.i.l.bf16 %v12468_v40  ;;  %v16821_v17 = vpack.i.bf16 %v12472_v35, %v12470_v58  ;;  %v2540_v59 = vpack.c.bf16 %v2495_v4, %v2494_v10  ;;  %v2478_v15 = vsel %vm2371_vm3, %v2446_v47, %v9087_v31  ;;  %v16822_v58 = vld [vmem:[#allocation82_spill] sm:$0xff]  ;;  %v16828_v4 = vld [vmem:[#allocation73_spill] sm:$0xff] }
 0x220   : > { %9430 = vrot.lane.b32.xlu0 %v16820_v46, %s10585_s15  ;;  %v2479_v41 = vsel %vm2371_vm3, %v2447_v56, %v9088_v6  ;;  %v9133_v2 = vunpack.i.h.bf16 %v12710_v20  ;;  %v9132_v14 = vunpack.i.l.bf16 %v12710_v20  ;;  %v9459_v40 = vpack.i.bf16 %v12768_v3, %v12766_v28  ;;  %v12797_v43 = vpop.permute.xlu1 %9155  ;;  %v16824_v6 = vld [vmem:[#allocation57_spill] sm:$0xff] }
 0x221   : > { %9435 = vrot.lane.b32.xlu1 %v16821_v17, %s10585_s15  ;;  %2876 = vmatmul.mubr.bf16.gmra.mrb[40].mxu1 %v2536_v25  ;;  %v2398_v44 = vsel %vm2371_vm3, %v12425_v42, %v8887_v5  ;;  %v8933_v35 = vunpack.i.h.bf16 %v16822_v58  ;;  %v8932_v9 = vunpack.i.l.bf16 %v16822_v58  ;;  %v2433_v29 = vsel %vm529_vm0, %v16823_v11, %v8973_v51  ;;  %v16831_v51 = vld [vmem:[#allocation95_spill] sm:$0xff]  ;;  %v10377_v46 = vld [vmem:[%s16273_s9 + $0x40] sm:$0xff]  }
 0x222   : > { %2883 = vmatprep.mubr.bf16.mxu1 %v2540_v59  ;;  %v2399_v20 = vsel %vm2371_vm3, %v12429_v7, %v8888_v21  ;;  %v2432_v31 = vsel %vm529_vm0, %v16824_v6, %v8972_v52  ;;  %v9013_v8 = vunpack.i.h.bf16 %v16825_v13  ;;  %v9012_v42 = vunpack.i.l.bf16 %v16825_v13  ;;  %v3299_v52 = vld [vmem:[#allocation2 + $0x4c0] sm:$0xff]  ;;  %8186 = vmatprep.subr.bf16.mxu0 %v10377_v46  ;;  %v16837_v13 = vld [vmem:[#allocation59_spill] sm:$0xff] }
 0x223   : > { %v16826_v60 = vpack.i.bf16 %v12550_v26, %v12548_v61  ;;  %v2516_v1 = vpack.c.bf16 %v2479_v41, %v2478_v15  ;;  %v9093_v38 = vunpack.i.h.bf16 %v12611_v22  ;;  %v9092_v5 = vunpack.i.l.bf16 %v12611_v22  ;;  %v12820_v26 = vpop.permute.xlu0 %9160 }
 0x224   : > { %v16827_v7 = vpack.c.bf16 %v12570_v53, %v12566_v0  ;;  %v2464_v21 = vsel %vm2338_vm2, %v2432_v31, %v9052_v12  ;;  %v2465_v10 = vsel %vm2338_vm2, %v2433_v29, %v9053_v45  ;;  %v8893_v30 = vunpack.i.h.bf16 %v16828_v4  ;;  %v16829_v0 = vld [vmem:[#allocation32_spill] sm:$0xff]  ;;  %v12829_v28 = vpop.permute.xlu1 %9165  ;;  %v3300_v45 = vld [vmem:[#allocation2 + $0x4c8] sm:$0xff] }
 0x225   : > { %9440 = vrot.lane.b32.xlu0 %v16826_v60, %s10585_s15  ;;  %9445 = vrot.lane.b32.xlu1 %v12251_v50, %s10586_s24  ;;  %v8892_v61 = vunpack.i.l.bf16 %v16828_v4  ;;  %v2496_v22 = vsel %vm2371_vm3, %v2464_v21, %v9132_v14  ;;  %v2497_v57 = vsel %vm2371_vm3, %v2465_v10, %v9133_v2  ;;  %v2417_v53 = vsel %vm529_vm0, %v16829_v0, %v8933_v35  ;;  %v16834_v35 = vld [vmem:[#allocation83_spill] sm:$0xff]  ;;  %v16835_v29 = vld [vmem:[#allocation60_spill] sm:$0xff]  ;;  %v16839_v10 = vld [vmem:[#allocation109_spill] sm:$0xff] }
 0x226   : > { %2812 = vmatmul.mubr.bf16.gmra.mrb[16].mxu0 %v16827_v7  ;;  %v2416_v50 = vsel %vm529_vm0, %v16830_v36, %v8932_v9  ;;  %v8978_v25 = vunpack.i.h.bf16 %v16831_v51  ;;  %v2539_v3 = vpack.c.bf16 %v2399_v20, %v2398_v44  ;;  %v8977_v47 = vunpack.i.l.bf16 %v16831_v51  ;;  %v16846_v51 = vld [vmem:[#allocation49_spill] sm:$0xff]  ;;  %v13254_v36 = vld [vmem:[#allocation2 + $0x5eb] sm:$0xff] }
 0x227   : > { %2819 = vmatprep.mubr.bf16.mxu0 %v2516_v1  ;;  %v9058_v56 = vunpack.i.h.bf16 %v12476_v18  ;;  %v16832_v12 = vpack.i.bf16 %v12558_v49, %v12556_v33  ;;  %v2448_v17 = vsel %vm2338_vm2, %v2416_v50, %v9012_v42  ;;  %v2449_v59 = vsel %vm2338_vm2, %v2417_v53, %v9013_v8  ;;  %v12849_v49 = vpop.permute.xlu0 %9170  ;;  %v16838_v42 = vld [vmem:[#allocation119_spill] sm:$0xff]  ;;  %v16844_v53 = vld [vmem:[#allocation65_spill] sm:$0xff] }
 0x228   : > { %v9057_v15 = vunpack.i.l.bf16 %v12476_v18  ;;  %v2543_v41 = vpack.c.bf16 %v2497_v57, %v2496_v22  ;;  %v2480_v2 = vsel %vm2371_vm3, %v2448_v17, %v9092_v5  ;;  %v2481_v14 = vsel %vm2371_vm3, %v2449_v59, %v9093_v38  ;;  %16833 = vst [vmem:[#allocation103_spill] sm:$0xff] %v12849_v49  ;;  %v12857_v31 = vpop.permute.xlu1 %9175  ;;  %v3301_v38 = vld [vmem:[#allocation2 + $0x4f0] sm:$0xff]  ;;  %v3302_v5 = vld [vmem:[#allocation2 + $0x4f8] sm:$0xff]  ;;  %v16851_v17 = vld [vmem:[#allocation50_spill] sm:$0xff] }
 0x229   : > { %9450 = vrot.lane.b32.xlu0 %v16832_v12, %s10587_s21  ;;  %9455 = vrot.lane.b32.xlu1 %v16758_v34, %s10586_s24  ;;  %v9138_v44 = vunpack.i.h.bf16 %v12726_v37  ;;  %v9137_v33 = vunpack.i.l.bf16 %v12726_v37  ;;  %v9469_v58 = vpack.i.bf16 %v3300_v45, %v3299_v52  ;;  %v2400_v18 = vsel %vm2371_vm3, %v12448_v55, %v8892_v61  ;;  %16836 = vst [vmem:[#allocation51_spill] sm:$0xff] %v12857_v31  ;;  %v16842_v22 = vld [vmem:[#allocation48_spill] sm:$0xff]  ;;  %v16848_v45 = vld [vmem:[#allocation33_spill] sm:$0xff]  ;;  %v13410_v49 = vld [vmem:[#allocation2 + $0x6c9] sm:$0xff] }
 0x22a   : > { %2884 = vmatmul.mubr.bf16.gmra.mrb[44].mxu1 %v2539_v3  ;;  %v8938_v9 = vunpack.i.h.bf16 %v16834_v35  ;;  %v8937_v34 = vunpack.i.l.bf16 %v16834_v35  ;;  %v2435_v20 = vsel %vm529_vm0, %v16835_v29, %v8978_v25  ;;  %v2401_v37 = vsel %vm2371_vm3, %v12462_v63, %v8893_v30  ;;  %v16841_v63 = vld [vmem:[#allocation115_spill] sm:$0xff]  ;;  %v16847_v3 = vld [vmem:[#allocation34_spill] sm:$0xff]  ;;  %v16853_v35 = vld [vmem:[#allocation120_spill] sm:$0xff] }
 0x22b   : > { %2891 = vmatprep.mubr.bf16.mxu1 %v2543_v41  ;;  %v2434_v8 = vsel %vm529_vm0, %v16837_v13, %v8977_v47  ;;  %v9018_v60 = vunpack.i.h.bf16 %v16838_v42  ;;  %v9017_v55 = vunpack.i.l.bf16 %v16838_v42  ;;  %v2519_v1 = vpack.c.bf16 %v2481_v14, %v2480_v2  ;;  %v12876_v57 = vpop.permute.xlu0 %9180  ;;  %v3304_v42 = vld [vmem:[#allocation2 + $0x528] sm:$0xff]  ;;  %v13423_v31 = vld [vmem:[#allocation2 + $0x13f] sm:$0xff] }
 0x22c   : > { %v9098_v7 = vunpack.i.h.bf16 %v12621_v39  ;;  %v9097_v21 = vunpack.i.l.bf16 %v12621_v39  ;;  %v16840_v4 = vpack.c.bf16 %v12615_v32, %v16839_v10  ;;  %v2466_v30 = vsel %vm2338_vm2, %v2434_v8, %v9057_v15  ;;  %16843 = vst [vmem:[#allocation76_spill] sm:$0xff] %v12876_v57  ;;  %v12888_v47 = vpop.permute.xlu1 %9185  ;;  %v16852_v15 = vld [vmem:[#allocation74_spill] sm:$0xff]  ;;  %v3303_v8 = vld [vmem:[#allocation2 + $0x520] sm:$0xff]  ;;  %v16859_v10 = vld [vmem:[#allocation64_spill] sm:$0xff] }
 0x22d   : > { %9460 = vrot.lane.b32.xlu0 %v9459_v40, %s10587_s21  ;;  %9465 = vrot.lane.b32.xlu1 %v16841_v63, %s10586_s24  ;;  %v2467_v61 = vsel %vm2338_vm2, %v2435_v20, %v9058_v56  ;;  %v8817_v40 = vunpack.i.l.bf16 %v16842_v22  ;;  %v16845_v50 = vunpack.i.l.bf16 %v16844_v53  ;;  %v2498_v32 = vsel %vm2371_vm3, %v2466_v30, %v9137_v33  ;;  %16849 = vst [vmem:[#allocation77_spill] sm:$0xff] %v12888_v47  ;;  %v16862_v30 = vld [vmem:[#allocation84_spill] sm:$0xff]  ;;  %v13250_v0 = vld [vmem:[#allocation2 + $0x641] sm:$0xff]  ;;  %v13390_v57 = vld [vmem:[#allocation2 + $0x130] sm:$0xff] }
 0x22e   : > { %2820 = vmatmul.mubr.bf16.gmra.mrb[20].mxu0 %v16840_v4  ;;  %v2499_v25 = vsel %vm2371_vm3, %v2467_v61, %v9138_v44  ;;  %v2419_v52 = vsel %vm529_vm0, %v16847_v3, %v8938_v9  ;;  %v2418_v46 = vsel %vm529_vm0, %v16848_v45, %v8937_v34  ;;  %v9479_v56 = vpack.i.bf16 %v3302_v5, %v3301_v38  ;;  %v3336_v45 = vld [vmem:[#allocation2 + $0x52f] sm:$0xff]  ;;  %v13388_v47 = vld [vmem:[#allocation2 + $0x417] sm:$0xff] }
 0x22f   : > { %2827 = vmatprep.mubr.bf16.mxu0 %v2519_v1  ;;  %v2384_v39 = vsel %vm2371_vm3, %v16846_v51, %v16845_v50  ;;  %v16850_v12 = vunpack.i.h.bf16 %v16844_v53  ;;  %v8898_v41 = vunpack.i.h.bf16 %v16852_v15  ;;  %v2542_v2 = vpack.c.bf16 %v2401_v37, %v2400_v18  ;;  %v16854_v1 = vld [vmem:[#allocation66_spill] sm:$0xff] }
 0x230   : > { %v2450_v14 = vsel %vm2338_vm2, %v2418_v46, %v9017_v55  ;;  %v2451_v44 = vsel %vm2338_vm2, %v2419_v52, %v9018_v60  ;;  %v8897_v33 = vunpack.i.l.bf16 %v16852_v15  ;;  %v2546_v9 = vpack.c.bf16 %v2499_v25, %v2498_v32  ;;  %v16856_v18 = vld [vmem:[#allocation118_spill] sm:$0xff]  ;;  %v16858_v55 = vld [vmem:[#allocation116_spill] sm:$0xff]  ;;  %v12919_v50 = vpop.permute.xlu1 %9195 }
 0x231   : > { %v2385_v59 = vsel %vm2371_vm3, %v16851_v17, %v16850_v12  ;;  %9470 = vrot.lane.b32.xlu0 %v9469_v58, %s10587_s21  ;;  %9475 = vrot.lane.b32.xlu1 %v16853_v35, %s10586_s24  ;;  %v2482_v34 = vsel %vm2371_vm3, %v2450_v14, %v9097_v21  ;;  %v2483_v20 = vsel %vm2371_vm3, %v2451_v44, %v9098_v7  ;;  %v8857_v38 = vunpack.i.l.bf16 %v16854_v1  ;;  %v12904_v58 = vpop.permute.xlu0 %9190  ;;  %v16861_v21 = vld [vmem:[#allocation110_spill] sm:$0xff]  ;;  %v16865_v17 = vld [vmem:[#allocation108_spill] sm:$0xff]  ;;  %v16866_v14 = vld [vmem:[#allocation121_spill] sm:$0xff] }
 0x232   : > { %16855 = vst [vmem:[#allocation97_spill] sm:$0xff] %v12904_v58  ;;  %2892 = vmatmul.mubr.bf16.gmra.mrb[48].mxu1 %v2542_v2  ;;  %v2369_v37 = vsel %vm2338_vm2, %v16856_v18, %v8817_v40  ;;  %v16857_v60 = vunpack.i.h.bf16 %v16842_v22  ;;  %v16860_v4 = vunpack.i.l.bf16 %v16859_v10  ;;  %v8858_v63 = vunpack.i.h.bf16 %v16854_v1  ;;  %16863 = vst [vmem:[#allocation99_spill] sm:$0xff] %v12919_v50  ;;  %v16864_v40 = vld [vmem:[#allocation122_spill] sm:$0xff]  ;;  %v16871_v18 = vld [vmem:[#allocation36_spill] sm:$0xff] }
 0x233   : > { %v8943_v61 = vunpack.i.h.bf16 %v16862_v30  ;;  %v8942_v53 = vunpack.i.l.bf16 %v16862_v30  ;;  %v2518_v51 = vpack.c.bf16 %v2385_v59, %v2384_v39  ;;  %2899 = vmatprep.mubr.bf16.mxu1 %v2546_v9  ;;  %v9023_v22 = vunpack.i.h.bf16 %v16864_v40  ;;  %v1506_v46 = vld [vmem:[#allocation2 + $0x3a3] sm:$0xff]  ;;  %v1507_v12 = vld [vmem:[#allocation2 + $0x3ab] sm:$0xff]  ;;  %v3306_v59 = vld [vmem:[#allocation2 + $0x558] sm:$0xff] }
 0x234   : > { %v2370_v5 = vsel %vm2338_vm2, %v16858_v55, %v16857_v60  ;;  %v2353_v7 = vsel %vm2338_vm2, %v16861_v21, %v16860_v4  ;;  %v9022_v32 = vunpack.i.l.bf16 %v16864_v40  ;;  %v2522_v25 = vpack.c.bf16 %v2483_v20, %v2482_v34  ;;  %v3305_v39 = vld [vmem:[#allocation2 + $0x550] sm:$0xff]  ;;  %v16867_v9 = vld [vmem:[#allocation61_spill] sm:$0xff] }
 0x235   : > { %9480 = vrot.lane.b32.xlu0 %v9479_v56, %s10587_s21  ;;  %v9489_v52 = vpack.i.bf16 %v3304_v42, %v3303_v8  ;;  %v9103_v15 = vunpack.i.h.bf16 %v16865_v17  ;;  %v9102_v2 = vunpack.i.l.bf16 %v16865_v17  ;;  %9485 = vrot.lane.b32.xlu1 %v16866_v14, %s10586_s24  ;;  %v2402_v44 = vsel %vm2371_vm3, %v2369_v37, %v8897_v33  ;;  %v12931_v34 = vpop.permute.xlu0 %9200  ;;  %v16870_v8 = vld [vmem:[#allocation106_spill] sm:$0xff]  ;;  %v16872_v55 = vld [vmem:[#allocation35_spill] sm:$0xff]  ;;  %v12942_v37 = vpop.permute.xlu1 %9205  ;;  %v3307_v40 = vld [vmem:[#allocation2 + $0x580] sm:$0xff] }
 0x236   : > { %2828 = vmatmul.mubr.bf16.gmra.mrb[24].mxu0 %v2518_v51  ;;  %v2403_v35 = vsel %vm2371_vm3, %v2370_v5, %v8898_v41  ;;  %v8703_v56 = vunpack.i.h.bf16 %v16867_v9  ;;  %16868 = vst [vmem:[#allocation114_spill] sm:$0xff] %v12931_v34  ;;  %v16869_v20 = vunpack.i.h.bf16 %v16859_v10  ;;  %v2386_v1 = vsel %vm2371_vm3, %v2353_v7, %v8857_v38  ;;  %16873 = vst [vmem:[#allocation52_spill] sm:$0xff] %v12942_v37  ;;  %v16874_v7 = vld [vmem:[#allocation62_spill] sm:$0xff]  ;;  %v16875_v51 = vld [vmem:[#allocation123_spill] sm:$0xff] }
 0x237   : > { %2835 = vmatprep.mubr.bf16.mxu0 %v2522_v25  ;;  %v2421_v60 = vsel %vm529_vm0, %v16871_v18, %v8943_v61  ;;  %v2420_v33 = vsel %vm529_vm0, %v16872_v55, %v8942_v53  ;;  %v2502_v5 = vpack.c.bf16 %v1507_v12, %v1506_v46  ;;  %v9499_v4 = vpack.i.bf16 %v3306_v59, %v3305_v39  ;;  %v3308_v25 = vld [vmem:[#allocation2 + $0x588] sm:$0xff]  ;;  %v16876_v46 = vld [vmem:[#allocation43_spill] sm:$0xff]  ;;  %v16879_v59 = vld [vmem:[#allocation85_spill] sm:$0xff] }
 0x238   : > { %v2354_v42 = vsel %vm2338_vm2, %v16870_v8, %v16869_v20  ;;  %v2545_v10 = vpack.c.bf16 %v2403_v35, %v2402_v44  ;;  %v2452_v21 = vsel %vm2338_vm2, %v2420_v33, %v9022_v32  ;;  %v2453_v30 = vsel %vm2338_vm2, %v2421_v60, %v9023_v22  ;;  %v16877_v22 = vld [vmem:[#allocation67_spill] sm:$0xff]  ;;  %v1509_v20 = vld [vmem:[#allocation2 + $0x3db] sm:$0xff]  ;;  %v5123_v37 = vld [vmem:[#allocation2 + $0x6a8] sm:$0xff] }
 0x239   : > { %v2387_v41 = vsel %vm2371_vm3, %v2354_v42, %v8858_v63  ;;  %9490 = vrot.lane.b32.xlu0 %v9489_v52, %s10587_s21  ;;  %v8702_v38 = vunpack.i.l.bf16 %v16867_v9  ;;  %v8708_v61 = vunpack.i.h.bf16 %v16874_v7  ;;  %9495 = vrot.lane.b32.xlu1 %v16875_v51, %s10586_s24  ;;  %v2484_v53 = vsel %vm2371_vm3, %v2452_v21, %v9102_v2  ;;  %v12958_v14 = vpop.permute.xlu0 %9210  ;;  %v1508_v9 = vld [vmem:[#allocation2 + $0x3d3] sm:$0xff]  ;;  %v1510_v21 = vld [vmem:[#allocation2 + $0x403] sm:$0xff] }
 0x23a   : > { %v2485_v63 = vsel %vm2371_vm3, %v2453_v30, %v9103_v15  ;;  %v8707_v52 = vunpack.i.l.bf16 %v16874_v7  ;;  %v8783_v12 = vunpack.i.h.bf16 %v16876_v46  ;;  %v8782_v32 = vunpack.i.l.bf16 %v16876_v46  ;;  %16878 = vst [vmem:[#allocation53_spill] sm:$0xff] %v12958_v14  ;;  %2900 = vmatmul.mubr.bf16.gmra.mrb[52].mxu1 %v2545_v10  ;;  %v12963_v15 = vpop.permute.xlu1 %9215  ;;  %v16881_v8 = vld [vmem:[#allocation124_spill] sm:$0xff]  ;;  %v1511_v30 = vld [vmem:[#allocation2 + $0x40b] sm:$0xff]  ;;  %v5122_v14 = vld [vmem:[#allocation2 + $0x6a0] sm:$0xff] }
 0x23b   : > { %v8863_v17 = vunpack.i.h.bf16 %v16877_v22  ;;  %v8862_v39 = vunpack.i.l.bf16 %v16877_v22  ;;  %v8948_v44 = vunpack.i.h.bf16 %v16879_v59  ;;  %v8947_v2 = vunpack.i.l.bf16 %v16879_v59  ;;  %16880 = vst [vmem:[#allocation78_spill] sm:$0xff] %v12963_v15  ;;  %8396 = vmatprep.mubr.msk.bf16.mxu1 %vm529_vm0, %v2502_v5  ;;  %v10423_v7 = vld [vmem:[#allocation2 + $0x405] sm:$0xff]  ;;  %v10424_v46 = vld [vmem:[#allocation2 + $0x3fd] sm:$0xff]  ;;  %v16900_v55 = vld [vmem:[#allocation39_spill] sm:$0xff] }
 0x23c   : > { %v2521_v35 = vpack.c.bf16 %v2387_v41, %v2386_v1  ;;  %v9028_v42 = vunpack.i.h.bf16 %v16881_v8  ;;  %v9027_v60 = vunpack.i.l.bf16 %v16881_v8  ;;  %v2525_v33 = vpack.c.bf16 %v2485_v63, %v2484_v53  ;;  %v16882_v41 = vld [vmem:[#allocation111_spill] sm:$0xff]  ;;  %v16883_v59 = vld [vmem:[#allocation125_spill] sm:$0xff] }
 0x23d   : > { %9500 = vrot.lane.b32.xlu0 %v9499_v4, %s10587_s21  ;;  %v9509_v10 = vpack.i.bf16 %v3308_v25, %v3307_v40  ;;  %v2323_v51 = vsel %vm529_vm0, %v10423_v7, %v8703_v56  ;;  %v2322_v1 = vsel %vm529_vm0, %v10424_v46, %v8702_v38  ;;  %v9108_v5 = vunpack.i.h.bf16 %v16882_v41  ;;  %9505 = vrot.lane.b32.xlu1 %v16883_v59, %s10586_s24  ;;  %v3309_v8 = vld [vmem:[#allocation2 + $0x5b0] sm:$0xff]  ;;  %v3310_v4 = vld [vmem:[#allocation2 + $0x5b8] sm:$0xff]  ;;  %v12978_v40 = vpop.permute.xlu0 %9220  ;;  %v5050_v46 = vld [vmem:[#allocation2 + $0x327] sm:$0xff] }
 0x23e   : > { %v9107_v22 = vunpack.i.l.bf16 %v16882_v41  ;;  %2836 = vmatmul.mubr.bf16.gmra.mrb[28].mxu0 %v2521_v35  ;;  %v10425_v53 = vld [vmem:[#allocation2 + $0x435] sm:$0xff]  ;;  %16884 = vst [vmem:[#allocation105_spill] sm:$0xff] %v12978_v40  ;;  %v2505_v56 = vpack.c.bf16 %v1509_v20, %v1508_v9  ;;  %v2355_v38 = vsel %vm2338_vm2, %v2322_v1, %v8782_v32  ;;  %v2356_v25 = vsel %vm2338_vm2, %v2323_v51, %v8783_v12  ;;  %v5049_v7 = vld [vmem:[#allocation2 + $0x31f] sm:$0xff]  ;;  %v16885_v35 = vld [vmem:[#allocation38_spill] sm:$0xff]  ;;  %v12986_v29 = vpop.permute.xlu1 %9225 }
 0x23f   : > { %v12976_v63 = vsel %vm529_vm0, %v10425_v53, %v8708_v61  ;;  %2843 = vmatprep.mubr.bf16.mxu0 %v2525_v33  ;;  %v2423_v41 = vsel %vm529_vm0, %v16885_v35, %v8948_v44  ;;  %v16886_v59 = vld [vmem:[#allocation37_spill] sm:$0xff]  ;;  %16887 = vst [vmem:[#allocation54_spill] sm:$0xff] %v12986_v29  ;;  %v2388_v61 = vsel %vm2371_vm3, %v2355_v38, %v8862_v39  ;;  %v16888_v33 = vld [vmem:[#allocation44_spill] sm:$0xff]  ;;  %v9113_v27 = vunpack.i.h.bf16 %v16897_v16  ;;  %v13366_v50 = vld [vmem:[#allocation2 + $0x3c9] sm:$0xff] }
 0x240   : > { %v2422_v13 = vsel %vm529_vm0, %v16886_v59, %v8947_v2  ;;  %v2508_v53 = vpack.c.bf16 %v1511_v30, %v1510_v21  ;;  %v10361_v9 = vld [vmem:[%s16271_s7] sm:$0xff]   ;;  %v9519_v12 = vpack.i.bf16 %v3310_v4, %v3309_v8  ;;  %v2389_v32 = vsel %vm2371_vm3, %v2356_v25, %v8863_v17  ;;  %v10363_v2 = vld [vmem:[%s16271_s7 + $0x48] sm:$0xff]   ;;  %v13351_v15 = vld [vmem:[#allocation2 + $0x117] sm:$0xff] }
 0x241   : > { %9510 = vrot.lane.b32.xlu0 %v9509_v10, %s10587_s21  ;;  %v2454_v20 = vsel %vm2338_vm2, %v2422_v13, %v9027_v60  ;;  %v2455_v44 = vsel %vm2338_vm2, %v2423_v41, %v9028_v42  ;;  %v8787_v39 = vunpack.i.l.bf16 %v16888_v33  ;;  %v16889_v21 = vld [vmem:[#allocation126_spill] sm:$0xff]  ;;  %v9524_v51 = vpack.i.bf16 %v5050_v46, %v5049_v7  ;;  %v4953_v1 = vld [vmem:[#allocation2 + $0x40] sm:$0xff]  ;;  %v16890_v60 = vld [vmem:[#allocation68_spill] sm:$0xff]  ;;  %v13008_v25 = vpop.permute.xlu0 %9230 }
 0x242   : > { %9515 = vrot.lane.b32.xlu1 %v16889_v21, %s10586_s24  ;;  %v2486_v30 = vsel %vm2371_vm3, %v2454_v20, %v9107_v22  ;;  %v2487_v10 = vsel %vm2371_vm3, %v2455_v44, %v9108_v5  ;;  %v4954_v17 = vld [vmem:[#allocation2 + $0x48] sm:$0xff]  ;;  %v8788_v42 = vunpack.i.h.bf16 %v16888_v33  ;;  %v8868_v4 = vunpack.i.h.bf16 %v16890_v60  ;;  %16891 = vst [vmem:[#allocation70_spill] sm:$0xff] %v13008_v25  ;;  %8397 = vmatmul.mubr.msk.bf16.vlgmr.msra.gmra.mrb[56].mxu1 %vm529_vm0, %v2505_v56  ;;  %v5082_v41 = vld [vmem:[#allocation2 + $0x5d1] sm:$0xff]  ;;  %v1513_v21 = vld [vmem:[#allocation2 + $0x43b] sm:$0xff] }
 0x243   : > { %v10426_v8 = vld [vmem:[#allocation2 + $0x42d] sm:$0xff]  ;;  %v8867_v38 = vunpack.i.l.bf16 %v16890_v60  ;;  %v2524_v44 = vpack.c.bf16 %v2389_v32, %v2388_v61  ;;  %8400 = vmatprep.mubr.msk.bf16.mxu1 %vm529_vm0, %v2508_v53  ;;  %8057 = vmatpush3.bf16.msra.mxu1 %v10361_v9  ;;  %v9529_v61 = vpack.i.bf16 %v4954_v17, %v4953_v1  ;;  %v1514_v32 = vld [vmem:[#allocation2 + $0x463] sm:$0xff]  ;;  %v9112_v19 = vunpack.i.l.bf16 %v16897_v16  ;;  %v13347_v40 = vld [vmem:[#allocation2 + $0x699] sm:$0xff] }
 0x244   : > { %v2324_v13 = vsel %vm529_vm0, %v10426_v8, %v8707_v52  ;;  %v13011_v22 = vld [vmem:[#allocation2 + $0x5e7] sm:$0xff]  ;;  %v13013_v5 = vld [vmem:[#allocation2 + $0x5ef] sm:$0xff]  ;;  %v13017_v52 = vpop.permute.xlu1 %9235  ;;  %8058 = vmatprep.subr.bf16.mxu1 %v10363_v2  ;;  %v10427_v8 = vld [vmem:[#allocation2 + $0x5d9] sm:$0xff]  ;;  %v2358_v1 = vsel %vm2338_vm2, %v12976_v63, %v8788_v42  ;;  %16956 = vst [vmem:[#allocation126_spill] sm:$0xff] %v13347_v40  ;;  %v9147_v40 = vunpack.i.l.bf16 %v12764_v48 }
 0x245   : > { %16892 = vst [vmem:[#allocation79_spill] sm:$0xff] %v13011_v22  ;;  %16893 = vst [vmem:[#allocation80_spill] sm:$0xff] %v13013_v5  ;;  %v16894_v7 = vld [vmem:[#allocation86_spill] sm:$0xff]  ;;  %v1512_v33 = vld [vmem:[#allocation2 + $0x433] sm:$0xff]  ;;  %9520 = vrot.lane.b32.xlu0 %v9519_v12, %s10587_s21 }
 0x246   : > { %v8953_v46 = vunpack.i.h.bf16 %v16894_v7  ;;  %v8952_v20 = vunpack.i.l.bf16 %v16894_v7  ;;  %16895 = vst [vmem:[#allocation87_spill] sm:$0xff] %v13017_v52  ;;  %v10364_v56 = vld [vmem:[%s16271_s7 + $0x8] sm:$0xff]   ;;  %v16896_v60 = vld [vmem:[#allocation127_spill] sm:$0xff]  ;;  %v2528_v7 = vpack.c.bf16 %v2487_v10, %v2486_v30  ;;  %2844 = vmatmul.mubr.bf16.gmra.mrb[32].mxu0 %v2524_v44  ;;  %9525 = vrot.lane.b32.xlu1 %v9524_v51, %s10585_s15  ;;  %v2357_v30 = vsel %vm2338_vm2, %v2324_v13, %v8787_v39  ;;  %v13035_v10 = vpop.permute.xlu0 %9240  ;;  %v5114_v35 = vld [vmem:[#allocation2 + $0x5e0] sm:$0xff] }
 0x247   : > { %v9033_v6 = vunpack.i.h.bf16 %v16896_v60  ;;  %v9032_v11 = vunpack.i.l.bf16 %v16896_v60  ;;  %v1515_v53 = vld [vmem:[#allocation2 + $0x46b] sm:$0xff]  ;;  %v9534_v60 = vpack.i.bf16 %v10427_v8, %v5082_v41  ;;  %v4986_v12 = vld [vmem:[#allocation2 + $0x57] sm:$0xff]  ;;  %16898 = vst [vmem:[#allocation107_spill] sm:$0xff] %v13035_v10  ;;  %v2511_v2 = vpack.c.bf16 %v1513_v21, %v1512_v33  ;;  %8059 = vmatpush3.bf16.msra.mxu1 %v10364_v56  ;;  %v5017_v56 = vld [vmem:[#allocation2 + $0x301] sm:$0xff] }
 0x248   : > { %v10365_v9 = vld [vmem:[%s16271_s7 + $0x50] sm:$0xff]   ;;  %2851 = vmatprep.mubr.bf16.mxu0 %v2528_v7  ;;  %v2390_v17 = vsel %vm2371_vm3, %v2357_v30, %v8867_v38  ;;  %v5115_v16 = vld [vmem:[#allocation2 + $0x5e8] sm:$0xff]  ;;  %v16899_v44 = vld [vmem:[#allocation40_spill] sm:$0xff]  ;;  %v2424_v41 = vsel %vm529_vm0, %v16900_v55, %v8952_v20  ;;  %v13044_v8 = vpop.permute.xlu1 %9245  ;;  %v2391_v39 = vsel %vm2371_vm3, %v2358_v1, %v8868_v4  ;;  %v2514_v13 = vpack.c.bf16 %v1515_v53, %v1514_v32 }
 0x249   : > { %v4985_v59 = vld [vmem:[#allocation2 + $0x4f] sm:$0xff]  ;;  %v2425_v51 = vsel %vm529_vm0, %v16899_v44, %v8953_v46  ;;  %16901 = vst [vmem:[#allocation88_spill] sm:$0xff] %v13044_v8  ;;  %9530 = vrot.lane.b32.xlu0 %v9529_v61, %s10585_s15  ;;  %v2456_v38 = vsel %vm2338_vm2, %v2424_v41, %v9032_v11  ;;  %8060 = vmatprep.subr.bf16.mxu1 %v10365_v9  ;;  %v10367_v20 = vld [vmem:[%s16271_s7 + $0x58] sm:$0xff]   ;;  %v3280_v53 = vld [vmem:[#allocation2 + $0x5e1] sm:$0xff] }
 0x24a   : > { %v10366_v63 = vld [vmem:[%s16271_s7 + $0x10] sm:$0xff]   ;;  %v9539_v42 = vpack.i.bf16 %v4986_v12, %v4985_v59  ;;  %v2457_v46 = vsel %vm2338_vm2, %v2425_v51, %v9033_v6  ;;  %9535 = vrot.lane.b32.xlu1 %v9534_v60, %s10586_s24  ;;  %v2488_v4 = vsel %vm2371_vm3, %v2456_v38, %v9112_v19  ;;  %v13059_v21 = vpack.i.bf16 %v5115_v16, %v5114_v35  ;;  %v13063_v6 = vpop.permute.xlu0 %9250  ;;  %v3279_v32 = vld [vmem:[#allocation2 + $0x5d9] sm:$0xff]  ;;  %v13330_v52 = vld [vmem:[#allocation2 + $0x3e7] sm:$0xff] }
 0x24b   : > { %v2489_v33 = vsel %vm2371_vm3, %v2457_v46, %v9113_v27  ;;  %v5018_v7 = vld [vmem:[#allocation2 + $0x309] sm:$0xff]  ;;  %16903 = vst [vmem:[#allocation91_spill] sm:$0xff] %v13063_v6  ;;  %8401 = vmatmul.mubr.msk.bf16.gmra.mrb[60].mxu1 %vm529_vm0, %v2511_v2  ;;  %v2527_v27 = vpack.c.bf16 %v2391_v39, %v2390_v17  ;;  %v1516_v35 = vld [vmem:[#allocation2 + $0x493] sm:$0xff]  ;;  %v1517_v30 = vld [vmem:[#allocation2 + $0x49b] sm:$0xff]  ;;  %v9554_v39 = vpack.i.bf16 %v3280_v53, %v3279_v32 }
 0x24c   : > { %v16902_v59 = vld [vmem:[#allocation63_spill] sm:$0xff]  ;;  %v13068_v12 = vpop.permute.xlu1 %9255  ;;  %8404 = vmatprep.mubr.msk.bf16.mxu1 %vm529_vm0, %v2514_v13  ;;  %8061 = vmatpush3.bf16.msra.mxu1 %v10366_v63  ;;  %v10368_v1 = vld [vmem:[%s16271_s7 + $0x18] sm:$0xff]   ;;  %v16906_v16 = vld [vmem:[#allocation69_spill] sm:$0xff]  ;;  %v2531_v41 = vpack.c.bf16 %v2489_v33, %v2488_v4  ;;  %v9549_v38 = vpack.i.bf16 %v5018_v7, %v5017_v56  ;;  %v13082_v13 = vpop.f32.mrb[0].mxu1  ;;  %16958 = vst [vmem:[#allocation86_spill] sm:$0xff] %v13351_v15 }
 0x24d   : > { %v8713_v61 = vunpack.i.h.bf16 %v16902_v59  ;;  %v8712_v11 = vunpack.i.l.bf16 %v16902_v59  ;;  %v16904_v9 = vld [vmem:[#allocation47_spill] sm:$0xff]  ;;  %16905 = vst [vmem:[#allocation71_spill] sm:$0xff] %v13068_v12  ;;  %v8873_v2 = vunpack.i.h.bf16 %v16906_v16  ;;  %v8872_v51 = vunpack.i.l.bf16 %v16906_v16  ;;  %9540 = vrot.lane.b32.xlu0 %v9539_v42, %s10586_s24  ;;  %v1518_v46 = vld [vmem:[#allocation2 + $0x4c3] sm:$0xff]  ;;  %8062 = vmatprep.subr.bf16.mxu1 %v10367_v20  ;;  %16907 = vst [vmem:[#allocation89_spill] sm:$0xff] %v13082_v13  ;;  %v8355_v16 = vpop.f32.mrb[1].mxu1 }
 0x24e   : > { %v8793_v60 = vunpack.i.h.bf16 %v16904_v9  ;;  %v8792_v19 = vunpack.i.l.bf16 %v16904_v9  ;;  %v1519_v59 = vld [vmem:[#allocation2 + $0x4cb] sm:$0xff]  ;;  %v10369_v17 = vld [vmem:[%s16271_s7 + $0x60] sm:$0xff]   ;;  %2852 = vmatmul.mubr.bf16.gmra.mrb[36].mxu0 %v2527_v27  ;;  %9545 = vrot.lane.b32.xlu1 %v13059_v21, %s10587_s21  ;;  %v13086_v33 = vpop.permute.xlu0 %9260  ;;  %v2517_v20 = vpack.c.bf16 %v1517_v30, %v1516_v35  ;;  %v5052_v7 = vld [vmem:[#allocation2 + $0x357] sm:$0xff]  ;;  %16962 = vst [vmem:[#allocation47_spill] sm:$0xff] %v13366_v50 }
 0x24f   : > { %v10428_v63 = vld [vmem:[#allocation2 + $0x465] sm:$0xff]  ;;  %v10429_v42 = vld [vmem:[#allocation2 + $0x45d] sm:$0xff]  ;;  %16908 = vst [vmem:[#allocation92_spill] sm:$0xff] %v13086_v33  ;;  %2859 = vmatprep.mubr.bf16.mxu0 %v2531_v41  ;;  %v5051_v56 = vld [vmem:[#allocation2 + $0x34f] sm:$0xff]  ;;  %v2520_v53 = vpack.c.bf16 %v1519_v59, %v1518_v46 }
 0x250   : > { %v2327_v9 = vsel %vm529_vm0, %v10428_v63, %v8713_v61  ;;  %v2326_v4 = vsel %vm529_vm0, %v10429_v42, %v8712_v11  ;;  %v13088_v27 = vpop.permute.xlu1 %9265  ;;  %v3327_v13 = vld [vmem:[#allocation2 + $0x467] sm:$0xff]  ;;  %v13092_v44 = vld [vmem:[#allocation2 + $0x46f] sm:$0xff]  ;;  %8063 = vmatpush3.bf16.msra.mxu1 %v10368_v1  ;;  %v13097_v11 = vpop.f32.mrb[4].mxu1  ;;  %v9564_v1 = vpack.i.bf16 %v5052_v7, %v5051_v56  ;;  %v4956_v46 = vld [vmem:[#allocation2 + $0x78] sm:$0xff] }
 0x251   : > { %16909 = vst [vmem:[#allocation94_spill] sm:$0xff] %v13088_v27  ;;  %v2359_v55 = vsel %vm2338_vm2, %v2326_v4, %v8792_v19  ;;  %v2360_v32 = vsel %vm2338_vm2, %v2327_v9, %v8793_v60  ;;  %16910 = vst [vmem:[#allocation90_spill] sm:$0xff] %v13092_v44  ;;  %v10370_v61 = vld [vmem:[%s16271_s7 + $0x20] sm:$0xff]   ;;  %9550 = vrot.lane.b32.xlu0 %v9549_v38, %s10587_s21  ;;  %8064 = vmatprep.subr.bf16.mxu1 %v10369_v17  ;;  %v10371_v60 = vld [vmem:[%s16271_s7 + $0x68] sm:$0xff]   ;;  %v13105_v19 = vpop.f32.mrb[5].mxu1 }
 0x252   : > { %16911 = vst [vmem:[#allocation112_spill] sm:$0xff] %v13097_v11  ;;  %v2392_v35 = vsel %vm2371_vm3, %v2359_v55, %v8872_v51  ;;  %v2393_v30 = vsel %vm2371_vm3, %v2360_v32, %v8873_v2  ;;  %16912 = vst [vmem:[#allocation96_spill] sm:$0xff] %v13105_v19  ;;  %9555 = vrot.lane.b32.xlu1 %v9554_v39, %s10586_s24  ;;  %v4955_v41 = vld [vmem:[#allocation2 + $0x70] sm:$0xff]  ;;  %v13108_v59 = vpop.f32.mrb[6].mxu1  ;;  %v13110_v63 = vpop.permute.xlu0 %9270  ;;  %v5084_v55 = vld [vmem:[#allocation2 + $0x601] sm:$0xff]  ;;  %v4321_v51 = vpack.c.bf16 %v13092_v44, %v3327_v13 }
 0x253   : > { %16913 = vst [vmem:[#allocation98_spill] sm:$0xff] %v13108_v59  ;;  %16914 = vst [vmem:[#allocation100_spill] sm:$0xff] %v13110_v63  ;;  %8405 = vmatmul.mubr.msk.bf16.gmra.mrb[64].mxu1 %vm529_vm0, %v2517_v20  ;;  %v13113_v2 = vld [vmem:[#allocation2 + $0x609] sm:$0xff]  ;;  %v13116_v38 = vpop.f32.mrb[7].mxu1  ;;  %v2530_v9 = vpack.c.bf16 %v2393_v30, %v2392_v35  ;;  %v1520_v39 = vld [vmem:[#allocation2 + $0x4f3] sm:$0xff]  ;;  %v9569_v13 = vpack.i.bf16 %v4956_v46, %v4955_v41 }
 0x254   : > { %16915 = vst [vmem:[#allocation101_spill] sm:$0xff] %v13116_v38  ;;  %v13118_v17 = vpop.permute.xlu1 %9275  ;;  %8408 = vmatprep.mubr.msk.bf16.mxu1 %vm529_vm0, %v2520_v53  ;;  %v1521_v42 = vld [vmem:[#allocation2 + $0x4fb] sm:$0xff]  ;;  %8065 = vmatpush3.bf16.msra.mxu1 %v10370_v61  ;;  %v10372_v4 = vld [vmem:[%s16271_s7 + $0x28] sm:$0xff]   ;;  %v13124_v20 = vpop.f32.mrb[8].mxu1  ;;  %v10373_v16 = vld [vmem:[%s16271_s7 + $0x70] sm:$0xff]   ;;  %v9574_v53 = vpack.i.bf16 %v13113_v2, %v5084_v55 }
 0x255   : > { %16916 = vst [vmem:[#allocation81_spill] sm:$0xff] %v13118_v17  ;;  %16917 = vst [vmem:[#allocation75_spill] sm:$0xff] %v13124_v20  ;;  %9560 = vrot.lane.b32.xlu0 %v13059_v21, %s10587_s21  ;;  %v1522_v56 = vld [vmem:[#allocation2 + $0x523] sm:$0xff]  ;;  %v1523_v7 = vld [vmem:[#allocation2 + $0x52b] sm:$0xff]  ;;  %8066 = vmatprep.subr.bf16.mxu1 %v10371_v60  ;;  %v13131_v32 = vpop.f32.mrb[9].mxu1  ;;  %v2523_v41 = vpack.c.bf16 %v1521_v42, %v1520_v39 }
 0x256   : > { %16918 = vst [vmem:[#allocation113_spill] sm:$0xff] %v13131_v32  ;;  %2860 = vmatmul.mubr.bf16.gmra.mrb[40].mxu0 %v2530_v9  ;;  %9565 = vrot.lane.b32.xlu1 %v9564_v1, %s10585_s15  ;;  %v4987_v61 = vld [vmem:[#allocation2 + $0x7f] sm:$0xff]  ;;  %v4988_v35 = vld [vmem:[#allocation2 + $0x87] sm:$0xff]  ;;  %v5116_v30 = vld [vmem:[#allocation2 + $0x610] sm:$0xff]  ;;  %v13135_v20 = vpop.f32.mrb[10].mxu1  ;;  %v13137_v21 = vpop.permute.xlu0 %9280  ;;  %v2526_v1 = vpack.c.bf16 %v1523_v7, %v1522_v56 }
 0x257   : > { %16919 = vst [vmem:[#allocation102_spill] sm:$0xff] %v13135_v20  ;;  %16920 = vst [vmem:[#allocation72_spill] sm:$0xff] %v13137_v21  ;;  %v5117_v60 = vld [vmem:[#allocation2 + $0x618] sm:$0xff]  ;;  %8432 = vmatprep.mubr.msk.bf16.mxu0 %vm529_vm0, %v4321_v51  ;;  %v13140_v59 = vpop.f32.mrb[11].mxu1  ;;  %v3331_v32 = vld [vmem:[#allocation2 + $0x4c7] sm:$0xff]  ;;  %v9579_v39 = vpack.i.bf16 %v4988_v35, %v4987_v61 }
 0x258   : > { %v3329_v46 = vld [vmem:[#allocation2 + $0x497] sm:$0xff]  ;;  %v3330_v38 = vld [vmem:[#allocation2 + $0x49f] sm:$0xff]  ;;  %16921 = vst [vmem:[#allocation93_spill] sm:$0xff] %v13140_v59  ;;  %v13142_v9 = vpop.permute.xlu1 %9285  ;;  %v3332_v55 = vld [vmem:[#allocation2 + $0x4cf] sm:$0xff]  ;;  %8067 = vmatpush3.bf16.msra.mxu1 %v10372_v4  ;;  %v13147_v19 = vpop.f32.mrb[12].mxu1  ;;  %v13156_v56 = vpack.i.bf16 %v5117_v60, %v5116_v30 }
 0x259   : > { %16922 = vst [vmem:[#allocation82_spill] sm:$0xff] %v13142_v9  ;;  %v10374_v20 = vld [vmem:[%s16271_s7 + $0x30] sm:$0xff]   ;;  %16923 = vst [vmem:[#allocation117_spill] sm:$0xff] %v13147_v19  ;;  %9570 = vrot.lane.b32.xlu0 %v9569_v13, %s10585_s15  ;;  %8068 = vmatprep.subr.bf16.mxu1 %v10373_v16  ;;  %v10375_v51 = vld [vmem:[%s16271_s7 + $0x78] sm:$0xff]   ;;  %v13153_v42 = vpop.f32.mrb[13].mxu1  ;;  %v4324_v59 = vpack.c.bf16 %v3330_v38, %v3329_v46  ;;  %v4327_v61 = vpack.c.bf16 %v3332_v55, %v3331_v32 }
 0x25a   : > { %16924 = vst [vmem:[#allocation73_spill] sm:$0xff] %v13153_v42  ;;  %9575 = vrot.lane.b32.xlu1 %v9574_v53, %s10586_s24  ;;  %v5019_v4 = vld [vmem:[#allocation2 + $0x331] sm:$0xff]  ;;  %v5020_v7 = vld [vmem:[#allocation2 + $0x339] sm:$0xff]  ;;  %v13158_v11 = vpop.f32.mrb[14].mxu1  ;;  %v13160_v19 = vpop.permute.xlu0 %9290  ;;  %v10379_v32 = vld [vmem:[%s16273_s9 + $0x48] sm:$0xff]  }
 0x25b   : > { %16925 = vst [vmem:[#allocation95_spill] sm:$0xff] %v13158_v11  ;;  %16926 = vst [vmem:[#allocation83_spill] sm:$0xff] %v13160_v19  ;;  %8409 = vmatmul.mubr.msk.bf16.gmra.mrb[68].mxu1 %vm529_vm0, %v2523_v41  ;;  %v3282_v13 = vld [vmem:[#allocation2 + $0x611] sm:$0xff]  ;;  %v10378_v35 = vld [vmem:[%s16273_s9] sm:$0xff]   ;;  %v13166_v42 = vpop.f32.mrb[15].mxu1  ;;  %v9589_v41 = vpack.i.bf16 %v5020_v7, %v5019_v4 }
 0x25c   : > { %v1524_v16 = vld [vmem:[#allocation2 + $0x553] sm:$0xff]  ;;  %16927 = vst [vmem:[#allocation119_spill] sm:$0xff] %v13166_v42  ;;  %v13168_v53 = vpop.permute.xlu1 %9295  ;;  %8412 = vmatprep.mubr.msk.bf16.mxu1 %vm529_vm0, %v2526_v1  ;;  %v1525_v38 = vld [vmem:[#allocation2 + $0x55b] sm:$0xff]  ;;  %8069 = vmatpush3.bf16.msra.mxu1 %v10374_v20  ;;  %v1526_v60 = vld [vmem:[#allocation2 + $0x583] sm:$0xff]  ;;  %v13181_v55 = vpop.f32.mrb[16].mxu1  ;;  %v9594_v20 = vpack.i.bf16 %v3282_v13, %v13113_v2 }
 0x25d   : > { %16928 = vst [vmem:[#allocation109_spill] sm:$0xff] %v13168_v53  ;;  %v10376_v30 = vld [vmem:[%s16271_s7 + $0x38] sm:$0xff]   ;;  %9580 = vrot.lane.b32.xlu0 %v9579_v39, %s10586_s24  ;;  %v1527_v46 = vld [vmem:[#allocation2 + $0x58b] sm:$0xff]  ;;  %8070 = vmatprep.subr.bf16.mxu1 %v10375_v51  ;;  %v10393_v1 = vld [vmem:[%s16273_s9 + $0x80] sm:$0xff]   ;;  %v13187_v39 = vpop.f32.mrb[17].mxu1  ;;  %v2529_v51 = vpack.c.bf16 %v1525_v38, %v1524_v16 }
 0x25e   : > { %16929 = vst [vmem:[#allocation115_spill] sm:$0xff] %v13181_v55  ;;  %9585 = vrot.lane.b32.xlu1 %v13156_v56, %s10587_s21  ;;  %v5053_v42 = vld [vmem:[#allocation2 + $0x37f] sm:$0xff]  ;;  %v5054_v11 = vld [vmem:[#allocation2 + $0x387] sm:$0xff]  ;;  %8433 = vmatmul.mubr.msk.bf16.vlgmr.msra.gmra.mrb[44].mxu0 %vm529_vm0, %v4324_v59  ;;  %16930 = vst [vmem:[#allocation48_spill] sm:$0xff] %v13187_v39  ;;  %v13189_v4 = vpop.permute.xlu0 %9300  ;;  %v13195_v3 = vpop.f32.mrb[18].mxu1  ;;  %v2532_v13 = vpack.c.bf16 %v1527_v46, %v1526_v60 }
 0x25f   : > { %16931 = vst [vmem:[#allocation65_spill] sm:$0xff] %v13189_v4  ;;  %8436 = vmatprep.mubr.msk.bf16.mxu0 %vm529_vm0, %v4327_v61  ;;  %v3333_v7 = vld [vmem:[#allocation2 + $0x4f7] sm:$0xff]  ;;  %v3334_v18 = vld [vmem:[#allocation2 + $0x4ff] sm:$0xff]  ;;  %8187 = vmatpush3.bf16.msra.mxu0 %v10378_v35  ;;  %v10380_v55 = vld [vmem:[%s16273_s9 + $0x8] sm:$0xff]   ;;  %v13202_v61 = vpop.f32.mrb[19].mxu1  ;;  %v9604_v38 = vpack.i.bf16 %v5054_v11, %v5053_v42 }
 0x260   : > { %16932 = vst [vmem:[#allocation49_spill] sm:$0xff] %v13195_v3  ;;  %v13197_v2 = vpop.permute.xlu1 %9305  ;;  %v3335_v59 = vld [vmem:[#allocation2 + $0x527] sm:$0xff]  ;;  %8071 = vmatpush3.bf16.msra.mxu1 %v10376_v30  ;;  %8188 = vmatprep.subr.bf16.mxu0 %v10379_v32  ;;  %v10381_v16 = vld [vmem:[%s16273_s9 + $0x50] sm:$0xff]   ;;  %16934 = vst [vmem:[#allocation74_spill] sm:$0xff] %v13202_v61  ;;  %v13205_v35 = vpop.f32.mrb[20].mxu1  ;;  %v4330_v30 = vpack.c.bf16 %v3334_v18, %v3333_v7 }
 0x261   : > { %16933 = vst [vmem:[#allocation50_spill] sm:$0xff] %v13197_v2  ;;  %9590 = vrot.lane.b32.xlu0 %v9589_v41, %s10587_s21  ;;  %8464 = vmatprep.subr.bf16.mxu1 %v10393_v1  ;;  %16935 = vst [vmem:[#allocation120_spill] sm:$0xff] %v13205_v35  ;;  %v13208_v3 = vld [vmem:[#allocation2 + $0xa0] sm:$0xff]  ;;  %v13210_v60 = vld [vmem:[#allocation2 + $0xa8] sm:$0xff]  ;;  %v13212_v32 = vpop.f32.mrb[21].mxu1  ;;  %v4333_v1 = vpack.c.bf16 %v3336_v45, %v3335_v59 }
 0x262   : > { %9595 = vrot.lane.b32.xlu1 %v9594_v20, %s10586_s24  ;;  %16936 = vst [vmem:[#allocation66_spill] sm:$0xff] %v13212_v32  ;;  %v13214_v46 = vpop.permute.xlu0 %9310  ;;  %v13217_v61 = vld [vmem:[#allocation2 + $0x631] sm:$0xff]  ;;  %v13219_v41 = vld [vmem:[#allocation2 + $0x639] sm:$0xff]  ;;  %v13224_v42 = vpop.f32.mrb[22].mxu1  ;;  %v13246_v35 = vld [vmem:[#allocation2 + $0x361] sm:$0xff] }
 0x263   : > { %16937 = vst [vmem:[#allocation118_spill] sm:$0xff] %v13214_v46  ;;  %8413 = vmatmul.mubr.msk.bf16.gmra.mrb[72].mxu1 %vm529_vm0, %v2529_v51  ;;  %8189 = vmatpush3.bf16.msra.mxu0 %v10380_v55  ;;  %v10382_v11 = vld [vmem:[%s16273_s9 + $0x10] sm:$0xff]   ;;  %16938 = vst [vmem:[#allocation116_spill] sm:$0xff] %v13224_v42  ;;  %v13235_v32 = vld [vmem:[#allocation2 + $0x5bb] sm:$0xff]  ;;  %v13240_v55 = vpop.f32.mrb[23].mxu1 }
 0x264   : > { %v13226_v20 = vpop.permute.xlu1 %9315  ;;  %8416 = vmatprep.mubr.msk.bf16.mxu1 %vm529_vm0, %v2532_v13  ;;  %v13229_v18 = vld [vmem:[#allocation2 + $0xaf] sm:$0xff]  ;;  %v13231_v7 = vld [vmem:[#allocation2 + $0xb7] sm:$0xff]  ;;  %8190 = vmatprep.subr.bf16.mxu0 %v10381_v16  ;;  %16940 = vst [vmem:[#allocation110_spill] sm:$0xff] %v13240_v55  ;;  %v9609_v13 = vpack.i.bf16 %v13210_v60, %v13208_v3  ;;  %v5118_v59 = vld [vmem:[#allocation2 + $0x640] sm:$0xff]  ;;  %v13256_v24 = vpop.f32.mrb[24].mxu1 }
 0x265   : > { %16939 = vst [vmem:[#allocation64_spill] sm:$0xff] %v13226_v20  ;;  %v13233_v51 = vld [vmem:[#allocation2 + $0x5b3] sm:$0xff]  ;;  %9600 = vrot.lane.b32.xlu0 %v13156_v56, %s10587_s21  ;;  %v5119_v42 = vld [vmem:[#allocation2 + $0x648] sm:$0xff]  ;;  %16941 = vst [vmem:[#allocation84_spill] sm:$0xff] %v13256_v24  ;;  %v9614_v56 = vpack.i.bf16 %v13219_v41, %v13217_v61  ;;  %v13270_v20 = vpop.f32.mrb[25].mxu1  ;;  %v9619_v6 = vpack.i.bf16 %v13231_v7, %v13229_v18 }
 0x266   : > { %v10383_v45 = vld [vmem:[%s16273_s9 + $0x58] sm:$0xff]   ;;  %v13248_v39 = vld [vmem:[#allocation2 + $0x369] sm:$0xff]  ;;  %9605 = vrot.lane.b32.xlu1 %v9604_v38, %s10585_s15  ;;  %8437 = vmatmul.mubr.msk.bf16.gmra.mrb[48].mxu0 %vm529_vm0, %v4330_v30  ;;  %16942 = vst [vmem:[#allocation122_spill] sm:$0xff] %v13270_v20  ;;  %v13272_v53 = vpop.permute.xlu0 %9320  ;;  %v2535_v38 = vpack.c.bf16 %v13235_v32, %v13233_v51  ;;  %v13280_v46 = vld [vmem:[#allocation2 + $0x661] sm:$0xff]  ;;  %v13296_v51 = vpop.f32.mrb[26].mxu1 }
 0x267   : > { %v13252_v16 = vld [vmem:[#allocation2 + $0x5e3] sm:$0xff]  ;;  %v13261_v3 = vld [vmem:[#allocation2 + $0x613] sm:$0xff]  ;;  %v13263_v60 = vld [vmem:[#allocation2 + $0x61b] sm:$0xff]  ;;  %16943 = vst [vmem:[#allocation108_spill] sm:$0xff] %v13272_v53  ;;  %8440 = vmatprep.mubr.msk.bf16.mxu0 %vm529_vm0, %v4333_v1  ;;  %8191 = vmatpush3.bf16.msra.mxu0 %v10382_v11 }
 0x268   : > { %v13265_v55 = vld [vmem:[#allocation2 + $0x3af] sm:$0xff]  ;;  %v13278_v61 = vld [vmem:[#allocation2 + $0xd8] sm:$0xff]  ;;  %16944 = vst [vmem:[#allocation121_spill] sm:$0xff] %v13280_v46  ;;  %v13284_v2 = vld [vmem:[#allocation2 + $0x643] sm:$0xff]  ;;  %v13298_v53 = vpop.permute.xlu1 %9325  ;;  %v2538_v4 = vpack.c.bf16 %v13254_v36, %v13252_v16  ;;  %8192 = vmatprep.subr.bf16.mxu0 %v10383_v45  ;;  %v13321_v16 = vpop.f32.mrb[27].mxu1 }
 0x269   : > { %v13276_v24 = vld [vmem:[#allocation2 + $0xd0] sm:$0xff]  ;;  %v13291_v20 = vld [vmem:[#allocation2 + $0x55f] sm:$0xff]  ;;  %16945 = vst [vmem:[#allocation61_spill] sm:$0xff] %v13296_v51  ;;  %16946 = vst [vmem:[#allocation106_spill] sm:$0xff] %v13298_v53  ;;  %9610 = vrot.lane.b32.xlu0 %v9609_v13, %s10585_s15  ;;  %v13336_v29 = vpop.f32.mrb[28].mxu1 }
 0x26a   : > { %v13282_v19 = vld [vmem:[#allocation2 + $0x669] sm:$0xff]  ;;  %v13289_v30 = vld [vmem:[#allocation2 + $0x557] sm:$0xff]  ;;  %v13302_v21 = vld [vmem:[#allocation2 + $0xdf] sm:$0xff]  ;;  %16951 = vst [vmem:[#allocation85_spill] sm:$0xff] %v13321_v16  ;;  %9615 = vrot.lane.b32.xlu1 %v9614_v56, %s10586_s24  ;;  %v13339_v16 = vpack.i.bf16 %v5119_v42, %v5118_v59  ;;  %v13355_v59 = vpop.f32.mrb[29].mxu1  ;;  %v13357_v56 = vpop.permute.xlu0 %9330 }
 0x26b   : > { %v13286_v9 = vld [vmem:[#allocation2 + $0x64b] sm:$0xff]  ;;  %v10384_v32 = vld [vmem:[%s16273_s9 + $0x18] sm:$0xff]   ;;  %v10385_v36 = vld [vmem:[%s16273_s9 + $0x60] sm:$0xff]   ;;  %v4336_v42 = vpack.c.bf16 %v13291_v20, %v13289_v30  ;;  %16959 = vst [vmem:[#allocation127_spill] sm:$0xff] %v13355_v59  ;;  %8417 = vmatmul.mubr.msk.bf16.gmra.mrb[76].mxu1 %vm529_vm0, %v2535_v38  ;;  %v13375_v30 = vpop.f32.mrb[30].mxu1 }
 0x26c   : > { %v13304_v17 = vld [vmem:[#allocation2 + $0xe7] sm:$0xff]  ;;  %v13306_v1 = vld [vmem:[#allocation2 + $0x673] sm:$0xff]  ;;  %v13308_v63 = vld [vmem:[#allocation2 + $0x67b] sm:$0xff]  ;;  %16960 = vst [vmem:[#allocation104_spill] sm:$0xff] %v13357_v56  ;;  %8193 = vmatpush3.bf16.msra.mxu0 %v10384_v32  ;;  %v13377_v18 = vpop.permute.xlu1 %9335  ;;  %8420 = vmatprep.mubr.msk.bf16.mxu1 %vm529_vm0, %v2538_v4 }
 0x26d   : > { %v5120_v11 = vld [vmem:[#allocation2 + $0x670] sm:$0xff]  ;;  %v5121_v27 = vld [vmem:[#allocation2 + $0x678] sm:$0xff]  ;;  %v13314_v51 = vld [vmem:[#allocation2 + $0x587] sm:$0xff]  ;;  %16964 = vst [vmem:[#allocation128_spill] sm:$0xff] %v13377_v18  ;;  %8194 = vmatprep.subr.bf16.mxu0 %v10385_v36  ;;  %v13395_v18 = vpop.f32.mrb[31].mxu1  ;;  %9620 = vrot.lane.b32.xlu0 %v9619_v6, %s10586_s24  ;;  %v9143_v6 = vunpack.i.h.bf16 %v12755_v23 }
 0x26e   : > { %v13310_v33 = vld [vmem:[#allocation2 + $0x391] sm:$0xff]  ;;  %v13312_v12 = vld [vmem:[#allocation2 + $0x399] sm:$0xff]  ;;  %16949 = vst [vmem:[#allocation43_spill] sm:$0xff] %v13314_v51  ;;  %v13334_v45 = vld [vmem:[#allocation2 + $0x108] sm:$0xff]  ;;  %v13402_v56 = vpack.i.bf16 %v5121_v27, %v5120_v11  ;;  %9625 = vrot.lane.b32.xlu1 %v13339_v16, %s10587_s21  ;;  %8441 = vmatmul.mubr.msk.bf16.gmra.mrb[52].mxu0 %vm529_vm0, %v4336_v42 }
 0x26f   : > { %16947 = vst [vmem:[#allocation62_spill] sm:$0xff] %v13310_v33  ;;  %16948 = vst [vmem:[#allocation123_spill] sm:$0xff] %v13312_v12  ;;  %v13316_v53 = vld [vmem:[#allocation2 + $0x58f] sm:$0xff]  ;;  %v13328_v10 = vld [vmem:[#allocation2 + $0x3df] sm:$0xff]  ;;  %v13429_v12 = vpop.permute.xlu0 %9340 }
 0x270   : > { %16950 = vst [vmem:[#allocation67_spill] sm:$0xff] %v13316_v53  ;;  %v13326_v8 = vld [vmem:[#allocation2 + $0x671] sm:$0xff]  ;;  %16952 = vst [vmem:[#allocation124_spill] sm:$0xff] %v13328_v10  ;;  %v13332_v25 = vld [vmem:[#allocation2 + $0x100] sm:$0xff]  ;;  %v4339_v20 = vpack.c.bf16 %v13316_v53, %v13314_v51  ;;  %v13435_v10 = vpack.i.bf16 %v5123_v37, %v5122_v14  ;;  %v13449_v27 = vpop.permute.xlu1 %9345  ;;  %v9148_v37 = vunpack.i.h.bf16 %v12764_v48  ;;  %v16971_v14 = vpack.i.bf16 %v13248_v39, %v13246_v35 }
 0x271   : > { %16953 = vst [vmem:[#allocation111_spill] sm:$0xff] %v13332_v25  ;;  %16954 = vst [vmem:[#allocation125_spill] sm:$0xff] %v13334_v45  ;;  %v13345_v7 = vld [vmem:[#allocation2 + $0x691] sm:$0xff]  ;;  %v13364_v34 = vld [vmem:[#allocation2 + $0x3c1] sm:$0xff]  ;;  %v16973_v45 = vpack.i.bf16 %v13250_v0, %v13219_v41  ;;  %v16975_v48 = vpack.c.bf16 %v13263_v60, %v13261_v3  ;;  %v4345_v39 = vpack.c.bf16 %v13013_v5, %v13011_v22 }
 0x272   : > { %16955 = vst [vmem:[#allocation44_spill] sm:$0xff] %v13345_v7  ;;  %v13349_v44 = vld [vmem:[#allocation2 + $0x10f] sm:$0xff]  ;;  %16961 = vst [vmem:[#allocation63_spill] sm:$0xff] %v13364_v34  ;;  %v13368_v58 = vld [vmem:[#allocation2 + $0x6a1] sm:$0xff]  ;;  %8444 = vmatprep.mubr.msk.bf16.mxu0 %vm529_vm0, %v4339_v20  ;;  %v9142_v7 = vunpack.i.l.bf16 %v12755_v23  ;;  %9630 = vrot.lane.b32.xlu0 %v16971_v14, %s10587_s21 }
 0x273   : > { %16957 = vst [vmem:[#allocation68_spill] sm:$0xff] %v13349_v44  ;;  %16963 = vst [vmem:[#allocation69_spill] sm:$0xff] %v13368_v58  ;;  %v10386_v38 = vld [vmem:[%s16273_s9 + $0x20] sm:$0xff]   ;;  %v13386_v32 = vld [vmem:[#allocation2 + $0x40f] sm:$0xff]  ;;  %9635 = vrot.lane.b32.xlu1 %v16973_v45, %s10586_s24  ;;  %v13490_v58 = vpop.permute.xlu0 %9350  ;;  %8421 = vmatmul.mubr.msk.bf16.gmra.mrb[80].mxu1 %vm529_vm0, %v16975_v48  ;;  %v16979_v48 = vpack.c.bf16 %v13286_v9, %v13284_v2  ;;  %v9158_v9 = vunpack.i.h.bf16 %v12797_v43  ;;  %v9157_v2 = vunpack.i.l.bf16 %v12797_v43 }
 0x274   : > { %v10387_v4 = vld [vmem:[%s16273_s9 + $0x68] sm:$0xff]   ;;  %16965 = vst [vmem:[#allocation129_spill] sm:$0xff] %v13395_v18  ;;  %v13406_v36 = vld [vmem:[#allocation2 + $0x138] sm:$0xff]  ;;  %v13412_v18 = vpop.f32.mrb[32].mxu1  ;;  %v5124_v13 = vld [vmem:[#allocation2 + $0x6d0] sm:$0xff]  ;;  %8195 = vmatpush3.bf16.msra.mxu0 %v10386_v38 }
 0x275   : > { %v13408_v46 = vld [vmem:[#allocation2 + $0x6c1] sm:$0xff]  ;;  %v13427_v33 = vpop.f32.mrb[33].mxu1  ;;  %16966 = vst [vmem:[#allocation130_spill] sm:$0xff] %v13429_v12  ;;  %16967 = vst [vmem:[#allocation131_spill] sm:$0xff] %v13435_v10  ;;  %v13438_v42 = vld [vmem:[#allocation2 + $0x5b7] sm:$0xff]  ;;  %8196 = vmatprep.subr.bf16.mxu0 %v10387_v4  ;;  %8424 = vmatprep.mubr.msk.bf16.mxu1 %vm529_vm0, %v16979_v48 }
 0x276   : > { %v13425_v59 = vld [vmem:[#allocation2 + $0x147] sm:$0xff]  ;;  %16968 = vst [vmem:[#allocation132_spill] sm:$0xff] %v13438_v42  ;;  %v13440_v11 = vld [vmem:[#allocation2 + $0x5bf] sm:$0xff]  ;;  %v13445_v12 = vpop.f32.mrb[34].mxu1  ;;  %16970 = vst [vmem:[#allocation134_spill] sm:$0xff] %v13449_v27  ;;  %9640 = vrot.lane.b32.xlu0 %v13339_v16, %s10587_s21 }
 0x277   : > { %16969 = vst [vmem:[#allocation133_spill] sm:$0xff] %v13440_v11  ;;  %v10388_v25 = vld [vmem:[%s16273_s9 + $0x28] sm:$0xff]   ;;  %v5125_v20 = vld [vmem:[#allocation2 + $0x6d8] sm:$0xff]  ;;  %v10389_v38 = vld [vmem:[%s16273_s9 + $0x70] sm:$0xff]   ;;  %v13463_v23 = vpop.f32.mrb[35].mxu1  ;;  %v4342_v14 = vpack.c.bf16 %v13440_v11, %v13438_v42 }
 0x278   : > { %v13461_v10 = vld [vmem:[%s16268_s4] ss:$0 sm:$0xff]  ;;  %v3103_v44 = vld [vmem:[#allocation2 + $0x1c1] sm:$0xff]  ;;  %v3104_v50 = vld [vmem:[#allocation2 + $0x1e9] sm:$0xff]  ;;  %16974 = vst [vmem:[#allocation136_spill] sm:$0xff] %v13490_v58  ;;  %v13496_v0 = vpack.i.bf16 %v5125_v20, %v5124_v13  ;;  %8197 = vmatpush3.bf16.msra.mxu0 %v10388_v25  ;;  %v13515_v20 = vpop.permute.xlu1 %9355 }
 0x279   : > { %v3102_v27 = vld [vmem:[#allocation2 + $0x1b9] sm:$0xff]  ;;  %v13476_v34 = vadd.f32 %v13336_v29, %v13461_v10  ;;  %v3105_v15 = vld [vmem:[#allocation2 + $0x1f1] sm:$0xff]  ;;  %v9153_v29 = vunpack.i.h.bf16 %v12787_v54  ;;  %v13510_v3 = vsel %vm529_vm0, %v3103_v44, %v9143_v6  ;;  %v3107_v13 = vld [vmem:[#allocation2 + $0x221] sm:$0xff]  ;;  %16978 = vst [vmem:[#allocation139_spill] sm:$0xff] %v13515_v20  ;;  %8198 = vmatprep.subr.bf16.mxu0 %v10389_v38  ;;  %v13528_v44 = vadd.f32 %v13375_v30, %v13461_v10 }
 0x27a   : > { %v13500_v45 = vld [vmem:[#allocation2 + $0x3f1] sm:$0xff]  ;;  %v13502_v35 = vld [vmem:[#allocation2 + $0x3f9] sm:$0xff]  ;;  %v13513_v60 = vsel %vm529_vm0, %v3102_v27, %v9142_v7  ;;  %v13531_v7 = vsel %vm529_vm0, %v3105_v15, %v9148_v37  ;;  %v9152_v27 = vunpack.i.l.bf16 %v12787_v54  ;;  %v13539_v38 = vsel %vm529_vm0, %v3104_v50, %v9147_v40  ;;  %v3108_v48 = vld [vmem:[#allocation2 + $0x249] sm:$0xff]  ;;  %8445 = vmatmul.mubr.msk.bf16.gmra.mrb[56].mxu0 %vm529_vm0, %v4342_v14  ;;  %v13557_v37 = vpop.permute.xlu0 %9360 }
 0x27b   : > { %16972 = vst [vmem:[#allocation135_spill] sm:$0xff] %v13476_v34  ;;  %16976 = vst [vmem:[#allocation137_spill] sm:$0xff] %v13500_v45  ;;  %v10390_v4 = vld [vmem:[%s16273_s9 + $0x30] sm:$0xff]   ;;  %v10391_v25 = vld [vmem:[%s16273_s9 + $0x78] sm:$0xff]   ;;  %v16982_v15 = vpack.i.bf16 %v13267_v62, %v13265_v55  ;;  %v13552_v43 = vadd.f32 %v13412_v18, %v13461_v10  ;;  %v13555_v50 = vsel %vm529_vm0, %v3107_v13, %v9153_v29  ;;  %8448 = vmatprep.mubr.msk.bf16.mxu0 %vm529_vm0, %v4345_v39 }
 0x27c   : > { %16977 = vst [vmem:[#allocation138_spill] sm:$0xff] %v13502_v35  ;;  %v13521_v41 = vld [vmem:[#allocation2 + $0x6d1] sm:$0xff]  ;;  %16981 = vst [vmem:[#allocation141_spill] sm:$0xff] %v13528_v44  ;;  %v3106_v6 = vld [vmem:[#allocation2 + $0x219] sm:$0xff]  ;;  %8199 = vmatpush3.bf16.msra.mxu0 %v10390_v4  ;;  %v13567_v29 = vadd.f32 %v13461_v10, %v13427_v33  ;;  %v9163_v13 = vunpack.i.h.bf16 %v12820_v26  ;;  %v9168_v54 = vunpack.i.h.bf16 %v12829_v28  ;;  %v9167_v62 = vunpack.i.l.bf16 %v12829_v28  ;;  %v13573_v39 = vpop.permute.xlu1 %9365 }
 0x27d   : > { %16980 = vst [vmem:[#allocation140_spill] sm:$0xff] %v13521_v41  ;;  %v3109_v34 = vld [vmem:[#allocation2 + $0x251] sm:$0xff]  ;;  %9645 = vrot.lane.b32.xlu1 %v16982_v15, %s10585_s15  ;;  %v13548_v30 = vld [vmem:[#allocation2 + $0x43f] sm:$0xff]  ;;  %16984 = vst [vmem:[#allocation143_spill] sm:$0xff] %v13552_v43  ;;  %v9162_v15 = vunpack.i.l.bf16 %v12820_v26  ;;  %8200 = vmatprep.subr.bf16.mxu0 %v10391_v25  ;;  %v16989_v28 = vpack.i.bf16 %v13278_v61, %v13276_v24  ;;  %v13592_v25 = vadd.f32 %v13445_v12, %v13461_v10 }
 0x27e   : > { %16983 = vst [vmem:[#allocation142_spill] sm:$0xff] %v13548_v30  ;;  %v3110_v40 = vld [vmem:[#allocation2 + $0x279] sm:$0xff]  ;;  %v3111_v16 = vld [vmem:[#allocation2 + $0x281] sm:$0xff]  ;;  %16985 = vst [vmem:[#allocation144_spill] sm:$0xff] %v13557_v37  ;;  %v13578_v37 = vsel %vm529_vm0, %v3106_v6, %v9152_v27  ;;  %v13581_v33 = vsel %vm529_vm0, %v3109_v34, %v9158_v9  ;;  %v13606_v24 = vadd.f32 %v13461_v10, %v13463_v23 }
 0x27f   : > { %v3345_v55 = vld [vmem:[#allocation2 + $0x617] sm:$0xff]  ;;  %v3346_v14 = vld [vmem:[#allocation2 + $0x61f] sm:$0xff]  ;;  %16986 = vst [vmem:[#allocation145_spill] sm:$0xff] %v13567_v29  ;;  %16987 = vst [vmem:[#allocation146_spill] sm:$0xff] %v13573_v39  ;;  %v13584_v29 = vsel %vm529_vm0, %v3108_v48, %v9157_v2  ;;  %9650 = vrot.lane.b32.xlu0 %v16989_v28, %s10585_s15 }
 0x280   : > { %v10392_v18 = vld [vmem:[%s16273_s9 + $0x38] sm:$0xff]   ;;  %v13575_v43 = vld [vmem:[#allocation2 + $0x447] sm:$0xff]  ;;  %v3348_v44 = vld [vmem:[#allocation2 + $0x64f] sm:$0xff]  ;;  %16990 = vst [vmem:[#allocation148_spill] sm:$0xff] %v13592_v25  ;;  %v4348_v48 = vpack.c.bf16 %v3346_v14, %v3345_v55  ;;  %v13610_v25 = vpop.permute.xlu0 %9370 }
 0x281   : > { %16988 = vst [vmem:[#allocation147_spill] sm:$0xff] %v13575_v43  ;;  %v3347_v4 = vld [vmem:[#allocation2 + $0x647] sm:$0xff]  ;;  %v3113_v20 = vld [vmem:[#allocation2 + $0x2b1] sm:$0xff]  ;;  %v3114_v58 = vld [vmem:[#allocation2 + $0x2d9] sm:$0xff]  ;;  %8201 = vmatpush3.bf16.msra.mxu0 %v10392_v18 }
 0x282   : > { %v3112_v26 = vld [vmem:[#allocation2 + $0x2a9] sm:$0xff]  ;;  %v3115_v6 = vld [vmem:[#allocation2 + $0x2e1] sm:$0xff]  ;;  %16996 = vst [vmem:[#allocation149_spill] sm:$0xff] %v13606_v24  ;;  %v13618_v14 = vld [vmem:[#allocation2 + $0x6f1] sm:$0xff]  ;;  %v4351_v23 = vpack.c.bf16 %v3348_v44, %v3347_v4  ;;  %8449 = vmatmul.mubr.msk.bf16.gmra.mrb[60].mxu0 %vm529_vm0, %v4348_v48 }
 0x283   : > { %v16991_v27 = vld [vmem:[#allocation103_spill] sm:$0xff]  ;;  %v16992_v9 = vld [vmem:[#allocation121_spill] sm:$0xff]  ;;  %v13602_v5 = vld [vmem:[#allocation2 + $0x168] sm:$0xff]  ;;  %17000 = vst [vmem:[#allocation150_spill] sm:$0xff] %v13618_v14 }
 0x284   : > { %v9173_v39 = vunpack.i.h.bf16 %v16991_v27  ;;  %v9172_v34 = vunpack.i.l.bf16 %v16991_v27  ;;  %v16993_v2 = vpack.i.bf16 %v13282_v19, %v16992_v9  ;;  %v13600_v22 = vld [vmem:[#allocation2 + $0x160] sm:$0xff]  ;;  %16995 = vst [vmem:[#allocation121_spill] sm:$0xff] %v13602_v5  ;;  %v16997_v12 = vld [vmem:[#allocation51_spill] sm:$0xff]  ;;  %v16999_v27 = vpack.c.bf16 %v13308_v63, %v13306_v1  ;;  %v17005_v44 = vld [vmem:[#allocation76_spill] sm:$0xff]  ;;  %8452 = vmatprep.mubr.msk.bf16.mxu0 %vm529_vm0, %v4351_v23 }
 0x285   : > { %16994 = vst [vmem:[#allocation103_spill] sm:$0xff] %v13600_v22  ;;  %v9178_v61 = vunpack.i.h.bf16 %v16997_v12  ;;  %v9177_v28 = vunpack.i.l.bf16 %v16997_v12  ;;  %16998 = vst [vmem:[#allocation51_spill] sm:$0xff] %v13610_v25  ;;  %v13620_v9 = vld [vmem:[#allocation2 + $0x6f9] sm:$0xff]  ;;  %v13622_v10 = vld [vmem:[#allocation2 + $0x16f] sm:$0xff]  ;;  %v13628_v12 = vsel %vm529_vm0, %v3110_v40, %v9162_v15  ;;  %v13631_v63 = vsel %vm529_vm0, %v3113_v20, %v9168_v54 }
 0x286   : > { %9655 = vrot.lane.b32.xlu1 %v16993_v2, %s10586_s24  ;;  %8425 = vmatmul.mubr.msk.bf16.gmra.mrb[84].mxu1 %vm529_vm0, %v16999_v27  ;;  %17001 = vst [vmem:[#allocation151_spill] sm:$0xff] %v13620_v9  ;;  %17002 = vst [vmem:[#allocation152_spill] sm:$0xff] %v13622_v10  ;;  %v13625_v2 = vsel %vm529_vm0, %v3111_v16, %v9163_v13  ;;  %v13634_v1 = vsel %vm529_vm0, %v3112_v26, %v9167_v62  ;;  %v13636_v27 = vpop.permute.xlu1 %9375  ;;  %v13638_v55 = vld [vmem:[#allocation2 + $0x177] sm:$0xff]  ;;  %v5126_v24 = vld [vmem:[#allocation2 + $0x700] sm:$0xff]  ;;  %v9183_v18 = vunpack.i.h.bf16 %v17005_v44 }
 0x287   : > { %17003 = vst [vmem:[#allocation153_spill] sm:$0xff] %v13636_v27  ;;  %17004 = vst [vmem:[#allocation154_spill] sm:$0xff] %v13638_v55  ;;  %v5127_v25 = vld [vmem:[#allocation2 + $0x708] sm:$0xff]  ;;  %v9182_v16 = vunpack.i.l.bf16 %v17005_v44  ;;  %v17006_v13 = vld [vmem:[#allocation77_spill] sm:$0xff]  ;;  %v17007_v20 = vpack.i.bf16 %v13304_v17, %v13302_v21  ;;  %v13650_v40 = vsel %vm529_vm0, %v3115_v6, %v9173_v39  ;;  %v13653_v62 = vsel %vm529_vm0, %v3114_v58, %v9172_v34  ;;  %v13671_v34 = vpop.permute.xlu0 %9380 }
 0x288   : > { %v9188_v4 = vunpack.i.h.bf16 %v17006_v13  ;;  %v9187_v15 = vunpack.i.l.bf16 %v17006_v13  ;;  %v13661_v21 = vld [vmem:[#allocation2 + $0x677] sm:$0xff]  ;;  %v13663_v26 = vld [vmem:[#allocation2 + $0x67f] sm:$0xff]  ;;  %v10431_v58 = vld [vmem:[#allocation2 + $0x309] sm:$0xff]  ;;  %v13676_v13 = vpack.i.bf16 %v5127_v25, %v5126_v24 }
 0x289   : > { %9660 = vrot.lane.b32.xlu0 %v17007_v20, %s10586_s24  ;;  %v10430_v44 = vld [vmem:[#allocation2 + $0x311] sm:$0xff]  ;;  %v13669_v6 = vsel %vm529_vm0, %v10431_v58, %v9177_v28  ;;  %v13678_v20 = vld [vmem:[#allocation2 + $0x421] sm:$0xff]  ;;  %v13686_v14 = vld [vmem:[#allocation2 + $0x429] sm:$0xff]  ;;  %v4354_v30 = vpack.c.bf16 %v13663_v26, %v13661_v21 }
 0x28a   : > { %9665 = vrot.lane.b32.xlu1 %v13402_v56, %s10587_s21  ;;  %v13666_v39 = vsel %vm529_vm0, %v10430_v44, %v9178_v61  ;;  %17008 = vst [vmem:[#allocation76_spill] sm:$0xff] %v13676_v13  ;;  %17009 = vst [vmem:[#allocation77_spill] sm:$0xff] %v13678_v20  ;;  %v17010_v17 = vld [vmem:[#allocation97_spill] sm:$0xff]  ;;  %v17011_v44 = vld [vmem:[#allocation99_spill] sm:$0xff]  ;;  %v13684_v58 = vpop.permute.xlu1 %9385 }
 0x28b   : > { %v9193_v54 = vunpack.i.h.bf16 %v17010_v17  ;;  %v9192_v61 = vunpack.i.l.bf16 %v17010_v17  ;;  %v9198_v27 = vunpack.i.h.bf16 %v17011_v44  ;;  %v9197_v28 = vunpack.i.l.bf16 %v17011_v44  ;;  %17012 = vst [vmem:[#allocation97_spill] sm:$0xff] %v13686_v14  ;;  %v3351_v22 = vld [vmem:[#allocation2 + $0x6a7] sm:$0xff]  ;;  %v3352_v48 = vld [vmem:[#allocation2 + $0x6af] sm:$0xff]  ;;  %v10433_v24 = vld [vmem:[#allocation2 + $0x339] sm:$0xff]  ;;  %8453 = vmatmul.mubr.msk.bf16.gmra.mrb[64].mxu0 %vm529_vm0, %v4354_v30 }
 0x28c   : > { %v10432_v10 = vld [vmem:[#allocation2 + $0x341] sm:$0xff]  ;;  %v13692_v23 = vsel %vm529_vm0, %v10433_v24, %v9182_v16  ;;  %v10434_v13 = vld [vmem:[#allocation2 + $0x371] sm:$0xff]  ;;  %v10435_v43 = vld [vmem:[#allocation2 + $0x369] sm:$0xff]  ;;  %v4357_v24 = vpack.c.bf16 %v3352_v48, %v3351_v22 }
 0x28d   : > { %v13689_v25 = vsel %vm529_vm0, %v10432_v10, %v9183_v18  ;;  %v13695_v17 = vsel %vm529_vm0, %v10434_v13, %v9188_v4  ;;  %v17013_v44 = vld [vmem:[#allocation123_spill] sm:$0xff]  ;;  %v17014_v55 = vld [vmem:[#allocation62_spill] sm:$0xff]  ;;  %v13704_v10 = vsel %vm529_vm0, %v10435_v43, %v9187_v15  ;;  %v17017_v4 = vpack.i.bf16 %v13326_v8, %v13282_v19  ;;  %v17019_v13 = vld [vmem:[#allocation52_spill] sm:$0xff]  ;;  %v13718_v43 = vpop.permute.xlu0 %9390 }
 0x28e   : > { %v17015_v5 = vpack.i.bf16 %v17013_v44, %v17014_v55  ;;  %v17016_v18 = vld [vmem:[#allocation114_spill] sm:$0xff]  ;;  %v9208_v21 = vunpack.i.h.bf16 %v17019_v13  ;;  %v9207_v26 = vunpack.i.l.bf16 %v17019_v13  ;;  %v13722_v44 = vld [vmem:[#allocation2 + $0x6d7] sm:$0xff]  ;;  %v13738_v22 = vpop.permute.xlu1 %9395  ;;  %8456 = vmatprep.mubr.msk.bf16.mxu0 %vm529_vm0, %v4357_v24 }
 0x28f   : > { %v9203_v41 = vunpack.i.h.bf16 %v17016_v18  ;;  %v9202_v16 = vunpack.i.l.bf16 %v17016_v18  ;;  %9675 = vrot.lane.b32.xlu1 %v17017_v4, %s10586_s24  ;;  %v13724_v18 = vld [vmem:[#allocation2 + $0x6df] sm:$0xff]  ;;  %v10438_v42 = vld [vmem:[#allocation2 + $0x3d1] sm:$0xff]  ;;  %v10439_v11 = vld [vmem:[#allocation2 + $0x3c9] sm:$0xff]  ;;  %17022 = vst [vmem:[#allocation114_spill] sm:$0xff] %v13738_v22 }
 0x290   : > { %9670 = vrot.lane.b32.xlu0 %v17015_v5, %s10587_s21  ;;  %v13714_v5 = vld [vmem:[#allocation2 + $0x701] sm:$0xff]  ;;  %v10437_v4 = vld [vmem:[#allocation2 + $0x399] sm:$0xff]  ;;  %v13733_v13 = vsel %vm529_vm0, %v10438_v42, %v9198_v27  ;;  %v13736_v15 = vsel %vm529_vm0, %v10439_v11, %v9197_v28  ;;  %v13742_v20 = vld [vmem:[#allocation2 + $0x190] sm:$0xff] }
 0x291   : > { %17018 = vst [vmem:[#allocation99_spill] sm:$0xff] %v13714_v5  ;;  %v10436_v8 = vld [vmem:[#allocation2 + $0x3a1] sm:$0xff]  ;;  %v13730_v55 = vsel %vm529_vm0, %v10437_v4, %v9192_v61  ;;  %17020 = vst [vmem:[#allocation123_spill] sm:$0xff] %v13733_v13  ;;  %v13740_v48 = vld [vmem:[#allocation2 + $0x477] sm:$0xff]  ;;  %v13777_v5 = vpop.permute.xlu0 %9400 }
 0x292   : > { %v13727_v19 = vsel %vm529_vm0, %v10436_v8, %v9193_v54  ;;  %17021 = vst [vmem:[#allocation62_spill] sm:$0xff] %v13736_v15  ;;  %17023 = vst [vmem:[#allocation52_spill] sm:$0xff] %v13740_v48  ;;  %v13744_v54 = vld [vmem:[#allocation2 + $0x198] sm:$0xff]  ;;  %v17026_v8 = vld [vmem:[#allocation53_spill] sm:$0xff] }
 0x293   : > { %17024 = vst [vmem:[#allocation155_spill] sm:$0xff] %v13742_v20  ;;  %17025 = vst [vmem:[#allocation156_spill] sm:$0xff] %v13744_v54  ;;  %v9213_v14 = vunpack.i.h.bf16 %v17026_v8  ;;  %v9212_v61 = vunpack.i.l.bf16 %v17026_v8  ;;  %v17027_v4 = vld [vmem:[#allocation78_spill] sm:$0xff]  ;;  %v10441_v28 = vld [vmem:[#allocation2 + $0x3f9] sm:$0xff] }
 0x294   : > { %v9218_v45 = vunpack.i.h.bf16 %v17027_v4  ;;  %9680 = vrot.lane.b32.xlu0 %v13402_v56, %s10587_s21  ;;  %v10440_v42 = vld [vmem:[#allocation2 + $0x401] sm:$0xff]  ;;  %v13757_v13 = vsel %vm529_vm0, %v10441_v28, %v9202_v16  ;;  %v9217_v22 = vunpack.i.l.bf16 %v17027_v4  ;;  %v17030_v8 = vld [vmem:[#allocation124_spill] sm:$0xff]  ;;  %v4360_v56 = vpack.c.bf16 %v13724_v18, %v13722_v44  ;;  %v10443_v28 = vld [vmem:[#allocation2 + $0x429] sm:$0xff]  ;;  %17036 = vst [vmem:[#allocation160_spill] sm:$0xff] %v13777_v5  ;;  %v13790_v5 = vpop.permute.xlu1 %9405 }
 0x295   : > { %v13754_v27 = vsel %vm529_vm0, %v10440_v42, %v9203_v41  ;;  %17029 = vst [vmem:[#allocation78_spill] sm:$0xff] %v13757_v13  ;;  %v17031_v35 = vpack.i.bf16 %v13330_v52, %v17030_v8  ;;  %v13767_v11 = vld [vmem:[#allocation2 + $0x721] sm:$0xff]  ;;  %v13769_v41 = vld [vmem:[#allocation2 + $0x729] sm:$0xff]  ;;  %v10442_v42 = vld [vmem:[#allocation2 + $0x431] sm:$0xff]  ;;  %v13775_v4 = vsel %vm529_vm0, %v10443_v28, %v9207_v26 }
 0x296   : > { %17028 = vst [vmem:[#allocation53_spill] sm:$0xff] %v13754_v27  ;;  %17032 = vst [vmem:[#allocation124_spill] sm:$0xff] %v13767_v11  ;;  %v13772_v16 = vsel %vm529_vm0, %v10442_v42, %v9208_v21  ;;  %v3355_v44 = vld [vmem:[#allocation2 + $0x707] sm:$0xff]  ;;  %v3356_v18 = vld [vmem:[#allocation2 + $0x70f] sm:$0xff]  ;;  %8457 = vmatmul.mubr.msk.bf16.gmra.mrb[68].mxu0 %vm529_vm0, %v4360_v56 }
 0x297   : > { %9685 = vrot.lane.b32.xlu1 %v17031_v35, %s10585_s15  ;;  %17033 = vst [vmem:[#allocation157_spill] sm:$0xff] %v13769_v41  ;;  %17034 = vst [vmem:[#allocation158_spill] sm:$0xff] %v13772_v16  ;;  %v13784_v8 = vld [vmem:[#allocation2 + $0x19f] sm:$0xff]  ;;  %v17040_v26 = vld [vmem:[#allocation54_spill] sm:$0xff] }
 0x298   : > { %17035 = vst [vmem:[#allocation159_spill] sm:$0xff] %v13775_v4  ;;  %17038 = vst [vmem:[#allocation161_spill] sm:$0xff] %v13784_v8  ;;  %v17039_v21 = vld [vmem:[#allocation105_spill] sm:$0xff]  ;;  %v9228_v28 = vunpack.i.h.bf16 %v17040_v26  ;;  %v9227_v4 = vunpack.i.l.bf16 %v17040_v26  ;;  %v13794_v35 = vld [vmem:[#allocation2 + $0x737] sm:$0xff] }
 0x299   : > { %v9223_v42 = vunpack.i.h.bf16 %v17039_v21  ;;  %v9222_v16 = vunpack.i.l.bf16 %v17039_v21  ;;  %17041 = vst [vmem:[#allocation105_spill] sm:$0xff] %v13790_v5  ;;  %v13792_v24 = vld [vmem:[#allocation2 + $0x1a7] sm:$0xff]  ;;  %v13796_v52 = vld [vmem:[#allocation2 + $0x73f] sm:$0xff]  ;;  %v10446_v21 = vld [vmem:[#allocation2 + $0x491] sm:$0xff] }
 0x29a   : > { %17042 = vst [vmem:[#allocation54_spill] sm:$0xff] %v13792_v24  ;;  %v10444_v30 = vld [vmem:[#allocation2 + $0x461] sm:$0xff]  ;;  %v10445_v54 = vld [vmem:[#allocation2 + $0x459] sm:$0xff]  ;;  %v13805_v9 = vsel %vm529_vm0, %v10446_v21, %v9218_v45  ;;  %v17048_v13 = vld [vmem:[#allocation111_spill] sm:$0xff]  ;;  %v4363_v21 = vpack.c.bf16 %v3356_v18, %v3355_v44  ;;  %v13838_v18 = vpop.permute.xlu1 %9415 }
 0x29b   : > { %v13799_v20 = vsel %vm529_vm0, %v10444_v30, %v9213_v14  ;;  %v13802_v48 = vsel %vm529_vm0, %v10445_v54, %v9212_v61  ;;  %17045 = vst [vmem:[#allocation164_spill] sm:$0xff] %v13805_v9  ;;  %v17046_v26 = vld [vmem:[#allocation70_spill] sm:$0xff]  ;;  %v17047_v27 = vld [vmem:[#allocation125_spill] sm:$0xff]  ;;  %v17052_v61 = vld [vmem:[#allocation44_spill] sm:$0xff]  ;;  %v13836_v44 = vsel %vm2338_vm2, %v13510_v3, %v9223_v42 }
 0x29c   : > { %17043 = vst [vmem:[#allocation162_spill] sm:$0xff] %v13799_v20  ;;  %17044 = vst [vmem:[#allocation163_spill] sm:$0xff] %v13802_v48  ;;  %v9232_v5 = vunpack.i.l.bf16 %v17046_v26  ;;  %v17049_v51 = vpack.i.bf16 %v17047_v27, %v17048_v13  ;;  %v10447_v53 = vld [vmem:[#allocation2 + $0x489] sm:$0xff]  ;;  %v9233_v14 = vunpack.i.h.bf16 %v17046_v26  ;;  %v5129_v20 = vld [vmem:[#allocation2 + $0x738] sm:$0xff]  ;;  %v13824_v27 = vpop.permute.xlu0 %9410  ;;  %v13832_v26 = vsel %vm2338_vm2, %v13513_v60, %v9222_v16  ;;  %8460 = vmatprep.mubr.msk.bf16.mxu0 %vm529_vm0, %v4363_v21 }
 0x29d   : > { %v13813_v15 = vsel %vm529_vm0, %v10447_v53, %v9217_v22  ;;  %v17051_v54 = vld [vmem:[#allocation126_spill] sm:$0xff]  ;;  %v5128_v9 = vld [vmem:[#allocation2 + $0x730] sm:$0xff]  ;;  %17055 = vst [vmem:[#allocation125_spill] sm:$0xff] %v13838_v18  ;;  %v13850_v53 = vld [vmem:[#allocation2 + $0x459] sm:$0xff] }
 0x29e   : > { %9690 = vrot.lane.b32.xlu0 %v17049_v51, %s10585_s15  ;;  %17050 = vst [vmem:[#allocation70_spill] sm:$0xff] %v13813_v15  ;;  %v17053_v30 = vpack.i.bf16 %v17051_v54, %v17052_v61  ;;  %v17054_v48 = vld [vmem:[#allocation87_spill] sm:$0xff]  ;;  %v13846_v61 = vsel %vm2338_vm2, %v13531_v7, %v9228_v28  ;;  %17057 = vst [vmem:[#allocation126_spill] sm:$0xff] %v13850_v53  ;;  %v17059_v3 = vld [vmem:[#allocation86_spill] sm:$0xff] }
 0x29f   : > { %v9238_v13 = vunpack.i.h.bf16 %v17054_v48  ;;  %v9237_v51 = vunpack.i.l.bf16 %v17054_v48  ;;  %v13842_v48 = vsel %vm2338_vm2, %v13539_v38, %v9227_v4  ;;  %v17058_v60 = vld [vmem:[#allocation107_spill] sm:$0xff]  ;;  %v17060_v42 = vld [vmem:[#allocation68_spill] sm:$0xff]  ;;  %v13860_v38 = vsel %vm2338_vm2, %v13578_v37, %v9232_v5  ;;  %v13892_v56 = vld [vmem:[#allocation2 + $0x4a7] sm:$0xff] }
 0x2a0   : > { %9695 = vrot.lane.b32.xlu1 %v17053_v30, %s10586_s24  ;;  %v13848_v30 = vld [vmem:[#allocation2 + $0x451] sm:$0xff]  ;;  %v9243_v16 = vunpack.i.h.bf16 %v17058_v60  ;;  %v9242_v45 = vunpack.i.l.bf16 %v17058_v60  ;;  %v17061_v22 = vpack.i.bf16 %v17059_v3, %v17060_v42  ;;  %v13862_v4 = vpack.i.bf16 %v5129_v20, %v5128_v9  ;;  %v13877_v9 = vpop.permute.xlu0 %9420  ;;  %v13903_v21 = vld [vmem:[#allocation2 + $0x1c8] sm:$0xff] }
 0x2a1   : > { %17056 = vst [vmem:[#allocation111_spill] sm:$0xff] %v13848_v30  ;;  %v13864_v7 = vld [vmem:[#allocation2 + $0x731] sm:$0xff]  ;;  %17067 = vst [vmem:[#allocation107_spill] sm:$0xff] %v13877_v9  ;;  %v13881_v20 = vsel %vm2338_vm2, %v13584_v29, %v9237_v51  ;;  %v13885_v5 = vsel %vm2338_vm2, %v13581_v33, %v9238_v13  ;;  %v13897_v51 = vpop.permute.xlu1 %9425  ;;  %v13901_v13 = vld [vmem:[#allocation2 + $0x1c0] sm:$0xff] }
 0x2a2   : > { %9700 = vrot.lane.b32.xlu0 %v17061_v22, %s10586_s24  ;;  %17062 = vst [vmem:[#allocation44_spill] sm:$0xff] %v13862_v4  ;;  %17063 = vst [vmem:[#allocation87_spill] sm:$0xff] %v13864_v7  ;;  %v17064_v28 = vld [vmem:[#allocation88_spill] sm:$0xff]  ;;  %v17065_v24 = vld [vmem:[#allocation91_spill] sm:$0xff]  ;;  %v13873_v22 = vsel %vm2338_vm2, %v13555_v50, %v9233_v14  ;;  %v13917_v33 = vsel %vm2338_vm2, %v13625_v2, %v9243_v16 }
 0x2a3   : > { %v9248_v15 = vunpack.i.h.bf16 %v17064_v28  ;;  %v9247_v8 = vunpack.i.l.bf16 %v17064_v28  ;;  %v9252_v11 = vunpack.i.l.bf16 %v17065_v24  ;;  %v17066_v60 = vld [vmem:[#allocation131_spill] sm:$0xff]  ;;  %v9253_v37 = vunpack.i.h.bf16 %v17065_v24  ;;  %v13890_v14 = vld [vmem:[#allocation2 + $0x49f] sm:$0xff]  ;;  %17070 = vst [vmem:[#allocation86_spill] sm:$0xff] %v13897_v51  ;;  %v17071_v9 = vld [vmem:[#allocation94_spill] sm:$0xff] }
 0x2a4   : > { %9705 = vrot.lane.b32.xlu1 %v17066_v60, %s10587_s21  ;;  %v17068_v24 = vld [vmem:[#allocation71_spill] sm:$0xff]  ;;  %v17069_v28 = vld [vmem:[#allocation92_spill] sm:$0xff]  ;;  %v9267_v30 = vunpack.i.l.bf16 %v17071_v9 }
 0x2a5   : > { %v9258_v3 = vunpack.i.h.bf16 %v17068_v24  ;;  %v9257_v42 = vunpack.i.l.bf16 %v17068_v24  ;;  %v9262_v29 = vunpack.i.l.bf16 %v17069_v28  ;;  %v9263_v50 = vunpack.i.h.bf16 %v17069_v28  ;;  %v17072_v53 = vld [vmem:[#allocation47_spill] sm:$0xff]  ;;  %v13921_v7 = vld [vmem:[#allocation2 + $0x759] sm:$0xff] }
 0x2a6   : > { %v17073_v4 = vld [vmem:[#allocation63_spill] sm:$0xff]  ;;  %v13913_v24 = vsel %vm2338_vm2, %v13628_v12, %v9242_v45  ;;  %v17075_v28 = vld [vmem:[#allocation69_spill] sm:$0xff]  ;;  %v13933_v12 = vsel %vm2338_vm2, %v13631_v63, %v9248_v15  ;;  %v13939_v45 = vsel %vm2338_vm2, %v13653_v62, %v9252_v11  ;;  %v13953_v15 = vsel %vm2338_vm2, %v13650_v40, %v9253_v37  ;;  %v13957_v62 = vpop.permute.xlu1 %9435 }
 0x2a7   : > { %v17074_v18 = vpack.i.bf16 %v17072_v53, %v17073_v4  ;;  %v13919_v51 = vld [vmem:[#allocation2 + $0x751] sm:$0xff]  ;;  %v17076_v41 = vpack.i.bf16 %v17075_v28, %v17051_v54  ;;  %v13929_v53 = vsel %vm2338_vm2, %v13634_v1, %v9247_v8  ;;  %v13947_v8 = vpop.permute.xlu0 %9430  ;;  %v13955_v4 = vld [vmem:[#allocation2 + $0x760] sm:$0xff]  ;;  %17081 = vst [vmem:[#allocation131_spill] sm:$0xff] %v13957_v62  ;;  %v13961_v28 = vld [vmem:[#allocation2 + $0x768] sm:$0xff]  ;;  %v13969_v63 = vsel %vm2338_vm2, %v13669_v6, %v9257_v42 }
 0x2a8   : > { %v13943_v16 = vld [vmem:[#allocation2 + $0x1d7] sm:$0xff]  ;;  %17079 = vst [vmem:[#allocation88_spill] sm:$0xff] %v13947_v8  ;;  %17080 = vst [vmem:[#allocation91_spill] sm:$0xff] %v13955_v4  ;;  %v13965_v2 = vld [vmem:[#allocation2 + $0x489] sm:$0xff]  ;;  %v13973_v40 = vsel %vm2338_vm2, %v13666_v39, %v9258_v3  ;;  %v13977_v37 = vsel %vm2338_vm2, %v13692_v23, %v9262_v29  ;;  %v13986_v6 = vsel %vm2338_vm2, %v13689_v25, %v9263_v50  ;;  %v9383_v29 = vunpack.i.h.bf16 %v13671_v34 }
 0x2a9   : > { %9710 = vrot.lane.b32.xlu0 %v17074_v18, %s10587_s21  ;;  %9715 = vrot.lane.b32.xlu1 %v17076_v41, %s10586_s24  ;;  %v13941_v18 = vld [vmem:[#allocation2 + $0x1cf] sm:$0xff]  ;;  %v9268_v41 = vunpack.i.h.bf16 %v17071_v9  ;;  %v17078_v54 = vld [vmem:[#allocation100_spill] sm:$0xff]  ;;  %17082 = vst [vmem:[#allocation71_spill] sm:$0xff] %v13961_v28  ;;  %v13963_v9 = vld [vmem:[#allocation2 + $0x481] sm:$0xff]  ;;  %v13990_v39 = vsel %vm2338_vm2, %v13704_v10, %v9267_v30  ;;  %v17087_v25 = vpack.c.bf16 %v13796_v52, %v13794_v35  ;;  %v9387_v28 = vunpack.i.l.bf16 %v13684_v58 }
 0x2aa   : > { %17077 = vst [vmem:[#allocation68_spill] sm:$0xff] %v13941_v18  ;;  %v9272_v1 = vunpack.i.l.bf16 %v17078_v54  ;;  %17083 = vst [vmem:[#allocation92_spill] sm:$0xff] %v13963_v9  ;;  %v9273_v11 = vunpack.i.h.bf16 %v17078_v54  ;;  %v17085_v3 = vld [vmem:[#allocation81_spill] sm:$0xff]  ;;  %v9382_v54 = vunpack.i.l.bf16 %v13671_v34  ;;  %v14010_v62 = vld [vmem:[#allocation2 + $0x4cf] sm:$0xff]  ;;  %v9446_v42 = vpop.permute.xlu1 %9445 }
 0x2ab   : > { %17084 = vst [vmem:[#allocation94_spill] sm:$0xff] %v13965_v2  ;;  %v9277_v23 = vunpack.i.l.bf16 %v17085_v3  ;;  %8461 = vmatmul.mubr.msk.bf16.gmra.mrb[72].mxu0 %vm529_vm0, %v17087_v25  ;;  %v14004_v10 = vpop.permute.xlu0 %9440  ;;  %17089 = vst [vmem:[#allocation63_spill] sm:$0xff] %v14010_v62  ;;  %v14012_v34 = vld [vmem:[#allocation2 + $0x4d7] sm:$0xff]  ;;  %v17092_v25 = vld [vmem:[#allocation65_spill] sm:$0xff]  ;;  %v9447_v35 = vunpack.i.l.bf16 %v9446_v42 }
 0x2ac   : > { %17088 = vst [vmem:[#allocation47_spill] sm:$0xff] %v14004_v10  ;;  %17090 = vst [vmem:[#allocation69_spill] sm:$0xff] %v14012_v34  ;;  %v17091_v52 = vld [vmem:[#allocation72_spill] sm:$0xff]  ;;  %v9303_v30 = vunpack.i.h.bf16 %v17092_v25  ;;  %v9302_v50 = vunpack.i.l.bf16 %v17092_v25  ;;  %v14026_v10 = vld [vmem:[#allocation2 + $0x1f0] sm:$0xff] }
 0x2ad   : > { %9720 = vrot.lane.b32.xlu0 %v17066_v60, %s10587_s21  ;;  %v17086_v60 = vpack.i.bf16 %v13388_v47, %v13386_v32  ;;  %v14016_v47 = vsel %vm2338_vm2, %v13695_v17, %v9268_v41  ;;  %v14020_v32 = vsel %vm2338_vm2, %v13730_v55, %v9272_v1  ;;  %17093 = vst [vmem:[#allocation100_spill] sm:$0xff] %v14026_v10  ;;  %v14028_v8 = vld [vmem:[#allocation2 + $0x1f8] sm:$0xff]  ;;  %v9388_v41 = vunpack.i.h.bf16 %v13684_v58  ;;  %v17098_v25 = vld [vmem:[#allocation19_spill] sm:$0xff]  ;;  %v17100_v62 = vld [vmem:[#allocation22_spill] sm:$0xff] }
 0x2ae   : > { %17094 = vst [vmem:[#allocation81_spill] sm:$0xff] %v14028_v8  ;;  %v17096_v55 = vpack.i.bf16 %v13406_v36, %v13390_v57  ;;  %v9448_v1 = vunpack.i.h.bf16 %v9446_v42  ;;  %v4223_v4 = vsel %vm529_vm0, %v17098_v25, %v9382_v54  ;;  %v17099_v17 = vpack.i.bf16 %v13410_v49, %v13408_v46  ;;  %v9456_v18 = vpop.permute.xlu1 %9455  ;;  %v17155_v9 = vld [vmem:[#allocation27_spill] sm:$0xff] }
 0x2af   : > { %9725 = vrot.lane.b32.xlu1 %v17086_v60, %s10585_s15  ;;  %v17097_v60 = vld [vmem:[#allocation20_spill] sm:$0xff]  ;;  %v9451_v57 = vpop.permute.xlu0 %9450  ;;  %v4255_v36 = vsel %vm2338_vm2, %v4223_v4, %v9447_v35  ;;  %v14053_v54 = vsel %vm2338_vm2, %v13727_v19, %v9273_v11  ;;  %v4191_v58 = vsel %vm2371_vm3, %v13832_v26, %v9302_v50  ;;  %v4192_v46 = vsel %vm2371_vm3, %v13836_v44, %v9303_v30 }
 0x2b0   : > { %v4224_v2 = vsel %vm529_vm0, %v17097_v60, %v9383_v29  ;;  %v4226_v4 = vsel %vm529_vm0, %v17100_v62, %v9388_v41  ;;  %v17101_v35 = vpack.i.bf16 %v13425_v59, %v13423_v31  ;;  %v9458_v19 = vunpack.i.h.bf16 %v9456_v18  ;;  %v17103_v59 = vld [vmem:[#allocation62_spill] sm:$0xff] }
 0x2b1   : > { %9730 = vrot.lane.b32.xlu0 %v17096_v55, %s10585_s15  ;;  %v4256_v42 = vsel %vm2338_vm2, %v4224_v2, %v9448_v1  ;;  %v9452_v55 = vunpack.i.l.bf16 %v9451_v57  ;;  %v9393_v2 = vunpack.i.h.bf16 %v13718_v43  ;;  %v9457_v11 = vunpack.i.l.bf16 %v9456_v18  ;;  %v17102_v1 = vld [vmem:[#allocation21_spill] sm:$0xff] }
 0x2b2   : > { %v4225_v26 = vsel %vm529_vm0, %v17102_v1, %v9387_v28  ;;  %v9392_v44 = vunpack.i.l.bf16 %v13718_v43  ;;  %v4258_v31 = vsel %vm2338_vm2, %v4226_v4, %v9458_v19  ;;  %v14077_v18 = vsel %vm2338_vm2, %v17103_v59, %v9277_v23  ;;  %v9466_v34 = vpop.permute.xlu1 %9465  ;;  %v17106_v4 = vld [vmem:[#allocation67_spill] sm:$0xff] }
 0x2b3   : > { %9735 = vrot.lane.b32.xlu1 %v17099_v17, %s10586_s24  ;;  %v9453_v17 = vunpack.i.h.bf16 %v9451_v57  ;;  %v4287_v30 = vsel %vm2371_vm3, %v4255_v36, %v9452_v55  ;;  %v9461_v41 = vpop.permute.xlu0 %9460  ;;  %v4257_v29 = vsel %vm2338_vm2, %v4225_v26, %v9457_v11  ;;  %v4319_v28 = vpack.c.bf16 %v4192_v46, %v4191_v58  ;;  %v10394_v36 = vld [vmem:[%s16273_s9 + $0x88] sm:$0xff]   ;;  %v17107_v19 = vld [vmem:[#allocation43_spill] sm:$0xff] }
 0x2b4   : > { %v9463_v10 = vunpack.i.h.bf16 %v9461_v41  ;;  %v9462_v8 = vunpack.i.l.bf16 %v9461_v41  ;;  %v17108_v23 = vpack.i.bf16 %v17106_v4, %v17107_v19  ;;  %v9468_v58 = vunpack.i.h.bf16 %v9466_v34  ;;  %v17109_v26 = vld [vmem:[#allocation23_spill] sm:$0xff]  ;;  %v17111_v41 = vld [vmem:[#allocation137_spill] sm:$0xff] }
 0x2b5   : > { %9740 = vrot.lane.b32.xlu0 %v17101_v35, %s10586_s24  ;;  %v4288_v50 = vsel %vm2371_vm3, %v4256_v42, %v9453_v17  ;;  %v17104_v35 = vld [vmem:[#allocation50_spill] sm:$0xff]  ;;  %v17105_v17 = vld [vmem:[#allocation24_spill] sm:$0xff]  ;;  %v9467_v46 = vunpack.i.l.bf16 %v9466_v34 }
 0x2b6   : > { %v4320_v57 = vpack.c.bf16 %v4288_v50, %v4287_v30  ;;  %v9308_v43 = vunpack.i.h.bf16 %v17104_v35  ;;  %v9307_v42 = vunpack.i.l.bf16 %v17104_v35  ;;  %v4228_v55 = vsel %vm529_vm0, %v17105_v17, %v9393_v2  ;;  %v17110_v50 = vld [vmem:[#allocation138_spill] sm:$0xff]  ;;  %v14145_v4 = vld [vmem:[#allocation2 + $0x1ff] sm:$0xff] }
 0x2b7   : > { %9745 = vrot.lane.b32.xlu1 %v13496_v0, %s10587_s21  ;;  %v4227_v30 = vsel %vm529_vm0, %v17109_v26, %v9392_v44  ;;  %v17112_v59 = vpack.i.bf16 %v17110_v50, %v17111_v41  ;;  %v4289_v2 = vsel %vm2371_vm3, %v4257_v29, %v9462_v8  ;;  %v4290_v35 = vsel %vm2371_vm3, %v4258_v31, %v9463_v10  ;;  %v10448_v44 = vld [vmem:[%s16273_s9 + $0x80] sm:$0xff]   ;;  %v17114_v50 = vld [vmem:[#allocation118_spill] sm:$0xff]  ;;  %v9476_v10 = vpop.permute.xlu1 %9475 }
 0x2b8   : > { %4598 = vmatprep.mubr.bf16.mxu1 %v4320_v57  ;;  %v9471_v57 = vpop.permute.xlu0 %9470  ;;  %v4259_v34 = vsel %vm2338_vm2, %v4227_v30, %v9467_v46  ;;  %v4260_v11 = vsel %vm2338_vm2, %v4228_v55, %v9468_v58  ;;  %v9312_v41 = vunpack.i.l.bf16 %v17114_v50  ;;  %v14107_v31 = vld [vmem:[#allocation2 + $0x781] sm:$0xff]  ;;  %v9313_v55 = vunpack.i.h.bf16 %v17114_v50  ;;  %v17116_v58 = vld [vmem:[#allocation140_spill] sm:$0xff]  ;;  %17125 = vst [vmem:[#allocation72_spill] sm:$0xff] %v14145_v4 }
 0x2b9   : > { %9750 = vrot.lane.b32.xlu0 %v17108_v23, %s10585_s15  ;;  %4599 = vmatmul.mubr.bf16.vlgmr.msra.gmra.mrb[88].mxu1 %v4319_v28  ;;  %v4323_v23 = vpack.c.bf16 %v4290_v35, %v4289_v2  ;;  %v9473_v8 = vunpack.i.h.bf16 %v9471_v57  ;;  %v9472_v29 = vunpack.i.l.bf16 %v9471_v57  ;;  %v17117_v2 = vpack.i.bf16 %v17116_v58, %v13410_v49  ;;  %v17122_v49 = vld [vmem:[#allocation147_spill] sm:$0xff] }
 0x2ba   : > { %8465 = vmatpush3.bf16.msra.mxu1 %v10448_v44  ;;  %v4193_v35 = vsel %vm2371_vm3, %v13842_v48, %v9307_v42  ;;  %v4194_v57 = vsel %vm2371_vm3, %v13846_v61, %v9308_v43  ;;  %v17118_v44 = vld [vmem:[#allocation114_spill] sm:$0xff]  ;;  %v9477_v58 = vunpack.i.l.bf16 %v9476_v10  ;;  %v17119_v61 = vld [vmem:[#allocation64_spill] sm:$0xff] }
 0x2bb   : > { %9755 = vrot.lane.b32.xlu1 %v17112_v59, %s10587_s21  ;;  %v14109_v59 = vld [vmem:[#allocation2 + $0x789] sm:$0xff]  ;;  %8466 = vmatprep.subr.bf16.mxu1 %v10394_v36  ;;  %v9398_v19 = vunpack.i.h.bf16 %v17118_v44  ;;  %v9397_v28 = vunpack.i.l.bf16 %v17118_v44  ;;  %v4291_v50 = vsel %vm2371_vm3, %v4259_v34, %v9472_v29  ;;  %v4292_v30 = vsel %vm2371_vm3, %v4260_v11, %v9473_v8  ;;  %v14132_v44 = vpop.permute.xlu1 %9485  ;;  %v17121_v8 = vld [vmem:[#allocation108_spill] sm:$0xff] }
 0x2bc   : > { %4606 = vmatprep.mubr.bf16.mxu1 %v4323_v23  ;;  %v9478_v23 = vunpack.i.h.bf16 %v9476_v10  ;;  %v9318_v43 = vunpack.i.h.bf16 %v17119_v61  ;;  %v9317_v42 = vunpack.i.l.bf16 %v17119_v61  ;;  %v4195_v34 = vsel %vm2371_vm3, %v13860_v38, %v9312_v41  ;;  %v17123_v48 = vld [vmem:[#allocation142_spill] sm:$0xff] }
 0x2bd   : > { %9760 = vrot.lane.b32.xlu0 %v17117_v2, %s10586_s24  ;;  %v9481_v2 = vpop.permute.xlu0 %9480  ;;  %v17120_v11 = vmov 0.0|0.0   ;;  %v9323_v29 = vunpack.i.h.bf16 %v17121_v8  ;;  %v9322_v10 = vunpack.i.l.bf16 %v17121_v8  ;;  %v4326_v46 = vpack.c.bf16 %v4292_v30, %v4291_v50  ;;  %v17127_v38 = vld [vmem:[#allocation26_spill] sm:$0xff]  ;;  %v14157_v50 = vld [vmem:[#allocation2 + $0x790] sm:$0xff] }
 0x2be   : > { %8467 = vmatpush3.bf16.msra.mxu1 %v10394_v36  ;;  %v17124_v36 = vpack.i.bf16 %v17122_v49, %v17123_v48  ;;  %v4196_v61 = vsel %vm2371_vm3, %v13873_v22, %v9313_v55  ;;  %v4230_v41 = vsel %vm529_vm0, %v17127_v38, %v9398_v19  ;;  %v9483_v8 = vunpack.i.h.bf16 %v9481_v2  ;;  %v17129_v49 = vld [vmem:[#allocation121_spill] sm:$0xff]  ;;  %v17130_v48 = vld [vmem:[#allocation103_spill] sm:$0xff]  ;;  %17132 = vst [vmem:[#allocation20_spill] sm:$0xff] %v14157_v50  ;;  %v14159_v22 = vld [vmem:[#allocation2 + $0x798] sm:$0xff] }
 0x2bf   : > { %9765 = vrot.lane.b32.xlu1 %v13496_v0, %s10587_s21  ;;  %v4322_v0 = vpack.c.bf16 %v4194_v57, %v4193_v35  ;;  %8565 = vmatprep.subr.bf16.mxu1 %v17120_v11  ;;  %v14147_v35 = vld [vmem:[#allocation2 + $0x207] sm:$0xff]  ;;  %v9482_v26 = vunpack.i.l.bf16 %v9481_v2  ;;  %v17131_v30 = vpack.i.bf16 %v17129_v49, %v17130_v48  ;;  %17133 = vst [vmem:[#allocation19_spill] sm:$0xff] %v14159_v22  ;;  %v17135_v2 = vld [vmem:[#allocation123_spill] sm:$0xff]  ;;  %v17136_v49 = vunpack.i.l.bf16 %v17091_v52  ;;  %v17151_v22 = vld [vmem:[#allocation104_spill] sm:$0xff] }
 0x2c0   : > { %17126 = vst [vmem:[#allocation65_spill] sm:$0xff] %v14147_v35  ;;  %v17128_v57 = vld [vmem:[#allocation25_spill] sm:$0xff]  ;;  %v17137_v48 = vld [vmem:[#allocation78_spill] sm:$0xff] }
 0x2c1   : > { %9770 = vrot.lane.b32.xlu0 %v17124_v36, %s10585_s15  ;;  %v4229_v11 = vsel %vm529_vm0, %v17128_v57, %v9397_v28  ;;  %4607 = vmatmul.mubr.bf16.gmra.mrb[92].mxu1 %v4322_v0  ;;  %v14161_v55 = vpop.permute.xlu0 %9490  ;;  %v4262_v36 = vsel %vm2338_vm2, %v4230_v41, %v9478_v23  ;;  %v17134_v28 = vunpack.i.h.bf16 %v17085_v3  ;;  %v14177_v57 = vpop.permute.xlu1 %9495  ;;  %v14185_v23 = vsel %vm2371_vm3, %v13885_v5, %v9318_v43  ;;  %v14209_v43 = vld [vmem:[#allocation2 + $0x4b1] sm:$0xff] }
 0x2c2   : > { %4614 = vmatprep.mubr.bf16.mxu1 %v4326_v46  ;;  %v4261_v19 = vsel %vm2338_vm2, %v4229_v11, %v9477_v58  ;;  %v14181_v46 = vsel %vm2371_vm3, %v13881_v20, %v9317_v42  ;;  %v17138_v58 = vunpack.i.h.bf16 %v17091_v52  ;;  %v17139_v11 = vld [vmem:[#allocation53_spill] sm:$0xff]  ;;  %v4325_v20 = vpack.c.bf16 %v4196_v61, %v4195_v34  ;;  %17144 = vst [vmem:[#allocation21_spill] sm:$0xff] %v14209_v43  ;;  %v17147_v34 = vld [vmem:[#allocation154_spill] sm:$0xff]  ;;  %v17148_v61 = vld [vmem:[#allocation152_spill] sm:$0xff] }
 0x2c3   : > { %9775 = vrot.lane.b32.xlu1 %v17131_v30, %s10585_s15  ;;  %v14169_v0 = vsel %vm2338_vm2, %v17135_v2, %v17134_v28  ;;  %v14175_v30 = vsel %vm2338_vm2, %v17137_v48, %v17136_v49  ;;  %v17141_v28 = vld [vmem:[#allocation151_spill] sm:$0xff]  ;;  %v17142_v2 = vld [vmem:[#allocation150_spill] sm:$0xff]  ;;  %v14201_v42 = vsel %vm2371_vm3, %v13913_v24, %v9322_v10  ;;  %v14205_v5 = vsel %vm2371_vm3, %v13917_v33, %v9323_v29  ;;  %v14211_v48 = vld [vmem:[#allocation2 + $0x4b9] sm:$0xff] }
 0x2c4   : > { %v14193_v41 = vsel %vm2338_vm2, %v17139_v11, %v17138_v58  ;;  %v17143_v49 = vpack.i.bf16 %v17141_v28, %v17142_v2  ;;  %17145 = vst [vmem:[#allocation62_spill] sm:$0xff] %v14211_v48  ;;  %v17146_v58 = vld [vmem:[#allocation160_spill] sm:$0xff]  ;;  %v17149_v24 = vpack.i.bf16 %v17147_v34, %v17148_v61  ;;  %v4293_v10 = vsel %vm2371_vm3, %v4261_v19, %v9482_v26  ;;  %v17150_v29 = vld [vmem:[#allocation106_spill] sm:$0xff] }
 0x2c5   : > { %17140 = vst [vmem:[#allocation22_spill] sm:$0xff] %v14193_v41  ;;  %v9403_v11 = vunpack.i.h.bf16 %v17146_v58  ;;  %v9402_v2 = vunpack.i.l.bf16 %v17146_v58  ;;  %v4294_v33 = vsel %vm2371_vm3, %v4262_v36, %v9483_v8  ;;  %v9488_v52 = vunpack.i.h.bf16 %v14132_v44  ;;  %v14224_v38 = vpop.permute.xlu0 %9500  ;;  %v14230_v61 = vpop.permute.xlu1 %9505  ;;  %v17157_v43 = vld [vmem:[#allocation132_spill] sm:$0xff] }
 0x2c6   : > { %9780 = vrot.lane.b32.xlu0 %v17143_v49, %s10586_s24  ;;  %v9327_v49 = vunpack.i.l.bf16 %v17150_v29  ;;  %v9487_v3 = vunpack.i.l.bf16 %v14132_v44  ;;  %v4328_v58 = vpack.c.bf16 %v14185_v23, %v14181_v46  ;;  %v9328_v50 = vunpack.i.h.bf16 %v17150_v29  ;;  %v17152_v44 = vld [vmem:[#allocation128_spill] sm:$0xff] }
 0x2c7   : > { %9785 = vrot.lane.b32.xlu1 %v17149_v24, %s10586_s24  ;;  %v9332_v34 = vunpack.i.l.bf16 %v17151_v22  ;;  %v9333_v19 = vunpack.i.h.bf16 %v17151_v22  ;;  %v9338_v36 = vunpack.i.h.bf16 %v17152_v44  ;;  %v9337_v24 = vunpack.i.l.bf16 %v17152_v44  ;;  %v17153_v46 = vld [vmem:[#allocation76_spill] sm:$0xff]  ;;  %v17156_v22 = vld [vmem:[#allocation133_spill] sm:$0xff] }
 0x2c8   : > { %v4329_v23 = vpack.c.bf16 %v4294_v33, %v4293_v10  ;;  %v17154_v29 = vld [vmem:[#allocation28_spill] sm:$0xff]  ;;  %v4231_v41 = vsel %vm529_vm0, %v17155_v9, %v9402_v2  ;;  %v9493_v26 = vunpack.i.h.bf16 %v14161_v55  ;;  %v9492_v8 = vunpack.i.l.bf16 %v14161_v55  ;;  %v17159_v44 = vld [vmem:[#allocation105_spill] sm:$0xff] }
 0x2c9   : > { %v4232_v17 = vsel %vm529_vm0, %v17154_v29, %v9403_v11  ;;  %4615 = vmatmul.mubr.bf16.gmra.mrb[96].mxu1 %v4325_v20  ;;  %v17158_v48 = vpack.i.bf16 %v17156_v22, %v17157_v43  ;;  %v9407_v4 = vunpack.i.l.bf16 %v17159_v44  ;;  %v14252_v35 = vpop.permute.xlu0 %9510  ;;  %v4263_v11 = vsel %vm2338_vm2, %v4231_v41, %v9487_v3  ;;  %v14262_v33 = vpop.permute.xlu1 %9515  ;;  %v14272_v3 = vld [vmem:[#allocation2 + $0x4ff] sm:$0xff]  ;;  %v17165_v22 = vld [vmem:[#allocation99_spill] sm:$0xff] }
 0x2ca   : > { %9790 = vrot.lane.b32.xlu0 %v17153_v46, %s10587_s21  ;;  %4622 = vmatprep.mubr.bf16.mxu1 %v4329_v23  ;;  %v4264_v10 = vsel %vm2338_vm2, %v4232_v17, %v9488_v52  ;;  %v14258_v2 = vsel %vm2371_vm3, %v13929_v53, %v9327_v49  ;;  %v9408_v55 = vunpack.i.h.bf16 %v17159_v44  ;;  %v9497_v20 = vunpack.i.l.bf16 %v14177_v57  ;;  %17160 = vst [vmem:[#allocation50_spill] sm:$0xff] %v14272_v3  ;;  %v14274_v17 = vld [vmem:[#allocation2 + $0x507] sm:$0xff]  ;;  %v4922_v9 = vld [vmem:[#allocation2 + $0x39] sm:$0xff]  ;;  %v17179_v29 = vld [vmem:[#allocation155_spill] sm:$0xff] }
 0x2cb   : > { %9795 = vrot.lane.b32.xlu1 %v17158_v48, %s10585_s15  ;;  %v14266_v43 = vsel %vm2371_vm3, %v13933_v12, %v9328_v50  ;;  %v14270_v48 = vsel %vm2371_vm3, %v13939_v45, %v9332_v34  ;;  %v9498_v53 = vunpack.i.h.bf16 %v14177_v57  ;;  %v17161_v41 = vld [vmem:[#allocation97_spill] sm:$0xff]  ;;  %v14283_v23 = vsel %vm2371_vm3, %v13953_v15, %v9333_v19  ;;  %v17164_v50 = vld [vmem:[#allocation130_spill] sm:$0xff] }
 0x2cc   : > { %v17162_v52 = vld [vmem:[#allocation77_spill] sm:$0xff]  ;;  %v14287_v12 = vsel %vm2371_vm3, %v13969_v63, %v9337_v24  ;;  %v14291_v45 = vsel %vm2371_vm3, %v13973_v40, %v9338_v36  ;;  %v9343_v34 = vunpack.i.h.bf16 %v17164_v50  ;;  %v9342_v57 = vunpack.i.l.bf16 %v17164_v50  ;;  %v14318_v50 = vld [vmem:[#allocation2 + $0x228] sm:$0xff] }
 0x2cd   : > { %v17163_v49 = vpack.i.bf16 %v17161_v41, %v17162_v52  ;;  %v17166_v44 = vpack.i.bf16 %v17165_v22, %v17141_v28  ;;  %v4295_v15 = vsel %vm2371_vm3, %v4263_v11, %v9492_v8  ;;  %v4296_v19 = vsel %vm2371_vm3, %v4264_v10, %v9493_v26  ;;  %v17167_v41 = vld [vmem:[#allocation29_spill] sm:$0xff]  ;;  %v14304_v40 = vpop.permute.xlu0 %9520  ;;  %v9526_v11 = vpop.permute.xlu1 %9525  ;;  %17170 = vst [vmem:[#allocation43_spill] sm:$0xff] %v14318_v50  ;;  %v17171_v22 = vld [vmem:[#allocation134_spill] sm:$0xff] }
 0x2ce   : > { %v4233_v63 = vsel %vm529_vm0, %v17167_v41, %v9407_v4  ;;  %v9502_v24 = vunpack.i.l.bf16 %v14224_v38  ;;  %v9503_v8 = vunpack.i.h.bf16 %v14224_v38  ;;  %v14316_v10 = vld [vmem:[#allocation2 + $0x220] sm:$0xff]  ;;  %v4332_v52 = vpack.c.bf16 %v4296_v19, %v4295_v15  ;;  %v17172_v4 = vld [vmem:[#allocation52_spill] sm:$0xff]  ;;  %v17173_v36 = vld [vmem:[#allocation90_spill] sm:$0xff] }
 0x2cf   : > { %9800 = vrot.lane.b32.xlu0 %v17163_v49, %s10587_s21  ;;  %9805 = vrot.lane.b32.xlu1 %v17166_v44, %s10586_s24  ;;  %v17168_v49 = vld [vmem:[#allocation30_spill] sm:$0xff]  ;;  %v4265_v26 = vsel %vm2338_vm2, %v4233_v63, %v9497_v20  ;;  %17169 = vst [vmem:[#allocation67_spill] sm:$0xff] %v14316_v10  ;;  %v9347_v44 = vunpack.i.l.bf16 %v17171_v22  ;;  %v9412_v63 = vunpack.i.l.bf16 %v13824_v27  ;;  %v17174_v41 = vpack.i.bf16 %v17172_v4, %v17173_v36  ;;  %v14342_v15 = vld [vmem:[#allocation2 + $0x7b9] sm:$0xff] }
 0x2d0   : > { %v4234_v28 = vsel %vm529_vm0, %v17168_v49, %v9408_v55  ;;  %v14334_v49 = vsel %vm2371_vm3, %v13977_v37, %v9342_v57  ;;  %17176 = vst [vmem:[#allocation137_spill] sm:$0xff] %v14342_v15  ;;  %v9413_v19 = vunpack.i.h.bf16 %v13824_v27  ;;  %v9528_v57 = vunpack.i.h.bf16 %v9526_v11  ;;  %v17177_v38 = vld [vmem:[#allocation125_spill] sm:$0xff]  ;;  %v17178_v27 = vld [vmem:[#allocation156_spill] sm:$0xff] }
 0x2d1   : > { %v4266_v55 = vsel %vm2338_vm2, %v4234_v28, %v9498_v53  ;;  %4623 = vmatmul.mubr.bf16.gmra.mrb[100].mxu1 %v4328_v58  ;;  %v14340_v53 = vld [vmem:[#allocation2 + $0x7b1] sm:$0xff]  ;;  %v9507_v58 = vunpack.i.l.bf16 %v14230_v61  ;;  %v9531_v28 = vpop.permute.xlu0 %9530  ;;  %v9527_v36 = vunpack.i.l.bf16 %v9526_v11  ;;  %v17180_v3 = vpack.i.bf16 %v17178_v27, %v17179_v29  ;;  %v17182_v10 = vld [vmem:[#allocation157_spill] sm:$0xff] }
 0x2d2   : > { %17175 = vst [vmem:[#allocation138_spill] sm:$0xff] %v14340_v53  ;;  %4630 = vmatprep.mubr.bf16.mxu1 %v4332_v52  ;;  %v9533_v4 = vunpack.i.h.bf16 %v9531_v28  ;;  %v14361_v11 = vsel %vm2371_vm3, %v13990_v39, %v9347_v44  ;;  %v17183_v29 = vld [vmem:[#allocation124_spill] sm:$0xff]  ;;  %v9508_v52 = vunpack.i.h.bf16 %v14230_v61  ;;  %v17186_v61 = vld [vmem:[#allocation54_spill] sm:$0xff] }
 0x2d3   : > { %9810 = vrot.lane.b32.xlu0 %v17153_v46, %s10587_s21  ;;  %9815 = vrot.lane.b32.xlu1 %v17174_v41, %s10585_s15  ;;  %v14338_v46 = vsel %vm2371_vm3, %v13986_v6, %v9343_v34  ;;  %v4297_v41 = vsel %vm2371_vm3, %v4265_v26, %v9502_v24  ;;  %v9536_v6 = vpop.permute.xlu1 %9535  ;;  %v4298_v34 = vsel %vm2371_vm3, %v4266_v55, %v9503_v8  ;;  %v17181_v26 = vld [vmem:[#allocation31_spill] sm:$0xff]  ;;  %v9532_v55 = vunpack.i.l.bf16 %v9531_v28  ;;  %v17185_v27 = vld [vmem:[#allocation32_spill] sm:$0xff] }
 0x2d4   : > { %v4235_v8 = vsel %vm529_vm0, %v17181_v26, %v9412_v63  ;;  %v9538_v37 = vunpack.i.h.bf16 %v9536_v6  ;;  %v9537_v20 = vunpack.i.l.bf16 %v9536_v6  ;;  %v4236_v24 = vsel %vm529_vm0, %v17185_v27, %v9413_v19  ;;  %v4921_v53 = vld [vmem:[#allocation2 + $0x31] sm:$0xff]  ;;  %v17187_v27 = vld [vmem:[#allocation161_spill] sm:$0xff] }
 0x2d5   : > { %v9541_v15 = vpop.permute.xlu0 %9540  ;;  %v4335_v39 = vpack.c.bf16 %v4298_v34, %v4297_v41  ;;  %v4267_v44 = vsel %vm2338_vm2, %v4235_v8, %v9507_v58  ;;  %v9512_v63 = vunpack.i.l.bf16 %v14252_v35  ;;  %v6043_v28 = vsel %vm529_vm0, %v17097_v60, %v9528_v57 }
 0x2d6   : > { %v6042_v6 = vsel %vm529_vm0, %v17098_v25, %v9527_v36  ;;  %v9543_v26 = vunpack.i.h.bf16 %v9541_v15  ;;  %v9542_v19 = vunpack.i.l.bf16 %v9541_v15  ;;  %v17188_v50 = vpack.i.bf16 %v17186_v61, %v17187_v27 }
 0x2d7   : > { %9820 = vrot.lane.b32.xlu0 %v17180_v3, %s10585_s15  ;;  %v17184_v3 = vpack.i.bf16 %v17182_v10, %v17183_v29  ;;  %v5947_v29 = vsel %vm529_vm0, %v4922_v9, %v9533_v4  ;;  %v9513_v34 = vunpack.i.h.bf16 %v14252_v35  ;;  %v5946_v8 = vsel %vm529_vm0, %v4921_v53, %v9532_v55  ;;  %v17190_v9 = vld [vmem:[#allocation44_spill] sm:$0xff] }
 0x2d8   : > { %v17189_v60 = vpack.c.bf16 %v14205_v5, %v14201_v42  ;;  %v6074_v25 = vsel %vm2338_vm2, %v6042_v6, %v9537_v20  ;;  %v6075_v15 = vsel %vm2338_vm2, %v6043_v28, %v9538_v37  ;;  %v9417_v57 = vunpack.i.l.bf16 %v17177_v38  ;;  %v17192_v6 = vld [vmem:[#allocation79_spill] sm:$0xff] }
 0x2d9   : > { %9825 = vrot.lane.b32.xlu1 %v17184_v3, %s10586_s24  ;;  %v9546_v3 = vpop.permute.xlu1 %9545  ;;  %v4268_v53 = vsel %vm2338_vm2, %v4236_v24, %v9508_v52  ;;  %v9517_v42 = vunpack.i.l.bf16 %v14262_v33  ;;  %v9518_v20 = vunpack.i.h.bf16 %v14262_v33  ;;  %v5978_v37 = vsel %vm2338_vm2, %v5946_v8, %v9542_v19  ;;  %v17194_v52 = vld [vmem:[#allocation136_spill] sm:$0xff]  ;;  %v17196_v33 = vld [vmem:[#allocation111_spill] sm:$0xff] }
 0x2da   : > { %v9548_v41 = vunpack.i.h.bf16 %v9546_v3  ;;  %v9547_v58 = vunpack.i.l.bf16 %v9546_v3  ;;  %4631 = vmatmul.mubr.bf16.gmra.mrb[104].mxu1 %v17189_v60  ;;  %v5979_v28 = vsel %vm2338_vm2, %v5947_v29, %v9543_v26  ;;  %v4299_v24 = vsel %vm2371_vm3, %v4267_v44, %v9512_v63  ;;  %v17195_v60 = vld [vmem:[#allocation126_spill] sm:$0xff]  ;;  %v17198_v29 = vld [vmem:[#allocation33_spill] sm:$0xff] }
 0x2db   : > { %9830 = vrot.lane.b32.xlu0 %v17188_v50, %s10586_s24  ;;  %v9551_v50 = vpop.permute.xlu0 %9550  ;;  %4638 = vmatprep.mubr.bf16.mxu1 %v4335_v39  ;;  %v17191_v39 = vld [vmem:[#allocation80_spill] sm:$0xff]  ;;  %v9353_v61 = vunpack.i.h.bf16 %v17194_v52  ;;  %v4300_v26 = vsel %vm2371_vm3, %v4268_v53, %v9513_v34  ;;  %v4237_v19 = vsel %vm529_vm0, %v17198_v29, %v9417_v57  ;;  %v9522_v8 = vunpack.i.l.bf16 %v14304_v40  ;;  %v17201_v57 = vld [vmem:[#allocation34_spill] sm:$0xff] }
 0x2dc   : > { %v6106_v36 = vsel %vm2371_vm3, %v6074_v25, %v9547_v58  ;;  %v6107_v35 = vsel %vm2371_vm3, %v6075_v15, %v9548_v41  ;;  %v9553_v5 = vunpack.i.h.bf16 %v9551_v50  ;;  %v9552_v4 = vunpack.i.l.bf16 %v9551_v50 }
 0x2dd   : > { %9835 = vrot.lane.b32.xlu1 %v17190_v9, %s10587_s21  ;;  %v14397_v55 = vpop.permute.xlu1 %9555  ;;  %v6139_v27 = vpack.c.bf16 %v6107_v35, %v6106_v36  ;;  %v17193_v3 = vpack.i.bf16 %v17191_v39, %v17192_v6  ;;  %v17197_v25 = vpack.i.bf16 %v17195_v60, %v17196_v33  ;;  %v17199_v15 = vunpack.i.h.bf16 %v17171_v22  ;;  %v14426_v36 = vld [vmem:[#allocation2 + $0x22f] sm:$0xff]  ;;  %v14428_v35 = vld [vmem:[#allocation2 + $0x237] sm:$0xff] }
 0x2de   : > { %v6010_v41 = vsel %vm2371_vm3, %v5978_v37, %v9552_v4  ;;  %v6011_v58 = vsel %vm2371_vm3, %v5979_v28, %v9553_v5  ;;  %v9352_v34 = vunpack.i.l.bf16 %v17194_v52  ;;  %v17200_v53 = vunpack.i.h.bf16 %v17177_v38  ;;  %v14437_v37 = vld [vmem:[#allocation2 + $0x7c0] sm:$0xff]  ;;  %v17202_v28 = vld [vmem:[#allocation139_spill] sm:$0xff] }
 0x2df   : > { %9840 = vrot.lane.b32.xlu0 %v17193_v3, %s10585_s15  ;;  %6417 = vmatprep.mubr.bf16.mxu0 %v6139_v27  ;;  %v6138_v44 = vpack.c.bf16 %v6011_v58, %v6010_v41  ;;  %v14418_v63 = vpop.permute.xlu0 %9560  ;;  %v14424_v50 = vsel %vm2371_vm3, %v14016_v47, %v17199_v15  ;;  %v9523_v4 = vunpack.i.h.bf16 %v14304_v40  ;;  %v4269_v22 = vsel %vm2338_vm2, %v4237_v19, %v9517_v42  ;;  %v14439_v47 = vld [vmem:[#allocation2 + $0x7c8] sm:$0xff]  ;;  %v17203_v6 = vld [vmem:[#allocation107_spill] sm:$0xff] }
 0x2e0   : > { %v4238_v5 = vsel %vm529_vm0, %v17201_v57, %v17200_v53  ;;  %v9423_v3 = vunpack.i.h.bf16 %v17203_v6  ;;  %v17204_v41 = vld [vmem:[#allocation87_spill] sm:$0xff]  ;;  %v4338_v58 = vpack.c.bf16 %v4300_v26, %v4299_v24  ;;  %v9357_v60 = vunpack.i.l.bf16 %v17202_v28 }
 0x2e1   : > { %9845 = vrot.lane.b32.xlu1 %v17197_v25, %s10587_s21  ;;  %v9566_v27 = vpop.permute.xlu1 %9565  ;;  %v17205_v38 = vpack.i.bf16 %v17204_v41, %v17182_v10  ;;  %6418 = vmatmul.mubr.bf16.vlgmr.msra.gmra.mrb[76].mxu0 %v6138_v44  ;;  %v4270_v40 = vsel %vm2338_vm2, %v4238_v5, %v9518_v20  ;;  %v9422_v42 = vunpack.i.l.bf16 %v17203_v6  ;;  %v17206_v33 = vpack.c.bf16 %v14266_v43, %v14258_v2  ;;  %v17207_v5 = vld [vmem:[#allocation144_spill] sm:$0xff]  ;;  %v4923_v25 = vld [vmem:[#allocation2 + $0x61] sm:$0xff] }
 0x2e2   : > { %v9558_v24 = vunpack.i.h.bf16 %v14397_v55  ;;  %v9557_v20 = vunpack.i.l.bf16 %v14397_v55  ;;  %v4301_v19 = vsel %vm2371_vm3, %v4269_v22, %v9522_v8  ;;  %v9568_v43 = vunpack.i.h.bf16 %v9566_v27  ;;  %v17210_v22 = vld [vmem:[#allocation35_spill] sm:$0xff]  ;;  %v17232_v41 = vld [vmem:[#allocation100_spill] sm:$0xff] }
 0x2e3   : > { %9850 = vrot.lane.b32.xlu0 %v17205_v38, %s10586_s24  ;;  %4639 = vmatmul.mubr.bf16.gmra.mrb[108].mxu1 %v17206_v33  ;;  %v9571_v26 = vpop.permute.xlu0 %9570  ;;  %v9567_v44 = vunpack.i.l.bf16 %v9566_v27  ;;  %v4302_v53 = vsel %vm2371_vm3, %v4270_v40, %v9523_v4  ;;  %v17208_v38 = vld [vmem:[#allocation36_spill] sm:$0xff]  ;;  %v4924_v33 = vld [vmem:[#allocation2 + $0x69] sm:$0xff]  ;;  %v17209_v8 = vpack.i.bf16 %v13892_v56, %v13890_v14  ;;  %v14475_v27 = vsel %vm2371_vm3, %v14020_v32, %v9352_v34 }
 0x2e4   : > { %4646 = vmatprep.mubr.bf16.mxu1 %v4338_v58  ;;  %v4240_v55 = vsel %vm529_vm0, %v17208_v38, %v9423_v3  ;;  %v4239_v4 = vsel %vm529_vm0, %v17210_v22, %v9422_v42  ;;  %v9572_v58 = vunpack.i.l.bf16 %v9571_v26  ;;  %v17211_v3 = vpack.i.bf16 %v13903_v21, %v13901_v13 }
 0x2e5   : > { %9855 = vrot.lane.b32.xlu1 %v17190_v9, %s10587_s21  ;;  %v9573_v9 = vunpack.i.h.bf16 %v9571_v26  ;;  %v9576_v15 = vpop.permute.xlu1 %9575  ;;  %v9563_v10 = vunpack.i.h.bf16 %v14418_v63  ;;  %v4341_v56 = vpack.c.bf16 %v4302_v53, %v4301_v19  ;;  %v4272_v32 = vsel %vm2338_vm2, %v4240_v55, %v9558_v24  ;;  %v17213_v53 = vld [vmem:[#allocation146_spill] sm:$0xff] }
 0x2e6   : > { %v9578_v40 = vunpack.i.h.bf16 %v9576_v15  ;;  %v9577_v2 = vunpack.i.l.bf16 %v9576_v15  ;;  %v9562_v34 = vunpack.i.l.bf16 %v14418_v63  ;;  %v6045_v42 = vsel %vm529_vm0, %v17100_v62, %v9568_v43  ;;  %v17229_v63 = vld [vmem:[#allocation51_spill] sm:$0xff] }
 0x2e7   : > { %9860 = vrot.lane.b32.xlu0 %v17209_v8, %s10585_s15  ;;  %v9581_v14 = vpop.permute.xlu0 %9580  ;;  %v4271_v8 = vsel %vm2338_vm2, %v4239_v4, %v9557_v20  ;;  %v6044_v26 = vsel %vm529_vm0, %v17102_v1, %v9567_v44  ;;  %v5949_v13 = vsel %vm529_vm0, %v4924_v33, %v9573_v9  ;;  %v17212_v19 = vpack.i.bf16 %v13921_v7, %v13919_v51  ;;  %v17215_v1 = vld [vmem:[#allocation68_spill] sm:$0xff]  ;;  %v17217_v51 = vld [vmem:[#allocation86_spill] sm:$0xff] }
 0x2e8   : > { %v9583_v15 = vunpack.i.h.bf16 %v9581_v14  ;;  %v5948_v55 = vsel %vm529_vm0, %v4923_v25, %v9572_v58  ;;  %v17214_v62 = vpack.c.bf16 %v14283_v23, %v14270_v48  ;;  %v17216_v43 = vpack.i.bf16 %v13943_v16, %v17215_v1  ;;  %v14510_v58 = vld [vmem:[#allocation2 + $0x4e1] sm:$0xff]  ;;  %v14512_v48 = vld [vmem:[#allocation2 + $0x4e9] sm:$0xff]  ;;  %v14535_v1 = vld [vmem:[#allocation2 + $0x258] sm:$0xff] }
 0x2e9   : > { %9865 = vrot.lane.b32.xlu1 %v17211_v3, %s10585_s15  ;;  %v9586_v21 = vpop.permute.xlu1 %9585  ;;  %v9582_v3 = vunpack.i.l.bf16 %v9581_v14  ;;  %v6076_v44 = vsel %vm2338_vm2, %v6044_v26, %v9577_v2  ;;  %v6077_v7 = vsel %vm2338_vm2, %v6045_v42, %v9578_v40  ;;  %v9428_v9 = vunpack.i.h.bf16 %v17217_v51  ;;  %v14521_v42 = vld [vmem:[#allocation2 + $0x52f] sm:$0xff]  ;;  %v14523_v26 = vld [vmem:[#allocation2 + $0x537] sm:$0xff] }
 0x2ea   : > { %v9588_v20 = vunpack.i.h.bf16 %v9586_v21  ;;  %v9587_v24 = vunpack.i.l.bf16 %v9586_v21  ;;  %v14518_v16 = vsel %vm2371_vm3, %v14053_v54, %v9353_v61  ;;  %v9427_v23 = vunpack.i.l.bf16 %v17217_v51  ;;  %v14525_v21 = vld [vmem:[#allocation2 + $0x250] sm:$0xff] }
 0x2eb   : > { %9870 = vrot.lane.b32.xlu0 %v17212_v19, %s10586_s24  ;;  %4647 = vmatmul.mubr.bf16.gmra.mrb[112].mxu1 %v17214_v62  ;;  %v9591_v33 = vpop.permute.xlu0 %9590  ;;  %v17218_v19 = vld [vmem:[#allocation71_spill] sm:$0xff]  ;;  %v5980_v54 = vsel %vm2338_vm2, %v5948_v55, %v9582_v3  ;;  %v5981_v61 = vsel %vm2338_vm2, %v5949_v13, %v9583_v15  ;;  %v4304_v62 = vsel %vm2371_vm3, %v4272_v32, %v9563_v10  ;;  %v14552_v55 = vld [vmem:[#allocation2 + $0x25f] sm:$0xff] }
 0x2ec   : > { %4654 = vmatprep.mubr.bf16.mxu1 %v4341_v56  ;;  %v6108_v4 = vsel %vm2371_vm3, %v6076_v44, %v9587_v24  ;;  %v6109_v25 = vsel %vm2371_vm3, %v6077_v7, %v9588_v20  ;;  %v9593_v2 = vunpack.i.h.bf16 %v9591_v33  ;;  %v9592_v40 = vunpack.i.l.bf16 %v9591_v33  ;;  %v17219_v20 = vld [vmem:[#allocation91_spill] sm:$0xff]  ;;  %v17221_v33 = vld [vmem:[#allocation94_spill] sm:$0xff]  ;;  %v17239_v10 = vld [vmem:[#allocation65_spill] sm:$0xff] }
 0x2ed   : > { %9875 = vrot.lane.b32.xlu1 %v17216_v43, %s10586_s24  ;;  %v9596_v14 = vpop.permute.xlu1 %9595  ;;  %v6142_v56 = vpack.c.bf16 %v6109_v25, %v6108_v4  ;;  %v17220_v52 = vpack.i.bf16 %v17218_v19, %v17219_v20  ;;  %v4303_v24 = vsel %vm2371_vm3, %v4271_v8, %v9562_v34  ;;  %v14537_v43 = vld [vmem:[#allocation2 + $0x7e1] sm:$0xff]  ;;  %v14539_v44 = vld [vmem:[#allocation2 + $0x7e9] sm:$0xff]  ;;  %v17222_v4 = vld [vmem:[#allocation92_spill] sm:$0xff] }
 0x2ee   : > { %v9598_v7 = vunpack.i.h.bf16 %v9596_v14  ;;  %v9597_v51 = vunpack.i.l.bf16 %v9596_v14  ;;  %v17223_v25 = vpack.i.bf16 %v17221_v33, %v17222_v4  ;;  %v6012_v13 = vsel %vm2371_vm3, %v5980_v54, %v9592_v40  ;;  %v14554_v14 = vld [vmem:[#allocation2 + $0x267] sm:$0xff]  ;;  %v14564_v54 = vld [vmem:[#allocation2 + $0x7f0] sm:$0xff] }
 0x2ef   : > { %9880 = vrot.lane.b32.xlu0 %v17220_v52, %s10587_s21  ;;  %6425 = vmatprep.mubr.bf16.mxu0 %v6142_v56  ;;  %v6013_v8 = vsel %vm2371_vm3, %v5981_v61, %v9593_v2  ;;  %v9601_v32 = vpop.permute.xlu0 %9600  ;;  %v17224_v19 = vld [vmem:[#allocation38_spill] sm:$0xff]  ;;  %v14566_v61 = vld [vmem:[#allocation2 + $0x7f8] sm:$0xff]  ;;  %v17225_v33 = vld [vmem:[#allocation37_spill] sm:$0xff]  ;;  %v7942_v2 = vpop.f32.mrb[0].mxu0  ;;  %v4344_v20 = vpack.c.bf16 %v4304_v62, %v4303_v24 }
 0x2f0   : > { %v6141_v34 = vpack.c.bf16 %v6013_v8, %v6012_v13  ;;  %v4242_v56 = vsel %vm529_vm0, %v17224_v19, %v9428_v9  ;;  %v4241_v4 = vsel %vm529_vm0, %v17225_v33, %v9427_v23  ;;  %v9602_v13 = vunpack.i.l.bf16 %v9601_v32  ;;  %v17226_v9 = vld [vmem:[#allocation69_spill] sm:$0xff]  ;;  %v17227_v8 = vld [vmem:[#allocation63_spill] sm:$0xff]  ;;  %v7943_v6 = vpop.f32.mrb[1].mxu0 }
 0x2f1   : > { %9885 = vrot.lane.b32.xlu1 %v17223_v25, %s10587_s21  ;;  %v9606_v40 = vpop.permute.xlu1 %9605  ;;  %v9603_v25 = vunpack.i.h.bf16 %v9601_v32  ;;  %v17228_v3 = vpack.i.bf16 %v17226_v9, %v17227_v8  ;;  %v14574_v15 = vld [vmem:[#allocation2 + $0x511] sm:$0xff]  ;;  %v14576_v52 = vld [vmem:[#allocation2 + $0x519] sm:$0xff]  ;;  %v17230_v23 = vpack.c.bf16 %v14291_v45, %v14287_v12  ;;  %v4274_v24 = vsel %vm2338_vm2, %v4242_v56, %v9598_v7  ;;  %v7945_v8 = vpop.f32.mrb[2].mxu0 }
 0x2f2   : > { %6426 = vmatmul.mubr.bf16.gmra.mrb[80].mxu0 %v6141_v34  ;;  %v17231_v32 = vld [vmem:[#allocation81_spill] sm:$0xff]  ;;  %v14590_v34 = vadd.f32 %v7943_v6, %v7942_v2  ;;  %v14598_v45 = vsel %vm2371_vm3, %v14077_v18, %v9357_v60  ;;  %v9608_v6 = vunpack.i.h.bf16 %v9606_v40  ;;  %v9607_v7 = vunpack.i.l.bf16 %v9606_v40 }
 0x2f3   : > { %9890 = vrot.lane.b32.xlu0 %v17228_v3, %s10585_s15  ;;  %4655 = vmatmul.mubr.bf16.gmra.mrb[116].mxu1 %v17230_v23  ;;  %v17233_v39 = vpack.i.bf16 %v17231_v32, %v17232_v41  ;;  %v4273_v3 = vsel %vm2338_vm2, %v4241_v4, %v9597_v51  ;;  %v9611_v9 = vpop.permute.xlu0 %9610  ;;  %v7946_v51 = vpop.f32.mrb[3].mxu0  ;;  %v14610_v4 = vld [vmem:[#allocation2 + $0x567] sm:$0xff]  ;;  %v17236_v18 = vunpack.i.l.bf16 %v17207_v5  ;;  %v17238_v40 = vpack.i.bf16 %v14109_v59, %v14107_v31  ;;  %v4926_v31 = vld [vmem:[#allocation2 + $0x99] sm:$0xff] }
 0x2f4   : > { %17234 = vst [vmem:[#allocation118_spill] sm:$0xff] %v14590_v34  ;;  %4662 = vmatprep.mubr.bf16.mxu1 %v4344_v20  ;;  %v14608_v20 = vld [vmem:[#allocation2 + $0x55f] sm:$0xff]  ;;  %v9612_v60 = vunpack.i.l.bf16 %v9611_v9  ;;  %v4305_v23 = vsel %vm2371_vm3, %v4273_v3, %v9602_v13  ;;  %v4306_v32 = vsel %vm2371_vm3, %v4274_v24, %v9603_v25  ;;  %v9613_v2 = vunpack.i.h.bf16 %v9611_v9  ;;  %v17244_v3 = vld [vmem:[#allocation22_spill] sm:$0xff] }
 0x2f5   : > { %9895 = vrot.lane.b32.xlu1 %v17233_v39, %s10585_s15  ;;  %v17235_v39 = vunpack.i.h.bf16 %v17202_v28  ;;  %v9616_v56 = vpop.permute.xlu1 %9615  ;;  %v14616_v28 = vsel %vm2371_vm3, %v14175_v30, %v17236_v18  ;;  %v17240_v30 = vld [vmem:[#allocation72_spill] sm:$0xff]  ;;  %v17243_v25 = vunpack.i.h.bf16 %v17207_v5  ;;  %v17245_v9 = vld [vmem:[#allocation82_spill] sm:$0xff]  ;;  %v4347_v13 = vpack.c.bf16 %v4306_v32, %v4305_v23  ;;  %v17255_v23 = vld [vmem:[#allocation21_spill] sm:$0xff] }
 0x2f6   : > { %v9618_v12 = vunpack.i.h.bf16 %v9616_v56  ;;  %v9617_v62 = vunpack.i.l.bf16 %v9616_v56  ;;  %v17241_v18 = vpack.i.bf16 %v17239_v10, %v17240_v30  ;;  %v17246_v56 = vunpack.i.l.bf16 %v17245_v9  ;;  %v17247_v10 = vld [vmem:[#allocation159_spill] sm:$0xff]  ;;  %v17248_v30 = vld [vmem:[#allocation24_spill] sm:$0xff] }
 0x2f7   : > { %v14604_v41 = vsel %vm2371_vm3, %v14169_v0, %v17235_v39  ;;  %v14618_v0 = vadd.f32 %v7946_v51, %v7945_v8  ;;  %9900 = vrot.lane.b32.xlu0 %v17238_v40, %s10586_s24  ;;  %v4925_v39 = vld [vmem:[#allocation2 + $0x91] sm:$0xff]  ;;  %v9621_v59 = vpop.permute.xlu0 %9620  ;;  %v14639_v24 = vsel %vm2371_vm3, %v17244_v3, %v17243_v25 }
 0x2f8   : > { %v17242_v51 = vld [vmem:[#allocation88_spill] sm:$0xff]  ;;  %v4185_v40 = vsel %vm2338_vm2, %v17247_v10, %v17246_v56  ;;  %v17249_v8 = vld [vmem:[#allocation23_spill] sm:$0xff]  ;;  %v9622_v22 = vunpack.i.l.bf16 %v9621_v59  ;;  %v5950_v5 = vsel %vm529_vm0, %v4925_v39, %v9612_v60  ;;  %v9623_v29 = vunpack.i.h.bf16 %v9621_v59  ;;  %v17254_v60 = vld [vmem:[#allocation62_spill] sm:$0xff] }
 0x2f9   : > { %17237 = vst [vmem:[#allocation140_spill] sm:$0xff] %v14618_v0  ;;  %9905 = vrot.lane.b32.xlu1 %v17241_v18, %s10586_s24  ;;  %v9433_v33 = vunpack.i.h.bf16 %v17242_v51  ;;  %v6047_v18 = vsel %vm529_vm0, %v17248_v30, %v9608_v6  ;;  %v6046_v19 = vsel %vm529_vm0, %v17249_v8, %v9607_v7  ;;  %v9626_v38 = vpop.permute.xlu1 %9625  ;;  %v17250_v25 = vld [vmem:[#allocation19_spill] sm:$0xff]  ;;  %v17251_v3 = vld [vmem:[#allocation20_spill] sm:$0xff]  ;;  %v7948_v0 = vpop.f32.mrb[4].mxu0  ;;  %v9432_v10 = vunpack.i.l.bf16 %v17242_v51 }
 0x2fa   : > { %v17252_v57 = vpack.i.bf16 %v17250_v25, %v17251_v3  ;;  %v9628_v34 = vunpack.i.h.bf16 %v9626_v38  ;;  %v9627_v56 = vunpack.i.l.bf16 %v9626_v38  ;;  %v5951_v6 = vsel %vm529_vm0, %v4926_v31, %v9613_v2  ;;  %v7949_v30 = vpop.f32.mrb[5].mxu0  ;;  %v17257_v8 = vld [vmem:[#allocation40_spill] sm:$0xff] }
 0x2fb   : > { %v17253_v7 = vpack.c.bf16 %v14338_v46, %v14334_v49  ;;  %v17256_v32 = vpack.i.bf16 %v17254_v60, %v17255_v23  ;;  %v6078_v39 = vsel %vm2338_vm2, %v6046_v19, %v9617_v62  ;;  %v4244_v38 = vsel %vm529_vm0, %v17257_v8, %v9433_v33  ;;  %v9631_v2 = vpop.permute.xlu0 %9630  ;;  %v7951_v31 = vpop.f32.mrb[6].mxu0  ;;  %v17258_v33 = vld [vmem:[#allocation50_spill] sm:$0xff] }
 0x2fc   : > { %9910 = vrot.lane.b32.xlu0 %v17252_v57, %s10587_s21  ;;  %v6079_v57 = vsel %vm2338_vm2, %v6047_v18, %v9618_v12  ;;  %v14667_v51 = vadd.f32 %v7949_v30, %v7948_v0  ;;  %v6110_v49 = vsel %vm2371_vm3, %v6078_v39, %v9627_v56  ;;  %v9633_v59 = vunpack.i.h.bf16 %v9631_v2  ;;  %v7952_v3 = vpop.f32.mrb[7].mxu0  ;;  %v14679_v56 = vld [vmem:[#allocation2 + $0x280] sm:$0xff]  ;;  %v17260_v30 = vld [vmem:[#allocation39_spill] sm:$0xff] }
 0x2fd   : > { %4663 = vmatmul.mubr.bf16.gmra.mrb[120].mxu1 %v17253_v7  ;;  %9915 = vrot.lane.b32.xlu1 %v17256_v32, %s10587_s21  ;;  %v6111_v46 = vsel %vm2371_vm3, %v6079_v57, %v9628_v34  ;;  %v9632_v25 = vunpack.i.l.bf16 %v9631_v2  ;;  %v9636_v7 = vpop.permute.xlu1 %9635  ;;  %v5982_v19 = vsel %vm2338_vm2, %v5950_v5, %v9622_v22  ;;  %v14672_v62 = vadd.f32 %v7952_v3, %v7951_v31  ;;  %v17261_v22 = vld [vmem:[#allocation43_spill] sm:$0xff]  ;;  %v14690_v57 = vld [vmem:[#allocation2 + $0x288] sm:$0xff] }
 0x2fe   : > { %4670 = vmatprep.mubr.bf16.mxu1 %v4347_v13  ;;  %v6145_v60 = vpack.c.bf16 %v6111_v46, %v6110_v49  ;;  %v17259_v12 = vpack.i.bf16 %v14274_v17, %v17258_v33  ;;  %v9638_v0 = vunpack.i.h.bf16 %v9636_v7  ;;  %v9637_v13 = vunpack.i.l.bf16 %v9636_v7  ;;  %v17262_v5 = vld [vmem:[#allocation67_spill] sm:$0xff]  ;;  %v17265_v3 = vld [vmem:[#allocation158_spill] sm:$0xff] }
 0x2ff   : > { %v5983_v18 = vsel %vm2338_vm2, %v5951_v6, %v9623_v29  ;;  %v9372_v34 = vunpack.i.l.bf16 %v17229_v63  ;;  %v4243_v23 = vsel %vm529_vm0, %v17260_v30, %v9432_v10  ;;  %v17263_v32 = vpack.i.bf16 %v17261_v22, %v17262_v5  ;;  %v14692_v29 = vld [vmem:[#allocation2 + $0x811] sm:$0xff]  ;;  %v14694_v6 = vld [vmem:[#allocation2 + $0x819] sm:$0xff]  ;;  %v9641_v2 = vpop.permute.xlu0 %9640  ;;  %v7954_v22 = vpop.f32.mrb[8].mxu0 }
 0x300   : > { %9920 = vrot.lane.b32.xlu0 %v17259_v12, %s10585_s15  ;;  %6433 = vmatprep.mubr.bf16.mxu0 %v6145_v60  ;;  %v6014_v17 = vsel %vm2371_vm3, %v5982_v19, %v9632_v25  ;;  %v6015_v39 = vsel %vm2371_vm3, %v5983_v18, %v9633_v59  ;;  %v4275_v10 = vsel %vm2338_vm2, %v4243_v23, %v9637_v13  ;;  %v17264_v46 = vunpack.i.h.bf16 %v17245_v9  ;;  %v17270_v13 = vld [vmem:[#allocation153_spill] sm:$0xff] }
 0x301   : > { %9925 = vrot.lane.b32.xlu1 %v17263_v32, %s10585_s15  ;;  %v6144_v31 = vpack.c.bf16 %v6015_v39, %v6014_v17  ;;  %v4276_v49 = vsel %vm2338_vm2, %v4244_v38, %v9638_v0  ;;  %v9643_v25 = vunpack.i.h.bf16 %v9641_v2  ;;  %v9642_v60 = vunpack.i.l.bf16 %v9641_v2  ;;  %v9646_v59 = vpop.permute.xlu1 %9645  ;;  %v17271_v9 = vld [vmem:[#allocation137_spill] sm:$0xff]  ;;  %v17272_v0 = vld [vmem:[#allocation138_spill] sm:$0xff]  ;;  %v7955_v2 = vpop.f32.mrb[9].mxu0 }
 0x302   : > { %v4186_v7 = vsel %vm2338_vm2, %v17265_v3, %v17264_v46  ;;  %v17266_v19 = vunpack.i.l.bf16 %v17213_v53  ;;  %v17268_v12 = vunpack.i.h.bf16 %v17213_v53  ;;  %v9378_v38 = vunpack.i.h.bf16 %v17270_v13  ;;  %v14721_v32 = vld [vmem:[#allocation2 + $0x28f] sm:$0xff]  ;;  %v14723_v53 = vld [vmem:[#allocation2 + $0x297] sm:$0xff] }
 0x303   : > { %v17273_v23 = vpack.i.bf16 %v17271_v9, %v17272_v0  ;;  %6434 = vmatmul.mubr.bf16.gmra.mrb[84].mxu0 %v6144_v31  ;;  %v9377_v39 = vunpack.i.l.bf16 %v17270_v13  ;;  %v17274_v46 = vpack.c.bf16 %v14424_v50, %v14361_v11  ;;  %v17275_v31 = vpack.i.bf16 %v14428_v35, %v14426_v36  ;;  %v17278_v9 = vld [vmem:[#allocation163_spill] sm:$0xff]  ;;  %v9651_v17 = vpop.permute.xlu0 %9650  ;;  %v7957_v11 = vpop.f32.mrb[10].mxu0 }
 0x304   : > { %v14705_v33 = vsel %vm2371_vm3, %v4185_v40, %v17266_v19  ;;  %v14710_v18 = vsel %vm2371_vm3, %v4186_v7, %v17268_v12  ;;  %v4307_v3 = vsel %vm2371_vm3, %v4275_v10, %v9642_v60  ;;  %v4308_v7 = vsel %vm2371_vm3, %v4276_v49, %v9643_v25  ;;  %v17276_v19 = vld [vmem:[#allocation83_spill] sm:$0xff]  ;;  %v17280_v60 = vld [vmem:[#allocation162_spill] sm:$0xff] }
 0x305   : > { %17267 = vst [vmem:[#allocation114_spill] sm:$0xff] %v14705_v33  ;;  %17269 = vst [vmem:[#allocation64_spill] sm:$0xff] %v14710_v18  ;;  %9930 = vrot.lane.b32.xlu0 %v17273_v23, %s10586_s24  ;;  %4671 = vmatmul.mubr.bf16.gmra.mrb[124].mxu1 %v17274_v46  ;;  %v17277_v12 = vunpack.i.l.bf16 %v17276_v19  ;;  %v9648_v13 = vunpack.i.h.bf16 %v9646_v59  ;;  %v14741_v23 = vadd.f32 %v7955_v2, %v7954_v22  ;;  %v9647_v36 = vunpack.i.l.bf16 %v9646_v59  ;;  %v9656_v10 = vpop.permute.xlu1 %9655  ;;  %v4928_v22 = vld [vmem:[#allocation2 + $0xc9] sm:$0xff]  ;;  %v4927_v46 = vld [vmem:[#allocation2 + $0xc1] sm:$0xff] }
 0x306   : > { %9935 = vrot.lane.b32.xlu1 %v17275_v31, %s10586_s24  ;;  %v4350_v50 = vpack.c.bf16 %v4308_v7, %v4307_v3  ;;  %v9653_v35 = vunpack.i.h.bf16 %v9651_v17  ;;  %v7958_v31 = vpop.f32.mrb[11].mxu0  ;;  %v17279_v25 = vunpack.i.h.bf16 %v17276_v19  ;;  %v9652_v2 = vunpack.i.l.bf16 %v9651_v17 }
 0x307   : > { %v4187_v0 = vsel %vm2338_vm2, %v17278_v9, %v17277_v12  ;;  %v14751_v9 = vadd.f32 %v7958_v31, %v7957_v11  ;;  %v17281_v3 = vpack.i.bf16 %v14439_v47, %v14437_v37  ;;  %v17283_v7 = vunpack.i.h.bf16 %v17229_v63  ;;  %v8008_v11 = vpop.f32.mrb[36].mxu1  ;;  %v17286_v37 = vld [vmem:[#allocation109_spill] sm:$0xff]  ;;  %v17290_v63 = vld [vmem:[#allocation164_spill] sm:$0xff]  ;;  %v9661_v49 = vpop.permute.xlu0 %9660 }
 0x308   : > { %v4188_v12 = vsel %vm2338_vm2, %v17280_v60, %v17279_v25  ;;  %4678 = vmatprep.mubr.bf16.mxu1 %v4350_v50  ;;  %v14758_v59 = vsel %vm2371_vm3, %v4187_v0, %v9372_v34  ;;  %v9658_v25 = vunpack.i.h.bf16 %v9656_v10  ;;  %v9657_v60 = vunpack.i.l.bf16 %v9656_v10  ;;  %v17288_v50 = vld [vmem:[#allocation70_spill] sm:$0xff]  ;;  %v8009_v40 = vpop.f32.mrb[37].mxu1 }
 0x309   : > { %9940 = vrot.lane.b32.xlu0 %v17281_v3, %s10587_s21  ;;  %17282 = vst [vmem:[#allocation108_spill] sm:$0xff] %v14758_v59  ;;  %v14763_v19 = vsel %vm2371_vm3, %v4188_v12, %v17283_v7  ;;  %v17285_v17 = vpack.i.bf16 %v14512_v48, %v14510_v58  ;;  %v17287_v47 = vunpack.i.l.bf16 %v17286_v37  ;;  %v17289_v0 = vunpack.i.h.bf16 %v17286_v37  ;;  %v17291_v12 = vld [vmem:[#allocation131_spill] sm:$0xff]  ;;  %v17292_v7 = vld [vmem:[#allocation26_spill] sm:$0xff]  ;;  %v8011_v5 = vpop.f32.mrb[38].mxu1 }
 0x30a   : > { %17284 = vst [vmem:[#allocation147_spill] sm:$0xff] %v14763_v19  ;;  %v9438_v3 = vunpack.i.h.bf16 %v17291_v12  ;;  %v6049_v10 = vsel %vm529_vm0, %v17292_v7, %v9648_v13  ;;  %v5953_v37 = vsel %vm529_vm0, %v4928_v22, %v9653_v35  ;;  %v5952_v13 = vsel %vm529_vm0, %v4927_v46, %v9652_v2  ;;  %v8012_v30 = vpop.f32.mrb[39].mxu1  ;;  %v14951_v59 = vld [vmem:[#allocation2 + $0x2ef] sm:$0xff]  ;;  %v14953_v19 = vld [vmem:[#allocation2 + $0x2f7] sm:$0xff] }
 0x30b   : > { %9945 = vrot.lane.b32.xlu1 %v17285_v17, %s10587_s21  ;;  %v4189_v34 = vsel %vm2338_vm2, %v17288_v50, %v17287_v47  ;;  %v4190_v31 = vsel %vm2338_vm2, %v17290_v63, %v17289_v0  ;;  %v17295_v17 = vld [vmem:[#allocation25_spill] sm:$0xff]  ;;  %v9662_v50 = vunpack.i.l.bf16 %v9661_v49  ;;  %v14789_v0 = vadd.f32 %v8009_v40, %v8008_v11  ;;  %v9666_v63 = vpop.permute.xlu1 %9665 }
 0x30c   : > { %v14781_v58 = vsel %vm2371_vm3, %v4189_v34, %v9377_v39  ;;  %v14784_v48 = vsel %vm2371_vm3, %v4190_v31, %v9378_v38  ;;  %v6048_v47 = vsel %vm529_vm0, %v17295_v17, %v9647_v36  ;;  %v9663_v7 = vunpack.i.h.bf16 %v9661_v49  ;;  %v7960_v38 = vpop.f32.mrb[12].mxu0  ;;  %v17300_v49 = vld [vmem:[#allocation42_spill] sm:$0xff] }
 0x30d   : > { %17293 = vst [vmem:[#allocation142_spill] sm:$0xff] %v14781_v58  ;;  %17294 = vst [vmem:[#allocation121_spill] sm:$0xff] %v14784_v48  ;;  %v17296_v39 = vpack.i.bf16 %v14523_v26, %v14521_v42  ;;  %v9668_v34 = vunpack.i.h.bf16 %v9666_v63  ;;  %v9667_v31 = vunpack.i.l.bf16 %v9666_v63  ;;  %v9437_v36 = vunpack.i.l.bf16 %v17291_v12  ;;  %v7961_v35 = vpop.f32.mrb[13].mxu0  ;;  %v9671_v12 = vpop.permute.xlu0 %9670  ;;  %v4929_v48 = vld [vmem:[#allocation2 + $0xf1] sm:$0xff] }
 0x30e   : > { %v17297_v40 = vpack.c.bf16 %v14518_v16, %v14475_v27  ;;  %v14800_v22 = vadd.f32 %v8012_v30, %v8011_v5  ;;  %v17299_v46 = vpack.i.bf16 %v14535_v1, %v14525_v21  ;;  %v6080_v42 = vsel %vm2338_vm2, %v6048_v47, %v9657_v60  ;;  %v7963_v17 = vpop.f32.mrb[14].mxu0  ;;  %v14815_v47 = vld [vmem:[#allocation2 + $0x820] sm:$0xff] }
 0x30f   : > { %9950 = vrot.lane.b32.xlu0 %v17296_v39, %s10585_s15  ;;  %v6081_v26 = vsel %vm2338_vm2, %v6049_v10, %v9658_v25  ;;  %v4246_v2 = vsel %vm529_vm0, %v17300_v49, %v9438_v3  ;;  %v14810_v11 = vadd.f32 %v7961_v35, %v7960_v38  ;;  %v6112_v27 = vsel %vm2371_vm3, %v6080_v42, %v9667_v31  ;;  %v7964_v63 = vpop.f32.mrb[15].mxu0  ;;  %v9676_v21 = vpop.permute.xlu1 %9675  ;;  %v14817_v25 = vld [vmem:[#allocation2 + $0x828] sm:$0xff]  ;;  %v17302_v35 = vld [vmem:[#allocation41_spill] sm:$0xff] }
 0x310   : > { %4679 = vmatmul.mubr.bf16.gmra.mrb[128].mxu1 %v17297_v40  ;;  %17298 = vst [vmem:[#allocation103_spill] sm:$0xff] %v14800_v22  ;;  %9955 = vrot.lane.b32.xlu1 %v17299_v46, %s10585_s15  ;;  %v6113_v16 = vsel %vm2371_vm3, %v6081_v26, %v9668_v34  ;;  %v9673_v30 = vunpack.i.h.bf16 %v9671_v12  ;;  %v9672_v5 = vunpack.i.l.bf16 %v9671_v12  ;;  %v5984_v60 = vsel %vm2338_vm2, %v5952_v13, %v9662_v50  ;;  %v14826_v31 = vld [vmem:[#allocation2 + $0x541] sm:$0xff]  ;;  %v8014_v40 = vpop.f32.mrb[40].mxu1  ;;  %v14838_v42 = vld [vmem:[#allocation2 + $0x58f] sm:$0xff] }
 0x311   : > { %v6148_v1 = vpack.c.bf16 %v6113_v16, %v6112_v27  ;;  %v14819_v3 = vadd.f32 %v7964_v63, %v7963_v17  ;;  %v17301_v10 = vpack.i.bf16 %v14539_v44, %v14537_v43  ;;  %v9678_v39 = vunpack.i.h.bf16 %v9676_v21  ;;  %v14836_v44 = vld [vmem:[#allocation2 + $0x549] sm:$0xff]  ;;  %v8015_v26 = vpop.f32.mrb[41].mxu1  ;;  %v14848_v27 = vld [vmem:[#allocation2 + $0x2b8] sm:$0xff] }
 0x312   : > { %v9677_v38 = vunpack.i.l.bf16 %v9676_v21  ;;  %v5985_v34 = vsel %vm2338_vm2, %v5953_v37, %v9663_v7  ;;  %v4245_v50 = vsel %vm529_vm0, %v17302_v35, %v9437_v36  ;;  %v17303_v13 = vpack.i.bf16 %v14554_v14, %v14552_v55  ;;  %v14840_v37 = vld [vmem:[#allocation2 + $0x597] sm:$0xff]  ;;  %v9681_v7 = vpop.permute.xlu0 %9680  ;;  %v8017_v21 = vpop.f32.mrb[42].mxu1 }
 0x313   : > { %9960 = vrot.lane.b32.xlu0 %v17301_v10, %s10586_s24  ;;  %6441 = vmatprep.mubr.bf16.mxu0 %v6148_v1  ;;  %v6016_v46 = vsel %vm2371_vm3, %v5984_v60, %v9672_v5  ;;  %v6017_v43 = vsel %vm2371_vm3, %v5985_v34, %v9673_v30  ;;  %v4278_v55 = vsel %vm2338_vm2, %v4246_v2, %v9678_v39  ;;  %v14846_v17 = vld [vmem:[#allocation2 + $0x2b0] sm:$0xff]  ;;  %v9683_v16 = vunpack.i.h.bf16 %v9681_v7  ;;  %v14852_v63 = vpop.permute.xlu1 %9685  ;;  %v14854_v1 = vld [vmem:[#allocation2 + $0x841] sm:$0xff]  ;;  %v7966_v39 = vpop.f32.mrb[16].mxu0  ;;  %v14886_v2 = vld [vmem:[#allocation2 + $0x858] sm:$0xff] }
 0x314   : > { %9965 = vrot.lane.b32.xlu1 %v17303_v13, %s10586_s24  ;;  %v6147_v36 = vpack.c.bf16 %v6017_v43, %v6016_v46  ;;  %v4277_v12 = vsel %vm2338_vm2, %v4245_v50, %v9677_v38  ;;  %v9682_v30 = vunpack.i.l.bf16 %v9681_v7  ;;  %v14850_v5 = vadd.f32 %v8015_v26, %v8014_v40  ;;  %v14856_v60 = vld [vmem:[#allocation2 + $0x849] sm:$0xff]  ;;  %v8018_v38 = vpop.f32.mrb[43].mxu1  ;;  %v14868_v13 = vld [vmem:[#allocation2 + $0x2bf] sm:$0xff]  ;;  %v14888_v50 = vld [vmem:[#allocation2 + $0x571] sm:$0xff] }
 0x315   : > { %v17305_v10 = vpack.i.bf16 %v14566_v61, %v14564_v54  ;;  %v14870_v40 = vld [vmem:[#allocation2 + $0x2c7] sm:$0xff]  ;;  %v14872_v46 = vld [vmem:[#allocation2 + $0x850] sm:$0xff]  ;;  %v7967_v54 = vpop.f32.mrb[17].mxu0  ;;  %v14876_v61 = vadd.f32 %v8018_v38, %v8017_v21  ;;  %v17307_v7 = vpack.i.bf16 %v14576_v52, %v14574_v15  ;;  %v14890_v43 = vld [vmem:[#allocation2 + $0x579] sm:$0xff]  ;;  %v17319_v18 = vpack.i.bf16 %v14723_v53, %v14721_v32 }
 0x316   : > { %17304 = vst [vmem:[#allocation123_spill] sm:$0xff] %v14850_v5  ;;  %6442 = vmatmul.mubr.bf16.gmra.mrb[88].mxu0 %v6147_v36  ;;  %v4309_v26 = vsel %vm2371_vm3, %v4277_v12, %v9682_v30  ;;  %v4310_v36 = vsel %vm2371_vm3, %v4278_v55, %v9683_v16  ;;  %v17308_v21 = vld [vmem:[#allocation47_spill] sm:$0xff]  ;;  %v14894_v14 = vadd.f32 %v7967_v54, %v7966_v39  ;;  %v9691_v15 = vpop.permute.xlu0 %9690  ;;  %v7969_v52 = vpop.f32.mrb[18].mxu0  ;;  %v14896_v30 = vld [vmem:[#allocation2 + $0x5bf] sm:$0xff]  ;;  %v14898_v55 = vld [vmem:[#allocation2 + $0x5c7] sm:$0xff] }
 0x317   : > { %9970 = vrot.lane.b32.xlu0 %v17305_v10, %s10587_s21  ;;  %17306 = vst [vmem:[#allocation78_spill] sm:$0xff] %v14876_v61  ;;  %v9443_v38 = vunpack.i.h.bf16 %v17308_v21  ;;  %v9442_v34 = vunpack.i.l.bf16 %v17308_v21  ;;  %v4353_v12 = vpack.c.bf16 %v4310_v36, %v4309_v26  ;;  %v14900_v16 = vld [vmem:[#allocation2 + $0x2e0] sm:$0xff]  ;;  %v9687_v10 = vunpack.i.l.bf16 %v14852_v63  ;;  %v7970_v35 = vpop.f32.mrb[19].mxu0  ;;  %v9696_v49 = vpop.permute.xlu1 %9695  ;;  %v14908_v54 = vld [vmem:[#allocation2 + $0x2e8] sm:$0xff]  ;;  %v14910_v26 = vld [vmem:[#allocation2 + $0x871] sm:$0xff] }
 0x318   : > { %9975 = vrot.lane.b32.xlu1 %v17307_v7, %s10587_s21  ;;  %v9688_v7 = vunpack.i.h.bf16 %v14852_v63  ;;  %v14912_v36 = vld [vmem:[#allocation2 + $0x879] sm:$0xff]  ;;  %v9692_v8 = vunpack.i.l.bf16 %v9691_v15  ;;  %v14914_v58 = vadd.f32 %v7970_v35, %v7969_v52  ;;  %v17309_v63 = vpack.i.bf16 %v14610_v4, %v14608_v20  ;;  %v8020_v4 = vpop.f32.mrb[44].mxu1  ;;  %v17315_v52 = vld [vmem:[#allocation27_spill] sm:$0xff] }
 0x319   : > { %4686 = vmatprep.mubr.bf16.mxu1 %v4353_v12  ;;  %v9693_v61 = vunpack.i.h.bf16 %v9691_v15  ;;  %v9698_v5 = vunpack.i.h.bf16 %v9696_v49  ;;  %v9697_v22 = vunpack.i.l.bf16 %v9696_v49  ;;  %v17310_v35 = vpack.c.bf16 %v14604_v41, %v14598_v45  ;;  %v17312_v12 = vld [vmem:[#allocation46_spill] sm:$0xff]  ;;  %v17313_v15 = vld [vmem:[#allocation45_spill] sm:$0xff]  ;;  %v8021_v41 = vpop.f32.mrb[45].mxu1 }
 0x31a   : > { %v17311_v20 = vpack.i.bf16 %v14690_v57, %v14679_v56  ;;  %v14939_v49 = vsel %vm529_vm0, %v17313_v15, %v9442_v34  ;;  %v4930_v39 = vld [vmem:[#allocation2 + $0xf9] sm:$0xff]  ;;  %v9701_v45 = vpop.permute.xlu0 %9700  ;;  %v8023_v15 = vpop.f32.mrb[46].mxu1  ;;  %v17317_v56 = vpack.i.bf16 %v14694_v6, %v14692_v29 }
 0x31b   : > { %9980 = vrot.lane.b32.xlu0 %v17309_v63, %s10585_s15  ;;  %4687 = vmatmul.mubr.bf16.gmra.mrb[132].mxu1 %v17310_v35  ;;  %v14935_v63 = vsel %vm529_vm0, %v17312_v12, %v9443_v38  ;;  %v17314_v57 = vld [vmem:[#allocation28_spill] sm:$0xff]  ;;  %v6050_v38 = vsel %vm529_vm0, %v17315_v52, %v9687_v10  ;;  %v9702_v21 = vunpack.i.l.bf16 %v9701_v45  ;;  %v14949_v12 = vadd.f32 %v8021_v41, %v8020_v4  ;;  %v9706_v34 = vpop.permute.xlu1 %9705  ;;  %v8024_v52 = vpop.f32.mrb[47].mxu1 }
 0x31c   : > { %9985 = vrot.lane.b32.xlu1 %v17311_v20, %s10585_s15  ;;  %v6051_v20 = vsel %vm529_vm0, %v17314_v57, %v9688_v7  ;;  %v5954_v35 = vsel %vm529_vm0, %v4929_v48, %v9692_v8  ;;  %v9703_v33 = vunpack.i.h.bf16 %v9701_v45  ;;  %v7972_v7 = vpop.f32.mrb[20].mxu0  ;;  %v9708_v57 = vunpack.i.h.bf16 %v9706_v34 }
 0x31d   : > { %17316 = vst [vmem:[#allocation53_spill] sm:$0xff] %v14949_v12  ;;  %v9707_v10 = vunpack.i.l.bf16 %v9706_v34  ;;  %v5955_v4 = vsel %vm529_vm0, %v4930_v39, %v9693_v61  ;;  %v7973_v41 = vpop.f32.mrb[21].mxu0  ;;  %v14961_v12 = vadd.f32 %v8024_v52, %v8023_v15  ;;  %v6082_v8 = vsel %vm2338_vm2, %v6050_v38, %v9697_v22  ;;  %v14975_v15 = vld [vmem:[#allocation2 + $0x880] sm:$0xff]  ;;  %v14977_v34 = vld [vmem:[#allocation2 + $0x888] sm:$0xff] }
 0x31e   : > { %v6083_v48 = vsel %vm2338_vm2, %v6051_v20, %v9698_v5  ;;  %v14969_v29 = vadd.f32 %v7973_v41, %v7972_v7  ;;  %v9711_v6 = vpop.permute.xlu0 %9710  ;;  %v7975_v45 = vpop.f32.mrb[22].mxu0  ;;  %v5986_v38 = vsel %vm2338_vm2, %v5954_v35, %v9702_v21  ;;  %v14982_v7 = vld [vmem:[#allocation2 + $0x5a9] sm:$0xff]  ;;  %v17322_v41 = vpack.i.bf16 %v14817_v25, %v14815_v47  ;;  %v14997_v21 = vld [vmem:[#allocation2 + $0x318] sm:$0xff]  ;;  %v14999_v35 = vld [vmem:[#allocation2 + $0x8a1] sm:$0xff] }
 0x31f   : > { %9990 = vrot.lane.b32.xlu0 %v17317_v56, %s10586_s24  ;;  %17318 = vst [vmem:[#allocation151_spill] sm:$0xff] %v14961_v12  ;;  %v6114_v56 = vsel %vm2371_vm3, %v6082_v8, %v9707_v10  ;;  %v6115_v61 = vsel %vm2371_vm3, %v6083_v48, %v9708_v57  ;;  %v9713_v32 = vunpack.i.h.bf16 %v9711_v6  ;;  %v9712_v53 = vunpack.i.l.bf16 %v9711_v6  ;;  %v7976_v22 = vpop.f32.mrb[23].mxu0  ;;  %v9716_v5 = vpop.permute.xlu1 %9715  ;;  %v14984_v10 = vld [vmem:[#allocation2 + $0x5ef] sm:$0xff]  ;;  %v14986_v57 = vld [vmem:[#allocation2 + $0x5f7] sm:$0xff] }
 0x320   : > { %9995 = vrot.lane.b32.xlu1 %v17319_v18, %s10586_s24  ;;  %17320 = vst [vmem:[#allocation150_spill] sm:$0xff] %v14969_v29  ;;  %v14979_v18 = vld [vmem:[#allocation2 + $0x5a1] sm:$0xff]  ;;  %v6151_v20 = vpack.c.bf16 %v6115_v61, %v6114_v56  ;;  %v14988_v52 = vadd.f32 %v7976_v22, %v7975_v45  ;;  %v9718_v8 = vunpack.i.h.bf16 %v9716_v5  ;;  %v9717_v48 = vunpack.i.l.bf16 %v9716_v5  ;;  %v14995_v56 = vld [vmem:[#allocation2 + $0x310] sm:$0xff]  ;;  %v8026_v61 = vpop.f32.mrb[48].mxu1 }
 0x321   : > { %v5987_v6 = vsel %vm2338_vm2, %v5955_v4, %v9703_v33  ;;  %v17323_v45 = vpack.i.bf16 %v14836_v44, %v14826_v31  ;;  %v6018_v47 = vsel %vm2371_vm3, %v5986_v38, %v9712_v53  ;;  %v15009_v4 = vld [vmem:[#allocation2 + $0x8a9] sm:$0xff]  ;;  %v15011_v22 = vld [vmem:[#allocation2 + $0x31f] sm:$0xff]  ;;  %v8027_v39 = vpop.f32.mrb[49].mxu1  ;;  %v15049_v29 = vld [vmem:[#allocation2 + $0x657] sm:$0xff] }
 0x322   : > { %17321 = vst [vmem:[#allocation160_spill] sm:$0xff] %v14988_v52  ;;  %6449 = vmatprep.mubr.bf16.mxu0 %v6151_v20  ;;  %v6019_v25 = vsel %vm2371_vm3, %v5987_v6, %v9713_v32  ;;  %17324 = vst [vmem:[#allocation154_spill] sm:$0xff] %v15011_v22  ;;  %v15013_v5 = vld [vmem:[#allocation2 + $0x327] sm:$0xff]  ;;  %v4279_v31 = vsel %vm2338_vm2, %v14939_v49, %v9717_v48  ;;  %v4280_v44 = vsel %vm2338_vm2, %v14935_v63, %v9718_v8  ;;  %v15021_v53 = vld [vmem:[#allocation2 + $0x8b0] sm:$0xff]  ;;  %v8029_v52 = vpop.f32.mrb[50].mxu1 }
 0x323   : > { %10000 = vrot.lane.b32.xlu0 %v17322_v41, %s10587_s21  ;;  %17325 = vst [vmem:[#allocation152_spill] sm:$0xff] %v15013_v5  ;;  %v9721_v41 = vpop.permute.xlu0 %9720  ;;  %v6150_v12 = vpack.c.bf16 %v6019_v25, %v6018_v47  ;;  %v15023_v20 = vld [vmem:[#allocation2 + $0x8b8] sm:$0xff]  ;;  %v9726_v33 = vpop.permute.xlu1 %9725  ;;  %v17328_v8 = vpack.i.bf16 %v14840_v37, %v14838_v42  ;;  %v15045_v32 = vld [vmem:[#allocation2 + $0x627] sm:$0xff]  ;;  %17330 = vst [vmem:[#allocation76_spill] sm:$0xff] %v15049_v29 }
 0x324   : > { %10005 = vrot.lane.b32.xlu1 %v17323_v45, %s10587_s21  ;;  %v9723_v38 = vunpack.i.h.bf16 %v9721_v41  ;;  %v9722_v6 = vunpack.i.l.bf16 %v9721_v41  ;;  %v15025_v45 = vadd.f32 %v8027_v39, %v8026_v61  ;;  %v15029_v49 = vld [vmem:[#allocation2 + $0x5d1] sm:$0xff]  ;;  %v15031_v48 = vld [vmem:[#allocation2 + $0x5d9] sm:$0xff]  ;;  %v7978_v25 = vpop.f32.mrb[24].mxu0  ;;  %v8030_v39 = vpop.f32.mrb[51].mxu1  ;;  %v15063_v22 = vld [vmem:[#allocation2 + $0x687] sm:$0xff] }
 0x325   : > { %17327 = vst [vmem:[#allocation104_spill] sm:$0xff] %v15029_v49  ;;  %v15033_v63 = vld [vmem:[#allocation2 + $0x61f] sm:$0xff]  ;;  %6450 = vmatmul.mubr.bf16.gmra.mrb[92].mxu0 %v6150_v12  ;;  %v7979_v42 = vpop.f32.mrb[25].mxu0  ;;  %v15051_v37 = vadd.f32 %v8030_v39, %v8029_v52  ;;  %v17332_v12 = vpack.i.bf16 %v14848_v27, %v14846_v17  ;;  %17334 = vst [vmem:[#allocation105_spill] sm:$0xff] %v15063_v22  ;;  %v17335_v27 = vpack.i.bf16 %v14856_v60, %v14854_v1  ;;  %v4932_v47 = vld [vmem:[#allocation2 + $0x129] sm:$0xff] }
 0x326   : > { %17326 = vst [vmem:[#allocation106_spill] sm:$0xff] %v15025_v45  ;;  %v15047_v45 = vld [vmem:[#allocation2 + $0x64f] sm:$0xff]  ;;  %v4312_v41 = vsel %vm2371_vm3, %v4280_v44, %v9723_v38  ;;  %v15061_v61 = vld [vmem:[#allocation2 + $0x67f] sm:$0xff]  ;;  %v15065_v5 = vadd.f32 %v7979_v42, %v7978_v25  ;;  %v7981_v39 = vpop.f32.mrb[26].mxu0  ;;  %v9728_v44 = vunpack.i.h.bf16 %v9726_v33  ;;  %v9727_v38 = vunpack.i.l.bf16 %v9726_v33 }
 0x327   : > { %10010 = vrot.lane.b32.xlu0 %v17328_v8, %s10585_s15  ;;  %17329 = vst [vmem:[#allocation128_spill] sm:$0xff] %v15047_v45  ;;  %17331 = vst [vmem:[#allocation133_spill] sm:$0xff] %v15051_v37  ;;  %v4311_v8 = vsel %vm2371_vm3, %v4279_v31, %v9722_v6  ;;  %v9731_v52 = vpop.permute.xlu0 %9730  ;;  %v15070_v17 = vld [vmem:[%s16270_s6] ss:$0 sm:$0xff]  ;;  %v7982_v6 = vpop.f32.mrb[27].mxu0  ;;  %v17336_v25 = vpack.c.bf16 %v14639_v24, %v14616_v28  ;;  %v17338_v60 = vld [vmem:[#allocation118_spill] sm:$0xff] }
 0x328   : > { %10015 = vrot.lane.b32.xlu1 %v17332_v12, %s10585_s15  ;;  %17333 = vst [vmem:[#allocation132_spill] sm:$0xff] %v15061_v61  ;;  %v4356_v37 = vpack.c.bf16 %v4312_v41, %v4311_v8  ;;  %v9736_v12 = vpop.permute.xlu1 %9735  ;;  %v9733_v42 = vunpack.i.h.bf16 %v9731_v52  ;;  %v15080_v8 = vadd.f32 %v7982_v6, %v7981_v39  ;;  %v17337_v39 = vpack.i.bf16 %v14870_v40, %v14868_v13  ;;  %v8032_v6 = vpop.f32.mrb[52].mxu1  ;;  %v17340_v40 = vld [vmem:[#allocation30_spill] sm:$0xff] }
 0x329   : > { %v9737_v31 = vunpack.i.l.bf16 %v9736_v12  ;;  %v9738_v49 = vunpack.i.h.bf16 %v9736_v12  ;;  %v2790_v1 = vadd.f32 %v14667_v51, %v15070_v17  ;;  %v9732_v12 = vunpack.i.l.bf16 %v9731_v52  ;;  %v8033_v28 = vpop.f32.mrb[53].mxu1 }
 0x32a   : > { %4694 = vmatprep.mubr.bf16.mxu1 %v4356_v37  ;;  %v2782_v37 = vadd.f32 %v17338_v60, %v15070_v17  ;;  %v15105_v24 = vadd.f32 %v14672_v62, %v15070_v17  ;;  %v15109_v13 = vadd.f32 %v14741_v23, %v15070_v17  ;;  %v15113_v51 = vadd.f32 %v14751_v9, %v15070_v17  ;;  %v4931_v60 = vld [vmem:[#allocation2 + $0x121] sm:$0xff]  ;;  %v8035_v62 = vpop.f32.mrb[54].mxu1 }
 0x32b   : > { %10020 = vrot.lane.b32.xlu0 %v17335_v27, %s10586_s24  ;;  %4695 = vmatmul.mubr.bf16.gmra.mrb[136].mxu1 %v17336_v25  ;;  %v17339_v27 = vld [vmem:[#allocation140_spill] sm:$0xff]  ;;  %v9741_v41 = vpop.permute.xlu0 %9740  ;;  %v6053_v25 = vsel %vm529_vm0, %v17340_v40, %v9728_v44  ;;  %v15123_v22 = vadd.f32 %v14789_v0, %v15070_v17  ;;  %v5957_v23 = vsel %vm529_vm0, %v4932_v47, %v9733_v42  ;;  %v7984_v44 = vpop.f32.mrb[28].mxu0 }
 0x32c   : > { %10025 = vrot.lane.b32.xlu1 %v17337_v39, %s10586_s24  ;;  %v15101_v33 = vadd.f32 %v17339_v27, %v15070_v17  ;;  %v17341_v39 = vld [vmem:[#allocation29_spill] sm:$0xff]  ;;  %v15119_v27 = vadd.f32 %v8033_v28, %v8032_v6  ;;  %v9746_v61 = vpop.permute.xlu1 %9745  ;;  %v17343_v9 = vpack.i.bf16 %v14886_v2, %v14872_v46  ;;  %v9743_v28 = vunpack.i.h.bf16 %v9741_v41 }
 0x32d   : > { %v6052_v52 = vsel %vm529_vm0, %v17341_v39, %v9727_v38  ;;  %v9748_v40 = vunpack.i.h.bf16 %v9746_v61  ;;  %v9747_v45 = vunpack.i.l.bf16 %v9746_v61  ;;  %v8036_v38 = vpop.f32.mrb[55].mxu1  ;;  %v9742_v39 = vunpack.i.l.bf16 %v9741_v41 }
 0x32e   : > { %17342 = vst [vmem:[#allocation97_spill] sm:$0xff] %v15119_v27  ;;  %v6084_v6 = vsel %vm2338_vm2, %v6052_v52, %v9737_v31  ;;  %v7985_v27 = vpop.f32.mrb[29].mxu0  ;;  %v15131_v29 = vadd.f32 %v8036_v38, %v8035_v62  ;;  %v17345_v0 = vpack.i.bf16 %v14890_v43, %v14888_v50  ;;  %v6085_v47 = vsel %vm2338_vm2, %v6053_v25, %v9738_v49 }
 0x32f   : > { %10030 = vrot.lane.b32.xlu0 %v17343_v9, %s10587_s21  ;;  %v5956_v2 = vsel %vm529_vm0, %v4931_v60, %v9732_v12  ;;  %v15139_v46 = vadd.f32 %v7985_v27, %v7984_v44  ;;  %v9751_v61 = vpop.permute.xlu0 %9750  ;;  %v7987_v42 = vpop.f32.mrb[30].mxu0  ;;  %v6116_v31 = vsel %vm2371_vm3, %v6084_v6, %v9747_v45  ;;  %v6117_v41 = vsel %vm2371_vm3, %v6085_v47, %v9748_v40  ;;  %v17347_v60 = vld [vmem:[#allocation56_spill] sm:$0xff] }
 0x330   : > { %17344 = vst [vmem:[#allocation77_spill] sm:$0xff] %v15131_v29  ;;  %10035 = vrot.lane.b32.xlu1 %v17345_v0, %s10587_s21  ;;  %v9753_v52 = vunpack.i.h.bf16 %v9751_v61  ;;  %v9752_v62 = vunpack.i.l.bf16 %v9751_v61  ;;  %v7988_v9 = vpop.f32.mrb[31].mxu0  ;;  %v9756_v38 = vpop.permute.xlu1 %9755  ;;  %v6154_v29 = vpack.c.bf16 %v6117_v41, %v6116_v31  ;;  %v15145_v50 = vadd.f32 %v14810_v11, %v15070_v17 }
 0x331   : > { %v15147_v43 = vadd.f32 %v7988_v9, %v7987_v42  ;;  %v17346_v49 = vpack.i.bf16 %v14898_v55, %v14896_v30  ;;  %v9758_v12 = vunpack.i.h.bf16 %v9756_v38  ;;  %v9757_v45 = vunpack.i.l.bf16 %v9756_v38  ;;  %v8398_v44 = vpop.f32.mrb[56].mxu1  ;;  %v17349_v55 = vld [vmem:[#allocation55_spill] sm:$0xff] }
 0x332   : > { %v15155_v25 = vadd.f32 %v14819_v3, %v15070_v17  ;;  %v4250_v27 = vsel %vm529_vm0, %v17347_v60, %v9753_v52  ;;  %v17348_v11 = vpack.i.bf16 %v14908_v54, %v14900_v16  ;;  %6457 = vmatprep.mubr.bf16.mxu0 %v6154_v29  ;;  %v5988_v40 = vsel %vm2338_vm2, %v5956_v2, %v9742_v39  ;;  %v2942_v47 = vpop.f32.mrb[57].mxu1 }
 0x333   : > { %10040 = vrot.lane.b32.xlu0 %v17346_v49, %s10585_s15  ;;  %v5989_v30 = vsel %vm2338_vm2, %v5957_v23, %v9743_v28  ;;  %v4249_v6 = vsel %vm529_vm0, %v17349_v55, %v9752_v62  ;;  %v9761_v0 = vpop.permute.xlu0 %9760  ;;  %v2951_v3 = vadd.f32 %v8398_v44, %v2790_v1  ;;  %v6020_v61 = vsel %vm2371_vm3, %v5988_v40, %v9757_v45  ;;  %v8399_v52 = vpop.f32.mrb[58].mxu1 }
 0x334   : > { %10045 = vrot.lane.b32.xlu1 %v17348_v11, %s10585_s15  ;;  %v6021_v42 = vsel %vm2371_vm3, %v5989_v30, %v9758_v12  ;;  %v9763_v31 = vunpack.i.h.bf16 %v9761_v0  ;;  %v9762_v41 = vunpack.i.l.bf16 %v9761_v0  ;;  %v2943_v16 = vadd.f32 %v2942_v47, %v2782_v37  ;;  %v9766_v54 = vpop.permute.xlu1 %9765  ;;  %v7990_v28 = vpop.f32.mrb[32].mxu0 }
 0x335   : > { %v6153_v29 = vpack.c.bf16 %v6021_v42, %v6020_v61  ;;  %v3071_v9 = vmax.f32 %v2951_v3, 0.0  ;;  %v17350_v23 = vpack.i.bf16 %v14912_v36, %v14910_v26  ;;  %v9768_v39 = vunpack.i.h.bf16 %v9766_v54  ;;  %v2945_v62 = vpop.f32.mrb[59].mxu1  ;;  %v7991_v49 = vpop.f32.mrb[33].mxu0 }
 0x336   : > { %v9767_v1 = vunpack.i.l.bf16 %v9766_v54  ;;  %v2954_v2 = vadd.f32 %v8399_v52, %v15105_v24  ;;  %v3069_v38 = vmax.f32 %v2943_v16, 0.0  ;;  %v2946_v12 = vadd.f32 %v2945_v62, %v15101_v33  ;;  %v7993_v24 = vpop.f32.mrb[34].mxu0  ;;  %v4933_v16 = vld [vmem:[#allocation2 + $0x151] sm:$0xff]  ;;  %v4934_v54 = vld [vmem:[#allocation2 + $0x159] sm:$0xff] }
 0x337   : > { %10050 = vrot.lane.b32.xlu0 %v17350_v23, %s10586_s24  ;;  %v17351_v37 = vpack.i.bf16 %v14953_v19, %v14951_v59  ;;  %6458 = vmatmul.mubr.bf16.gmra.mrb[96].mxu0 %v6153_v29  ;;  %v4281_v45 = vsel %vm2338_vm2, %v4249_v6, %v9762_v41  ;;  %v4282_v26 = vsel %vm2338_vm2, %v4250_v27, %v9763_v31  ;;  %v9771_v44 = vpop.permute.xlu0 %9770  ;;  %v7994_v47 = vpop.f32.mrb[35].mxu0  ;;  %v17358_v62 = vld [vmem:[#allocation160_spill] sm:$0xff] }
 0x338   : > { %v15181_v36 = vadd.f32 %v7991_v49, %v7990_v28  ;;  %v3072_v11 = vmax.f32 %v2954_v2, 0.0  ;;  %v4313_v40 = vsel %vm2371_vm3, %v4281_v45, %v9767_v1  ;;  %v4314_v30 = vsel %vm2371_vm3, %v4282_v26, %v9768_v39  ;;  %v9776_v59 = vpop.permute.xlu1 %9775  ;;  %v8402_v29 = vpop.f32.mrb[60].mxu1  ;;  %v17354_v39 = vld [vmem:[#allocation64_spill] sm:$0xff]  ;;  %v17355_v1 = vld [vmem:[#allocation114_spill] sm:$0xff] }
 0x339   : > { %10055 = vrot.lane.b32.xlu1 %v17351_v37, %s10586_s24  ;;  %v9773_v33 = vunpack.i.h.bf16 %v9771_v44  ;;  %v9772_v0 = vunpack.i.l.bf16 %v9771_v44  ;;  %v3070_v3 = vmax.f32 %v2946_v12, 0.0  ;;  %v4359_v19 = vpack.c.bf16 %v4314_v30, %v4313_v40  ;;  %v2958_v28 = vpop.f32.mrb[61].mxu1  ;;  %v7996_v30 = vpop.f32.mrb[36].mxu0 }
 0x33a   : > { %v15185_v61 = vpack.i.bf16 %v3072_v11, %v3071_v9  ;;  %v15187_v6 = vadd.f32 %v7994_v47, %v7993_v24  ;;  %v17352_v27 = vpack.i.bf16 %v14977_v34, %v14975_v15  ;;  %v9778_v42 = vunpack.i.h.bf16 %v9776_v59  ;;  %v8403_v26 = vpop.f32.mrb[62].mxu1  ;;  %v17360_v11 = vld [vmem:[#allocation32_spill] sm:$0xff] }
 0x33b   : > { %v9777_v31 = vunpack.i.l.bf16 %v9776_v59  ;;  %v15193_v41 = vpack.i.bf16 %v3070_v3, %v3069_v38  ;;  %v17353_v52 = vpack.i.bf16 %v14982_v7, %v14979_v18  ;;  %4702 = vmatprep.mubr.bf16.mxu1 %v4359_v19  ;;  %v2814_v9 = vadd.f32 %v14894_v14, %v15070_v17  ;;  %v9781_v34 = vpop.permute.xlu0 %9780  ;;  %v17357_v18 = vld [vmem:[#allocation150_spill] sm:$0xff]  ;;  %v2961_v3 = vpop.f32.mrb[63].mxu1 }
 0x33c   : > { %10060 = vrot.lane.b32.xlu0 %v17352_v27, %s10587_s21  ;;  %v15203_v15 = vadd.f32 %v14914_v58, %v15070_v17  ;;  %v2967_v23 = vadd.f32 %v8402_v29, %v15145_v50  ;;  %v17356_v2 = vpack.c.bf16 %v17354_v39, %v17355_v1  ;;  %v2822_v7 = vadd.f32 %v17357_v18, %v15070_v17  ;;  %v17359_v58 = vld [vmem:[#allocation31_spill] sm:$0xff]  ;;  %v9786_v45 = vpop.permute.xlu1 %9785  ;;  %v7997_v19 = vpop.f32.mrb[37].mxu0 }
 0x33d   : > { %10065 = vrot.lane.b32.xlu1 %v17353_v52, %s10587_s21  ;;  %v2825_v38 = vadd.f32 %v17358_v62, %v15070_v17  ;;  %v15215_v14 = vadd.f32 %v15065_v5, %v15070_v17  ;;  %v6054_v49 = vsel %vm529_vm0, %v17359_v58, %v9772_v0  ;;  %v9783_v12 = vunpack.i.h.bf16 %v9781_v34  ;;  %v7999_v52 = vpop.f32.mrb[38].mxu0  ;;  %v17364_v58 = vld [vmem:[#allocation152_spill] sm:$0xff] }
 0x33e   : > { %4703 = vmatmul.mubr.bf16.gmra.mrb[140].mxu1 %v17356_v2  ;;  %v9782_v50 = vunpack.i.l.bf16 %v9781_v34  ;;  %v2959_v37 = vadd.f32 %v2958_v28, %v15109_v13  ;;  %v6055_v44 = vsel %vm529_vm0, %v17360_v11, %v9773_v33  ;;  %v5959_v24 = vsel %vm529_vm0, %v4934_v54, %v9778_v42  ;;  %v8000_v28 = vpop.f32.mrb[39].mxu0  ;;  %v17367_v11 = vld [vmem:[#allocation58_spill] sm:$0xff] }
 0x33f   : > { %v5958_v40 = vsel %vm529_vm0, %v4933_v16, %v9777_v31  ;;  %v17361_v5 = vpack.i.bf16 %v14986_v57, %v14984_v10  ;;  %v2970_v0 = vadd.f32 %v8403_v26, %v15155_v25  ;;  %v3075_v47 = vmax.f32 %v2967_v23, 0.0  ;;  %v9791_v54 = vpop.permute.xlu0 %9790 }
 0x340   : > { %v9788_v13 = vunpack.i.h.bf16 %v9786_v45  ;;  %v9787_v59 = vunpack.i.l.bf16 %v9786_v45  ;;  %v2962_v27 = vadd.f32 %v2961_v3, %v15113_v51  ;;  %v17362_v33 = vpack.i.bf16 %v14997_v21, %v14995_v56  ;;  %v9796_v39 = vpop.permute.xlu1 %9795  ;;  %v17368_v3 = vld [vmem:[#allocation57_spill] sm:$0xff] }
 0x341   : > { %10070 = vrot.lane.b32.xlu0 %v17361_v5, %s10585_s15  ;;  %v3073_v42 = vmax.f32 %v2959_v37, 0.0  ;;  %v15234_v31 = vadd.f32 %v7997_v19, %v7996_v30  ;;  %v3076_v16 = vmax.f32 %v2970_v0, 0.0  ;;  %v6086_v25 = vsel %vm2338_vm2, %v6054_v49, %v9782_v50  ;;  %v17365_v49 = vld [vmem:[#allocation154_spill] sm:$0xff]  ;;  %v8406_v37 = vpop.f32.mrb[64].mxu1 }
 0x342   : > { %10075 = vrot.lane.b32.xlu1 %v17362_v33, %s10585_s15  ;;  %v9793_v29 = vunpack.i.h.bf16 %v9791_v54  ;;  %v9792_v34 = vunpack.i.l.bf16 %v9791_v54  ;;  %v3074_v23 = vmax.f32 %v2962_v27, 0.0  ;;  %v6087_v51 = vsel %vm2338_vm2, %v6055_v44, %v9783_v12  ;;  %v2974_v5 = vpop.f32.mrb[65].mxu1 }
 0x343   : > { %v15238_v1 = vpack.i.bf16 %v3076_v16, %v3075_v47  ;;  %v15240_v2 = vadd.f32 %v8000_v28, %v7999_v52  ;;  %v17363_v56 = vpack.i.bf16 %v15009_v4, %v14999_v35  ;;  %v9798_v21 = vunpack.i.h.bf16 %v9796_v39  ;;  %v9801_v4 = vpop.permute.xlu0 %9800  ;;  %v8407_v16 = vpop.f32.mrb[66].mxu1 }
 0x344   : > { %v9797_v18 = vunpack.i.l.bf16 %v9796_v39  ;;  %v15246_v62 = vpack.i.bf16 %v3074_v23, %v3073_v42  ;;  %v17366_v50 = vpack.i.bf16 %v17364_v58, %v17365_v49  ;;  %v6118_v12 = vsel %vm2371_vm3, %v6086_v25, %v9792_v34  ;;  %v9806_v42 = vpop.permute.xlu1 %9805 }
 0x345   : > { %10080 = vrot.lane.b32.xlu0 %v17363_v56, %s10586_s24  ;;  %v6119_v45 = vsel %vm2371_vm3, %v6087_v51, %v9793_v29  ;;  %v5990_v26 = vsel %vm2338_vm2, %v5958_v40, %v9787_v59  ;;  %v4252_v35 = vsel %vm529_vm0, %v17367_v11, %v9798_v21  ;;  %v2983_v44 = vadd.f32 %v8406_v37, %v2822_v7  ;;  %v8002_v59 = vpop.f32.mrb[40].mxu0 }
 0x346   : > { %10085 = vrot.lane.b32.xlu1 %v17366_v50, %s10586_s24  ;;  %v6157_v30 = vpack.c.bf16 %v6119_v45, %v6118_v12  ;;  %v5991_v0 = vsel %vm2338_vm2, %v5959_v24, %v9788_v13  ;;  %v4251_v47 = vsel %vm529_vm0, %v17368_v3, %v9797_v18  ;;  %v9803_v19 = vunpack.i.h.bf16 %v9801_v4  ;;  %v2977_v24 = vpop.f32.mrb[67].mxu1  ;;  %v8003_v29 = vpop.f32.mrb[41].mxu0 }
 0x347   : > { %v9802_v27 = vunpack.i.l.bf16 %v9801_v4  ;;  %v2975_v33 = vadd.f32 %v2974_v5, %v2814_v9  ;;  %v3079_v54 = vmax.f32 %v2983_v44, 0.0  ;;  %v17369_v40 = vpack.i.bf16 %v15023_v20, %v15021_v53  ;;  %v17370_v9 = vld [vmem:[#allocation104_spill] sm:$0xff]  ;;  %v9811_v51 = vpop.permute.xlu0 %9810  ;;  %v8005_v56 = vpop.f32.mrb[42].mxu0 }
 0x348   : > { %6465 = vmatprep.mubr.bf16.mxu0 %v6157_v30  ;;  %v9808_v7 = vunpack.i.h.bf16 %v9806_v42  ;;  %v9807_v52 = vunpack.i.l.bf16 %v9806_v42  ;;  %v2986_v25 = vadd.f32 %v8407_v16, %v2825_v38  ;;  %v2978_v34 = vadd.f32 %v2977_v24, %v15203_v15  ;;  %v8006_v49 = vpop.f32.mrb[43].mxu0  ;;  %v9816_v50 = vpop.permute.xlu1 %9815 }
 0x349   : > { %10090 = vrot.lane.b32.xlu0 %v17369_v40, %s10587_s21  ;;  %v3077_v13 = vmax.f32 %v2975_v33, 0.0  ;;  %v17371_v23 = vpack.i.bf16 %v15031_v48, %v17370_v9  ;;  %v6022_v28 = vsel %vm2371_vm3, %v5990_v26, %v9802_v27  ;;  %v6023_v53 = vsel %vm2371_vm3, %v5991_v0, %v9803_v19  ;;  %v8410_v4 = vpop.f32.mrb[68].mxu1  ;;  %v4935_v40 = vld [vmem:[#allocation2 + $0x181] sm:$0xff] }
 0x34a   : > { %v15271_v20 = vadd.f32 %v8003_v29, %v8002_v59  ;;  %v3080_v39 = vmax.f32 %v2986_v25, 0.0  ;;  %v6156_v38 = vpack.c.bf16 %v6023_v53, %v6022_v28  ;;  %v4283_v21 = vsel %vm2338_vm2, %v4251_v47, %v9807_v52  ;;  %v2990_v19 = vpop.f32.mrb[69].mxu1  ;;  %v15302_v25 = vpop.f32.mrb[44].mxu0  ;;  %v17372_v29 = vld [vmem:[#allocation147_spill] sm:$0xff]  ;;  %v17375_v28 = vld [vmem:[#allocation34_spill] sm:$0xff]  ;;  %v17376_v53 = vld [vmem:[#allocation33_spill] sm:$0xff] }
 0x34b   : > { %10095 = vrot.lane.b32.xlu1 %v17371_v23, %s10587_s21  ;;  %v9813_v18 = vunpack.i.h.bf16 %v9811_v51  ;;  %v9812_v58 = vunpack.i.l.bf16 %v9811_v51  ;;  %v3078_v15 = vmax.f32 %v2978_v34, 0.0  ;;  %v4284_v48 = vsel %vm2338_vm2, %v4252_v35, %v9808_v7  ;;  %v8411_v16 = vpop.f32.mrb[70].mxu1  ;;  %v15307_v23 = vpop.f32.mrb[45].mxu0 }
 0x34c   : > { %v15275_v37 = vpack.i.bf16 %v3080_v39, %v3079_v54  ;;  %v15277_v12 = vadd.f32 %v8006_v49, %v8005_v56  ;;  %6466 = vmatmul.mubr.bf16.gmra.mrb[100].mxu0 %v6156_v38  ;;  %v2838_v45 = vadd.f32 %v15139_v46, %v15070_v17  ;;  %v2841_v5 = vadd.f32 %v15147_v43, %v15070_v17  ;;  %v9826_v42 = vpop.permute.xlu1 %9825  ;;  %v2993_v59 = vpop.f32.mrb[71].mxu1  ;;  %v4936_v39 = vld [vmem:[#allocation2 + $0x189] sm:$0xff] }
 0x34d   : > { %10100 = vrot.lane.b32.xlu0 %v15193_v41, %s10585_s15  ;;  %v15283_v26 = vpack.i.bf16 %v3078_v15, %v3077_v13  ;;  %v4315_v44 = vsel %vm2371_vm3, %v4283_v21, %v9812_v58  ;;  %v4316_v35 = vsel %vm2371_vm3, %v4284_v48, %v9813_v18  ;;  %v9818_v30 = vunpack.i.h.bf16 %v9816_v50  ;;  %v9821_v41 = vpop.permute.xlu0 %9820  ;;  %v15313_v38 = vpop.f32.mrb[46].mxu0 }
 0x34e   : > { %v9817_v0 = vunpack.i.l.bf16 %v9816_v50  ;;  %v2999_v47 = vadd.f32 %v8410_v4, %v2838_v45  ;;  %v4362_v27 = vpack.c.bf16 %v4316_v35, %v4315_v44  ;;  %v9822_v46 = vunpack.i.l.bf16 %v9821_v41  ;;  %v15316_v50 = vpop.f32.mrb[47].mxu0 }
 0x34f   : > { %10105 = vrot.lane.b32.xlu1 %v15185_v61, %s10585_s15  ;;  %v2991_v33 = vadd.f32 %v2990_v19, %v15215_v14  ;;  %v2833_v61 = vadd.f32 %v15080_v8, %v15070_v17  ;;  %v2846_v54 = vadd.f32 %v15181_v36, %v15070_v17  ;;  %v3002_v43 = vadd.f32 %v8411_v16, %v2841_v5  ;;  %v17373_v36 = vld [vmem:[#allocation108_spill] sm:$0xff] }
 0x350   : > { %4710 = vmatprep.mubr.bf16.mxu1 %v4362_v27  ;;  %v2854_v7 = vadd.f32 %v15234_v31, %v15070_v17  ;;  %v2857_v52 = vadd.f32 %v15240_v2, %v15070_v17  ;;  %v2849_v14 = vadd.f32 %v15187_v6, %v15070_v17  ;;  %v9823_v24 = vunpack.i.h.bf16 %v9821_v41  ;;  %v9836_v49 = vpop.permute.xlu1 %9835 }
 0x351   : > { %v9828_v8 = vunpack.i.h.bf16 %v9826_v42  ;;  %v9827_v13 = vunpack.i.l.bf16 %v9826_v42  ;;  %v17374_v34 = vpack.c.bf16 %v17372_v29, %v17373_v36  ;;  %v2994_v9 = vadd.f32 %v2993_v59, %v2833_v61  ;;  %v9831_v56 = vpop.permute.xlu0 %9830 }
 0x352   : > { %v6057_v31 = vsel %vm529_vm0, %v17375_v28, %v9818_v30  ;;  %v6056_v2 = vsel %vm529_vm0, %v17376_v53, %v9817_v0  ;;  %v3083_v6 = vmax.f32 %v2999_v47, 0.0  ;;  %v3084_v51 = vmax.f32 %v3002_v43, 0.0  ;;  %v8414_v30 = vpop.f32.mrb[72].mxu1 }
 0x353   : > { %4711 = vmatmul.mubr.bf16.gmra.mrb[144].mxu1 %v17374_v34  ;;  %v5960_v21 = vsel %vm529_vm0, %v4935_v40, %v9822_v46  ;;  %v3081_v18 = vmax.f32 %v2991_v33, 0.0  ;;  %v9832_v58 = vunpack.i.l.bf16 %v9831_v56  ;;  %v3082_v15 = vmax.f32 %v2994_v9, 0.0  ;;  %v3006_v27 = vpop.f32.mrb[73].mxu1  ;;  %v17377_v9 = vld [vmem:[#allocation60_spill] sm:$0xff] }
 0x354   : > { %v15318_v48 = vpack.i.bf16 %v3084_v51, %v3083_v6  ;;  %v9833_v45 = vunpack.i.h.bf16 %v9831_v56  ;;  %v9838_v4 = vunpack.i.h.bf16 %v9836_v49  ;;  %v9837_v44 = vunpack.i.l.bf16 %v9836_v49  ;;  %v9846_v43 = vpop.permute.xlu1 %9845  ;;  %v8415_v59 = vpop.f32.mrb[74].mxu1 }
 0x355   : > { %v5961_v35 = vsel %vm529_vm0, %v4936_v39, %v9823_v24  ;;  %v15321_v5 = vpack.i.bf16 %v3082_v15, %v3081_v18  ;;  %v6088_v0 = vsel %vm2338_vm2, %v6056_v2, %v9827_v13  ;;  %v6089_v41 = vsel %vm2338_vm2, %v6057_v31, %v9828_v8  ;;  %v9841_v47 = vpop.permute.xlu0 %9840  ;;  %v3009_v34 = vpop.f32.mrb[75].mxu1  ;;  %v17378_v31 = vld [vmem:[#allocation59_spill] sm:$0xff] }
 0x356   : > { %v3015_v19 = vadd.f32 %v8414_v30, %v2854_v7  ;;  %v6120_v46 = vsel %vm2371_vm3, %v6088_v0, %v9837_v44  ;;  %v6121_v33 = vsel %vm2371_vm3, %v6089_v41, %v9838_v4  ;;  %v5992_v42 = vsel %vm2338_vm2, %v5960_v21, %v9832_v58  ;;  %v15329_v7 = vpop.f32.mrb[48].mxu0  ;;  %v17380_v0 = vld [vmem:[#allocation103_spill] sm:$0xff] }
 0x357   : > { %v9843_v16 = vunpack.i.h.bf16 %v9841_v47  ;;  %v9842_v61 = vunpack.i.l.bf16 %v9841_v47  ;;  %v3007_v40 = vadd.f32 %v3006_v27, %v2846_v54  ;;  %v6160_v24 = vpack.c.bf16 %v6121_v33, %v6120_v46  ;;  %v15335_v54 = vpop.f32.mrb[49].mxu0  ;;  %v8418_v46 = vpop.f32.mrb[76].mxu1 }
 0x358   : > { %v9848_v29 = vunpack.i.h.bf16 %v9846_v43  ;;  %v9847_v36 = vunpack.i.l.bf16 %v9846_v43  ;;  %v3018_v13 = vadd.f32 %v8415_v59, %v2857_v52  ;;  %v5993_v8 = vsel %vm2338_vm2, %v5961_v35, %v9833_v45  ;;  %v15339_v18 = vpop.f32.mrb[50].mxu0  ;;  %v9856_v45 = vpop.permute.xlu1 %9855 }
 0x359   : > { %v4254_v28 = vsel %vm529_vm0, %v17377_v9, %v9843_v16  ;;  %v4253_v53 = vsel %vm529_vm0, %v17378_v31, %v9842_v61  ;;  %v3087_v2 = vmax.f32 %v3015_v19, 0.0  ;;  %v3010_v39 = vadd.f32 %v3009_v34, %v2849_v14  ;;  %6473 = vmatprep.mubr.bf16.mxu0 %v6160_v24  ;;  %v9851_v56 = vpop.permute.xlu0 %9850  ;;  %v15341_v44 = vpop.f32.mrb[51].mxu0 }
 0x35a   : > { %v3085_v6 = vmax.f32 %v3007_v40, 0.0  ;;  %v3088_v51 = vmax.f32 %v3018_v13, 0.0  ;;  %v6024_v52 = vsel %vm2371_vm3, %v5992_v42, %v9847_v36  ;;  %v6025_v21 = vsel %vm2371_vm3, %v5993_v8, %v9848_v29  ;;  %v3022_v61 = vpop.f32.mrb[77].mxu1 }
 0x35b   : > { %v9853_v58 = vunpack.i.h.bf16 %v9851_v56  ;;  %v9852_v15 = vunpack.i.l.bf16 %v9851_v56  ;;  %v3086_v49 = vmax.f32 %v3010_v39, 0.0  ;;  %v6159_v4 = vpack.c.bf16 %v6025_v21, %v6024_v52  ;;  %v8419_v34 = vpop.f32.mrb[78].mxu1  ;;  %v4937_v56 = vld [vmem:[#allocation2 + $0x1b1] sm:$0xff] }
 0x35c   : > { %v15343_v14 = vpack.i.bf16 %v3088_v51, %v3087_v2  ;;  %v9858_v35 = vunpack.i.h.bf16 %v9856_v45  ;;  %v9857_v30 = vunpack.i.l.bf16 %v9856_v45  ;;  %v2873_v41 = vadd.f32 %v17380_v0, %v15070_v17  ;;  %v9866_v13 = vpop.permute.xlu1 %9865  ;;  %v15364_v51 = vpop.f32.mrb[52].mxu0 }
 0x35d   : > { %v4285_v47 = vsel %vm2338_vm2, %v4253_v53, %v9852_v15  ;;  %v4286_v19 = vsel %vm2338_vm2, %v4254_v28, %v9853_v58  ;;  %v15349_v27 = vpack.i.bf16 %v3086_v49, %v3085_v6  ;;  %6474 = vmatmul.mubr.bf16.gmra.mrb[104].mxu0 %v6159_v4  ;;  %v2862_v33 = vadd.f32 %v15271_v20, %v15070_v17  ;;  %v9861_v42 = vpop.permute.xlu0 %9860  ;;  %v3025_v53 = vpop.f32.mrb[79].mxu1  ;;  %v17382_v20 = vld [vmem:[#allocation53_spill] sm:$0xff]  ;;  %v17385_v15 = vld [vmem:[#allocation151_spill] sm:$0xff] }
 0x35e   : > { %17379 = vst [vmem:[#allocation130_spill] sm:$0xff] %v15343_v14  ;;  %v3031_v16 = vadd.f32 %v8418_v46, %v15123_v22  ;;  %v2865_v40 = vadd.f32 %v15277_v12, %v15070_v17  ;;  %v4317_v43 = vsel %vm2371_vm3, %v4285_v47, %v9857_v30  ;;  %v4318_v59 = vsel %vm2371_vm3, %v4286_v19, %v9858_v35  ;;  %v17383_v22 = vld [vmem:[#allocation123_spill] sm:$0xff]  ;;  %v17384_v12 = vld [vmem:[#allocation78_spill] sm:$0xff]  ;;  %v15368_v45 = vpop.f32.mrb[53].mxu0  ;;  %v15373_v4 = vld [vmem:[%s16275_s11] sm:$0xff] }
 0x35f   : > { %17381 = vst [vmem:[#allocation99_spill] sm:$0xff] %v15349_v27  ;;  %v9863_v24 = vunpack.i.h.bf16 %v9861_v42  ;;  %v9862_v29 = vunpack.i.l.bf16 %v9861_v42  ;;  %v3023_v36 = vadd.f32 %v3022_v61, %v2862_v33  ;;  %v4365_v8 = vpack.c.bf16 %v4318_v59, %v4317_v43  ;;  %v15378_v35 = vld [vmem:[%s16275_s11 + $0x8] sm:$0xff]  ;;  %v17386_v30 = vld [vmem:[#allocation36_spill] sm:$0xff]  ;;  %v17388_v61 = vld [vmem:[#allocation121_spill] sm:$0xff]  ;;  %v15387_v59 = vpop.f32.mrb[54].mxu0 }
 0x360   : > { %v3034_v28 = vadd.f32 %v8419_v34, %v2873_v41  ;;  %v2886_v2 = vadd.f32 %v17382_v20, %v15070_v17  ;;  %v2878_v39 = vadd.f32 %v17383_v22, %v15070_v17  ;;  %v2881_v6 = vadd.f32 %v17384_v12, %v15070_v17  ;;  %v17387_v41 = vld [vmem:[#allocation35_spill] sm:$0xff]  ;;  %v4938_v46 = vld [vmem:[#allocation2 + $0x1b9] sm:$0xff]  ;;  %v15403_v20 = vpop.f32.mrb[55].mxu0 }
 0x361   : > { %v9868_v52 = vunpack.i.h.bf16 %v9866_v13  ;;  %v9867_v21 = vunpack.i.l.bf16 %v9866_v13  ;;  %v3026_v58 = vadd.f32 %v3025_v53, %v2865_v40  ;;  %4718 = vmatprep.mubr.bf16.mxu1 %v4365_v8  ;;  %v2889_v49 = vadd.f32 %v17385_v15, %v15070_v17  ;;  %v9871_v42 = vpop.permute.xlu0 %9870  ;;  %v17389_v40 = vld [vmem:[#allocation142_spill] sm:$0xff]  ;;  %v15392_v13 = vld [vmem:[%s16275_s11 + $0x10] sm:$0xff] }
 0x362   : > { %v6059_v0 = vsel %vm529_vm0, %v17386_v30, %v9863_v24  ;;  %v6058_v47 = vsel %vm529_vm0, %v17387_v41, %v9862_v29  ;;  %v3091_v19 = vmax.f32 %v3031_v16, 0.0  ;;  %v3092_v33 = vmax.f32 %v3034_v28, 0.0  ;;  %v15397_v24 = vld [vmem:[%s16275_s11 + $0x18] sm:$0xff]  ;;  %v9876_v28 = vpop.permute.xlu1 %9875 }
 0x363   : > { %v17390_v43 = vpack.c.bf16 %v17388_v61, %v17389_v40  ;;  %v3089_v16 = vmax.f32 %v3023_v36, 0.0  ;;  %v9873_v29 = vunpack.i.h.bf16 %v9871_v42  ;;  %v9872_v34 = vunpack.i.l.bf16 %v9871_v42  ;;  %v8422_v42 = vpop.f32.mrb[80].mxu1 }
 0x364   : > { %v3090_v8 = vmax.f32 %v3026_v58, 0.0  ;;  %v17391_v53 = vpack.c.bf16 %v14986_v57, %v14984_v10  ;;  %v15405_v22 = vpack.i.bf16 %v3092_v33, %v3091_v19  ;;  %v9878_v12 = vunpack.i.h.bf16 %v9876_v28 }
 0x365   : > { %4719 = vmatmul.mubr.bf16.gmra.mrb[148].mxu1 %v17390_v43  ;;  %v9877_v15 = vunpack.i.l.bf16 %v9876_v28  ;;  %v8566_v30 = vpack.c.bf16 %v15378_v35, %v15373_v4  ;;  %v5963_v36 = vsel %vm529_vm0, %v4938_v46, %v9868_v52  ;;  %v5962_v41 = vsel %vm529_vm0, %v4937_v56, %v9867_v21  ;;  %v9881_v61 = vpop.permute.xlu0 %9880  ;;  %v3038_v43 = vpop.f32.mrb[81].mxu1 }
 0x366   : > { %8468 = vmatprep.mubr.msk.bf16.mxu1 %vm529_vm0, %v17391_v53  ;;  %17392 = vst [vmem:[#allocation134_spill] sm:$0xff] %v15405_v22  ;;  %v15411_v58 = vpack.i.bf16 %v3090_v8, %v3089_v16  ;;  %v6090_v57 = vsel %vm2338_vm2, %v6058_v47, %v9872_v34  ;;  %v6091_v19 = vsel %vm2338_vm2, %v6059_v0, %v9873_v29  ;;  %v9883_v52 = vunpack.i.h.bf16 %v9881_v61  ;;  %v9886_v21 = vpop.permute.xlu1 %9885  ;;  %v8423_v46 = vpop.f32.mrb[82].mxu1 }
 0x367   : > { %v5994_v33 = vsel %vm2338_vm2, %v5962_v41, %v9877_v15  ;;  %v3047_v40 = vadd.f32 %v8422_v42, %v2886_v2  ;;  %v5995_v4 = vsel %vm2338_vm2, %v5963_v36, %v9878_v12  ;;  %v9882_v35 = vunpack.i.l.bf16 %v9881_v61  ;;  %v3041_v10 = vpop.f32.mrb[83].mxu1  ;;  %v15419_v47 = vpop.f32.mrb[56].mxu0  ;;  %v15423_v15 = vld [vmem:[#allocation2 + $0x6af] sm:$0xff]  ;;  %v15425_v12 = vld [vmem:[#allocation2 + $0x6b7] sm:$0xff] }
 0x368   : > { %17393 = vst [vmem:[#allocation52_spill] sm:$0xff] %v15411_v58  ;;  %v3039_v56 = vadd.f32 %v3038_v43, %v2878_v39  ;;  %v9888_v8 = vunpack.i.h.bf16 %v9886_v21  ;;  %v9887_v28 = vunpack.i.l.bf16 %v9886_v21  ;;  %v3050_v53 = vadd.f32 %v8423_v46, %v2889_v49  ;;  %v15427_v39 = vpop.f32.mrb[57].mxu0 }
 0x369   : > { %v3095_v16 = vmax.f32 %v3047_v40, 0.0  ;;  %v3042_v29 = vadd.f32 %v3041_v10, %v2881_v6  ;;  %v6122_v34 = vsel %vm2371_vm3, %v6090_v57, %v9882_v35  ;;  %v6123_v2 = vsel %vm2371_vm3, %v6091_v19, %v9883_v52  ;;  %v9891_v41 = vpop.permute.xlu0 %9890  ;;  %v15435_v57 = vpop.f32.mrb[58].mxu0  ;;  %v17395_v35 = vld [vmem:[#allocation76_spill] sm:$0xff] }
 0x36a   : > { %v3093_v0 = vmax.f32 %v3039_v56, 0.0  ;;  %v3096_v36 = vmax.f32 %v3050_v53, 0.0  ;;  %v6163_v42 = vpack.c.bf16 %v6123_v2, %v6122_v34  ;;  %v17394_v49 = vpack.c.bf16 %v15045_v32, %v15033_v63  ;;  %v9896_v43 = vpop.permute.xlu1 %9895  ;;  %v17396_v56 = vld [vmem:[#allocation128_spill] sm:$0xff]  ;;  %v15441_v32 = vpop.f32.mrb[59].mxu0 }
 0x36b   : > { %v6026_v6 = vsel %vm2371_vm3, %v5994_v33, %v9887_v28  ;;  %v6027_v10 = vsel %vm2371_vm3, %v5995_v4, %v9888_v8  ;;  %v9893_v19 = vunpack.i.h.bf16 %v9891_v41  ;;  %v9892_v61 = vunpack.i.l.bf16 %v9891_v41  ;;  %v17399_v33 = vld [vmem:[#allocation97_spill] sm:$0xff]  ;;  %v8426_v34 = vpop.f32.mrb[84].mxu1 }
 0x36c   : > { %v3094_v40 = vmax.f32 %v3042_v29, 0.0  ;;  %v6162_v52 = vpack.c.bf16 %v6027_v10, %v6026_v6  ;;  %v17397_v21 = vpack.c.bf16 %v17395_v35, %v17396_v56  ;;  %v15443_v63 = vpack.i.bf16 %v3096_v36, %v3095_v16  ;;  %6481 = vmatprep.mubr.bf16.mxu0 %v6163_v42  ;;  %v17403_v16 = vld [vmem:[#allocation38_spill] sm:$0xff]  ;;  %v3054_v10 = vpop.f32.mrb[85].mxu1 }
 0x36d   : > { %8469 = vmatmul.mubr.msk.bf16.vlgmr.msra.gmra.mrb[152].mxu1 %vm529_vm0, %v17394_v49  ;;  %v2902_v4 = vadd.f32 %v17399_v33, %v15070_v17  ;;  %v6152_v46 = vpack.c.bf16 %v15425_v12, %v15423_v15  ;;  %v17400_v8 = vmov 0.0|0.0   ;;  %v9898_v53 = vunpack.i.h.bf16 %v9896_v43  ;;  %v4939_v41 = vld [vmem:[#allocation2 + $0x1e1] sm:$0xff]  ;;  %v4940_v42 = vld [vmem:[#allocation2 + $0x1e9] sm:$0xff]  ;;  %v9901_v49 = vpop.permute.xlu0 %9900 }
 0x36e   : > { %8472 = vmatprep.mubr.msk.bf16.mxu1 %vm529_vm0, %v17397_v21  ;;  %8567 = vmatpush3.bf16.msra.mxu1 %v8566_v30  ;;  %17398 = vst [vmem:[#allocation90_spill] sm:$0xff] %v15443_v63  ;;  %v15450_v28 = vpack.i.bf16 %v3094_v40, %v3093_v0  ;;  %v9897_v29 = vunpack.i.l.bf16 %v9896_v43  ;;  %v17402_v30 = vld [vmem:[#allocation106_spill] sm:$0xff]  ;;  %v6061_v36 = vsel %vm529_vm0, %v17403_v16, %v9893_v19  ;;  %v17404_v15 = vld [vmem:[#allocation77_spill] sm:$0xff]  ;;  %v9903_v35 = vunpack.i.h.bf16 %v9901_v49  ;;  %v9906_v33 = vpop.permute.xlu1 %9905  ;;  %v15465_v16 = vpop.f32.mrb[60].mxu0 }
 0x36f   : > { %8568 = vmatprep.subr.bf16.mxu1 %v17400_v8  ;;  %6482 = vmatmul.mubr.bf16.gmra.mrb[108].mxu0 %v6162_v52  ;;  %v2894_v2 = vadd.f32 %v17402_v30, %v15070_v17  ;;  %v3063_v6 = vadd.f32 %v8426_v34, %v2902_v4  ;;  %v2905_v12 = vadd.f32 %v17404_v15, %v15070_v17  ;;  %v17405_v0 = vld [vmem:[#allocation133_spill] sm:$0xff]  ;;  %v9902_v56 = vunpack.i.l.bf16 %v9901_v49  ;;  %v8427_v8 = vpop.f32.mrb[86].mxu1 }
 0x370   : > { %17401 = vst [vmem:[#allocation125_spill] sm:$0xff] %v15450_v28  ;;  %v2897_v40 = vadd.f32 %v17405_v0, %v15070_v17  ;;  %v17406_v43 = vld [vmem:[#allocation37_spill] sm:$0xff]  ;;  %v17407_v19 = vpack.c.bf16 %v15397_v24, %v15392_v13  ;;  %v9907_v4 = vunpack.i.l.bf16 %v9906_v33  ;;  %v3057_v30 = vpop.f32.mrb[87].mxu1  ;;  %v5965_v15 = vsel %vm529_vm0, %v4940_v42, %v9898_v53 }
 0x371   : > { %v6060_v52 = vsel %vm529_vm0, %v17406_v43, %v9892_v61  ;;  %v3055_v21 = vadd.f32 %v3054_v10, %v2894_v2  ;;  %v3066_v34 = vadd.f32 %v8427_v8, %v2905_v12  ;;  %v5964_v17 = vsel %vm529_vm0, %v4939_v41, %v9897_v29  ;;  %v15469_v43 = vpop.f32.mrb[61].mxu0  ;;  %v9911_v24 = vpop.permute.xlu0 %9910  ;;  %v17409_v12 = vld [vmem:[#allocation132_spill] sm:$0xff] }
 0x372   : > { %8570 = vmatpush3.bf16.msra.mxu1 %v17407_v19  ;;  %v9908_v0 = vunpack.i.h.bf16 %v9906_v33  ;;  %v3058_v61 = vadd.f32 %v3057_v30, %v2897_v40  ;;  %v6092_v2 = vsel %vm2338_vm2, %v6060_v52, %v9902_v56  ;;  %v6093_v49 = vsel %vm2338_vm2, %v6061_v36, %v9903_v35  ;;  %v17408_v19 = vld [vmem:[#allocation105_spill] sm:$0xff]  ;;  %v15477_v63 = vpop.f32.mrb[62].mxu0  ;;  %v9916_v40 = vpop.permute.xlu1 %9915  ;;  %v5158_v30 = vld [vmem:[#allocation2 + $0x70f] sm:$0xff] }
 0x373   : > { %v3099_v10 = vmax.f32 %v3063_v6, 0.0  ;;  %v3100_v13 = vmax.f32 %v3066_v34, 0.0  ;;  %v17410_v8 = vpack.c.bf16 %v17408_v19, %v17409_v12  ;;  %17411 = vst [vmem:[#allocation156_spill] sm:$0xff] %v15477_v63  ;;  %v3097_v53 = vmax.f32 %v3055_v21, 0.0  ;;  %v5156_v52 = vld [vmem:[#allocation2 + $0x6df] sm:$0xff]  ;;  %v5157_v56 = vld [vmem:[#allocation2 + $0x6e7] sm:$0xff] }
 0x374   : > { %v9913_v29 = vunpack.i.h.bf16 %v9911_v24  ;;  %v9912_v41 = vunpack.i.l.bf16 %v9911_v24  ;;  %v3098_v42 = vmax.f32 %v3058_v61, 0.0  ;;  %v15480_v36 = vpop.f32.mrb[63].mxu0  ;;  %v5996_v6 = vsel %vm2338_vm2, %v5964_v17, %v9907_v4  ;;  %v5159_v19 = vld [vmem:[#allocation2 + $0x717] sm:$0xff] }
 0x375   : > { %8473 = vmatmul.mubr.msk.bf16.gmra.mrb[156].mxu1 %vm529_vm0, %v17410_v8  ;;  %v15483_v35 = vpack.i.bf16 %v3100_v13, %v3099_v10  ;;  %v9918_v33 = vunpack.i.h.bf16 %v9916_v40  ;;  %v9917_v34 = vunpack.i.l.bf16 %v9916_v40  ;;  %v5997_v21 = vsel %vm2338_vm2, %v5965_v15, %v9908_v0  ;;  %v9921_v24 = vpop.permute.xlu0 %9920 }
 0x376   : > { %8476 = vmatprep.mubr.msk.bf16.mxu1 %vm529_vm0, %v6152_v46  ;;  %v15486_v12 = vpack.i.bf16 %v3098_v42, %v3097_v53  ;;  %v6124_v61 = vsel %vm2371_vm3, %v6092_v2, %v9912_v41  ;;  %v6125_v46 = vsel %vm2371_vm3, %v6093_v49, %v9913_v29  ;;  %v6155_v17 = vpack.c.bf16 %v5157_v56, %v5156_v52  ;;  %v9926_v10 = vpop.permute.xlu1 %9925  ;;  %v5160_v49 = vld [vmem:[#allocation2 + $0x73f] sm:$0xff]  ;;  %v5162_v56 = vld [vmem:[#allocation2 + $0x76f] sm:$0xff] }
 0x377   : > { %17412 = vst [vmem:[#allocation155_spill] sm:$0xff] %v15483_v35  ;;  %v6166_v8 = vpack.c.bf16 %v6125_v46, %v6124_v61  ;;  %v6028_v28 = vsel %vm2371_vm3, %v5996_v6, %v9917_v34  ;;  %v6029_v4 = vsel %vm2371_vm3, %v5997_v21, %v9918_v33  ;;  %v6158_v40 = vpack.c.bf16 %v5159_v19, %v5158_v30  ;;  %v15492_v35 = vpop.f32.mrb[64].mxu0  ;;  %v5163_v6 = vld [vmem:[#allocation2 + $0x777] sm:$0xff] }
 0x378   : > { %17413 = vst [vmem:[#allocation157_spill] sm:$0xff] %v15486_v12  ;;  %v6165_v13 = vpack.c.bf16 %v6029_v4, %v6028_v28  ;;  %17414 = vst [vmem:[#allocation124_spill] sm:$0xff] %v15492_v35  ;;  %v9923_v15 = vunpack.i.h.bf16 %v9921_v24  ;;  %v9922_v0 = vunpack.i.l.bf16 %v9921_v24  ;;  %v15494_v53 = vpop.f32.mrb[65].mxu0  ;;  %v9928_v41 = vunpack.i.h.bf16 %v9926_v10  ;;  %v5161_v28 = vld [vmem:[#allocation2 + $0x747] sm:$0xff]  ;;  %v4941_v34 = vld [vmem:[#allocation2 + $0x211] sm:$0xff] }
 0x379   : > { %6489 = vmatprep.mubr.bf16.mxu0 %v6166_v8  ;;  %17415 = vst [vmem:[#allocation54_spill] sm:$0xff] %v15494_v53  ;;  %v9931_v2 = vpop.permute.xlu0 %9930  ;;  %v15497_v29 = vpop.f32.mrb[66].mxu0  ;;  %v9927_v42 = vunpack.i.l.bf16 %v9926_v10  ;;  %v4942_v30 = vld [vmem:[#allocation2 + $0x219] sm:$0xff]  ;;  %v17419_v24 = vld [vmem:[#allocation39_spill] sm:$0xff] }
 0x37a   : > { %6490 = vmatmul.mubr.bf16.gmra.mrb[112].mxu0 %v6165_v13  ;;  %17416 = vst [vmem:[#allocation161_spill] sm:$0xff] %v15497_v29  ;;  %v9936_v52 = vpop.permute.xlu1 %9935  ;;  %v15500_v33 = vpop.f32.mrb[67].mxu0  ;;  %v9933_v19 = vunpack.i.h.bf16 %v9931_v2  ;;  %v9932_v21 = vunpack.i.l.bf16 %v9931_v2  ;;  %v17418_v61 = vld [vmem:[#allocation40_spill] sm:$0xff]  ;;  %v6062_v8 = vsel %vm529_vm0, %v17419_v24, %v9922_v0  ;;  %v6161_v13 = vpack.c.bf16 %v5161_v28, %v5160_v49 }
 0x37b   : > { %17417 = vst [vmem:[#allocation44_spill] sm:$0xff] %v15500_v33  ;;  %v6063_v46 = vsel %vm529_vm0, %v17418_v61, %v9923_v15  ;;  %v9938_v4 = vunpack.i.h.bf16 %v9936_v52  ;;  %v5967_v12 = vsel %vm529_vm0, %v4942_v30, %v9928_v41  ;;  %v5966_v58 = vsel %vm529_vm0, %v4941_v34, %v9927_v42  ;;  %v15510_v35 = vpop.f32.mrb[68].mxu0 }
 0x37c   : > { %v6094_v2 = vsel %vm2338_vm2, %v6062_v8, %v9932_v21  ;;  %v6095_v29 = vsel %vm2338_vm2, %v6063_v46, %v9933_v19  ;;  %17420 = vst [vmem:[#allocation80_spill] sm:$0xff] %v15510_v35  ;;  %v15516_v42 = vpop.f32.mrb[69].mxu0 }
 0x37d   : > { %8477 = vmatmul.mubr.msk.bf16.gmra.mrb[160].mxu1 %vm529_vm0, %v6155_v17  ;;  %v9937_v17 = vunpack.i.l.bf16 %v9936_v52  ;;  %v9941_v10 = vpop.permute.xlu0 %9940  ;;  %v5999_v49 = vsel %vm2338_vm2, %v5967_v12, %v9938_v4  ;;  %17421 = vst [vmem:[#allocation79_spill] sm:$0xff] %v15516_v42  ;;  %v15521_v34 = vpop.f32.mrb[70].mxu0  ;;  %v5164_v12 = vld [vmem:[#allocation2 + $0x79f] sm:$0xff] }
 0x37e   : > { %8480 = vmatprep.mubr.msk.bf16.mxu1 %vm529_vm0, %v6158_v40  ;;  %v6164_v40 = vpack.c.bf16 %v5163_v6, %v5162_v56  ;;  %v9943_v22 = vunpack.i.h.bf16 %v9941_v10  ;;  %v9942_v27 = vunpack.i.l.bf16 %v9941_v10  ;;  %v9946_v14 = vpop.permute.xlu1 %9945  ;;  %17422 = vst [vmem:[#allocation136_spill] sm:$0xff] %v15521_v34  ;;  %v15524_v19 = vpop.f32.mrb[71].mxu0 }
 0x37f   : > { %v9948_v15 = vunpack.i.h.bf16 %v9946_v14  ;;  %v9947_v61 = vunpack.i.l.bf16 %v9946_v14  ;;  %v5998_v0 = vsel %vm2338_vm2, %v5966_v58, %v9937_v17  ;;  %17423 = vst [vmem:[#allocation126_spill] sm:$0xff] %v15524_v19 }
 0x380   : > { %v6126_v52 = vsel %vm2371_vm3, %v6094_v2, %v9942_v27  ;;  %v6127_v41 = vsel %vm2371_vm3, %v6095_v29, %v9943_v22  ;;  %v5165_v27 = vld [vmem:[#allocation2 + $0x7a7] sm:$0xff]  ;;  %v5166_v22 = vld [vmem:[#allocation2 + $0x7cf] sm:$0xff]  ;;  %v5167_v29 = vld [vmem:[#allocation2 + $0x7d7] sm:$0xff] }
 0x381   : > { %v9951_v28 = vpop.permute.xlu0 %9950  ;;  %v6169_v56 = vpack.c.bf16 %v6127_v41, %v6126_v52  ;;  %v6030_v6 = vsel %vm2371_vm3, %v5998_v0, %v9947_v61  ;;  %v6031_v14 = vsel %vm2371_vm3, %v5999_v49, %v9948_v15  ;;  %v6167_v8 = vpack.c.bf16 %v5165_v27, %v5164_v12  ;;  %v4943_v2 = vld [vmem:[#allocation2 + $0x241] sm:$0xff]  ;;  %v4944_v15 = vld [vmem:[#allocation2 + $0x249] sm:$0xff]  ;;  %v15526_v0 = vpop.f32.mrb[72].mxu0 }
 0x382   : > { %v9956_v30 = vpop.permute.xlu1 %9955  ;;  %v6168_v58 = vpack.c.bf16 %v6031_v14, %v6030_v6  ;;  %v9953_v21 = vunpack.i.h.bf16 %v9951_v28  ;;  %v9952_v46 = vunpack.i.l.bf16 %v9951_v28  ;;  %17424 = vst [vmem:[#allocation111_spill] sm:$0xff] %v15526_v0  ;;  %v17425_v49 = vld [vmem:[#allocation42_spill] sm:$0xff]  ;;  %v17426_v41 = vld [vmem:[#allocation41_spill] sm:$0xff]  ;;  %v15532_v14 = vpop.f32.mrb[73].mxu0 }
 0x383   : > { %6497 = vmatprep.mubr.bf16.mxu0 %v6169_v56  ;;  %v9958_v4 = vunpack.i.h.bf16 %v9956_v30  ;;  %v9957_v17 = vunpack.i.l.bf16 %v9956_v30  ;;  %17427 = vst [vmem:[#allocation139_spill] sm:$0xff] %v15532_v14  ;;  %v15535_v30 = vpop.f32.mrb[74].mxu0  ;;  %v5171_v14 = vld [vmem:[#allocation2 + $0x837] sm:$0xff] }
 0x384   : > { %6498 = vmatmul.mubr.bf16.gmra.mrb[116].mxu0 %v6168_v58  ;;  %v6065_v52 = vsel %vm529_vm0, %v17425_v49, %v9953_v21  ;;  %v6064_v56 = vsel %vm529_vm0, %v17426_v41, %v9952_v46  ;;  %17428 = vst [vmem:[#allocation107_spill] sm:$0xff] %v15535_v30  ;;  %v5168_v21 = vld [vmem:[#allocation2 + $0x7ff] sm:$0xff]  ;;  %v5169_v46 = vld [vmem:[#allocation2 + $0x807] sm:$0xff]  ;;  %v15540_v49 = vpop.f32.mrb[75].mxu0  ;;  %v5170_v30 = vld [vmem:[#allocation2 + $0x82f] sm:$0xff] }
 0x385   : > { %8481 = vmatmul.mubr.msk.bf16.gmra.mrb[164].mxu1 %vm529_vm0, %v6161_v13  ;;  %v9961_v24 = vpop.permute.xlu0 %9960  ;;  %v6170_v13 = vpack.c.bf16 %v5167_v29, %v5166_v22  ;;  %v5969_v12 = vsel %vm529_vm0, %v4944_v15, %v9958_v4  ;;  %v5968_v27 = vsel %vm529_vm0, %v4943_v2, %v9957_v17  ;;  %17429 = vst [vmem:[#allocation87_spill] sm:$0xff] %v15540_v49 }
 0x386   : > { %8484 = vmatprep.mubr.msk.bf16.mxu1 %vm529_vm0, %v6164_v40  ;;  %v9966_v10 = vpop.permute.xlu1 %9965  ;;  %v9963_v61 = vunpack.i.h.bf16 %v9961_v24  ;;  %v9962_v40 = vunpack.i.l.bf16 %v9961_v24 }
 0x387   : > { %v9968_v28 = vunpack.i.h.bf16 %v9966_v10  ;;  %v9967_v6 = vunpack.i.l.bf16 %v9966_v10 }
 0x388   : > { %v6096_v10 = vsel %vm2338_vm2, %v6064_v56, %v9962_v40  ;;  %v6097_v41 = vsel %vm2338_vm2, %v6065_v52, %v9963_v61  ;;  %v6173_v56 = vpack.c.bf16 %v5169_v46, %v5168_v21  ;;  %v5174_v21 = vld [vmem:[#allocation2 + $0x88f] sm:$0xff] }
 0x389   : > { %v9971_v58 = vpop.permute.xlu0 %9970  ;;  %v6000_v4 = vsel %vm2338_vm2, %v5968_v27, %v9967_v6  ;;  %v6001_v17 = vsel %vm2338_vm2, %v5969_v12, %v9968_v28  ;;  %v4945_v6 = vld [vmem:[#allocation2 + $0x271] sm:$0xff] }
 0x38a   : > { %v9973_v22 = vunpack.i.h.bf16 %v9971_v58  ;;  %v9972_v29 = vunpack.i.l.bf16 %v9971_v58  ;;  %v9976_v24 = vpop.permute.xlu1 %9975 }
 0x38b   : > { %v9977_v0 = vunpack.i.l.bf16 %v9976_v24 }
 0x38c   : > { %v6128_v2 = vsel %vm2371_vm3, %v6096_v10, %v9972_v29  ;;  %v5173_v29 = vld [vmem:[#allocation2 + $0x867] sm:$0xff]  ;;  %v4946_v10 = vld [vmem:[#allocation2 + $0x279] sm:$0xff] }
 0x38d   : > { %8485 = vmatmul.mubr.msk.bf16.gmra.mrb[168].mxu1 %vm529_vm0, %v6167_v8  ;;  %v9978_v8 = vunpack.i.h.bf16 %v9976_v24  ;;  %v9981_v15 = vpop.permute.xlu0 %9980  ;;  %v6032_v49 = vsel %vm2371_vm3, %v6000_v4, %v9977_v0  ;;  %v6176_v24 = vpack.c.bf16 %v5171_v14, %v5170_v30  ;;  %v5175_v14 = vld [vmem:[#allocation2 + $0x897] sm:$0xff]  ;;  %v17430_v30 = vld [vmem:[#allocation46_spill] sm:$0xff] }
 0x38e   : > { %8488 = vmatprep.mubr.msk.bf16.mxu1 %vm529_vm0, %v6170_v13  ;;  %v6129_v13 = vsel %vm2371_vm3, %v6097_v41, %v9973_v22  ;;  %v9986_v61 = vpop.permute.xlu1 %9985  ;;  %v9983_v34 = vunpack.i.h.bf16 %v9981_v15  ;;  %v9982_v35 = vunpack.i.l.bf16 %v9981_v15  ;;  %v5172_v22 = vld [vmem:[#allocation2 + $0x85f] sm:$0xff] }
 0x38f   : > { %v6172_v58 = vpack.c.bf16 %v6129_v13, %v6128_v2  ;;  %v6033_v40 = vsel %vm2371_vm3, %v6001_v17, %v9978_v8  ;;  %v9988_v28 = vunpack.i.h.bf16 %v9986_v61  ;;  %v9987_v12 = vunpack.i.l.bf16 %v9986_v61  ;;  %v8072_v17 = vpop.f32.mrb[88].mxu1 }
 0x390   : > { %v6171_v52 = vpack.c.bf16 %v6033_v40, %v6032_v49  ;;  %v6067_v46 = vsel %vm529_vm0, %v17430_v30, %v9983_v34  ;;  %v17431_v49 = vld [vmem:[#allocation45_spill] sm:$0xff]  ;;  %v8073_v15 = vpop.f32.mrb[89].mxu1  ;;  %v6179_v40 = vpack.c.bf16 %v5173_v29, %v5172_v22 }
 0x391   : > { %6505 = vmatprep.mubr.bf16.mxu0 %v6172_v58  ;;  %v9991_v27 = vpop.permute.xlu0 %9990  ;;  %v6066_v4 = vsel %vm529_vm0, %v17431_v49, %v9982_v35  ;;  %v15559_v58 = vld [vmem:[%s16272_s8] ss:$0 sm:$0xff]  ;;  %v5970_v61 = vsel %vm529_vm0, %v4945_v6, %v9987_v12  ;;  %v8075_v34 = vpop.f32.mrb[90].mxu1 }
 0x392   : > { %6506 = vmatmul.mubr.bf16.gmra.mrb[120].mxu0 %v6171_v52  ;;  %v9993_v0 = vunpack.i.h.bf16 %v9991_v27  ;;  %v9992_v41 = vunpack.i.l.bf16 %v9991_v27  ;;  %v9996_v8 = vpop.permute.xlu1 %9995  ;;  %v8074_v52 = vadd.f32 %v8073_v15, %v8072_v17  ;;  %v6182_v27 = vpack.c.bf16 %v5175_v14, %v5174_v21  ;;  %v8076_v19 = vpop.f32.mrb[91].mxu1  ;;  %v5177_v14 = vld [vmem:[#allocation2 + $0x8c7] sm:$0xff] }
 0x393   : > { %v9998_v2 = vunpack.i.h.bf16 %v9996_v8  ;;  %v9997_v13 = vunpack.i.l.bf16 %v9996_v8  ;;  %v8077_v33 = vadd.f32 %v8076_v19, %v8075_v34  ;;  %v5176_v19 = vld [vmem:[#allocation2 + $0x8bf] sm:$0xff] }
 0x394   : > { %v6098_v35 = vsel %vm2338_vm2, %v6066_v4, %v9992_v41  ;;  %v6099_v30 = vsel %vm2338_vm2, %v6067_v46, %v9993_v0  ;;  %v4601_v22 = vadd.f32 %v8074_v52, %v15559_v58 }
 0x395   : > { %8489 = vmatmul.mubr.msk.bf16.gmra.mrb[172].mxu1 %vm529_vm0, %v6173_v56  ;;  %v5971_v56 = vsel %vm529_vm0, %v4946_v10, %v9988_v28  ;;  %v6002_v28 = vsel %vm2338_vm2, %v5970_v61, %v9997_v13  ;;  %v4604_v41 = vadd.f32 %v8077_v33, %v15559_v58  ;;  %v6185_v61 = vpack.c.bf16 %v5177_v14, %v5176_v19 }
 0x396   : > { %8492 = vmatprep.mubr.msk.bf16.mxu1 %vm529_vm0, %v6176_v24  ;;  %v10001_v24 = vpop.permute.xlu0 %10000  ;;  %v10006_v42 = vpop.permute.xlu1 %10005  ;;  %v6003_v6 = vsel %vm2338_vm2, %v5971_v56, %v9998_v2  ;;  %v4762_v10 = vadd.f32 %v15307_v23, %v4601_v22 }
 0x397   : > { %v10003_v8 = vunpack.i.h.bf16 %v10001_v24  ;;  %v10002_v49 = vunpack.i.l.bf16 %v10001_v24  ;;  %v10008_v53 = vunpack.i.h.bf16 %v10006_v42  ;;  %v10007_v63 = vunpack.i.l.bf16 %v10006_v42  ;;  %v8078_v23 = vpop.f32.mrb[92].mxu1 }
 0x398   : > { %v4765_v13 = vadd.f32 %v15316_v50, %v4604_v41  ;;  %v8079_v33 = vpop.f32.mrb[93].mxu1  ;;  %v4947_v50 = vld [vmem:[#allocation2 + $0x2a1] sm:$0xff] }
 0x399   : > { %v6130_v12 = vsel %vm2371_vm3, %v6098_v35, %v10002_v49  ;;  %v6131_v29 = vsel %vm2371_vm3, %v6099_v30, %v10003_v8  ;;  %v6034_v42 = vsel %vm2371_vm3, %v6002_v28, %v10007_v63  ;;  %v6035_v2 = vsel %vm2371_vm3, %v6003_v6, %v10008_v53  ;;  %v4948_v63 = vld [vmem:[#allocation2 + $0x2a9] sm:$0xff]  ;;  %v8081_v30 = vpop.f32.mrb[94].mxu1 }
 0x39a   : > { %v10011_v0 = vpop.permute.xlu0 %10010  ;;  %v6175_v21 = vpack.c.bf16 %v6131_v29, %v6130_v12  ;;  %v10016_v17 = vpop.permute.xlu1 %10015  ;;  %v6174_v56 = vpack.c.bf16 %v6035_v2, %v6034_v42  ;;  %v4889_v52 = vmax.f32 %v4765_v13, 0.0  ;;  %v8080_v34 = vadd.f32 %v8079_v33, %v8078_v23 }
 0x39b   : > { %v10013_v46 = vunpack.i.h.bf16 %v10011_v0  ;;  %v10012_v4 = vunpack.i.l.bf16 %v10011_v0  ;;  %v10018_v15 = vunpack.i.h.bf16 %v10016_v17  ;;  %v10017_v24 = vunpack.i.l.bf16 %v10016_v17  ;;  %v8082_v22 = vpop.f32.mrb[95].mxu1 }
 0x39c   : > { %6513 = vmatprep.mubr.bf16.mxu0 %v6175_v21  ;;  %v4609_v12 = vadd.f32 %v8080_v34, %v15559_v58  ;;  %v8083_v29 = vadd.f32 %v8082_v22, %v8081_v30  ;;  %v17432_v2 = vmov 0.0  }
 0x39d   : > { %8493 = vmatmul.mubr.msk.bf16.gmra.mrb[176].mxu1 %vm529_vm0, %v6179_v40  ;;  %v4888_v40 = vmax.f32 %v4762_v10, 0.0  ;;  %v6069_v53 = vsel %vm529_vm0, %v17347_v60, %v10013_v46  ;;  %6514 = vmatmul.mubr.bf16.gmra.mrb[124].mxu0 %v6174_v56  ;;  %v5973_v0 = vsel %vm529_vm0, %v4948_v63, %v10018_v15  ;;  %v5972_v21 = vsel %vm529_vm0, %v4947_v50, %v10017_v24  ;;  %v8084_v15 = vpop.f32.mrb[96].mxu1  ;;  %v17433_v50 = vld [vmem:[#allocation89_spill] sm:$0xff] }
 0x39e   : > { %8496 = vmatprep.mubr.msk.bf16.mxu1 %vm529_vm0, %v6182_v27  ;;  %v10021_v35 = vpop.permute.xlu0 %10020  ;;  %v6068_v27 = vsel %vm529_vm0, %v17349_v55, %v10012_v4  ;;  %v10026_v28 = vpop.permute.xlu1 %10025  ;;  %v4770_v60 = vadd.f32 %v15302_v25, %v4609_v12  ;;  %v4612_v55 = vadd.f32 %v8083_v29, %v15559_v58  ;;  %v926_v25 = vld [vmem:[%s16266_s2] sm:$0x1] }
 0x39f   : > { %v10023_v8 = vunpack.i.h.bf16 %v10021_v35  ;;  %v10022_v49 = vunpack.i.l.bf16 %v10021_v35  ;;  %v10109_v6 = vpack.i.bf16 %v4889_v52, %v4888_v40  ;;  %v10028_v10 = vunpack.i.h.bf16 %v10026_v28  ;;  %v8085_v52 = vpop.f32.mrb[97].mxu1 }
 0x3a0   : > { %v10027_v41 = vunpack.i.l.bf16 %v10026_v28  ;;  %v4773_v13 = vadd.f32 %v15313_v38, %v4612_v55  ;;  %v8086_v35 = vadd.f32 %v8085_v52, %v8084_v15 }
 0x3a1   : > { %10110 = vrot.lane.b32.xlu0 %v10109_v6, %s10586_s24  ;;  %v6100_v19 = vsel %vm2338_vm2, %v6068_v27, %v10022_v49  ;;  %v6101_v14 = vsel %vm2338_vm2, %v6069_v53, %v10023_v8  ;;  %v6005_v23 = vsel %vm2338_vm2, %v5973_v0, %v10028_v10  ;;  %v8087_v53 = vpop.f32.mrb[98].mxu1  ;;  %v997_v8 = vadd.f32 %v17433_v50, %v926_v25 }
 0x3a2   : > { %v10031_v42 = vpop.permute.xlu0 %10030  ;;  %v10036_v17 = vpop.permute.xlu1 %10035  ;;  %v6004_v40 = vsel %vm2338_vm2, %v5972_v21, %v10027_v41  ;;  %v4891_v34 = vmax.f32 %v4773_v13, 0.0  ;;  %v4617_v29 = vadd.f32 %v8086_v35, %v15559_v58 }
 0x3a3   : > { %v10033_v46 = vunpack.i.h.bf16 %v10031_v42  ;;  %v10032_v4 = vunpack.i.l.bf16 %v10031_v42  ;;  %v10038_v33 = vunpack.i.h.bf16 %v10036_v17  ;;  %v10037_v56 = vunpack.i.l.bf16 %v10036_v17  ;;  %v8088_v22 = vpop.f32.mrb[99].mxu1  ;;  %v4949_v42 = vld [vmem:[#allocation2 + $0x2d1] sm:$0xff] }
 0x3a4   : > { %v8089_v0 = vadd.f32 %v8088_v22, %v8087_v53  ;;  %v8090_v13 = vpop.f32.mrb[100].mxu1 }
 0x3a5   : > { %8497 = vmatmul.mubr.msk.bf16.gmra.mrb[180].mxu1 %vm529_vm0, %v6185_v61  ;;  %v4890_v61 = vmax.f32 %v4770_v60, 0.0  ;;  %v6132_v63 = vsel %vm2371_vm3, %v6100_v19, %v10032_v4  ;;  %v6133_v24 = vsel %vm2371_vm3, %v6101_v14, %v10033_v46  ;;  %10120 = vrot.lane.b32.xlu0 %v15246_v62, %s10585_s15  ;;  %v6036_v27 = vsel %vm2371_vm3, %v6004_v40, %v10037_v56  ;;  %v4950_v19 = vld [vmem:[#allocation2 + $0x2d9] sm:$0xff] }
 0x3a6   : > { %8508 = vmatprep.mubr.msk.f32.mxu1 %vm10589_vm1, %v17432_v2  ;;  %v10041_v30 = vpop.permute.xlu0 %10040  ;;  %v6178_v38 = vpack.c.bf16 %v6133_v24, %v6132_v63  ;;  %v10046_v28 = vpop.permute.xlu1 %10045  ;;  %v6037_v6 = vsel %vm2371_vm3, %v6005_v23, %v10038_v33  ;;  %v4778_v62 = vadd.f32 %v15335_v54, %v4617_v29  ;;  %v4620_v55 = vadd.f32 %v8089_v0, %v15559_v58 }
 0x3a7   : > { %v10042_v49 = vunpack.i.l.bf16 %v10041_v30  ;;  %v10114_v12 = vpack.i.bf16 %v4891_v34, %v4890_v61  ;;  %v10043_v10 = vunpack.i.h.bf16 %v10041_v30  ;;  %v10048_v41 = vunpack.i.h.bf16 %v10046_v28  ;;  %v8091_v61 = vpop.f32.mrb[101].mxu1 }
 0x3a8   : > { %6521 = vmatprep.mubr.bf16.mxu0 %v6178_v38  ;;  %v10047_v21 = vunpack.i.l.bf16 %v10046_v28  ;;  %v6177_v60 = vpack.c.bf16 %v6037_v6, %v6036_v27  ;;  %v4781_v54 = vadd.f32 %v15341_v44, %v4620_v55  ;;  %v4892_v40 = vmax.f32 %v4778_v62, 0.0  ;;  %v8093_v34 = vpop.f32.mrb[102].mxu1 }
 0x3a9   : > { %10115 = vrot.lane.b32.xlu1 %v10114_v12, %s10586_s24  ;;  %v6070_v46 = vsel %vm529_vm0, %v17368_v3, %v10042_v49  ;;  %v6071_v25 = vsel %vm529_vm0, %v17367_v11, %v10043_v10  ;;  %v5975_v15 = vsel %vm529_vm0, %v4950_v19, %v10048_v41  ;;  %v8092_v63 = vadd.f32 %v8091_v61, %v8090_v13  ;;  %v8094_v53 = vpop.f32.mrb[103].mxu1 }
 0x3aa   : > { %v10051_v14 = vpop.permute.xlu0 %10050  ;;  %6522 = vmatmul.mubr.bf16.gmra.mrb[128].mxu0 %v6177_v60  ;;  %v5974_v33 = vsel %vm529_vm0, %v4949_v42, %v10047_v21  ;;  %v4893_v52 = vmax.f32 %v4781_v54, 0.0 }
 0x3ab   : > { %v10053_v4 = vunpack.i.h.bf16 %v10051_v14  ;;  %v10052_v17 = vunpack.i.l.bf16 %v10051_v14  ;;  %v10056_v2 = vpop.permute.xlu1 %10055  ;;  %v4625_v50 = vadd.f32 %v8092_v63, %v15559_v58 }
 0x3ac   : > { %v10057_v23 = vunpack.i.l.bf16 %v10056_v2  ;;  %v10058_v56 = vunpack.i.h.bf16 %v10056_v2  ;;  %v10129_v27 = vpack.i.bf16 %v4893_v52, %v4892_v40 }
 0x3ad   : > { %8509 = vmatmul.mubr.msk.f32.vlgmr.msra.gmra.mrb[2].mxu1 %vm529_vm0, %v997_v8  ;;  %v6102_v3 = vsel %vm2338_vm2, %v6070_v46, %v10052_v17  ;;  %10125 = vrot.lane.b32.xlu1 %v15238_v1, %s10585_s15  ;;  %v6103_v11 = vsel %vm2338_vm2, %v6071_v25, %v10053_v4  ;;  %v8095_v8 = vadd.f32 %v8094_v53, %v8093_v34  ;;  %v8096_v19 = vpop.f32.mrb[104].mxu1 }
 0x3ae   : > { %v10061_v24 = vpop.permute.xlu0 %10060  ;;  %v6006_v44 = vsel %vm2338_vm2, %v5974_v33, %v10057_v23  ;;  %v6007_v22 = vsel %vm2338_vm2, %v5975_v15, %v10058_v56  ;;  %v4786_v12 = vadd.f32 %v15329_v7, %v4625_v50  ;;  %10130 = vrot.lane.b32.xlu0 %v10129_v27, %s10586_s24  ;;  %v8097_v46 = vpop.f32.mrb[105].mxu1  ;;  %v4951_v15 = vld [vmem:[#allocation2 + $0x301] sm:$0xff]  ;;  %v4952_v33 = vld [vmem:[#allocation2 + $0x309] sm:$0xff] }
 0x3af   : > { %v10063_v35 = vunpack.i.h.bf16 %v10061_v24  ;;  %v10062_v30 = vunpack.i.l.bf16 %v10061_v24  ;;  %v10066_v38 = vpop.permute.xlu1 %10065  ;;  %v4628_v29 = vadd.f32 %v8095_v8, %v15559_v58  ;;  %v8098_v25 = vadd.f32 %v8097_v46, %v8096_v19  ;;  %v8099_v13 = vpop.f32.mrb[106].mxu1 }
 0x3b0   : > { %v10068_v49 = vunpack.i.h.bf16 %v10066_v38  ;;  %v10067_v28 = vunpack.i.l.bf16 %v10066_v38  ;;  %v4894_v14 = vmax.f32 %v4786_v12, 0.0  ;;  %v8100_v40 = vpop.f32.mrb[107].mxu1 }
 0x3b1   : > { %v6134_v6 = vsel %vm2371_vm3, %v6102_v3, %v10062_v30  ;;  %v6135_v1 = vsel %vm2371_vm3, %v6103_v11, %v10063_v35  ;;  %v4789_v42 = vadd.f32 %v15339_v18, %v4628_v29  ;;  %v4633_v63 = vadd.f32 %v8098_v25, %v15559_v58 }
 0x3b2   : > { %v6181_v0 = vpack.c.bf16 %v6135_v1, %v6134_v6  ;;  %v6039_v41 = vsel %vm2371_vm3, %v6007_v22, %v10068_v49  ;;  %v6038_v55 = vsel %vm2371_vm3, %v6006_v44, %v10067_v28  ;;  %10140 = vrot.lane.b32.xlu0 %v15283_v26, %s10585_s15  ;;  %v8101_v24 = vadd.f32 %v8100_v40, %v8099_v13 }
 0x3b3   : > { %v10071_v10 = vpop.permute.xlu0 %10070  ;;  %v6180_v7 = vpack.c.bf16 %v6039_v41, %v6038_v55  ;;  %v4895_v4 = vmax.f32 %v4789_v42, 0.0  ;;  %v4794_v44 = vadd.f32 %v15368_v45, %v4633_v63 }
 0x3b4   : > { %v10073_v21 = vunpack.i.h.bf16 %v10071_v10  ;;  %v10072_v60 = vunpack.i.l.bf16 %v10071_v10  ;;  %v10076_v62 = vpop.permute.xlu1 %10075  ;;  %6529 = vmatprep.mubr.bf16.mxu0 %v6181_v0  ;;  %v8202_v50 = vpop.f32.mrb[76].mxu0 }
 0x3b5   : > { %v10078_v17 = vunpack.i.h.bf16 %v10076_v62  ;;  %v10077_v2 = vunpack.i.l.bf16 %v10076_v62  ;;  %6530 = vmatmul.mubr.bf16.gmra.mrb[132].mxu0 %v6180_v7  ;;  %v10134_v3 = vpack.i.bf16 %v4895_v4, %v4894_v14  ;;  %v8203_v6 = vpop.f32.mrb[77].mxu0 }
 0x3b6   : > { %v6073_v23 = vsel %vm529_vm0, %v17377_v9, %v10073_v21  ;;  %v6072_v18 = vsel %vm529_vm0, %v17378_v31, %v10072_v60  ;;  %v4636_v31 = vadd.f32 %v8101_v24, %v15559_v58  ;;  %v8102_v28 = vpop.f32.mrb[108].mxu1  ;;  %v15649_v29 = vadd.f32 %v8203_v6, %v8202_v50  ;;  %v8205_v0 = vpop.f32.mrb[78].mxu0 }
 0x3b7   : > { %v10081_v54 = vpop.permute.xlu0 %10080  ;;  %v5977_v26 = vsel %vm529_vm0, %v4952_v33, %v10078_v17  ;;  %v5976_v9 = vsel %vm529_vm0, %v4951_v15, %v10077_v2  ;;  %10135 = vrot.lane.b32.xlu1 %v10134_v3, %s10586_s24  ;;  %v8103_v10 = vpop.f32.mrb[109].mxu1  ;;  %v4896_v60 = vmax.f32 %v4794_v44, 0.0 }
 0x3b8   : > { %v10083_v56 = vunpack.i.h.bf16 %v10081_v54  ;;  %v10082_v61 = vunpack.i.l.bf16 %v10081_v54  ;;  %v10086_v52 = vpop.permute.xlu1 %10085  ;;  %v4797_v49 = vadd.f32 %v15403_v20, %v4636_v31  ;;  %v8104_v55 = vadd.f32 %v8103_v10, %v8102_v28  ;;  %v8105_v20 = vpop.f32.mrb[110].mxu1 }
 0x3b9   : > { %v10088_v34 = vunpack.i.h.bf16 %v10086_v52  ;;  %v10087_v11 = vunpack.i.l.bf16 %v10086_v52  ;;  %v8206_v19 = vpop.f32.mrb[79].mxu0  ;;  %v8106_v14 = vpop.f32.mrb[111].mxu1 }
 0x3ba   : > { %v6104_v30 = vsel %vm2338_vm2, %v6072_v18, %v10082_v61  ;;  %v6105_v53 = vsel %vm2338_vm2, %v6073_v23, %v10083_v56  ;;  %v4897_v62 = vmax.f32 %v4797_v49, 0.0  ;;  %v4641_v17 = vadd.f32 %v8104_v55, %v15559_v58 }
 0x3bb   : > { %v10091_v35 = vpop.permute.xlu0 %10090  ;;  %v6009_v22 = vsel %vm2338_vm2, %v5977_v26, %v10088_v34  ;;  %v6008_v12 = vsel %vm2338_vm2, %v5976_v9, %v10087_v11  ;;  %10145 = vrot.lane.b32.xlu1 %v15275_v37, %s10585_s15  ;;  %v15658_v2 = vadd.f32 %v8206_v19, %v8205_v0  ;;  %v8107_v25 = vadd.f32 %v8106_v14, %v8105_v20 }
 0x3bc   : > { %v10093_v38 = vunpack.i.h.bf16 %v10091_v35  ;;  %v10092_v27 = vunpack.i.l.bf16 %v10091_v35  ;;  %v10149_v4 = vpack.i.bf16 %v4897_v62, %v4896_v60  ;;  %v4802_v54 = vadd.f32 %v15364_v51, %v4641_v17  ;;  %v10395_v35 = vld [vmem:[%s16276_s12] sm:$0xff]   ;;  %v10396_v17 = vld [vmem:[%s16276_s12 + $0x8] sm:$0xff]  }
 0x3bd   : > { %v10096_v8 = vpop.permute.xlu1 %10095  ;;  %v4644_v13 = vadd.f32 %v8107_v25, %v15559_v58  ;;  %8511 = vmatprep.subr.bf16.mxu0 %v10395_v35 }
 0x3be   : > { %v10098_v45 = vunpack.i.h.bf16 %v10096_v8  ;;  %v10097_v1 = vunpack.i.l.bf16 %v10096_v8  ;;  %v6136_v41 = vsel %vm2371_vm3, %v6104_v30, %v10092_v27  ;;  %v6137_v21 = vsel %vm2371_vm3, %v6105_v53, %v10093_v38  ;;  %10150 = vrot.lane.b32.xlu0 %v10149_v4, %s10586_s24  ;;  %v8108_v18 = vpop.f32.mrb[112].mxu1  ;;  %8512 = vmatpush3.bf16.msra.mxu0 %v10395_v35 }
 0x3bf   : > { %v6184_v42 = vpack.c.bf16 %v6137_v21, %v6136_v41  ;;  %v4805_v23 = vadd.f32 %v15387_v59, %v4644_v13  ;;  %v8109_v15 = vpop.f32.mrb[113].mxu1  ;;  %v4898_v33 = vmax.f32 %v4802_v54, 0.0  ;;  %8513 = vmatprep.subr.bf16.mxu0 %v10396_v17 }
 0x3c0   : > { %v6040_v46 = vsel %vm2371_vm3, %v6008_v12, %v10097_v1  ;;  %v6041_v7 = vsel %vm2371_vm3, %v6009_v22, %v10098_v45  ;;  %v8110_v61 = vadd.f32 %v8109_v15, %v8108_v18  ;;  %v8111_v40 = vpop.f32.mrb[114].mxu1 }
 0x3c1   : > { %6537 = vmatprep.mubr.bf16.mxu0 %v6184_v42  ;;  %v6183_v37 = vpack.c.bf16 %v6041_v7, %v6040_v46  ;;  %v4899_v56 = vmax.f32 %v4805_v23, 0.0  ;;  %v8112_v52 = vpop.f32.mrb[115].mxu1 }
 0x3c2   : > { %10160 = vrot.lane.b32.xlu0 %v15321_v5, %s10585_s15  ;;  %v4649_v51 = vadd.f32 %v8110_v61, %v15559_v58  ;;  %v8113_v63 = vadd.f32 %v8112_v52, %v8111_v40  ;;  %8514 = vmatpush3.bf16.msra.mxu0 %v10396_v17  ;;  %v17434_v40 = vld [vmem:[#allocation156_spill] sm:$0xff] }
 0x3c3   : > { %6538 = vmatmul.mubr.bf16.gmra.mrb[136].mxu0 %v6183_v37  ;;  %v10154_v3 = vpack.i.bf16 %v4899_v56, %v4898_v33 }
 0x3c4   : > { %v4810_v24 = vadd.f32 %v15427_v39, %v4649_v51  ;;  %v4652_v34 = vadd.f32 %v8113_v63, %v15559_v58 }
 0x3c5   : > { %10155 = vrot.lane.b32.xlu1 %v10154_v3, %s10586_s24  ;;  %v8208_v59 = vpop.f32.mrb[80].mxu0 }
 0x3c6   : > { %v4813_v11 = vadd.f32 %v15441_v32, %v4652_v34  ;;  %v8114_v26 = vpop.f32.mrb[116].mxu1  ;;  %v8209_v9 = vpop.f32.mrb[81].mxu0  ;;  %v4900_v30 = vmax.f32 %v4810_v24, 0.0 }
 0x3c7   : > { %v15671_v44 = vadd.f32 %v8209_v9, %v8208_v59  ;;  %v8115_v31 = vpop.f32.mrb[117].mxu1  ;;  %v8211_v5 = vpop.f32.mrb[82].mxu0 }
 0x3c8   : > { %v4901_v53 = vmax.f32 %v4813_v11, 0.0  ;;  %v8116_v39 = vadd.f32 %v8115_v31, %v8114_v26  ;;  %v8117_v38 = vpop.f32.mrb[118].mxu1  ;;  %v8212_v27 = vpop.f32.mrb[83].mxu0 }
 0x3c9   : > { %10165 = vrot.lane.b32.xlu1 %v15318_v48, %s10585_s15  ;;  %v15678_v50 = vadd.f32 %v8212_v27, %v8211_v5  ;;  %v8118_v32 = vpop.f32.mrb[119].mxu1  ;;  %v17435_v5 = vld [vmem:[#allocation54_spill] sm:$0xff] }
 0x3ca   : > { %v15680_v8 = vpack.i.bf16 %v4901_v53, %v4900_v30  ;;  %v4657_v49 = vadd.f32 %v8116_v39, %v15559_v58  ;;  %v8119_v22 = vadd.f32 %v8118_v32, %v8117_v38  ;;  %v17436_v53 = vld [vmem:[#allocation44_spill] sm:$0xff] }
 0x3cc   : > { %v4818_v28 = vadd.f32 %v15419_v47, %v4657_v49  ;;  %v4660_v6 = vadd.f32 %v8119_v22, %v15559_v58 }
 0x3ce   : > { %v4821_v45 = vadd.f32 %v15435_v57, %v4660_v6  ;;  %v4902_v10 = vmax.f32 %v4818_v28, 0.0 }
 0x3d0   : > { %v8120_v1 = vpop.f32.mrb[120].mxu1  ;;  %v4903_v48 = vmax.f32 %v4821_v45, 0.0 }
 0x3d1   : > { %v8121_v12 = vpop.f32.mrb[121].mxu1 }
 0x3d2   : > { %v8122_v0 = vadd.f32 %v8121_v12, %v8120_v1  ;;  %v8123_v41 = vpop.f32.mrb[122].mxu1  ;;  %v15686_v60 = vpack.i.bf16 %v4903_v48, %v4902_v10  ;;  %v10397_v12 = vld [vmem:[%s16276_s12 + $0x10] sm:$0xff]  }
 0x3d3   : > { %v8124_v21 = vpop.f32.mrb[123].mxu1  ;;  %8515 = vmatprep.subr.bf16.mxu0 %v10397_v12 }
 0x3d4   : > { %v4665_v62 = vadd.f32 %v8122_v0, %v15559_v58  ;;  %v8125_v55 = vadd.f32 %v8124_v21, %v8123_v41  ;;  %8516 = vmatpush3.bf16.msra.mxu0 %v10397_v12 }
 0x3d6   : > { %v4826_v20 = vadd.f32 %v15469_v43, %v4665_v62  ;;  %v4668_v47 = vadd.f32 %v8125_v55, %v15559_v58  ;;  %v8214_v42 = vpop.f32.mrb[84].mxu0  ;;  %v17437_v55 = vld [vmem:[#allocation124_spill] sm:$0xff] }
 0x3d7   : > { %v8215_v14 = vpop.f32.mrb[85].mxu0 }
 0x3d8   : > { %v4829_v19 = vadd.f32 %v15480_v36, %v4668_v47  ;;  %v8126_v57 = vpop.f32.mrb[124].mxu1  ;;  %v15692_v46 = vadd.f32 %v8215_v14, %v8214_v42  ;;  %v8217_v4 = vpop.f32.mrb[86].mxu0  ;;  %v4904_v25 = vmax.f32 %v4826_v20, 0.0  ;;  %v17438_v42 = vld [vmem:[#allocation161_spill] sm:$0xff] }
 0x3d9   : > { %v8127_v7 = vpop.f32.mrb[125].mxu1  ;;  %v8218_v43 = vpop.f32.mrb[87].mxu0 }
 0x3da   : > { %v4905_v54 = vmax.f32 %v4829_v19, 0.0  ;;  %v8128_v13 = vadd.f32 %v8127_v7, %v8126_v57  ;;  %v8129_v37 = vpop.f32.mrb[126].mxu1  ;;  %v15697_v23 = vadd.f32 %v8218_v43, %v8217_v4 }
 0x3db   : > { %v8130_v18 = vpop.f32.mrb[127].mxu1 }
 0x3dc   : > { %v15699_v36 = vpack.i.bf16 %v4905_v54, %v4904_v25  ;;  %v4673_v15 = vadd.f32 %v8128_v13, %v15559_v58  ;;  %v8131_v33 = vadd.f32 %v8130_v18, %v8129_v37  ;;  %v10398_v37 = vld [vmem:[%s16276_s12 + $0x18] sm:$0xff]  }
 0x3dd   : > { %8517 = vmatprep.subr.bf16.mxu0 %v10398_v37 }
 0x3de   : > { %v4834_v56 = vadd.f32 %v15465_v16, %v4673_v15  ;;  %v4676_v61 = vadd.f32 %v8131_v33, %v15559_v58  ;;  %8518 = vmatpush3.bf16.msra.mxu0 %v10398_v37  ;;  %v10401_v37 = vld [vmem:[%s16276_s12 + $0x30] sm:$0xff]  }
 0x3e0   : > { %v4837_v52 = vadd.f32 %v17434_v40, %v4676_v61  ;;  %v4906_v63 = vmax.f32 %v4834_v56, 0.0 }
 0x3e2   : > { %v4907_v24 = vmax.f32 %v4837_v52, 0.0 }
 0x3e3   : > { %v8132_v3 = vpop.f32.mrb[128].mxu1 }
 0x3e4   : > { %v8133_v51 = vpop.f32.mrb[129].mxu1  ;;  %v15705_v26 = vpack.i.bf16 %v4907_v24, %v4906_v63  ;;  %v17440_v24 = vld [vmem:[#allocation126_spill] sm:$0xff] }
 0x3e5   : > { %v8134_v34 = vadd.f32 %v8133_v51, %v8132_v3  ;;  %v8135_v59 = vpop.f32.mrb[130].mxu1  ;;  %v17439_v3 = vld [vmem:[#allocation79_spill] sm:$0xff] }
 0x3e6   : > { %v8136_v11 = vpop.f32.mrb[131].mxu1 }
 0x3e7   : > { %v4681_v9 = vadd.f32 %v8134_v34, %v15559_v58  ;;  %v8137_v31 = vadd.f32 %v8136_v11, %v8135_v59 }
 0x3e9   : > { %v4842_v35 = vadd.f32 %v17435_v5, %v4681_v9  ;;  %v4684_v16 = vadd.f32 %v8137_v31, %v15559_v58  ;;  %v8220_v30 = vpop.f32.mrb[88].mxu0 }
 0x3ea   : > { %v8221_v38 = vpop.f32.mrb[89].mxu0 }
 0x3eb   : > { %v4845_v39 = vadd.f32 %v17436_v53, %v4684_v16  ;;  %v15711_v27 = vadd.f32 %v8221_v38, %v8220_v30  ;;  %v8223_v32 = vpop.f32.mrb[90].mxu0  ;;  %v4908_v49 = vmax.f32 %v4842_v35, 0.0 }
 0x3ec   : > { %v8224_v28 = vpop.f32.mrb[91].mxu0 }
 0x3ed   : > { %v4909_v22 = vmax.f32 %v4845_v39, 0.0  ;;  %v15713_v6 = vadd.f32 %v8224_v28, %v8223_v32  ;;  %v10399_v32 = vld [vmem:[%s16276_s12 + $0x20] sm:$0xff]  }
 0x3ee   : > { %v8138_v1 = vpop.f32.mrb[132].mxu1  ;;  %8519 = vmatprep.subr.bf16.mxu0 %v10399_v32 }
 0x3ef   : > { %v15715_v45 = vpack.i.bf16 %v4909_v22, %v4908_v49  ;;  %v8139_v10 = vpop.f32.mrb[133].mxu1  ;;  %8520 = vmatpush3.bf16.msra.mxu0 %v10399_v32 }
 0x3f0   : > { %v8140_v48 = vadd.f32 %v8139_v10, %v8138_v1  ;;  %v8141_v0 = vpop.f32.mrb[134].mxu1  ;;  %v17441_v10 = vld [vmem:[#allocation80_spill] sm:$0xff] }
 0x3f1   : > { %v8142_v41 = vpop.f32.mrb[135].mxu1 }
 0x3f2   : > { %v4689_v21 = vadd.f32 %v8140_v48, %v15559_v58  ;;  %v8143_v62 = vadd.f32 %v8142_v41, %v8141_v0  ;;  %v17442_v41 = vld [vmem:[#allocation136_spill] sm:$0xff] }
 0x3f4   : > { %v4850_v20 = vadd.f32 %v17437_v55, %v4689_v21  ;;  %v4692_v47 = vadd.f32 %v8143_v62, %v15559_v58 }
 0x3f6   : > { %v4853_v19 = vadd.f32 %v17438_v42, %v4692_v47  ;;  %v4910_v57 = vmax.f32 %v4850_v20, 0.0 }
 0x3f8   : > { %v4911_v14 = vmax.f32 %v4853_v19, 0.0  ;;  %v8226_v7 = vpop.f32.mrb[92].mxu0 }
 0x3f9   : > { %v8227_v17 = vpop.f32.mrb[93].mxu0 }
 0x3fa   : > { %v15724_v4 = vpack.i.bf16 %v4911_v14, %v4910_v57  ;;  %v15726_v25 = vadd.f32 %v8227_v17, %v8226_v7  ;;  %v8229_v54 = vpop.f32.mrb[94].mxu0  ;;  %v10400_v17 = vld [vmem:[%s16276_s12 + $0x28] sm:$0xff]  }
 0x3fb   : > { %v8230_v13 = vpop.f32.mrb[95].mxu0  ;;  %8521 = vmatprep.subr.bf16.mxu0 %v10400_v17 }
 0x3fc   : > { %v15731_v43 = vadd.f32 %v8230_v13, %v8229_v54  ;;  %8522 = vmatpush3.bf16.msra.mxu0 %v10400_v17 }
 0x3fd   : > { %8523 = vmatprep.subr.bf16.mxu0 %v10401_v37 }
 0x3fe   : > { %v8144_v18 = vpop.f32.mrb[136].mxu1 }
 0x3ff   : > { %v8145_v15 = vpop.f32.mrb[137].mxu1 }
 0x400   : > { %v8146_v33 = vadd.f32 %v8145_v15, %v8144_v18  ;;  %v8147_v56 = vpop.f32.mrb[138].mxu1  ;;  %8524 = vmatpush3.bf16.msra.mxu0 %v10401_v37 }
 0x401   : > { %v8148_v61 = vpop.f32.mrb[139].mxu1 }
 0x402   : > { %v4697_v40 = vadd.f32 %v8146_v33, %v15559_v58  ;;  %v8149_v52 = vadd.f32 %v8148_v61, %v8147_v56 }
 0x404   : > { %v4858_v51 = vadd.f32 %v17439_v3, %v4697_v40  ;;  %v4700_v63 = vadd.f32 %v8149_v52, %v15559_v58  ;;  %v17443_v40 = vld [vmem:[#allocation139_spill] sm:$0xff] }
 0x406   : > { %v4861_v34 = vadd.f32 %v17440_v24, %v4700_v63  ;;  %v4912_v59 = vmax.f32 %v4858_v51, 0.0  ;;  %v17444_v51 = vld [vmem:[#allocation87_spill] sm:$0xff] }
 0x408   : > { %v4913_v11 = vmax.f32 %v4861_v34, 0.0 }
 0x40a   : > { %v15737_v9 = vpack.i.bf16 %v4913_v11, %v4912_v59  ;;  %v8232_v31 = vpop.f32.mrb[96].mxu0 }
 0x40b   : > { %v8233_v5 = vpop.f32.mrb[97].mxu0 }
 0x40c   : > { %v15739_v35 = vadd.f32 %v8233_v5, %v8232_v31  ;;  %v8235_v16 = vpop.f32.mrb[98].mxu0 }
 0x40d   : > { %v8236_v30 = vpop.f32.mrb[99].mxu0 }
 0x40e   : > { %v15741_v53 = vadd.f32 %v8236_v30, %v8235_v16 }
 0x411   : > { %v8150_v39 = vpop.f32.mrb[140].mxu1 }
 0x412   : > { %v8151_v38 = vpop.f32.mrb[141].mxu1 }
 0x413   : > { %v8152_v49 = vadd.f32 %v8151_v38, %v8150_v39  ;;  %v8153_v22 = vpop.f32.mrb[142].mxu1 }
 0x414   : > { %v8154_v28 = vpop.f32.mrb[143].mxu1 }
 0x415   : > { %v4705_v1 = vadd.f32 %v8152_v49, %v15559_v58  ;;  %v8155_v12 = vadd.f32 %v8154_v28, %v8153_v22 }
 0x417   : > { %v4866_v48 = vadd.f32 %v17441_v10, %v4705_v1  ;;  %v4708_v0 = vadd.f32 %v8155_v12, %v15559_v58  ;;  %v15776_v10 = vld [vmem:[%s16274_s10] ss:$0 sm:$0xff] }
 0x419   : > { %v4869_v21 = vadd.f32 %v17442_v41, %v4708_v0  ;;  %v4914_v62 = vmax.f32 %v4866_v48, 0.0  ;;  %v17445_v48 = vld [vmem:[#allocation111_spill] sm:$0xff] }
 0x41b   : > { %v4915_v55 = vmax.f32 %v4869_v21, 0.0  ;;  %v6428_v21 = vadd.f32 %v15671_v44, %v15776_v10 }
 0x41d   : > { %v15750_v20 = vpack.i.bf16 %v4915_v55, %v4914_v62  ;;  %v10402_v62 = vld [vmem:[%s16276_s12 + $0x38] sm:$0xff]   ;;  %v17446_v55 = vld [vmem:[#allocation107_spill] sm:$0xff] }
 0x41e   : > { %8525 = vmatprep.subr.bf16.mxu0 %v10402_v62 }
 0x41f   : > { %v8238_v47 = vpop.f32.mrb[100].mxu0  ;;  %8526 = vmatpush3.bf16.msra.mxu0 %v10402_v62 }
 0x420   : > { %v8239_v42 = vpop.f32.mrb[101].mxu0 }
 0x421   : > { %v15752_v19 = vadd.f32 %v8239_v42, %v8238_v47  ;;  %v8241_v57 = vpop.f32.mrb[102].mxu0 }
 0x422   : > { %v8242_v14 = vpop.f32.mrb[103].mxu0 }
 0x423   : > { %v15754_v7 = vadd.f32 %v8242_v14, %v8241_v57  ;;  %v6420_v57 = vadd.f32 %v15649_v29, %v15776_v10 }
 0x426   : > { %v8156_v54 = vpop.f32.mrb[144].mxu1 }
 0x427   : > { %v8157_v13 = vpop.f32.mrb[145].mxu1 }
 0x428   : > { %v8158_v18 = vadd.f32 %v8157_v13, %v8156_v54  ;;  %v8159_v15 = vpop.f32.mrb[146].mxu1  ;;  %v6431_v54 = vadd.f32 %v15678_v50, %v15776_v10 }
 0x429   : > { %v8160_v33 = vpop.f32.mrb[147].mxu1 }
 0x42a   : > { %v4713_v56 = vadd.f32 %v8158_v18, %v15559_v58  ;;  %v8161_v61 = vadd.f32 %v8160_v33, %v8159_v15  ;;  %v6423_v33 = vadd.f32 %v15658_v2, %v15776_v10 }
 0x42c   : > { %v4874_v52 = vadd.f32 %v17443_v40, %v4713_v56  ;;  %v4716_v3 = vadd.f32 %v8161_v61, %v15559_v58 }
 0x42e   : > { %v4877_v63 = vadd.f32 %v17444_v51, %v4716_v3  ;;  %v4916_v24 = vmax.f32 %v4874_v52, 0.0 }
 0x430   : > { %v4917_v34 = vmax.f32 %v4877_v63, 0.0  ;;  %v8244_v11 = vpop.f32.mrb[104].mxu0 }
 0x431   : > { %v8245_v31 = vpop.f32.mrb[105].mxu0 }
 0x432   : > { %v15766_v59 = vpack.i.bf16 %v4917_v34, %v4916_v24  ;;  %v15768_v5 = vadd.f32 %v8245_v31, %v8244_v11  ;;  %v8247_v16 = vpop.f32.mrb[106].mxu0  ;;  %v6444_v24 = vadd.f32 %v15711_v27, %v15776_v10  ;;  %v6439_v27 = vadd.f32 %v15697_v23, %v15776_v10 }
 0x433   : > { %v8248_v30 = vpop.f32.mrb[107].mxu0  ;;  %v6460_v23 = vadd.f32 %v15739_v35, %v15776_v10  ;;  %v6455_v35 = vadd.f32 %v15731_v43, %v15776_v10 }
 0x434   : > { %v15770_v39 = vadd.f32 %v8248_v30, %v8247_v16  ;;  %v6436_v30 = vadd.f32 %v15692_v46, %v15776_v10  ;;  %v6476_v43 = vadd.f32 %v15768_v5, %v15776_v10 }
 0x438   : > { %v8162_v38 = vpop.f32.mrb[148].mxu1 }
 0x439   : > { %v8163_v32 = vpop.f32.mrb[149].mxu1 }
 0x43a   : > { %v8164_v49 = vadd.f32 %v8163_v32, %v8162_v38  ;;  %v8165_v22 = vpop.f32.mrb[150].mxu1 }
 0x43b   : > { %v8166_v28 = vpop.f32.mrb[151].mxu1 }
 0x43c   : > { %v4721_v1 = vadd.f32 %v8164_v49, %v15559_v58  ;;  %v8167_v12 = vadd.f32 %v8166_v28, %v8165_v22  ;;  %v6447_v22 = vadd.f32 %v15713_v6, %v15776_v10 }
 0x43e   : > { %v4882_v0 = vadd.f32 %v17445_v48, %v4721_v1  ;;  %v4724_v41 = vadd.f32 %v8167_v12, %v15559_v58 }
 0x440   : > { %v4885_v47 = vadd.f32 %v17446_v55, %v4724_v41  ;;  %v8470_v42 = vpop.f32.mrb[152].mxu1  ;;  %v4918_v58 = vmax.f32 %v4882_v0, 0.0 }
 0x441   : > { %v6589_v14 = vadd.f32 %v8470_v42, %v6428_v21  ;;  %v6580_v17 = vpop.f32.mrb[153].mxu1 }
 0x442   : > { %v4919_v13 = vmax.f32 %v4885_v47, 0.0  ;;  %v6581_v37 = vadd.f32 %v6580_v17, %v6420_v57  ;;  %v8471_v44 = vpop.f32.mrb[154].mxu1  ;;  %v8250_v15 = vpop.f32.mrb[108].mxu0 }
 0x443   : > { %v6592_v18 = vadd.f32 %v8471_v44, %v6431_v54  ;;  %v6583_v61 = vpop.f32.mrb[155].mxu1  ;;  %v8251_v29 = vpop.f32.mrb[109].mxu0  ;;  %v6709_v40 = vmax.f32 %v6589_v14, 0.0  ;;  %v6452_v14 = vadd.f32 %v15726_v25, %v15776_v10 }
 0x444   : > { %v15792_v56 = vpack.i.bf16 %v4919_v13, %v4918_v58  ;;  %v6584_v3 = vadd.f32 %v6583_v61, %v6423_v33  ;;  %v15794_v51 = vadd.f32 %v8251_v29, %v8250_v15  ;;  %v8253_v50 = vpop.f32.mrb[110].mxu0  ;;  %v6707_v34 = vmax.f32 %v6581_v37, 0.0 }
 0x445   : > { %v6710_v52 = vmax.f32 %v6592_v18, 0.0  ;;  %v8254_v63 = vpop.f32.mrb[111].mxu0  ;;  %v6463_v13 = vadd.f32 %v15741_v53, %v15776_v10 }
 0x446   : > { %v6708_v31 = vmax.f32 %v6584_v3, 0.0  ;;  %v15798_v16 = vadd.f32 %v8254_v63, %v8253_v50  ;;  %v17448_v50 = vld [vmem:[#allocation99_spill] sm:$0xff] }
 0x447   : > { %v10169_v11 = vpack.i.bf16 %v6710_v52, %v6709_v40  ;;  %v17447_v40 = vld [vmem:[#allocation130_spill] sm:$0xff] }
 0x448   : > { %v8474_v2 = vpop.f32.mrb[156].mxu1  ;;  %v10174_v38 = vpack.i.bf16 %v6708_v31, %v6707_v34  ;;  %v6468_v34 = vadd.f32 %v15752_v19, %v15776_v10 }
 0x449   : > { %v6605_v32 = vadd.f32 %v8474_v2, %v6444_v24  ;;  %v6596_v49 = vpop.f32.mrb[157].mxu1  ;;  %10170 = vrot.lane.b32.xlu1 %v10169_v11, %s10587_s21  ;;  %v6479_v2 = vadd.f32 %v15770_v39, %v15776_v10 }
 0x44a   : > { %v6597_v28 = vadd.f32 %v6596_v49, %v6436_v30  ;;  %v8475_v1 = vpop.f32.mrb[158].mxu1  ;;  %10175 = vrot.lane.b32.xlu0 %v10174_v38, %s10587_s21 }
 0x44b   : > { %v6608_v12 = vadd.f32 %v8475_v1, %v6447_v22  ;;  %v6599_v48 = vpop.f32.mrb[159].mxu1  ;;  %v6713_v41 = vmax.f32 %v6605_v32, 0.0  ;;  %v6471_v32 = vadd.f32 %v15754_v7, %v15776_v10 }
 0x44c   : > { %v6600_v0 = vadd.f32 %v6599_v48, %v6439_v27  ;;  %v6711_v21 = vmax.f32 %v6597_v28, 0.0 }
 0x44d   : > { %v6714_v46 = vmax.f32 %v6608_v12, 0.0  ;;  %10185 = vrot.lane.b32.xlu1 %v15686_v60, %s10586_s24  ;;  %v8256_v6 = vpop.f32.mrb[112].mxu0 }
 0x44e   : > { %v6712_v62 = vmax.f32 %v6600_v0, 0.0  ;;  %10180 = vrot.lane.b32.xlu0 %v15680_v8, %s10586_s24  ;;  %v8257_v42 = vpop.f32.mrb[113].mxu0 }
 0x44f   : > { %v10189_v55 = vpack.i.bf16 %v6714_v46, %v6713_v41  ;;  %v8258_v17 = vadd.f32 %v8257_v42, %v8256_v6  ;;  %v8259_v58 = vpop.f32.mrb[114].mxu0  ;;  %v6484_v6 = vadd.f32 %v15794_v51, %v15776_v10  ;;  %v17449_v51 = vld [vmem:[#allocation134_spill] sm:$0xff] }
 0x450   : > { %v10194_v47 = vpack.i.bf16 %v6712_v62, %v6711_v21  ;;  %v8478_v57 = vpop.f32.mrb[160].mxu1  ;;  %v8260_v37 = vpop.f32.mrb[115].mxu0 }
 0x451   : > { %v6621_v54 = vadd.f32 %v8478_v57, %v6460_v23  ;;  %v6612_v60 = vpop.f32.mrb[161].mxu1  ;;  %10190 = vrot.lane.b32.xlu1 %v10189_v55, %s10587_s21  ;;  %v8261_v18 = vadd.f32 %v8260_v37, %v8259_v58  ;;  %v6492_v7 = vadd.f32 %v8258_v17, %v15776_v10 }
 0x452   : > { %v6613_v8 = vadd.f32 %v6612_v60, %v6452_v14  ;;  %v8479_v44 = vpop.f32.mrb[162].mxu1  ;;  %10195 = vrot.lane.b32.xlu0 %v10194_v47, %s10587_s21  ;;  %v6487_v14 = vadd.f32 %v15798_v16, %v15776_v10 }
 0x453   : > { %v6624_v15 = vadd.f32 %v8479_v44, %v6463_v13  ;;  %v6615_v25 = vpop.f32.mrb[163].mxu1  ;;  %v6717_v61 = vmax.f32 %v6621_v54, 0.0  ;;  %v17450_v44 = vld [vmem:[#allocation52_spill] sm:$0xff] }
 0x454   : > { %v6616_v33 = vadd.f32 %v6615_v25, %v6455_v35  ;;  %v6715_v52 = vmax.f32 %v6613_v8, 0.0 }
 0x455   : > { %v6718_v29 = vmax.f32 %v6624_v15, 0.0  ;;  %10205 = vrot.lane.b32.xlu1 %v17447_v40, %s10585_s15 }
 0x456   : > { %v6716_v3 = vmax.f32 %v6616_v33, 0.0  ;;  %10200 = vrot.lane.b32.xlu0 %v17448_v50, %s10585_s15 }
 0x457   : > { %v10209_v53 = vpack.i.bf16 %v6718_v29, %v6717_v61  ;;  %v8262_v5 = vpop.f32.mrb[116].mxu0 }
 0x458   : > { %v10214_v63 = vpack.i.bf16 %v6716_v3, %v6715_v52  ;;  %v8482_v24 = vpop.f32.mrb[164].mxu1  ;;  %v8263_v1 = vpop.f32.mrb[117].mxu0 }
 0x459   : > { %v6637_v11 = vadd.f32 %v8482_v24, %v6476_v43  ;;  %v6628_v31 = vpop.f32.mrb[165].mxu1  ;;  %10210 = vrot.lane.b32.xlu1 %v10209_v53, %s10587_s21  ;;  %v8264_v12 = vadd.f32 %v8263_v1, %v8262_v5  ;;  %v8265_v48 = vpop.f32.mrb[118].mxu0 }
 0x45a   : > { %v6629_v30 = vadd.f32 %v6628_v31, %v6468_v34  ;;  %v8483_v38 = vpop.f32.mrb[166].mxu1  ;;  %10215 = vrot.lane.b32.xlu0 %v10214_v63, %s10587_s21  ;;  %v8266_v41 = vpop.f32.mrb[119].mxu0 }
 0x45b   : > { %v6640_v49 = vadd.f32 %v8483_v38, %v6479_v2  ;;  %v6631_v22 = vpop.f32.mrb[167].mxu1  ;;  %v6721_v19 = vmax.f32 %v6637_v11, 0.0  ;;  %v8267_v21 = vadd.f32 %v8266_v41, %v8265_v48  ;;  %v6500_v25 = vadd.f32 %v8264_v12, %v15776_v10 }
 0x45c   : > { %v6632_v28 = vadd.f32 %v6631_v22, %v6471_v32  ;;  %v6719_v39 = vmax.f32 %v6629_v30, 0.0 }
 0x45d   : > { %v6722_v27 = vmax.f32 %v6640_v49, 0.0  ;;  %10225 = vrot.lane.b32.xlu1 %v15705_v26, %s10586_s24  ;;  %v6495_v26 = vadd.f32 %v8261_v18, %v15776_v10  ;;  %v6503_v53 = vadd.f32 %v8267_v21, %v15776_v10  ;;  %v17452_v21 = vld [vmem:[#allocation90_spill] sm:$0xff] }
 0x45e   : > { %v6720_v0 = vmax.f32 %v6632_v28, 0.0  ;;  %10220 = vrot.lane.b32.xlu0 %v15699_v36, %s10586_s24 }
 0x45f   : > { %v10229_v46 = vpack.i.bf16 %v6722_v27, %v6721_v19 }
 0x460   : > { %v10234_v62 = vpack.i.bf16 %v6720_v0, %v6719_v39  ;;  %v8486_v55 = vpop.f32.mrb[168].mxu1  ;;  %v17451_v39 = vld [vmem:[#allocation125_spill] sm:$0xff] }
 0x461   : > { %v6653_v23 = vadd.f32 %v8486_v55, %v6492_v7  ;;  %v6644_v47 = vpop.f32.mrb[169].mxu1  ;;  %10230 = vrot.lane.b32.xlu1 %v10229_v46, %s10587_s21 }
 0x462   : > { %v6645_v42 = vadd.f32 %v6644_v47, %v6484_v6  ;;  %v8487_v57 = vpop.f32.mrb[170].mxu1  ;;  %10235 = vrot.lane.b32.xlu0 %v10234_v62, %s10587_s21 }
 0x463   : > { %v6656_v54 = vadd.f32 %v8487_v57, %v6495_v26  ;;  %v6647_v36 = vpop.f32.mrb[171].mxu1  ;;  %v6725_v58 = vmax.f32 %v6653_v23, 0.0 }
 0x464   : > { %v6648_v17 = vadd.f32 %v6647_v36, %v6487_v14  ;;  %v6723_v13 = vmax.f32 %v6645_v42, 0.0 }
 0x465   : > { %v6726_v60 = vmax.f32 %v6656_v54, 0.0  ;;  %10245 = vrot.lane.b32.xlu1 %v17449_v51, %s10585_s15  ;;  %v8268_v35 = vpop.f32.mrb[120].mxu0 }
 0x466   : > { %v6724_v8 = vmax.f32 %v6648_v17, 0.0  ;;  %10240 = vrot.lane.b32.xlu0 %v17450_v44, %s10585_s15  ;;  %v8269_v15 = vpop.f32.mrb[121].mxu0 }
 0x467   : > { %v10249_v37 = vpack.i.bf16 %v6726_v60, %v6725_v58  ;;  %v8270_v33 = vadd.f32 %v8269_v15, %v8268_v35  ;;  %v8271_v61 = vpop.f32.mrb[122].mxu0 }
 0x468   : > { %v10254_v18 = vpack.i.bf16 %v6724_v8, %v6723_v13  ;;  %v8490_v16 = vpop.f32.mrb[172].mxu1  ;;  %v8272_v52 = vpop.f32.mrb[123].mxu0 }
 0x469   : > { %v6660_v29 = vpop.f32.mrb[173].mxu1  ;;  %10250 = vrot.lane.b32.xlu1 %v10249_v37, %s10587_s21  ;;  %v6508_v50 = vadd.f32 %v8270_v33, %v15776_v10  ;;  %v8273_v43 = vadd.f32 %v8272_v52, %v8271_v61 }
 0x46a   : > { %v6661_v40 = vadd.f32 %v6660_v29, %v6500_v25  ;;  %v8491_v3 = vpop.f32.mrb[174].mxu1  ;;  %10255 = vrot.lane.b32.xlu0 %v10254_v18, %s10587_s21 }
 0x46b   : > { %v6663_v63 = vpop.f32.mrb[175].mxu1  ;;  %v6669_v34 = vadd.f32 %v8490_v16, %v6508_v50  ;;  %v6511_v11 = vadd.f32 %v8273_v43, %v15776_v10  ;;  %v17454_v50 = vld [vmem:[#allocation155_spill] sm:$0xff] }
 0x46c   : > { %v6664_v24 = vadd.f32 %v6663_v63, %v6503_v53  ;;  %v6727_v31 = vmax.f32 %v6661_v40, 0.0 }
 0x46d   : > { %10265 = vrot.lane.b32.xlu1 %v15724_v4, %s10586_s24  ;;  %v6672_v30 = vadd.f32 %v8491_v3, %v6511_v11  ;;  %v6729_v49 = vmax.f32 %v6669_v34, 0.0 }
 0x46e   : > { %v6728_v2 = vmax.f32 %v6664_v24, 0.0  ;;  %10260 = vrot.lane.b32.xlu0 %v15715_v45, %s10586_s24  ;;  %v10106_v24 = vpop.permute.xlu1 %10105 }
 0x46f   : > { %v6730_v5 = vmax.f32 %v6672_v30, 0.0 }
 0x470   : > { %v10274_v38 = vpack.i.bf16 %v6728_v2, %v6727_v31  ;;  %v8494_v32 = vpop.f32.mrb[176].mxu1  ;;  %v8274_v27 = vpop.f32.mrb[124].mxu0 }
 0x471   : > { %v6676_v22 = vpop.f32.mrb[177].mxu1  ;;  %v10269_v1 = vpack.i.bf16 %v6730_v5, %v6729_v49  ;;  %v8275_v4 = vpop.f32.mrb[125].mxu0 }
 0x472   : > { %v8495_v28 = vpop.f32.mrb[178].mxu1  ;;  %10275 = vrot.lane.b32.xlu0 %v10274_v38, %s10587_s21  ;;  %v8276_v12 = vadd.f32 %v8275_v4, %v8274_v27  ;;  %v8277_v48 = vpop.f32.mrb[126].mxu0 }
 0x473   : > { %v6679_v19 = vpop.f32.mrb[179].mxu1  ;;  %10270 = vrot.lane.b32.xlu1 %v10269_v1, %s10587_s21  ;;  %v8278_v45 = vpop.f32.mrb[127].mxu0 }
 0x474   : > { %v8279_v41 = vadd.f32 %v8278_v45, %v8277_v48  ;;  %v6516_v46 = vadd.f32 %v8276_v12, %v15776_v10  ;;  %v10101_v31 = vpop.permute.xlu0 %10100 }
 0x476   : > { %10280 = vrot.lane.b32.xlu0 %v17451_v39, %s10585_s15  ;;  %v6677_v55 = vadd.f32 %v6676_v22, %v6516_v46  ;;  %v6519_v6 = vadd.f32 %v8279_v41, %v15776_v10 }
 0x477   : > { %10285 = vrot.lane.b32.xlu1 %v17452_v21, %s10585_s15 }
 0x478   : > { %v8498_v0 = vpop.f32.mrb[180].mxu1  ;;  %v6680_v47 = vadd.f32 %v6679_v19, %v6519_v6  ;;  %v6731_v26 = vmax.f32 %v6677_v55, 0.0  ;;  %v17456_v55 = vld [vmem:[#allocation96_spill] sm:$0xff] }
 0x479   : > { %v6692_v7 = vpop.f32.mrb[181].mxu1 }
 0x47a   : > { %v8499_v62 = vpop.f32.mrb[182].mxu1  ;;  %10290 = vrot.lane.b32.xlu0 %v15737_v9, %s10586_s24  ;;  %v6732_v42 = vmax.f32 %v6680_v47, 0.0  ;;  %v17457_v47 = vld [vmem:[#allocation98_spill] sm:$0xff] }
 0x47b   : > { %v6695_v23 = vpop.f32.mrb[183].mxu1  ;;  %10295 = vrot.lane.b32.xlu1 %v15750_v20, %s10586_s24  ;;  %v17453_v20 = vld [vmem:[#allocation157_spill] sm:$0xff] }
 0x47c   : > { %v10299_v14 = vpack.i.bf16 %v6732_v42, %v6731_v26  ;;  %v17458_v42 = vld [vmem:[#allocation101_spill] sm:$0xff] }
 0x47d   : > { %v8280_v54 = vpop.f32.mrb[128].mxu0 }
 0x47e   : > { %v8281_v17 = vpop.f32.mrb[129].mxu0  ;;  %10300 = vrot.lane.b32.xlu0 %v10299_v14, %s10587_s21 }
 0x47f   : > { %v8282_v58 = vadd.f32 %v8281_v17, %v8280_v54  ;;  %v8283_v60 = vpop.f32.mrb[130].mxu0  ;;  %v17459_v54 = vld [vmem:[#allocation75_spill] sm:$0xff]  ;;  %v17460_v17 = vld [vmem:[#allocation113_spill] sm:$0xff] }
 0x480   : > { %v15874_v57 = vpop.f32.mrb[2].mxu1  ;;  %v8284_v51 = vpop.f32.mrb[131].mxu0 }
 0x481   : > { %v8510_v36 = vpop.f32.mrb[3].mxu1  ;;  %v6524_v9 = vadd.f32 %v8282_v58, %v15776_v10  ;;  %v8285_v13 = vadd.f32 %v8284_v51, %v8283_v60  ;;  %v17461_v60 = vld [vmem:[#allocation102_spill] sm:$0xff] }
 0x482   : > { %10310 = vrot.lane.b32.xlu0 %v17453_v20, %s10585_s15 }
 0x483   : > { %v6685_v8 = vadd.f32 %v8494_v32, %v6524_v9  ;;  %v6527_v37 = vadd.f32 %v8285_v13, %v15776_v10  ;;  %v10116_v32 = vpop.permute.xlu1 %10115 }
 0x485   : > { %v6688_v44 = vadd.f32 %v8495_v28, %v6527_v37  ;;  %v6733_v35 = vmax.f32 %v6685_v8, 0.0  ;;  %v10111_v28 = vpop.permute.xlu0 %10110  ;;  %v17462_v8 = vld [vmem:[#allocation93_spill] sm:$0xff] }
 0x486   : > { %10320 = vrot.lane.b32.xlu0 %v15766_v59, %s10586_s24 }
 0x487   : > { %v6734_v18 = vmax.f32 %v6688_v44, 0.0 }
 0x488   : > { %v8286_v16 = vpop.f32.mrb[132].mxu0 }
 0x489   : > { %v10304_v15 = vpack.i.bf16 %v6734_v18, %v6733_v35  ;;  %v8287_v25 = vpop.f32.mrb[133].mxu0  ;;  %v15895_v48 = vpop.permute.xlu0 %10120  ;;  %v10108_v18 = vunpack.i.h.bf16 %v10106_v24 }
 0x48a   : > { %v8288_v33 = vadd.f32 %v8287_v25, %v8286_v16  ;;  %v8289_v61 = vpop.f32.mrb[134].mxu0  ;;  %v10103_v16 = vunpack.i.h.bf16 %v10101_v31  ;;  %v10102_v25 = vunpack.i.l.bf16 %v10101_v31 }
 0x48b   : > { %10305 = vrot.lane.b32.xlu1 %v10304_v15, %s10587_s21  ;;  %v8290_v29 = vpop.f32.mrb[135].mxu0  ;;  %v10107_v15 = vunpack.i.l.bf16 %v10106_v24  ;;  %v10113_v24 = vunpack.i.h.bf16 %v10111_v28 }
 0x48c   : > { %v6532_v40 = vadd.f32 %v8288_v33, %v15776_v10  ;;  %v8291_v52 = vadd.f32 %v8290_v29, %v8289_v61  ;;  %v10118_v33 = vunpack.i.h.bf16 %v10116_v32  ;;  %v10117_v61 = vunpack.i.l.bf16 %v10116_v32 }
 0x48d   : > { %v15900_v41 = vpop.permute.xlu0 %10130 }
 0x48e   : > { %v6693_v3 = vadd.f32 %v6692_v7, %v6532_v40  ;;  %v6535_v53 = vadd.f32 %v8291_v52, %v15776_v10  ;;  %v17455_v7 = vld [vmem:[#allocation112_spill] sm:$0xff] }
 0x48f   : > { %10315 = vrot.lane.b32.xlu1 %v17454_v50, %s10585_s15  ;;  %s10506_s15 = scalar_lea.vmem %s16216_s23, 1024 }
 0x490   : > { %v6696_v43 = vadd.f32 %v6695_v23, %v6535_v53  ;;  %v6735_v63 = vmax.f32 %v6693_v3, 0.0  ;;  %v17463_v53 = vld [vmem:[#allocation117_spill] sm:$0xff]  ;;  %p10507_p12 = scmp.ne.s32.totalorder %s16216_s23, %s10506_s15 }
 0x491   : > { %v15904_v21 = vpop.permute.xlu0 %10140 }
 0x492   : > { %v6736_v59 = vmax.f32 %v6696_v43, 0.0  ;;  %p10508_p2 = pnand %p10507_p12, %p17489_p1 }
 0x493   : > { %10325 = vrot.lane.b32.xlu1 %v15792_v56, %s10586_s24  ;;  %v15893_v56 = vpop.permute.xlu1 %10125  ;;  %s10510_s24 = sshll.u32 %s10590_s17, 4  ;;  %s10511_s24 = int_to_ptr.vmem [resolvable:$false] %s10510_s24 }
 0x494   : > { %v10329_v34 = vpack.i.bf16 %v6736_v59, %v6735_v63  ;;  %v17464_v63 = vld [vmem:[#allocation73_spill] sm:$0xff]  ;;  %p10509_p3 = pneg %p10508_p2  ;;  %p10513_p4 = scmp.lt.s32.totalorder %s16216_s23, %s10511_s24 }
 0x495   : > { %v15917_v23 = vpop.permute.xlu0 %10150 }
 0x496   : > { %v8292_v11 = vpop.f32.mrb[136].mxu0  ;;  %10330 = vrot.lane.b32.xlu0 %v10329_v34, %s10587_s21  ;;  %v10112_v34 = vunpack.i.l.bf16 %v10111_v28 }
 0x497   : > { %v8293_v2 = vpop.f32.mrb[137].mxu0  ;;  %v15897_v45 = vpop.permute.xlu1 %10135 }
 0x498   : > { %v8294_v30 = vadd.f32 %v8293_v2, %v8292_v11  ;;  %v8295_v38 = vpop.f32.mrb[138].mxu0 }
 0x499   : > { %v8296_v49 = vpop.f32.mrb[139].mxu0  ;;  %v15939_v29 = vpop.permute.xlu0 %10160 }
 0x49a   : > { %v6540_v5 = vadd.f32 %v8294_v30, %v15776_v10  ;;  %v8297_v22 = vadd.f32 %v8296_v49, %v8295_v38 }
 0x49b   : > { %v15902_v46 = vpop.permute.xlu1 %10145 }
 0x49c   : > { %v6701_v1 = vadd.f32 %v8498_v0, %v6540_v5  ;;  %v6543_v19 = vadd.f32 %v8297_v22, %v15776_v10  ;;  %v15911_v10 = vld [vmem:[%s16268_s4] ss:$0 sm:$0xff] }
 0x49d   : > { %v1122_v6 = vadd.f32 %v15911_v10, %v17456_v55  ;;  %v1133_v26 = vadd.f32 %v15911_v10, %v17457_v47  ;;  %v1125_v14 = vadd.f32 %v15911_v10, %v17458_v42  ;;  %v15925_v36 = vadd.f32 %v15911_v10, %v17459_v54 }
 0x49e   : > { %v6704_v27 = vadd.f32 %v8499_v62, %v6543_v19  ;;  %v6737_v4 = vmax.f32 %v6701_v1, 0.0  ;;  %v1130_v62 = vadd.f32 %v15911_v10, %v17455_v7  ;;  %v15929_v58 = vadd.f32 %v15911_v10, %v17460_v17 }
 0x49f   : > { %v15906_v0 = vpop.permute.xlu1 %10155  ;;  %v1149_v51 = vadd.f32 %v15911_v10, %v17461_v60  ;;  %v1248_v13 = vmax.f32 %v1122_v6, 0.0  ;;  %v15935_v37 = vadd.f32 %v15911_v10, %v17462_v8  ;;  %v1251_v44 = vmax.f32 %v1133_v26, 0.0 }
 0x4a0   : > { %v6738_v12 = vmax.f32 %v6704_v27, 0.0  ;;  %v1250_v9 = vmax.f32 %v1130_v62, 0.0  ;;  %v1249_v35 = vmax.f32 %v1125_v14, 0.0  ;;  %v1254_v40 = vmax.f32 %v15925_v36, 0.0 }
 0x4a1   : > { %v1252_v52 = vmax.f32 %v15929_v58, 0.0  ;;  %v1255_v3 = vmax.f32 %v1149_v51, 0.0  ;;  %v15945_v50 = vadd.f32 %v15911_v10, %v17463_v53  ;;  %v1253_v43 = vmax.f32 %v15935_v37, 0.0  ;;  %v17467_v37 = vld [vmem:[#allocation115_spill] sm:$0xff] }
 0x4a2   : > { %v10334_v39 = vpack.i.bf16 %v6738_v12, %v6737_v4  ;;  %v15950_v59 = vadd.f32 %v15911_v10, %v17464_v63  ;;  %v7126_v31 = vsel %vm529_vm0, %v1251_v44, %v10108_v18  ;;  %v7125_v2 = vsel %vm529_vm0, %v1250_v9, %v10107_v15  ;;  %v17465_v9 = vld [vmem:[#allocation95_spill] sm:$0xff]  ;;  %v17468_v44 = vld [vmem:[#allocation48_spill] sm:$0xff] }
 0x4a3   : > { %v15937_v20 = vpop.permute.xlu1 %10165  ;;  %v7124_v32 = vsel %vm529_vm0, %v1249_v35, %v10103_v16  ;;  %v7123_v49 = vsel %vm529_vm0, %v1248_v13, %v10102_v25  ;;  %v7158_v5 = vsel %vm2338_vm2, %v7126_v31, %v10118_v33  ;;  %v7157_v22 = vsel %vm2338_vm2, %v7125_v2, %v10117_v61  ;;  %v17466_v13 = vld [vmem:[#allocation119_spill] sm:$0xff] }
 0x4a4   : > { %10335 = vrot.lane.b32.xlu1 %v10334_v39, %s10587_s21  ;;  %v7156_v12 = vsel %vm2338_vm2, %v7124_v32, %v10113_v24  ;;  %v7155_v39 = vsel %vm2338_vm2, %v7123_v49, %v10112_v34  ;;  %v10123_v7 = vunpack.i.h.bf16 %v15895_v48  ;;  %v10128_v6 = vunpack.i.h.bf16 %v15893_v56  ;;  %s10512_s21 = scalar_lea.vmem %s10511_s24, 2048 }
 0x4a5   : > { %v10127_v47 = vunpack.i.l.bf16 %v15893_v56  ;;  %v10122_v14 = vunpack.i.l.bf16 %v15895_v48  ;;  %v10138_v54 = vunpack.i.h.bf16 %v15897_v45  ;;  %v10137_v36 = vunpack.i.l.bf16 %v15897_v45  ;;  %p10514_p7 = scmp.lt.s32.totalorder %s10512_s21, %s10506_s15 }
 0x4a6   : > { %v1258_v60 = vmax.f32 %v15945_v50, 0.0  ;;  %v1256_v51 = vmax.f32 %v15950_v59, 0.0  ;;  %v1165_v56 = vadd.f32 %v15911_v10, %v17465_v9  ;;  %v1157_v8 = vadd.f32 %v15911_v10, %v17466_v13 }
 0x4a7   : > { %v15982_v48 = vadd.f32 %v15911_v10, %v17467_v37  ;;  %v15986_v45 = vadd.f32 %v15911_v10, %v17468_v44  ;;  %v10133_v35 = vunpack.i.h.bf16 %v15900_v41  ;;  %v10132_v18 = vunpack.i.l.bf16 %v15900_v41  ;;  %p10515_p8 = por %p10514_p7, %p10513_p4 }
 0x4a8   : > { %v7130_v16 = vsel %vm529_vm0, %v1255_v3, %v10128_v6  ;;  %v7129_v25 = vsel %vm529_vm0, %v1254_v40, %v10127_v47  ;;  %v7128_v53 = vsel %vm529_vm0, %v1253_v43, %v10123_v7  ;;  %v7127_v50 = vsel %vm529_vm0, %v1252_v52, %v10122_v14 }
 0x4a9   : > { %v7161_v63 = vsel %vm2338_vm2, %v7129_v25, %v10137_v36  ;;  %v7162_v59 = vsel %vm2338_vm2, %v7130_v16, %v10138_v54  ;;  %v7159_v40 = vsel %vm2338_vm2, %v7127_v50, %v10132_v18  ;;  %v7160_v31 = vsel %vm2338_vm2, %v7128_v53, %v10133_v35  ;;  %p10516_p11 = pnand %p10515_p8, %p10509_p3 }
 0x4aa   : > { %v10143_v2 = vunpack.i.h.bf16 %v15904_v21  ;;  %v1260_v7 = vmax.f32 %v15986_v45, 0.0  ;;  %v10152_v47 = vunpack.i.l.bf16 %v15917_v23  ;;  %v10163_v45 = vunpack.i.h.bf16 %v15939_v29 }
 0x4ab   : > { %v10168_v18 = vunpack.i.h.bf16 %v15937_v20 }
 0x4bb   : > { %v10171_v11 = vpop.permute.xlu1 %10170 }
 0x4bc   : > { %v10173_v30 = vunpack.i.h.bf16 %v10171_v11  ;;  %v10172_v38 = vunpack.i.l.bf16 %v10171_v11  ;;  %v10176_v1 = vpop.permute.xlu0 %10175 }
 0x4bd   : > { %v10178_v27 = vunpack.i.h.bf16 %v10176_v1  ;;  %v10177_v4 = vunpack.i.l.bf16 %v10176_v1  ;;  %v10157_v1 = vunpack.i.l.bf16 %v15906_v0 }
 0x4be   : > { %v7190_v19 = vsel %vm2371_vm3, %v7158_v5, %v10173_v30  ;;  %v7189_v28 = vsel %vm2371_vm3, %v7157_v22, %v10172_v38  ;;  %v10148_v30 = vunpack.i.h.bf16 %v15902_v46  ;;  %v10147_v38 = vunpack.i.l.bf16 %v15902_v46 }
 0x4bf   : > { %v7220_v62 = vpack.c.bf16 %v7190_v19, %v7189_v28  ;;  %v15963_v55 = vpop.permute.xlu1 %10185  ;;  %v7187_v26 = vsel %vm2371_vm3, %v7155_v39, %v10177_v4  ;;  %v7188_v42 = vsel %vm2371_vm3, %v7156_v12, %v10178_v27  ;;  %v10142_v5 = vunpack.i.l.bf16 %v15904_v21  ;;  %v17469_v39 = vld [vmem:[#allocation49_spill] sm:$0xff] }
 0x4c0   : > { %v15972_v17 = vpop.permute.xlu0 %10180  ;;  %v7219_v58 = vpack.c.bf16 %v7188_v42, %v7187_v26  ;;  %v10158_v22 = vunpack.i.h.bf16 %v15906_v0  ;;  %v1259_v27 = vmax.f32 %v1165_v56, 0.0  ;;  %v1257_v4 = vmax.f32 %v1157_v8, 0.0 }
 0x4c1   : > { %v1262_v12 = vmax.f32 %v15982_v48, 0.0  ;;  %v1181_v46 = vadd.f32 %v15911_v10, %v17469_v39  ;;  %v10153_v21 = vunpack.i.h.bf16 %v15917_v23  ;;  %v7133_v42 = vsel %vm529_vm0, %v1258_v60, %v10147_v38 }
 0x4c2   : > { %8527 = vmatprep.mubr.bf16.mxu0 %v7219_v58  ;;  %v7134_v26 = vsel %vm529_vm0, %v1259_v27, %v10148_v30  ;;  %v7132_v36 = vsel %vm529_vm0, %v1257_v4, %v10143_v2  ;;  %v7131_v58 = vsel %vm529_vm0, %v1256_v51, %v10142_v5  ;;  %v7165_v9 = vsel %vm2338_vm2, %v7133_v42, %v10157_v1 }
 0x4c3   : > { %v10191_v15 = vpop.permute.xlu1 %10190  ;;  %8528 = vmatmul.mubr.bf16.vlgmr.msra.gmra.mrb[140].mxu0 %v7220_v62  ;;  %v17470_v62 = vld [vmem:[#allocation74_spill] sm:$0xff]  ;;  %v7166_v56 = vsel %vm2338_vm2, %v7134_v26, %v10158_v22  ;;  %v7163_v60 = vsel %vm2338_vm2, %v7131_v58, %v10152_v47  ;;  %v7164_v44 = vsel %vm2338_vm2, %v7132_v36, %v10153_v21  ;;  %v10187_v53 = vunpack.i.l.bf16 %v15963_v55 }
 0x4c4   : > { %v10193_v33 = vunpack.i.h.bf16 %v10191_v15  ;;  %v10192_v61 = vunpack.i.l.bf16 %v10191_v15  ;;  %v10196_v24 = vpop.permute.xlu0 %10195  ;;  %v1173_v6 = vadd.f32 %v15911_v10, %v17470_v62  ;;  %v10167_v15 = vunpack.i.l.bf16 %v15937_v20 }
 0x4c5   : > { %v10198_v34 = vunpack.i.h.bf16 %v10196_v24  ;;  %v10197_v41 = vunpack.i.l.bf16 %v10196_v24  ;;  %v10183_v2 = vunpack.i.h.bf16 %v15972_v17 }
 0x4c6   : > { %v7193_v11 = vsel %vm2371_vm3, %v7161_v63, %v10192_v61  ;;  %v7194_v3 = vsel %vm2371_vm3, %v7162_v59, %v10193_v33  ;;  %v10162_v33 = vunpack.i.l.bf16 %v15939_v29  ;;  %v10188_v61 = vunpack.i.h.bf16 %v15963_v55 }
 0x4c7   : > { %v16001_v43 = vpop.permute.xlu1 %10205  ;;  %v7222_v52 = vpack.c.bf16 %v7194_v3, %v7193_v11  ;;  %v7191_v32 = vsel %vm2371_vm3, %v7159_v40, %v10197_v41  ;;  %v7192_v49 = vsel %vm2371_vm3, %v7160_v31, %v10198_v34  ;;  %v1263_v59 = vmax.f32 %v1181_v46, 0.0  ;;  %v17471_v34 = vld [vmem:[#allocation120_spill] sm:$0xff]  ;;  %v17472_v11 = vld [vmem:[#allocation66_spill] sm:$0xff] }
 0x4c8   : > { %v16010_v19 = vpop.permute.xlu0 %10200  ;;  %v7221_v28 = vpack.c.bf16 %v7192_v49, %v7191_v32  ;;  %v1261_v24 = vmax.f32 %v1173_v6, 0.0  ;;  %v1194_v41 = vadd.f32 %v15911_v10, %v17471_v34  ;;  %v1186_v20 = vadd.f32 %v15911_v10, %v17472_v11  ;;  %v17473_v3 = vld [vmem:[#allocation116_spill] sm:$0xff]  ;;  %v17474_v31 = vld [vmem:[#allocation110_spill] sm:$0xff] }
 0x4c9   : > { %v1197_v40 = vadd.f32 %v15911_v10, %v17473_v3  ;;  %v1189_v29 = vadd.f32 %v15911_v10, %v17474_v31  ;;  %v10182_v55 = vunpack.i.l.bf16 %v15972_v17  ;;  %v7138_v30 = vsel %vm529_vm0, %v1263_v59, %v10168_v18 }
 0x4ca   : > { %8531 = vmatprep.mubr.bf16.mxu0 %v7221_v28  ;;  %v7137_v38 = vsel %vm529_vm0, %v1262_v12, %v10167_v15  ;;  %v7136_v5 = vsel %vm529_vm0, %v1261_v24, %v10163_v45  ;;  %v7135_v22 = vsel %vm529_vm0, %v1260_v7, %v10162_v33  ;;  %v7170_v28 = vsel %vm2338_vm2, %v7138_v30, %v10188_v61  ;;  %v17475_v24 = vld [vmem:[#allocation122_spill] sm:$0xff] }
 0x4cb   : > { %v10211_v0 = vpop.permute.xlu1 %10210  ;;  %8532 = vmatmul.mubr.bf16.gmra.mrb[144].mxu0 %v7222_v52  ;;  %v7169_v1 = vsel %vm2338_vm2, %v7137_v38, %v10187_v53  ;;  %v7167_v12 = vsel %vm2338_vm2, %v7135_v22, %v10182_v55  ;;  %v7168_v62 = vsel %vm2338_vm2, %v7136_v5, %v10183_v2  ;;  %v10208_v6 = vunpack.i.h.bf16 %v16001_v43 }
 0x4cc   : > { %v10213_v14 = vunpack.i.h.bf16 %v10211_v0  ;;  %v10212_v54 = vunpack.i.l.bf16 %v10211_v0  ;;  %v10216_v13 = vpop.permute.xlu0 %10215  ;;  %v10207_v47 = vunpack.i.l.bf16 %v16001_v43  ;;  %v10203_v0 = vunpack.i.h.bf16 %v16010_v19 }
 0x4cd   : > { %v10218_v8 = vunpack.i.h.bf16 %v10216_v13  ;;  %v10217_v23 = vunpack.i.l.bf16 %v10216_v13  ;;  %v1267_v13 = vmax.f32 %v1197_v40, 0.0  ;;  %v1202_v34 = vadd.f32 %v15911_v10, %v17475_v24  ;;  %v17477_v40 = vld [vmem:[#allocation84_spill] sm:$0xff] }
 0x4ce   : > { %v7197_v37 = vsel %vm2371_vm3, %v7165_v9, %v10212_v54  ;;  %v7198_v48 = vsel %vm2371_vm3, %v7166_v56, %v10213_v14  ;;  %v10202_v14 = vunpack.i.l.bf16 %v16010_v19  ;;  %v1266_v56 = vmax.f32 %v1194_v41, 0.0  ;;  %v17476_v41 = vld [vmem:[#allocation85_spill] sm:$0xff] }
 0x4cf   : > { %v16031_v35 = vpop.permute.xlu1 %10225  ;;  %v7224_v51 = vpack.c.bf16 %v7198_v48, %v7197_v37  ;;  %v7195_v16 = vsel %vm2371_vm3, %v7163_v60, %v10217_v23  ;;  %v7196_v25 = vsel %vm2371_vm3, %v7164_v44, %v10218_v8  ;;  %v1264_v8 = vmax.f32 %v1186_v20, 0.0 }
 0x4d0   : > { %v16040_v50 = vpop.permute.xlu0 %10220  ;;  %v7223_v63 = vpack.c.bf16 %v7196_v25, %v7195_v16  ;;  %v10228_v54 = vunpack.i.h.bf16 %v16031_v35  ;;  %v10227_v36 = vunpack.i.l.bf16 %v16031_v35  ;;  %v1265_v23 = vmax.f32 %v1189_v29, 0.0  ;;  %v17478_v29 = vld [vmem:[#allocation61_spill] sm:$0xff] }
 0x4d1   : > { %v10223_v43 = vunpack.i.h.bf16 %v16040_v50  ;;  %v10222_v37 = vunpack.i.l.bf16 %v16040_v50  ;;  %v7142_v60 = vsel %vm529_vm0, %v1267_v13, %v10208_v6  ;;  %v7141_v19 = vsel %vm529_vm0, %v1266_v56, %v10207_v47 }
 0x4d2   : > { %8535 = vmatprep.mubr.bf16.mxu0 %v7223_v63  ;;  %v7140_v35 = vsel %vm529_vm0, %v1265_v23, %v10203_v0  ;;  %v7173_v18 = vsel %vm2338_vm2, %v7141_v19, %v10227_v36  ;;  %v7174_v15 = vsel %vm2338_vm2, %v7142_v60, %v10228_v54  ;;  %v1205_v11 = vadd.f32 %v15911_v10, %v17476_v41  ;;  %v17479_v60 = vld [vmem:[#allocation127_spill] sm:$0xff] }
 0x4d3   : > { %v10231_v52 = vpop.permute.xlu1 %10230  ;;  %8536 = vmatmul.mubr.bf16.gmra.mrb[148].mxu0 %v7224_v51  ;;  %v7139_v51 = vsel %vm529_vm0, %v1264_v8, %v10202_v14  ;;  %v7172_v63 = vsel %vm2338_vm2, %v7140_v35, %v10223_v43  ;;  %v1210_v31 = vadd.f32 %v15911_v10, %v17477_v40  ;;  %v1213_v2 = vadd.f32 %v15911_v10, %v17478_v29 }
 0x4d4   : > { %v10233_v32 = vunpack.i.h.bf16 %v10231_v52  ;;  %v10232_v49 = vunpack.i.l.bf16 %v10231_v52  ;;  %v10236_v27 = vpop.permute.xlu0 %10235  ;;  %v7171_v50 = vsel %vm2338_vm2, %v7139_v51, %v10222_v37  ;;  %v1218_v19 = vadd.f32 %v15911_v10, %v17479_v60 }
 0x4d5   : > { %v10238_v4 = vunpack.i.h.bf16 %v10236_v27  ;;  %v10237_v17 = vunpack.i.l.bf16 %v10236_v27  ;;  %v1269_v27 = vmax.f32 %v1205_v11, 0.0 }
 0x4d6   : > { %v7201_v39 = vsel %vm2371_vm3, %v7169_v1, %v10232_v49  ;;  %v7202_v46 = vsel %vm2371_vm3, %v7170_v28, %v10233_v32  ;;  %v1268_v28 = vmax.f32 %v1202_v34, 0.0 }
 0x4d7   : > { %v16063_v21 = vpop.permute.xlu1 %10245  ;;  %v7226_v7 = vpack.c.bf16 %v7202_v46, %v7201_v39  ;;  %v7199_v26 = vsel %vm2371_vm3, %v7167_v12, %v10237_v17  ;;  %v7200_v42 = vsel %vm2371_vm3, %v7168_v62, %v10238_v4  ;;  %v1270_v4 = vmax.f32 %v1210_v31, 0.0 }
 0x4d8   : > { %v10241_v58 = vpop.permute.xlu0 %10240  ;;  %v7225_v9 = vpack.c.bf16 %v7200_v42, %v7199_v26  ;;  %v10248_v49 = vunpack.i.h.bf16 %v16063_v21  ;;  %v10247_v5 = vunpack.i.l.bf16 %v16063_v21  ;;  %v1271_v17 = vmax.f32 %v1213_v2, 0.0 }
 0x4d9   : > { %v10243_v30 = vunpack.i.h.bf16 %v10241_v58  ;;  %v10242_v38 = vunpack.i.l.bf16 %v10241_v58 }
 0x4da   : > { %8539 = vmatprep.mubr.bf16.mxu0 %v7225_v9  ;;  %v7146_v0 = vsel %vm529_vm0, %v1271_v17, %v10248_v49  ;;  %v7145_v21 = vsel %vm529_vm0, %v1270_v4, %v10247_v5 }
 0x4db   : > { %v10251_v48 = vpop.permute.xlu1 %10250  ;;  %8540 = vmatmul.mubr.bf16.gmra.mrb[152].mxu0 %v7226_v7  ;;  %v7144_v62 = vsel %vm529_vm0, %v1269_v27, %v10243_v30  ;;  %v7143_v6 = vsel %vm529_vm0, %v1268_v28, %v10242_v38  ;;  %v17482_v30 = vld [vmem:[#allocation141_spill] sm:$0xff] }
 0x4dc   : > { %v10253_v44 = vunpack.i.h.bf16 %v10251_v48  ;;  %v10252_v45 = vunpack.i.l.bf16 %v10251_v48  ;;  %v10256_v16 = vpop.permute.xlu0 %10255  ;;  %v1275_v38 = vmax.f32 %v17482_v30, 0.0 }
 0x4dd   : > { %v10258_v25 = vunpack.i.h.bf16 %v10256_v16  ;;  %v10257_v33 = vunpack.i.l.bf16 %v10256_v16 }
 0x4de   : > { %v7205_v61 = vsel %vm2371_vm3, %v7173_v18, %v10252_v45  ;;  %v7206_v53 = vsel %vm2371_vm3, %v7174_v15, %v10253_v44  ;;  %v17480_v44 = vld [vmem:[#allocation129_spill] sm:$0xff] }
 0x4df   : > { %v7228_v59 = vpack.c.bf16 %v7206_v53, %v7205_v61  ;;  %v7203_v20 = vsel %vm2371_vm3, %v7171_v50, %v10257_v33  ;;  %v7204_v3 = vsel %vm2371_vm3, %v7172_v63, %v10258_v25  ;;  %v10266_v32 = vpop.permute.xlu1 %10265  ;;  %v1221_v45 = vadd.f32 %v15911_v10, %v17480_v44 }
 0x4e0   : > { %v10261_v55 = vpop.permute.xlu0 %10260  ;;  %v7227_v52 = vpack.c.bf16 %v7204_v3, %v7203_v20  ;;  %v10268_v39 = vunpack.i.h.bf16 %v10266_v32  ;;  %v10267_v46 = vunpack.i.l.bf16 %v10266_v32  ;;  %v1272_v25 = vmax.f32 %v1218_v19, 0.0 }
 0x4e1   : > { %v10263_v22 = vunpack.i.h.bf16 %v10261_v55  ;;  %v10262_v1 = vunpack.i.l.bf16 %v10261_v55  ;;  %v1273_v33 = vmax.f32 %v1221_v45, 0.0  ;;  %v17481_v55 = vld [vmem:[#allocation135_spill] sm:$0xff] }
 0x4e2   : > { %8543 = vmatprep.mubr.bf16.mxu0 %v7227_v52  ;;  %v7177_v56 = vsel %vm2338_vm2, %v7145_v21, %v10267_v46  ;;  %v7178_v13 = vsel %vm2338_vm2, %v7146_v0, %v10268_v39  ;;  %v1274_v52 = vmax.f32 %v17481_v55, 0.0  ;;  %v17483_v0 = vld [vmem:[#allocation145_spill] sm:$0xff] }
 0x4e3   : > { %8544 = vmatmul.mubr.bf16.gmra.mrb[156].mxu0 %v7228_v59  ;;  %v7175_v26 = vsel %vm2338_vm2, %v7143_v6, %v10262_v1  ;;  %v7176_v42 = vsel %vm2338_vm2, %v7144_v62, %v10263_v22  ;;  %v1276_v21 = vmax.f32 %v17483_v0, 0.0 }
 0x4e4   : > { %v10276_v12 = vpop.permute.xlu0 %10275 }
 0x4e5   : > { %v10278_v7 = vunpack.i.h.bf16 %v10276_v12  ;;  %v10277_v47 = vunpack.i.l.bf16 %v10276_v12  ;;  %v10271_v14 = vpop.permute.xlu1 %10270 }
 0x4e6   : > { %v10273_v54 = vunpack.i.h.bf16 %v10271_v14  ;;  %v10272_v36 = vunpack.i.l.bf16 %v10271_v14 }
 0x4e7   : > { %v7207_v58 = vsel %vm2371_vm3, %v7175_v26, %v10277_v47  ;;  %v7208_v9 = vsel %vm2371_vm3, %v7176_v42, %v10278_v7  ;;  %v17484_v26 = vld [vmem:[#allocation149_spill] sm:$0xff] }
 0x4e8   : > { %v7229_v8 = vpack.c.bf16 %v7208_v9, %v7207_v58  ;;  %v10281_v23 = vpop.permute.xlu0 %10280  ;;  %v7209_v43 = vsel %vm2371_vm3, %v7177_v56, %v10272_v36  ;;  %v7210_v37 = vsel %vm2371_vm3, %v7178_v13, %v10273_v54  ;;  %v1277_v42 = vmax.f32 %v17484_v26, 0.0 }
 0x4e9   : > { %v7230_v48 = vpack.c.bf16 %v7210_v37, %v7209_v43  ;;  %v10283_v51 = vunpack.i.h.bf16 %v10281_v23  ;;  %v10282_v18 = vunpack.i.l.bf16 %v10281_v23  ;;  %v10286_v63 = vpop.permute.xlu1 %10285 }
 0x4ea   : > { %8547 = vmatprep.mubr.bf16.mxu0 %v7229_v8  ;;  %v10288_v40 = vunpack.i.h.bf16 %v10286_v63  ;;  %v10287_v31 = vunpack.i.l.bf16 %v10286_v63 }
 0x4eb   : > { %8548 = vmatmul.mubr.bf16.gmra.mrb[160].mxu0 %v7230_v48  ;;  %v7148_v53 = vsel %vm529_vm0, %v1273_v33, %v10283_v51  ;;  %v7147_v50 = vsel %vm529_vm0, %v1272_v25, %v10282_v18  ;;  %v17486_v18 = vld [vmem:[#allocation148_spill] sm:$0xff] }
 0x4ec   : > { %v10291_v35 = vpop.permute.xlu0 %10290  ;;  %v7150_v49 = vsel %vm529_vm0, %v1275_v38, %v10288_v40  ;;  %v7149_v5 = vsel %vm529_vm0, %v1274_v52, %v10287_v31  ;;  %v16148_v40 = vld [vmem:[%s16277_s13] ss:$0 sm:$0xff] }
 0x4ed   : > { %v10293_v15 = vunpack.i.h.bf16 %v10291_v35  ;;  %v10292_v16 = vunpack.i.l.bf16 %v10291_v35  ;;  %v10296_v3 = vpop.permute.xlu1 %10295  ;;  %v17485_v35 = vld [vmem:[#allocation143_spill] sm:$0xff] }
 0x4ee   : > { %v10298_v29 = vunpack.i.h.bf16 %v10296_v3  ;;  %v10297_v2 = vunpack.i.l.bf16 %v10296_v3  ;;  %v1278_v51 = vmax.f32 %v17485_v35, 0.0 }
 0x4ef   : > { %v7179_v34 = vsel %vm2338_vm2, %v7147_v50, %v10292_v16  ;;  %v7180_v41 = vsel %vm2338_vm2, %v7148_v53, %v10293_v15  ;;  %v1279_v15 = vmax.f32 %v17486_v18, 0.0 }
 0x4f0   : > { %v10301_v61 = vpop.permute.xlu0 %10300  ;;  %v7181_v27 = vsel %vm2338_vm2, %v7149_v5, %v10297_v2  ;;  %v7182_v4 = vsel %vm2338_vm2, %v7150_v49, %v10298_v29 }
 0x4f1   : > { %v10303_v59 = vunpack.i.h.bf16 %v10301_v61  ;;  %v10302_v24 = vunpack.i.l.bf16 %v10301_v61 }
 0x4f3   : > { %v7211_v10 = vsel %vm2371_vm3, %v7179_v34, %v10302_v24  ;;  %v7212_v11 = vsel %vm2371_vm3, %v7180_v41, %v10303_v59  ;;  %v7328_v41 = vlaneseq }
 0x4f4   : > { %v7231_v20 = vpack.c.bf16 %v7212_v11, %v7211_v10  ;;  %v10311_v22 = vpop.permute.xlu0 %10310 }
 0x4f5   : > { %v10313_v62 = vunpack.i.h.bf16 %v10311_v22  ;;  %v10312_v6 = vunpack.i.l.bf16 %v10311_v22  ;;  %v7329_v10 = vshrl.u32 %v7328_v41, 7 }
 0x4f6   : > { %8551 = vmatprep.mubr.bf16.mxu0 %v7231_v20 }
 0x4f7   : > { %v7152_v54 = vsel %vm529_vm0, %v1277_v42, %v10313_v62  ;;  %v7151_v36 = vsel %vm529_vm0, %v1276_v21, %v10312_v6  ;;  %v7330_v11 = vsub.s32 0, %v7329_v10 }
 0x4f8   : > { %v10321_v12 = vpop.permute.xlu0 %10320 }
 0x4f9   : > { %v10323_v7 = vunpack.i.h.bf16 %v10321_v12  ;;  %v10322_v47 = vunpack.i.l.bf16 %v10321_v12  ;;  %v16143_v20 = vrot.slane %v15874_v57, %v7330_v11 }
 0x4fb   : > { %v7183_v56 = vsel %vm2338_vm2, %v7151_v36, %v10322_v47  ;;  %v7184_v13 = vsel %vm2338_vm2, %v7152_v54, %v10323_v7 }
 0x4fd   : > { %v10306_v32 = vpop.permute.xlu1 %10305 }
 0x4fe   : > { %v10308_v1 = vunpack.i.h.bf16 %v10306_v32  ;;  %v10307_v28 = vunpack.i.l.bf16 %v10306_v32 }
 0x500   : > { %v7213_v17 = vsel %vm2371_vm3, %v7181_v27, %v10307_v28  ;;  %v7214_v39 = vsel %vm2371_vm3, %v7182_v4, %v10308_v1 }
 0x501   : > { %v7232_v46 = vpack.c.bf16 %v7214_v39, %v7213_v17  ;;  %v10316_v8 = vpop.permute.xlu1 %10315 }
 0x502   : > { %v10318_v60 = vunpack.i.h.bf16 %v10316_v8  ;;  %v10317_v19 = vunpack.i.l.bf16 %v10316_v8 }
 0x503   : > { %8552 = vmatmul.mubr.bf16.gmra.mrb[164].mxu0 %v7232_v46 }
 0x504   : > { %v7154_v25 = vsel %vm529_vm0, %v1279_v15, %v10318_v60  ;;  %v7153_v33 = vsel %vm529_vm0, %v1278_v51, %v10317_v19 }
 0x505   : > { %v10326_v48 = vpop.permute.xlu1 %10325 }
 0x506   : > { %v10328_v44 = vunpack.i.h.bf16 %v10326_v48  ;;  %v10327_v45 = vunpack.i.l.bf16 %v10326_v48 }
 0x508   : > { %v10331_v14 = vpop.permute.xlu0 %10330  ;;  %v7185_v50 = vsel %vm2338_vm2, %v7153_v33, %v10327_v45  ;;  %v7186_v63 = vsel %vm2338_vm2, %v7154_v25, %v10328_v44 }
 0x509   : > { %v10333_v58 = vunpack.i.h.bf16 %v10331_v14  ;;  %v10332_v9 = vunpack.i.l.bf16 %v10331_v14 }
 0x50b   : > { %v7215_v23 = vsel %vm2371_vm3, %v7183_v56, %v10332_v9  ;;  %v7216_v43 = vsel %vm2371_vm3, %v7184_v13, %v10333_v58 }
 0x50c   : > { %v7233_v37 = vpack.c.bf16 %v7216_v43, %v7215_v23 }
 0x50e   : > { %8555 = vmatprep.mubr.bf16.mxu0 %v7233_v37 }
 0x516   : > { %v10336_v16 = vpop.permute.xlu1 %10335 }
 0x517   : > { %v10338_v61 = vunpack.i.h.bf16 %v10336_v16  ;;  %v10337_v53 = vunpack.i.l.bf16 %v10336_v16 }
 0x519   : > { %v7217_v59 = vsel %vm2371_vm3, %v7185_v50, %v10337_v53  ;;  %v7218_v24 = vsel %vm2371_vm3, %v7186_v63, %v10338_v61 }
 0x51a   : > { %v7234_v34 = vpack.c.bf16 %v7218_v24, %v7217_v59 }
 0x51c   : > { %8556 = vmatmul.mubr.bf16.gmra.mrb[168].mxu0 %v7234_v34 }
 0x596   : > { %v8529_v3 = vpop.f32.mrb[140].mxu0 }
 0x597   : > { %v7414_v31 = vpop.f32.mrb[141].mxu0  ;;  %v7423_v38 = vadd.f32 %v8529_v3, %v16143_v20 }
 0x598   : > { %v7415_v29 = vadd.f32 %v7414_v31, %v16143_v20  ;;  %v8530_v2 = vpop.f32.mrb[142].mxu0 }
 0x599   : > { %v7417_v55 = vpop.f32.mrb[143].mxu0  ;;  %v7550_v1 = vadd.f32 %v16148_v40, %v7423_v38  ;;  %v7426_v28 = vadd.f32 %v8530_v2, %v16143_v20 }
 0x59a   : > { %v7548_v52 = vadd.f32 %v16148_v40, %v7415_v29  ;;  %v7418_v30 = vadd.f32 %v7417_v55, %v16143_v20 }
 0x59b   : > { %v7551_v27 = vadd.f32 %v16148_v40, %v7426_v28 }
 0x59c   : > { %7580 = vxpose.xlu0.b32.start [1/16] (narrow) %v7548_v52, 32  ;;  %v7549_v57 = vadd.f32 %v16148_v40, %v7418_v30 }
 0x59e   : > { %v8533_v32 = vpop.f32.mrb[144].mxu0 }
 0x59f   : > { %v7430_v49 = vpop.f32.mrb[145].mxu0  ;;  %v7439_v7 = vadd.f32 %v8533_v32, %v16143_v20 }
 0x5a0   : > { %7581 = vxpose.xlu0.b32.cont [2/16] (narrow) %v7549_v57, 32  ;;  %v8534_v5 = vpop.f32.mrb[146].mxu0  ;;  %v7431_v4 = vadd.f32 %v7430_v49, %v16143_v20 }
 0x5a1   : > { %v7433_v22 = vpop.f32.mrb[147].mxu0  ;;  %v7554_v14 = vadd.f32 %v16148_v40, %v7439_v7  ;;  %v7442_v54 = vadd.f32 %v8534_v5, %v16143_v20 }
 0x5a2   : > { %v7552_v62 = vadd.f32 %v16148_v40, %v7431_v4  ;;  %v7434_v6 = vadd.f32 %v7433_v22, %v16143_v20 }
 0x5a3   : > { %v7555_v36 = vadd.f32 %v16148_v40, %v7442_v54 }
 0x5a4   : > { %7582 = vxpose.xlu0.b32.cont [3/16] (narrow) %v7550_v1, 32  ;;  %v7553_v47 = vadd.f32 %v16148_v40, %v7434_v6 }
 0x5a6   : > { %v8537_v17 = vpop.f32.mrb[148].mxu0 }
 0x5a7   : > { %v7446_v39 = vpop.f32.mrb[149].mxu0  ;;  %v7455_v19 = vadd.f32 %v8537_v17, %v16143_v20 }
 0x5a8   : > { %7583 = vxpose.xlu0.b32.cont [4/16] (narrow) %v7551_v27, 32  ;;  %v8538_v46 = vpop.f32.mrb[150].mxu0  ;;  %v7447_v58 = vadd.f32 %v7446_v39, %v16143_v20 }
 0x5a9   : > { %v7449_v12 = vpop.f32.mrb[151].mxu0  ;;  %v7558_v16 = vadd.f32 %v16148_v40, %v7455_v19  ;;  %v7458_v25 = vadd.f32 %v8538_v46, %v16143_v20 }
 0x5aa   : > { %v7556_v43 = vadd.f32 %v16148_v40, %v7447_v58  ;;  %v7450_v37 = vadd.f32 %v7449_v12, %v16143_v20 }
 0x5ab   : > { %v7559_v50 = vadd.f32 %v16148_v40, %v7458_v25 }
 0x5ac   : > { %7584 = vxpose.xlu0.b32.cont [5/16] (narrow) %v7552_v62, 32  ;;  %v7557_v44 = vadd.f32 %v16148_v40, %v7450_v37 }
 0x5ae   : > { %v8541_v0 = vpop.f32.mrb[152].mxu0 }
 0x5af   : > { %v7462_v21 = vpop.f32.mrb[153].mxu0  ;;  %v7471_v3 = vadd.f32 %v8541_v0, %v16143_v20 }
 0x5b0   : > { %v8542_v26 = vpop.f32.mrb[154].mxu0  ;;  %7585 = vxpose.xlu0.b32.cont [6/16] (narrow) %v7553_v47, 32  ;;  %v7463_v63 = vadd.f32 %v7462_v21, %v16143_v20 }
 0x5b1   : > { %v7465_v42 = vpop.f32.mrb[155].mxu0  ;;  %v7562_v55 = vadd.f32 %v16148_v40, %v7471_v3  ;;  %v7474_v52 = vadd.f32 %v8542_v26, %v16143_v20 }
 0x5b2   : > { %v7560_v34 = vadd.f32 %v16148_v40, %v7463_v63  ;;  %v7466_v41 = vadd.f32 %v7465_v42, %v16143_v20 }
 0x5b3   : > { %v7563_v57 = vadd.f32 %v16148_v40, %v7474_v52 }
 0x5b4   : > { %7586 = vxpose.xlu0.b32.cont [7/16] (narrow) %v7554_v14, 32  ;;  %v7561_v31 = vadd.f32 %v16148_v40, %v7466_v41 }
 0x5b6   : > { %v8545_v9 = vpop.f32.mrb[156].mxu0 }
 0x5b7   : > { %v7478_v56 = vpop.f32.mrb[157].mxu0  ;;  %v7487_v45 = vadd.f32 %v8545_v9, %v16143_v20 }
 0x5b8   : > { %v7479_v13 = vadd.f32 %v7478_v56, %v16143_v20  ;;  %v8546_v8 = vpop.f32.mrb[158].mxu0  ;;  %7587 = vxpose.xlu0.b32.cont [8/16] (narrow) %v7555_v36, 32 }
 0x5b9   : > { %v7481_v23 = vpop.f32.mrb[159].mxu0  ;;  %v7566_v33 = vadd.f32 %v16148_v40, %v7487_v45  ;;  %v7490_v61 = vadd.f32 %v8546_v8, %v16143_v20 }
 0x5ba   : > { %v7564_v48 = vadd.f32 %v16148_v40, %v7479_v13  ;;  %v7482_v60 = vadd.f32 %v7481_v23, %v16143_v20 }
 0x5bb   : > { %v7567_v59 = vadd.f32 %v16148_v40, %v7490_v61 }
 0x5bc   : > { %7612 = vxpose.xlu1.b32.start [1/16] (narrow) %v7564_v48, 32  ;;  %7588 = vxpose.xlu0.b32.cont [9/16] (narrow) %v7556_v43, 32  ;;  %v7565_v35 = vadd.f32 %v16148_v40, %v7482_v60 }
 0x5be   : > { %v8549_v51 = vpop.f32.mrb[160].mxu0 }
 0x5bf   : > { %v7494_v18 = vpop.f32.mrb[161].mxu0  ;;  %v7503_v29 = vadd.f32 %v8549_v51, %v16143_v20 }
 0x5c0   : > { %7613 = vxpose.xlu1.b32.cont [2/16] (narrow) %v7565_v35, 32  ;;  %7589 = vxpose.xlu0.b32.cont [10/16] (narrow) %v7557_v44, 32  ;;  %v8550_v15 = vpop.f32.mrb[162].mxu0  ;;  %v7495_v24 = vadd.f32 %v7494_v18, %v16143_v20 }
 0x5c1   : > { %v7497_v53 = vpop.f32.mrb[163].mxu0  ;;  %v7570_v30 = vadd.f32 %v16148_v40, %v7503_v29  ;;  %v7506_v38 = vadd.f32 %v8550_v15, %v16143_v20 }
 0x5c2   : > { %v7568_v10 = vadd.f32 %v16148_v40, %v7495_v24  ;;  %v7498_v11 = vadd.f32 %v7497_v53, %v16143_v20 }
 0x5c3   : > { %v7571_v32 = vadd.f32 %v16148_v40, %v7506_v38 }
 0x5c4   : > { %7614 = vxpose.xlu1.b32.cont [3/16] (narrow) %v7566_v33, 32  ;;  %7590 = vxpose.xlu0.b32.cont [11/16] (narrow) %v7558_v16, 32  ;;  %v7569_v2 = vadd.f32 %v16148_v40, %v7498_v11 }
 0x5c8   : > { %7615 = vxpose.xlu1.b32.cont [4/16] (narrow) %v7567_v59, 32  ;;  %7591 = vxpose.xlu0.b32.cont [12/16] (narrow) %v7559_v50, 32 }
 0x5cc   : > { %7616 = vxpose.xlu1.b32.cont [5/16] (narrow) %v7568_v10, 32  ;;  %7592 = vxpose.xlu0.b32.cont [13/16] (narrow) %v7560_v34, 32 }
 0x5d0   : > { %7617 = vxpose.xlu1.b32.cont [6/16] (narrow) %v7569_v2, 32  ;;  %7593 = vxpose.xlu0.b32.cont [14/16] (narrow) %v7561_v31, 32 }
 0x5d4   : > { %7618 = vxpose.xlu1.b32.cont [7/16] (narrow) %v7570_v30, 32  ;;  %7594 = vxpose.xlu0.b32.cont [15/16] (narrow) %v7562_v55, 32 }
 0x5d6   : > { %v8553_v49 = vpop.f32.mrb[164].mxu0 }
 0x5d7   : > { %v7510_v5 = vpop.f32.mrb[165].mxu0  ;;  %v7519_v17 = vadd.f32 %v8553_v49, %v16143_v20 }
 0x5d8   : > { %7619 = vxpose.xlu1.b32.cont [8/16] (narrow) %v7571_v32, 32  ;;  %7595 = vxpose.xlu0.b32.end [16/16] (narrow) %v7563_v57, 32  ;;  %v7511_v22 = vadd.f32 %v7510_v5, %v16143_v20  ;;  %v8554_v1 = vpop.f32.mrb[166].mxu0 }
 0x5d9   : > { %v7513_v28 = vpop.f32.mrb[167].mxu0  ;;  %v7574_v46 = vadd.f32 %v16148_v40, %v7519_v17  ;;  %v7522_v12 = vadd.f32 %v8554_v1, %v16143_v20 }
 0x5da   : > { %v7572_v27 = vadd.f32 %v16148_v40, %v7511_v22  ;;  %v7514_v4 = vadd.f32 %v7513_v28, %v16143_v20 }
 0x5db   : > { %v7575_v62 = vadd.f32 %v16148_v40, %v7522_v12 }
 0x5dc   : > { %7620 = vxpose.xlu1.b32.cont [9/16] (narrow) %v7572_v27, 32  ;;  %v7573_v39 = vadd.f32 %v16148_v40, %v7514_v4 }
 0x5e0   : > { %7621 = vxpose.xlu1.b32.cont [10/16] (narrow) %v7573_v39, 32 }
 0x5e4   : > { %7622 = vxpose.xlu1.b32.cont [11/16] (narrow) %v7574_v46, 32 }
 0x5e8   : > { %7623 = vxpose.xlu1.b32.cont [12/16] (narrow) %v7575_v62, 32 }
 0x5ef   : > { %v8557_v6 = vpop.f32.mrb[168].mxu0 }
 0x5f0   : > { %v7526_v7 = vpop.f32.mrb[169].mxu0  ;;  %v7535_v14 = vadd.f32 %v8557_v6, %v16143_v20 }
 0x5f1   : > { %v7527_v47 = vadd.f32 %v7526_v7, %v16143_v20  ;;  %v8558_v0 = vpop.f32.mrb[170].mxu0 }
 0x5f2   : > { %v7529_v21 = vpop.f32.mrb[171].mxu0  ;;  %v7578_v36 = vadd.f32 %v16148_v40, %v7535_v14  ;;  %v7538_v58 = vadd.f32 %v8558_v0, %v16143_v20 }
 0x5f3   : > { %v7576_v26 = vadd.f32 %v16148_v40, %v7527_v47  ;;  %v7530_v42 = vadd.f32 %v7529_v21, %v16143_v20 }
 0x5f4   : > { %v7579_v9 = vadd.f32 %v16148_v40, %v7538_v58 }
 0x5f5   : > { %7624 = vxpose.xlu1.b32.cont [13/16] (narrow) %v7576_v26, 32  ;;  %v7577_v54 = vadd.f32 %v16148_v40, %v7530_v42 }
 0x5f9   : > { %7625 = vxpose.xlu1.b32.cont [14/16] (narrow) %v7577_v54, 32 }
 0x5fd   : > { %7626 = vxpose.xlu1.b32.cont [15/16] (narrow) %v7578_v36, 32 }
 0x601   : > { %7627 = vxpose.xlu1.b32.end [16/16] (narrow) %v7579_v9, 32 }
 0x61c   : > { %v7596_v56 = vpop.trf.xlu0 }
 0x61d   : > { %7644 = vst [vmem:[%s490_s14] sm:$0xff] %v7596_v56 }
 0x620   : > { %v7597_v13 = vpop.trf.xlu0 }
 0x621   : > { %7646 = vst [vmem:[%s490_s14 + $0x10] sm:$0xff] %v7597_v13 }
 0x624   : > { %v7598_v8 = vpop.trf.xlu0 }
 0x625   : > { %7648 = vst [vmem:[%s490_s14 + $0x20] sm:$0xff] %v7598_v8 }
 0x628   : > { %v7599_v23 = vpop.trf.xlu0 }
 0x629   : > { %7650 = vst [vmem:[%s490_s14 + $0x30] sm:$0xff] %v7599_v23 }
 0x645   : > { %v7628_v43 = vpop.trf.xlu1 }
 0x646   : > { %7645 = vst [vmem:[%s490_s14 + $0x8] sm:$0xff] %v7628_v43 }
 0x649   : > { %v7629_v20 = vpop.trf.xlu1 }
 0x64a   : > { %7647 = vst [vmem:[%s490_s14 + $0x18] sm:$0xff] %v7629_v20 }
 0x64d   : > { %v7630_v40 = vpop.trf.xlu1 }
 0x64e   : > { %7649 = vst [vmem:[%s490_s14 + $0x28] sm:$0xff] %v7630_v40 }
 0x651   : > { %v7631_v37 = vpop.trf.xlu1 }
 0x652   : > { %7651 = vst [vmem:[%s490_s14 + $0x38] sm:$0xff] %v7631_v37 }
 0x653   : > { %10519 = shalt.err (!%p10516_p11)
}
 0x654   : > { %s10520_s26 = scalar_lea.hbm %s16221_s22, 1024  ;;  %s10524_s14 = scalar_lea.hbm %s17488_s20, 2048 }
 0x655   : > { %p10521_p13 = scmp.ne.s32.totalorder %s16221_s22, %s10520_s26  ;;  %p10525_p6 = scmp.lt.u32.totalorder %s16221_s22, %s17488_s20 }
 0x656   : > { %p10526_p9 = scmp.lt.u32.totalorder %s10524_s14, %s10520_s26  ;;  %p10528_p12 = scmp.lt.u32.totalorder %s10520_s26, %s16221_s22 }
 0x657   : > { %p10522_p0 = pnand %p10521_p13, %p17489_p1 }
 0x658   : > { %p10527_p10 = por %p10526_p9, %p10525_p6 }
 0x659   : > { %p10523_p5 = pneg %p10522_p0 }
 0x65a   : > { %p10529_p2 = por %p10528_p12, %p10527_p10 }
 0x65c   : > { %p10530_p3 = pnand %p10529_p2, %p10523_p5 }
 0x65e   : > { %10533 = shalt.err (!%p10530_p3)
}
 0x65f   : > { %s10591_s28 = smov 256   ;;  %s10592_s15 = smov 16  }
 0x660   : > { %8595 = dma.vmem_to_hbm [thread:$0]  (%p17489_p1), %s16216_s23, 1024, %s16221_s22, %s16223_s29, %s10591_s28, %s10591_s28, %s10592_s15  }
 0x661 PF: > { %s17490_s17 = sld [smem:[#allocation14_spill]]  ;;  %s17491_s24 = sld [smem:[#allocation12_spill]] }
 0x662   : > { %s17492_s21 = sld [smem:[#allocation18_spill]] }
 0x667   : > { %p8612_p4 = scmp.ge.s32.totalorder %s17490_s17, 2  ;;  %s7681_s18 = sand.u32 1, %s17491_s24  }
 0x668   : > { %p17493_p7 = scmp.ne.s32.totalorder %s17492_s21, 0  ;;  %s7682_s26 = scalar_lea.sflag [#allocation5], %s7681_s18 }
 0x66a   : > { %p8605_p8 = pnand %p8612_p4, %p17493_p7 }
 0x66c   : > { %10559 = dma.done.wait (!%p8605_p8), %s7682_s26, 1024  }
 0x66d   : > { %10561 = vsyncadd (!%p8605_p8), %s7682_s26, 4294966272  ;;  %s17494_s16 = sld [smem:[#allocation15_spill]]  ;;  %s17495_s27 = sld [smem:[#allocation13_spill]] }
 0x66e   : > { %s17496_s15 = sld [smem:[#allocation16_spill]]  ;;  %s17497_s29 = smov %s10568_s30 }
 0x673   : > { %p26_p11 = scmp.ge.s32.totalorder %s17494_s16, 4   ;;  %s17498_s30 = smov %s17495_s27 }
 0x675   :  { %28 = sbr.rel (!%p26_p11) target bundleno = 7 (0x7), region = 127 }
 0x67c   :  { %7687 = vsyncpa [#allocation4], 1 }
 0x67d   :  { %7689 = vsyncpa [#allocation4 + $0x1], 1 }
 0x67e   :  { %7690 = vsyncpa [#allocation7], 1 }
 0x67f   :  { %7691 = vsyncpa [#allocation5], 1 }
 0x680   :  { %7693 = vsyncpa [#allocation5 + $0x1], 1 }

</bundles_post_ra>
